<compile_context>
chip_gen: v7x
topology: tpu7x:2x2x1
jax: 0.10.0
libtpu: 0.0.40
codegen_flags: <defaults>
</compile_context>

<pallas_src>
import functools

import jax
import jax.numpy as jnp
from jax.experimental import pallas as pl
from jax.experimental.pallas import tpu as pltpu


# ----------------------------------------------------------------------------
# Fused Pallas kernel: full gradient for B images per grid step
# ----------------------------------------------------------------------------
def _gradient_kernel(x_pad_ref, x_img_ref, y_ref, a_bwd_ref, a_fwd_t_ref,
                     mask_ref, crop_ref, w1_ref, b1_ref, w2_ref, b2_ref,
                     w3_ref, b3_ref, alpha_ref, out_ref,
                     cb1_ref, cb2_ref, stk1_ref, stk_ref,
                     *, B, L, BL, lead, taps, CM):
    f32 = jnp.float32
    bf16 = jnp.bfloat16

    # ---------------- data-fidelity branch (f32 MXU matmuls) -----------------
    x_img = x_img_ref[0]                                                # (B, HW)
    fx = jnp.dot(x_img, a_fwd_t_ref[...], preferred_element_type=f32)   # (B, M)
    resid = fx - y_ref[0]                                               # (B, M)
    bp = jnp.dot(resid, a_bwd_ref[...], preferred_element_type=f32)     # (B, HW)

    mask = mask_ref[...] > 0.5                                          # (1, BL)

    # ------ conv1 (1 -> CM): stack the 25 shifted x windows, one MXU dot -----
    xrow = x_pad_ref[0]                                                 # (1, Wcb)
    for t, d in enumerate(taps):
        s = lead + d
        stk1_ref[t:t + 1, :] = xrow[:, s:s + BL]
    acc = jnp.dot(w1_ref[...], stk1_ref[...], preferred_element_type=f32)
    h1 = jnp.where(mask, jnp.maximum(acc + b1_ref[...], 0.0), 0.0)      # (CM, BL)
    cb1_ref[:, lead:lead + BL] = h1.astype(bf16)          # lane-aligned store

    # ------- conv2 (CM -> CM): one fused K = 25*CM contraction on the MXU ----
    for t, d in enumerate(taps):
        s = lead + d
        stk_ref[t * CM:(t + 1) * CM, :] = cb1_ref[:, s:s + BL]
    acc = jnp.dot(w2_ref[...], stk_ref[...], preferred_element_type=f32)
    h2 = jnp.where(mask, jnp.maximum(acc + b2_ref[...], 0.0), 0.0)      # (CM, BL)
    cb2_ref[:, lead:lead + BL] = h2.astype(bf16)

    # ------- conv3 (CM -> 1): one fused K = 25*CM contraction ----------------
    for t, d in enumerate(taps):
        s = lead + d
        stk_ref[t * CM:(t + 1) * CM, :] = cb2_ref[:, s:s + BL]
    acc = jnp.dot(w3_ref[...], stk_ref[...], preferred_element_type=f32)
    reg = jnp.where(mask, acc + b3_ref[0, 0], 0.0)                      # (1, BL)

    # ------- fused epilogue: MXU crop + alpha*bp, lane-dense 256-wide stores -
    alpha = alpha_ref[0, 0]
    for b in range(B):
        reg_crop = jnp.dot(reg[:, b * L:(b + 1) * L], crop_ref[...],
                           preferred_element_type=f32)                  # (1, HW)
        out_ref[0, b:b + 1, :] = alpha * bp[b:b + 1, :] + reg_crop


def _fused_gradient(x_pad, x_img, y, a_bwd, a_fwd_t, mask, crop,
                    w1, b1, w2, b2, w3, b3, alpha,
                    *, B, L, BL, lead, Wcb, taps, CM, HW, Mm, KK):
    G = x_pad.shape[0]
    kernel = functools.partial(_gradient_kernel, B=B, L=L, BL=BL, lead=lead,
                               taps=taps, CM=CM)
    smem = pl.BlockSpec(memory_space=pltpu.MemorySpace.SMEM)
    return pl.pallas_call(
        kernel,
        out_shape=jax.ShapeDtypeStruct((G, B, HW), jnp.float32),
        grid=(G,),
        in_specs=[
            pl.BlockSpec((1, 1, Wcb), lambda i: (i, 0, 0)),   # x, padded-flat (bf16)
            pl.BlockSpec((1, B, HW), lambda i: (i, 0, 0)),    # x, flat (f32)
            pl.BlockSpec((1, B, Mm), lambda i: (i, 0, 0)),    # y
            pl.BlockSpec((Mm, HW), lambda i: (0, 0)),         # A   (backward op)
            pl.BlockSpec((HW, Mm), lambda i: (0, 0)),         # A^T (forward op)
            pl.BlockSpec((1, BL), lambda i: (0, 0)),          # interior mask
            pl.BlockSpec((L, HW), lambda i: (0, 0)),          # crop matrix
            pl.BlockSpec((CM, KK), lambda i: (0, 0)),         # w1  (CM, KK) bf16
            pl.BlockSpec((CM, 1), lambda i: (0, 0)),          # b1
            pl.BlockSpec((CM, KK * CM), lambda i: (0, 0)),    # w2  (CM, KK*CM) bf16
            pl.BlockSpec((CM, 1), lambda i: (0, 0)),          # b2
            pl.BlockSpec((1, KK * CM), lambda i: (0, 0)),     # w3  (1, KK*CM) bf16
            smem,                                             # b3    (SMEM scalar)
            smem,                                             # alpha (SMEM scalar)
        ],
        out_specs=pl.BlockSpec((1, B, HW), lambda i: (i, 0, 0)),
        scratch_shapes=[
            pltpu.VMEM((CM, Wcb), jnp.bfloat16),        # conv1 out, padded layout
            pltpu.VMEM((CM, Wcb), jnp.bfloat16),        # conv2 out, padded layout
            pltpu.VMEM((KK, BL), jnp.bfloat16),         # conv1 tap stack
            pltpu.VMEM((KK * CM, BL), jnp.bfloat16),    # conv2/conv3 tap stack
        ],
        compiler_params=pltpu.CompilerParams(
            dimension_semantics=("parallel",)),         # grid steps across TCs
    )(x_pad, x_img, y, a_bwd, a_fwd_t, mask, crop,
      w1, b1, w2, b2, w3, b3, alpha)


# ----------------------------------------------------------------------------
# Parameter packing (hoisted out of the forward path)
# ----------------------------------------------------------------------------
def prepare_params(params):
    """One-time packing: conv weights -> fused-tap bf16 matrices
    (w1 -> (CM, KK), w2 -> (CM, KK*CM), w3 -> (1, KK*CM) with contraction
    index t*CM + cin), biases -> (Cout, 1) f32 columns, alpha/b3 -> scalars."""
    w1 = jnp.asarray(params["w1"])
    w2 = jnp.asarray(params["w2"])
    w3 = jnp.asarray(params["w3"])
    cm, _, k, _ = w1.shape
    kk = k * k
    return dict(
        w1=w1.reshape(cm, kk).astype(jnp.bfloat16),
        b1=jnp.reshape(params["b1"], (-1, 1)).astype(jnp.float32),
        w2=jnp.transpose(w2, (0, 2, 3, 1)).reshape(cm, kk * cm).astype(jnp.bfloat16),
        b2=jnp.reshape(params["b2"], (-1, 1)).astype(jnp.float32),
        w3=jnp.transpose(w3, (0, 2, 3, 1)).reshape(1, kk * cm).astype(jnp.bfloat16),
        b3=jnp.reshape(params["b3"], (1, 1)).astype(jnp.float32),
        alpha=jnp.reshape(jnp.asarray(params["alpha"], jnp.float32), (1, 1)),
    )


def _pick_batch_block(n):
    """Largest per-step batch block that keeps >= 2 grid steps (megacore)."""
    for b in (4, 3, 2):
        if n % b == 0 and n // b >= 2:
            return b
    return 1


# ----------------------------------------------------------------------------
# GradientFunction forward (fused)
# ----------------------------------------------------------------------------
def gradient_function(prepared, x_t, y, forward_module, backward_module,
                      batch_block=None):
    """gradient = alpha * backward(forward(x_t) - y) + RegularizationBlock(x_t)."""
    a_fwd = forward_module.A                       # (M, H*W): forward x -> x @ A^T
    a_fwd_t = getattr(forward_module, "AT", a_fwd.T)
    a_bwd = backward_module.A                      # (M, H*W): backward r -> r @ A

    N, C, H, W = x_t.shape
    assert C == 1, "RegularizationBlock is defined for in_channels=1"
    CM, KK = prepared["w1"].shape
    assert prepared["w2"].shape == (CM, KK * CM)
    K = int(round(KK ** 0.5))
    p = K // 2
    Hp, Wp = H + 2 * p, W + 2 * p
    L = Hp * Wp                     # padded-grid size (lane axis inside kernel)
    HW = H * W
    Mm = y.shape[-1]
    assert a_fwd.shape == (Mm, HW) and a_bwd.shape == (Mm, HW)

    B = batch_block if batch_block is not None else _pick_batch_block(N)
    assert N % B == 0
    G = N // B
    BL = B * L
    halo = p * Wp + p                               # max flat tap shift
    lead = ((halo + 127) // 128) * 128              # lane-aligned scratch offset
    tail = lead
    Wcb = lead + BL + tail
    taps = tuple((ky - p) * Wp + (kx - p) for ky in range(K) for kx in range(K))

    # Cheap JAX glue on tiny tensors: flat / padded-flat views, mask, crop mat.
    x32 = x_t.astype(jnp.float32)
    x_img = x32.reshape(G, B, HW)
    xg = jnp.pad(x_t.astype(jnp.bfloat16).reshape(N, H, W),
                 ((0, 0), (p, p), (p, p)))                     # (N, Hp, Wp)
    x_pad = jnp.pad(xg.reshape(G, BL), ((0, 0), (lead, tail)))[:, None, :]

    j = jnp.arange(L)
    ri, ci = j // Wp, j % Wp
    mask1 = ((ri >= p) & (ri < p + H) & (ci >= p) & (ci < p + W)).astype(jnp.float32)
    mask = jnp.tile(mask1, (B,)).reshape(1, BL)

    o_idx = ((jnp.arange(H)[:, None] + p) * Wp
             + (jnp.arange(W)[None, :] + p)).reshape(-1)        # (HW,)
    crop = jnp.zeros((L, HW), jnp.float32).at[o_idx, jnp.arange(HW)].set(1.0)

    grad = _fused_gradient(
        x_pad, x_img, y.astype(jnp.float32).reshape(G, B, Mm),
        a_bwd.astype(jnp.float32), a_fwd_t.astype(jnp.float32), mask, crop,
        prepared["w1"], prepared["b1"], prepared["w2"], prepared["b2"],
        prepared["w3"], prepared["b3"], prepared["alpha"],
        B=B, L=L, BL=BL, lead=lead, Wcb=Wcb, taps=taps,
        CM=CM, HW=HW, Mm=Mm, KK=KK)
    return grad.reshape(N, C, H, W)


# ----------------------------------------------------------------------------
# Synthetic forward/backward operators (passed in at call time, like PyTorch)
# ----------------------------------------------------------------------------
def make_operators(key, H, W, m):
    A = jax.random.normal(key, (m, H * W), jnp.float32) / jnp.sqrt(H * W)
    AT = A.T                                       # hoisted transpose

    def forward_module(x):                         # (N,C,H,W) -> (N,C,m)
        N, C, H_, W_ = x.shape
        return (x.reshape(N * C, H_ * W_) @ AT).reshape(N, C, m)

    def backward_module(r):                        # (N,C,m) -> (N,C,H,W)
        N, C, m_ = r.shape
        return (r.reshape(N * C, m_) @ A).reshape(N, C, H, W)

    forward_module.A, forward_module.AT = A, AT
    backward_module.A = A
    return forward_module, backward_module, A


# ----------------------------------------------------------------------------
# Pure-JAX reference (matches the kernel's precision: bf16 conv operands with
# f32 accumulation; f32 operator matmuls)
# ----------------------------------------------------------------------------
def _ref_gradient(params, x_t, y, A):
    N, C, H, W = x_t.shape
    p = params["w1"].shape[-1] // 2
    x32 = x_t.astype(jnp.float32)
    hi = jax.lax.Precision.HIGHEST
    fx = jnp.matmul(x32.reshape(N * C, H * W), A.T, precision=hi).reshape(N, C, -1)
    r = fx - y.astype(jnp.float32)
    bp = jnp.matmul(r.reshape(N * C, -1), A, precision=hi).reshape(N, C, H, W)

    def conv(x, w, b, relu):
        out = jax.lax.conv_general_dilated(
            x.astype(jnp.bfloat16), w.astype(jnp.bfloat16), (1, 1),
            [(p, p), (p, p)], dimension_numbers=("NCHW", "OIHW", "NCHW"),
            preferred_element_type=jnp.float32)
        out = out + b.reshape(1, -1, 1, 1).astype(jnp.float32)
        return jnp.maximum(out, 0.0) if relu else out

    h = conv(x32, params["w1"], params["b1"], True)
    h = conv(h, params["w2"], params["b2"], True)
    reg = conv(h, params["w3"], params["b3"], False)
    return params["alpha"] * bp + reg


# ----------------------------------------------------------------------------
if __name__ == "__main__":
    key = jax.random.PRNGKey(0)
    keys = jax.random.split(key, 12)

    H, W, K, M_MEAS = 16, 16, 5, 64

    def conv_params(kw, kb, cout, cin):
        w = 0.01 * jax.random.normal(kw, (cout, cin, K, K), jnp.float32)
        bound = 1.0 / jnp.sqrt(cin * K * K)
        b = jax.random.uniform(kb, (cout,), jnp.float32, -bound, bound)
        return w, b

    w1, b1 = conv_params(keys[0], keys[1], 48, 1)
    w2, b2 = conv_params(keys[2], keys[3], 48, 48)
    w3, b3 = conv_params(keys[4], keys[5], 1, 48)
    params = dict(w1=w1, b1=b1, w2=w2, b2=b2, w3=w3, b3=b3,
                  alpha=jnp.float32(0.1))
    prepared = prepare_params(params)              # hoisted packing / transposes

    fwd, bwd, A = make_operators(keys[6], H, W, M_MEAS)

    # Two configs: N=2 exercises B=1 (grid=2), N=8 exercises B=4 (grid=2).
    for N, kx, kn in ((2, keys[7], keys[8]), (8, keys[9], keys[10])):
        x_t = jax.random.normal(kx, (N, 1, H, W), jnp.float32)
        y = fwd(x_t) + 0.05 * jax.random.normal(kn, (N, 1, M_MEAS), jnp.float32)

        grad = gradient_function(prepared, x_t, y, fwd, bwd)
        grad = jax.block_until_ready(grad)

        ref = _ref_gradient(params, x_t, y, A)
        assert grad.shape == (N, 1, H, W)
        err = float(jnp.max(jnp.abs(grad - ref)))
        assert jnp.allclose(grad, ref, rtol=1e-2, atol=5e-3), (
            f"N={N}: mismatch vs reference, max abs err {err}")

    print("KERNEL_OK")
</pallas_src>

<mosaic_0001>
module attributes {stable_mosaic.version = 11 : i64} {
  func.func @_gradient_kernel(%arg0: i32, %arg1: memref<1x1x656xbf16, #tpu.memory_space<vmem>>, %arg2: memref<1x1x256xf32, #tpu.memory_space<vmem>>, %arg3: memref<1x1x64xf32, #tpu.memory_space<vmem>>, %arg4: memref<64x256xf32, #tpu.memory_space<vmem>>, %arg5: memref<256x64xf32, #tpu.memory_space<vmem>>, %arg6: memref<1x400xf32, #tpu.memory_space<vmem>>, %arg7: memref<400x256xf32, #tpu.memory_space<vmem>>, %arg8: memref<48x25xbf16, #tpu.memory_space<vmem>>, %arg9: memref<48x1xf32, #tpu.memory_space<vmem>>, %arg10: memref<48x1200xbf16, #tpu.memory_space<vmem>>, %arg11: memref<48x1xf32, #tpu.memory_space<vmem>>, %arg12: memref<1x1200xbf16, #tpu.memory_space<vmem>>, %arg13: memref<1x1xf32, #tpu.memory_space<smem>>, %arg14: memref<1x1xf32, #tpu.memory_space<smem>>, %arg15: memref<1x1x256xf32, #tpu.memory_space<vmem>>, %arg16: memref<48x656xbf16, #tpu.memory_space<vmem>>, %arg17: memref<48x656xbf16, #tpu.memory_space<vmem>>, %arg18: memref<25x400xbf16, #tpu.memory_space<vmem>>, %arg19: memref<1200x400xbf16, #tpu.memory_space<vmem>>) attributes {dimension_semantics = [#tpu.dimension_semantics<parallel>], iteration_bounds = array<i64: 2>, scalar_prefetch = 0 : i64, scratch_operands = 4 : i64, tpu.core_type = #tpu.core_type<tc>, window_params = [{transform_indices = @transform_0, window_bounds = array<i64: 1, 1, 656>}, {transform_indices = @transform_1, window_bounds = array<i64: 1, 1, 256>}, {transform_indices = @transform_2, window_bounds = array<i64: 1, 1, 64>}, {pipeline_mode = #tpu.pipeline_mode<synchronous>, transform_indices = @transform_3, window_bounds = array<i64: 64, 256>}, {pipeline_mode = #tpu.pipeline_mode<synchronous>, transform_indices = @transform_4, window_bounds = array<i64: 256, 64>}, {pipeline_mode = #tpu.pipeline_mode<synchronous>, transform_indices = @transform_5, window_bounds = array<i64: 1, 400>}, {pipeline_mode = #tpu.pipeline_mode<synchronous>, transform_indices = @transform_6, window_bounds = array<i64: 400, 256>}, {pipeline_mode = #tpu.pipeline_mode<synchronous>, transform_indices = @transform_7, window_bounds = array<i64: 48, 25>}, {pipeline_mode = #tpu.pipeline_mode<synchronous>, transform_indices = @transform_8, window_bounds = array<i64: 48, 1>}, {pipeline_mode = #tpu.pipeline_mode<synchronous>, transform_indices = @transform_9, window_bounds = array<i64: 48, 1200>}, {pipeline_mode = #tpu.pipeline_mode<synchronous>, transform_indices = @transform_10, window_bounds = array<i64: 48, 1>}, {pipeline_mode = #tpu.pipeline_mode<synchronous>, transform_indices = @transform_11, window_bounds = array<i64: 1, 1200>}, {transform_indices = @transform_12, window_bounds = array<i64: 1, 1>}, {transform_indices = @transform_13, window_bounds = array<i64: 1, 1>}, {transform_indices = @transform_14, window_bounds = array<i64: 1, 1, 256>}]} {
    %c0 = arith.constant 0 : index
    %c0_0 = arith.constant 0 : index
    %c0_1 = arith.constant 0 : index
    %0 = vector.load %arg2[%c0, %c0_0, %c0_1] : memref<1x1x256xf32, #tpu.memory_space<vmem>>, vector<1x1x256xf32>
    %1 = vector.shape_cast %0 : vector<1x1x256xf32> to vector<1x256xf32>
    %c0_2 = arith.constant 0 : index
    %c0_3 = arith.constant 0 : index
    %2 = vector.load %arg5[%c0_2, %c0_3] : memref<256x64xf32, #tpu.memory_space<vmem>>, vector<256x64xf32>
    %cst = arith.constant dense<0.000000e+00> : vector<1x64xf32>
    %3 = tpu.matmul %1, %2, %cst {dimension_numbers = #tpu.dot_dimension_numbers<[1], [0], [0], [1], [0, 0, 1, 1], [], []>} : vector<1x256xf32>, vector<256x64xf32>, vector<1x64xf32> -> vector<1x64xf32>
    %c0_4 = arith.constant 0 : index
    %c0_5 = arith.constant 0 : index
    %c0_6 = arith.constant 0 : index
    %4 = vector.load %arg3[%c0_4, %c0_5, %c0_6] : memref<1x1x64xf32, #tpu.memory_space<vmem>>, vector<1x1x64xf32>
    %5 = vector.shape_cast %4 : vector<1x1x64xf32> to vector<1x64xf32>
    %6 = arith.subf %3, %5 : vector<1x64xf32>
    %c0_7 = arith.constant 0 : index
    %c0_8 = arith.constant 0 : index
    %7 = vector.load %arg4[%c0_7, %c0_8] : memref<64x256xf32, #tpu.memory_space<vmem>>, vector<64x256xf32>
    %cst_9 = arith.constant dense<0.000000e+00> : vector<1x256xf32>
    %8 = tpu.matmul %6, %7, %cst_9 {dimension_numbers = #tpu.dot_dimension_numbers<[1], [0], [0], [1], [0, 0, 1, 1], [], []>} : vector<1x64xf32>, vector<64x256xf32>, vector<1x256xf32> -> vector<1x256xf32>
    %c0_10 = arith.constant 0 : index
    %c0_11 = arith.constant 0 : index
    %9 = vector.load %arg6[%c0_10, %c0_11] : memref<1x400xf32, #tpu.memory_space<vmem>>, vector<1x400xf32>
    %cst_12 = arith.constant 5.000000e-01 : f32
    %10 = vector.broadcast %cst_12 : f32 to vector<1x400xf32>
    %11 = arith.cmpf ogt, %9, %10 : vector<1x400xf32>
    %c0_13 = arith.constant 0 : index
    %c0_14 = arith.constant 0 : index
    %c0_15 = arith.constant 0 : index
    %12 = vector.load %arg1[%c0_13, %c0_14, %c0_15] : memref<1x1x656xbf16, #tpu.memory_space<vmem>>, vector<1x1x656xbf16>
    %13 = vector.shape_cast %12 : vector<1x1x656xbf16> to vector<1x656xbf16>
    %14 = vector.extract_strided_slice %13 {offsets = [0, 86], sizes = [1, 400], strides = [1, 1]} : vector<1x656xbf16> to vector<1x400xbf16>
    %c0_16 = arith.constant 0 : index
    %c0_17 = arith.constant 0 : index
    %15 = vector.load %arg18[%c0_16, %c0_17] : memref<25x400xbf16, #tpu.memory_space<vmem>>, vector<1x400xbf16>
    tpu.vector_store %arg18[%c0_16, %c0_17], %14 {strides = array<i32>} : memref<25x400xbf16, #tpu.memory_space<vmem>>, vector<1x400xbf16>,
    %16 = vector.extract_strided_slice %13 {offsets = [0, 87], sizes = [1, 400], strides = [1, 1]} : vector<1x656xbf16> to vector<1x400xbf16>
    %c1 = arith.constant 1 : index
    %c0_18 = arith.constant 0 : index
    %17 = vector.load %arg18[%c1, %c0_18] : memref<25x400xbf16, #tpu.memory_space<vmem>>, vector<1x400xbf16>
    tpu.vector_store %arg18[%c1, %c0_18], %16 {strides = array<i32>} : memref<25x400xbf16, #tpu.memory_space<vmem>>, vector<1x400xbf16>,
    %18 = vector.extract_strided_slice %13 {offsets = [0, 88], sizes = [1, 400], strides = [1, 1]} : vector<1x656xbf16> to vector<1x400xbf16>
    %c2 = arith.constant 2 : index
    %c0_19 = arith.constant 0 : index
    %19 = vector.load %arg18[%c2, %c0_19] : memref<25x400xbf16, #tpu.memory_space<vmem>>, vector<1x400xbf16>
    tpu.vector_store %arg18[%c2, %c0_19], %18 {strides = array<i32>} : memref<25x400xbf16, #tpu.memory_space<vmem>>, vector<1x400xbf16>,
    %20 = vector.extract_strided_slice %13 {offsets = [0, 89], sizes = [1, 400], strides = [1, 1]} : vector<1x656xbf16> to vector<1x400xbf16>
    %c3 = arith.constant 3 : index
    %c0_20 = arith.constant 0 : index
    %21 = vector.load %arg18[%c3, %c0_20] : memref<25x400xbf16, #tpu.memory_space<vmem>>, vector<1x400xbf16>
    tpu.vector_store %arg18[%c3, %c0_20], %20 {strides = array<i32>} : memref<25x400xbf16, #tpu.memory_space<vmem>>, vector<1x400xbf16>,
    %22 = vector.extract_strided_slice %13 {offsets = [0, 90], sizes = [1, 400], strides = [1, 1]} : vector<1x656xbf16> to vector<1x400xbf16>
    %c4 = arith.constant 4 : index
    %c0_21 = arith.constant 0 : index
    %23 = vector.load %arg18[%c4, %c0_21] : memref<25x400xbf16, #tpu.memory_space<vmem>>, vector<1x400xbf16>
    tpu.vector_store %arg18[%c4, %c0_21], %22 {strides = array<i32>} : memref<25x400xbf16, #tpu.memory_space<vmem>>, vector<1x400xbf16>,
    %24 = vector.extract_strided_slice %13 {offsets = [0, 106], sizes = [1, 400], strides = [1, 1]} : vector<1x656xbf16> to vector<1x400xbf16>
    %c5 = arith.constant 5 : index
    %c0_22 = arith.constant 0 : index
    %25 = vector.load %arg18[%c5, %c0_22] : memref<25x400xbf16, #tpu.memory_space<vmem>>, vector<1x400xbf16>
    tpu.vector_store %arg18[%c5, %c0_22], %24 {strides = array<i32>} : memref<25x400xbf16, #tpu.memory_space<vmem>>, vector<1x400xbf16>,
    %26 = vector.extract_strided_slice %13 {offsets = [0, 107], sizes = [1, 400], strides = [1, 1]} : vector<1x656xbf16> to vector<1x400xbf16>
    %c6 = arith.constant 6 : index
    %c0_23 = arith.constant 0 : index
    %27 = vector.load %arg18[%c6, %c0_23] : memref<25x400xbf16, #tpu.memory_space<vmem>>, vector<1x400xbf16>
    tpu.vector_store %arg18[%c6, %c0_23], %26 {strides = array<i32>} : memref<25x400xbf16, #tpu.memory_space<vmem>>, vector<1x400xbf16>,
    %28 = vector.extract_strided_slice %13 {offsets = [0, 108], sizes = [1, 400], strides = [1, 1]} : vector<1x656xbf16> to vector<1x400xbf16>
    %c7 = arith.constant 7 : index
    %c0_24 = arith.constant 0 : index
    %29 = vector.load %arg18[%c7, %c0_24] : memref<25x400xbf16, #tpu.memory_space<vmem>>, vector<1x400xbf16>
    tpu.vector_store %arg18[%c7, %c0_24], %28 {strides = array<i32>} : memref<25x400xbf16, #tpu.memory_space<vmem>>, vector<1x400xbf16>,
    %30 = vector.extract_strided_slice %13 {offsets = [0, 109], sizes = [1, 400], strides = [1, 1]} : vector<1x656xbf16> to vector<1x400xbf16>
    %c8 = arith.constant 8 : index
    %c0_25 = arith.constant 0 : index
    %31 = vector.load %arg18[%c8, %c0_25] : memref<25x400xbf16, #tpu.memory_space<vmem>>, vector<1x400xbf16>
    tpu.vector_store %arg18[%c8, %c0_25], %30 {strides = array<i32>} : memref<25x400xbf16, #tpu.memory_space<vmem>>, vector<1x400xbf16>,
    %32 = vector.extract_strided_slice %13 {offsets = [0, 110], sizes = [1, 400], strides = [1, 1]} : vector<1x656xbf16> to vector<1x400xbf16>
    %c9 = arith.constant 9 : index
    %c0_26 = arith.constant 0 : index
    %33 = vector.load %arg18[%c9, %c0_26] : memref<25x400xbf16, #tpu.memory_space<vmem>>, vector<1x400xbf16>
    tpu.vector_store %arg18[%c9, %c0_26], %32 {strides = array<i32>} : memref<25x400xbf16, #tpu.memory_space<vmem>>, vector<1x400xbf16>,
    %34 = vector.extract_strided_slice %13 {offsets = [0, 126], sizes = [1, 400], strides = [1, 1]} : vector<1x656xbf16> to vector<1x400xbf16>
    %c10 = arith.constant 10 : index
    %c0_27 = arith.constant 0 : index
    %35 = vector.load %arg18[%c10, %c0_27] : memref<25x400xbf16, #tpu.memory_space<vmem>>, vector<1x400xbf16>
    tpu.vector_store %arg18[%c10, %c0_27], %34 {strides = array<i32>} : memref<25x400xbf16, #tpu.memory_space<vmem>>, vector<1x400xbf16>,
    %36 = vector.extract_strided_slice %13 {offsets = [0, 127], sizes = [1, 400], strides = [1, 1]} : vector<1x656xbf16> to vector<1x400xbf16>
    %c11 = arith.constant 11 : index
    %c0_28 = arith.constant 0 : index
    %37 = vector.load %arg18[%c11, %c0_28] : memref<25x400xbf16, #tpu.memory_space<vmem>>, vector<1x400xbf16>
    tpu.vector_store %arg18[%c11, %c0_28], %36 {strides = array<i32>} : memref<25x400xbf16, #tpu.memory_space<vmem>>, vector<1x400xbf16>,
    %38 = vector.extract_strided_slice %13 {offsets = [0, 128], sizes = [1, 400], strides = [1, 1]} : vector<1x656xbf16> to vector<1x400xbf16>
    %c12 = arith.constant 12 : index
    %c0_29 = arith.constant 0 : index
    %39 = vector.load %arg18[%c12, %c0_29] : memref<25x400xbf16, #tpu.memory_space<vmem>>, vector<1x400xbf16>
    tpu.vector_store %arg18[%c12, %c0_29], %38 {strides = array<i32>} : memref<25x400xbf16, #tpu.memory_space<vmem>>, vector<1x400xbf16>,
    %40 = vector.extract_strided_slice %13 {offsets = [0, 129], sizes = [1, 400], strides = [1, 1]} : vector<1x656xbf16> to vector<1x400xbf16>
    %c13 = arith.constant 13 : index
    %c0_30 = arith.constant 0 : index
    %41 = vector.load %arg18[%c13, %c0_30] : memref<25x400xbf16, #tpu.memory_space<vmem>>, vector<1x400xbf16>
    tpu.vector_store %arg18[%c13, %c0_30], %40 {strides = array<i32>} : memref<25x400xbf16, #tpu.memory_space<vmem>>, vector<1x400xbf16>,
    %42 = vector.extract_strided_slice %13 {offsets = [0, 130], sizes = [1, 400], strides = [1, 1]} : vector<1x656xbf16> to vector<1x400xbf16>
    %c14 = arith.constant 14 : index
    %c0_31 = arith.constant 0 : index
    %43 = vector.load %arg18[%c14, %c0_31] : memref<25x400xbf16, #tpu.memory_space<vmem>>, vector<1x400xbf16>
    tpu.vector_store %arg18[%c14, %c0_31], %42 {strides = array<i32>} : memref<25x400xbf16, #tpu.memory_space<vmem>>, vector<1x400xbf16>,
    %44 = vector.extract_strided_slice %13 {offsets = [0, 146], sizes = [1, 400], strides = [1, 1]} : vector<1x656xbf16> to vector<1x400xbf16>
    %c15 = arith.constant 15 : index
    %c0_32 = arith.constant 0 : index
    %45 = vector.load %arg18[%c15, %c0_32] : memref<25x400xbf16, #tpu.memory_space<vmem>>, vector<1x400xbf16>
    tpu.vector_store %arg18[%c15, %c0_32], %44 {strides = array<i32>} : memref<25x400xbf16, #tpu.memory_space<vmem>>, vector<1x400xbf16>,
    %46 = vector.extract_strided_slice %13 {offsets = [0, 147], sizes = [1, 400], strides = [1, 1]} : vector<1x656xbf16> to vector<1x400xbf16>
    %c16 = arith.constant 16 : index
    %c0_33 = arith.constant 0 : index
    %47 = vector.load %arg18[%c16, %c0_33] : memref<25x400xbf16, #tpu.memory_space<vmem>>, vector<1x400xbf16>
    tpu.vector_store %arg18[%c16, %c0_33], %46 {strides = array<i32>} : memref<25x400xbf16, #tpu.memory_space<vmem>>, vector<1x400xbf16>,
    %48 = vector.extract_strided_slice %13 {offsets = [0, 148], sizes = [1, 400], strides = [1, 1]} : vector<1x656xbf16> to vector<1x400xbf16>
    %c17 = arith.constant 17 : index
    %c0_34 = arith.constant 0 : index
    %49 = vector.load %arg18[%c17, %c0_34] : memref<25x400xbf16, #tpu.memory_space<vmem>>, vector<1x400xbf16>
    tpu.vector_store %arg18[%c17, %c0_34], %48 {strides = array<i32>} : memref<25x400xbf16, #tpu.memory_space<vmem>>, vector<1x400xbf16>,
    %50 = vector.extract_strided_slice %13 {offsets = [0, 149], sizes = [1, 400], strides = [1, 1]} : vector<1x656xbf16> to vector<1x400xbf16>
    %c18 = arith.constant 18 : index
    %c0_35 = arith.constant 0 : index
    %51 = vector.load %arg18[%c18, %c0_35] : memref<25x400xbf16, #tpu.memory_space<vmem>>, vector<1x400xbf16>
    tpu.vector_store %arg18[%c18, %c0_35], %50 {strides = array<i32>} : memref<25x400xbf16, #tpu.memory_space<vmem>>, vector<1x400xbf16>,
    %52 = vector.extract_strided_slice %13 {offsets = [0, 150], sizes = [1, 400], strides = [1, 1]} : vector<1x656xbf16> to vector<1x400xbf16>
    %c19 = arith.constant 19 : index
    %c0_36 = arith.constant 0 : index
    %53 = vector.load %arg18[%c19, %c0_36] : memref<25x400xbf16, #tpu.memory_space<vmem>>, vector<1x400xbf16>
    tpu.vector_store %arg18[%c19, %c0_36], %52 {strides = array<i32>} : memref<25x400xbf16, #tpu.memory_space<vmem>>, vector<1x400xbf16>,
    %54 = vector.extract_strided_slice %13 {offsets = [0, 166], sizes = [1, 400], strides = [1, 1]} : vector<1x656xbf16> to vector<1x400xbf16>
    %c20 = arith.constant 20 : index
    %c0_37 = arith.constant 0 : index
    %55 = vector.load %arg18[%c20, %c0_37] : memref<25x400xbf16, #tpu.memory_space<vmem>>, vector<1x400xbf16>
    tpu.vector_store %arg18[%c20, %c0_37], %54 {strides = array<i32>} : memref<25x400xbf16, #tpu.memory_space<vmem>>, vector<1x400xbf16>,
    %56 = vector.extract_strided_slice %13 {offsets = [0, 167], sizes = [1, 400], strides = [1, 1]} : vector<1x656xbf16> to vector<1x400xbf16>
    %c21 = arith.constant 21 : index
    %c0_38 = arith.constant 0 : index
    %57 = vector.load %arg18[%c21, %c0_38] : memref<25x400xbf16, #tpu.memory_space<vmem>>, vector<1x400xbf16>
    tpu.vector_store %arg18[%c21, %c0_38], %56 {strides = array<i32>} : memref<25x400xbf16, #tpu.memory_space<vmem>>, vector<1x400xbf16>,
    %58 = vector.extract_strided_slice %13 {offsets = [0, 168], sizes = [1, 400], strides = [1, 1]} : vector<1x656xbf16> to vector<1x400xbf16>
    %c22 = arith.constant 22 : index
    %c0_39 = arith.constant 0 : index
    %59 = vector.load %arg18[%c22, %c0_39] : memref<25x400xbf16, #tpu.memory_space<vmem>>, vector<1x400xbf16>
    tpu.vector_store %arg18[%c22, %c0_39], %58 {strides = array<i32>} : memref<25x400xbf16, #tpu.memory_space<vmem>>, vector<1x400xbf16>,
    %60 = vector.extract_strided_slice %13 {offsets = [0, 169], sizes = [1, 400], strides = [1, 1]} : vector<1x656xbf16> to vector<1x400xbf16>
    %c23 = arith.constant 23 : index
    %c0_40 = arith.constant 0 : index
    %61 = vector.load %arg18[%c23, %c0_40] : memref<25x400xbf16, #tpu.memory_space<vmem>>, vector<1x400xbf16>
    tpu.vector_store %arg18[%c23, %c0_40], %60 {strides = array<i32>} : memref<25x400xbf16, #tpu.memory_space<vmem>>, vector<1x400xbf16>,
    %62 = vector.extract_strided_slice %13 {offsets = [0, 170], sizes = [1, 400], strides = [1, 1]} : vector<1x656xbf16> to vector<1x400xbf16>
    %c24 = arith.constant 24 : index
    %c0_41 = arith.constant 0 : index
    %63 = vector.load %arg18[%c24, %c0_41] : memref<25x400xbf16, #tpu.memory_space<vmem>>, vector<1x400xbf16>
    tpu.vector_store %arg18[%c24, %c0_41], %62 {strides = array<i32>} : memref<25x400xbf16, #tpu.memory_space<vmem>>, vector<1x400xbf16>,
    %c0_42 = arith.constant 0 : index
    %c0_43 = arith.constant 0 : index
    %64 = vector.load %arg8[%c0_42, %c0_43] : memref<48x25xbf16, #tpu.memory_space<vmem>>, vector<48x25xbf16>
    %c0_44 = arith.constant 0 : index
    %c0_45 = arith.constant 0 : index
    %65 = vector.load %arg18[%c0_44, %c0_45] : memref<25x400xbf16, #tpu.memory_space<vmem>>, vector<25x400xbf16>
    %cst_46 = arith.constant dense<0.000000e+00> : vector<48x400xf32>
    %66 = tpu.matmul %64, %65, %cst_46 {dimension_numbers = #tpu.dot_dimension_numbers<[1], [0], [0], [1], [0, 0, 1, 1], [], []>} : vector<48x25xbf16>, vector<25x400xbf16>, vector<48x400xf32> -> vector<48x400xf32>
    %c0_47 = arith.constant 0 : index
    %c0_48 = arith.constant 0 : index
    %67 = vector.load %arg9[%c0_47, %c0_48] : memref<48x1xf32, #tpu.memory_space<vmem>>, vector<48x1xf32>
    %68 = vector.broadcast %67 : vector<48x1xf32> to vector<48x400xf32>
    %69 = arith.addf %66, %68 : vector<48x400xf32>
    %cst_49 = arith.constant 0.000000e+00 : f32
    %70 = vector.broadcast %cst_49 : f32 to vector<48x400xf32>
    %71 = arith.maximumf %69, %70 : vector<48x400xf32>
    %cst_50 = arith.constant 0.000000e+00 : f32
    %72 = vector.shape_cast %11 : vector<1x400xi1> to vector<1x400xi1>
    %73 = vector.broadcast %72 : vector<1x400xi1> to vector<48x400xi1>
    %74 = vector.broadcast %cst_50 : f32 to vector<48x400xf32>
    %75 = arith.select %73, %71, %74 : vector<48x400xi1>, vector<48x400xf32>
    %76 = arith.truncf %75 : vector<48x400xf32> to vector<48x400xbf16>
    %c0_51 = arith.constant 0 : index
    %c128 = arith.constant 128 : index
    %77 = vector.load %arg16[%c0_51, %c128] : memref<48x656xbf16, #tpu.memory_space<vmem>>, vector<48x400xbf16>
    tpu.vector_store %arg16[%c0_51, %c128], %76 {strides = array<i32>} : memref<48x656xbf16, #tpu.memory_space<vmem>>, vector<48x400xbf16>,
    %c0_52 = arith.constant 0 : index
    %c86 = arith.constant 86 : index
    %78 = vector.load %arg16[%c0_52, %c86] : memref<48x656xbf16, #tpu.memory_space<vmem>>, vector<48x400xbf16>
    %c0_53 = arith.constant 0 : index
    %c0_54 = arith.constant 0 : index
    %79 = vector.load %arg19[%c0_53, %c0_54] : memref<1200x400xbf16, #tpu.memory_space<vmem>>, vector<48x400xbf16>
    tpu.vector_store %arg19[%c0_53, %c0_54], %78 {strides = array<i32>} : memref<1200x400xbf16, #tpu.memory_space<vmem>>, vector<48x400xbf16>,
    %c0_55 = arith.constant 0 : index
    %c87 = arith.constant 87 : index
    %80 = vector.load %arg16[%c0_55, %c87] : memref<48x656xbf16, #tpu.memory_space<vmem>>, vector<48x400xbf16>
    %c48 = arith.constant 48 : index
    %c0_56 = arith.constant 0 : index
    %81 = vector.load %arg19[%c48, %c0_56] : memref<1200x400xbf16, #tpu.memory_space<vmem>>, vector<48x400xbf16>
    tpu.vector_store %arg19[%c48, %c0_56], %80 {strides = array<i32>} : memref<1200x400xbf16, #tpu.memory_space<vmem>>, vector<48x400xbf16>,
    %c0_57 = arith.constant 0 : index
    %c88 = arith.constant 88 : index
    %82 = vector.load %arg16[%c0_57, %c88] : memref<48x656xbf16, #tpu.memory_space<vmem>>, vector<48x400xbf16>
    %c96 = arith.constant 96 : index
    %c0_58 = arith.constant 0 : index
    %83 = vector.load %arg19[%c96, %c0_58] : memref<1200x400xbf16, #tpu.memory_space<vmem>>, vector<48x400xbf16>
    tpu.vector_store %arg19[%c96, %c0_58], %82 {strides = array<i32>} : memref<1200x400xbf16, #tpu.memory_space<vmem>>, vector<48x400xbf16>,
    %c0_59 = arith.constant 0 : index
    %c89 = arith.constant 89 : index
    %84 = vector.load %arg16[%c0_59, %c89] : memref<48x656xbf16, #tpu.memory_space<vmem>>, vector<48x400xbf16>
    %c144 = arith.constant 144 : index
    %c0_60 = arith.constant 0 : index
    %85 = vector.load %arg19[%c144, %c0_60] : memref<1200x400xbf16, #tpu.memory_space<vmem>>, vector<48x400xbf16>
    tpu.vector_store %arg19[%c144, %c0_60], %84 {strides = array<i32>} : memref<1200x400xbf16, #tpu.memory_space<vmem>>, vector<48x400xbf16>,
    %c0_61 = arith.constant 0 : index
    %c90 = arith.constant 90 : index
    %86 = vector.load %arg16[%c0_61, %c90] : memref<48x656xbf16, #tpu.memory_space<vmem>>, vector<48x400xbf16>
    %c192 = arith.constant 192 : index
    %c0_62 = arith.constant 0 : index
    %87 = vector.load %arg19[%c192, %c0_62] : memref<1200x400xbf16, #tpu.memory_space<vmem>>, vector<48x400xbf16>
    tpu.vector_store %arg19[%c192, %c0_62], %86 {strides = array<i32>} : memref<1200x400xbf16, #tpu.memory_space<vmem>>, vector<48x400xbf16>,
    %c0_63 = arith.constant 0 : index
    %c106 = arith.constant 106 : index
    %88 = vector.load %arg16[%c0_63, %c106] : memref<48x656xbf16, #tpu.memory_space<vmem>>, vector<48x400xbf16>
    %c240 = arith.constant 240 : index
    %c0_64 = arith.constant 0 : index
    %89 = vector.load %arg19[%c240, %c0_64] : memref<1200x400xbf16, #tpu.memory_space<vmem>>, vector<48x400xbf16>
    tpu.vector_store %arg19[%c240, %c0_64], %88 {strides = array<i32>} : memref<1200x400xbf16, #tpu.memory_space<vmem>>, vector<48x400xbf16>,
    %c0_65 = arith.constant 0 : index
    %c107 = arith.constant 107 : index
    %90 = vector.load %arg16[%c0_65, %c107] : memref<48x656xbf16, #tpu.memory_space<vmem>>, vector<48x400xbf16>
    %c288 = arith.constant 288 : index
    %c0_66 = arith.constant 0 : index
    %91 = vector.load %arg19[%c288, %c0_66] : memref<1200x400xbf16, #tpu.memory_space<vmem>>, vector<48x400xbf16>
    tpu.vector_store %arg19[%c288, %c0_66], %90 {strides = array<i32>} : memref<1200x400xbf16, #tpu.memory_space<vmem>>, vector<48x400xbf16>,
    %c0_67 = arith.constant 0 : index
    %c108 = arith.constant 108 : index
    %92 = vector.load %arg16[%c0_67, %c108] : memref<48x656xbf16, #tpu.memory_space<vmem>>, vector<48x400xbf16>
    %c336 = arith.constant 336 : index
    %c0_68 = arith.constant 0 : index
    %93 = vector.load %arg19[%c336, %c0_68] : memref<1200x400xbf16, #tpu.memory_space<vmem>>, vector<48x400xbf16>
    tpu.vector_store %arg19[%c336, %c0_68], %92 {strides = array<i32>} : memref<1200x400xbf16, #tpu.memory_space<vmem>>, vector<48x400xbf16>,
    %c0_69 = arith.constant 0 : index
    %c109 = arith.constant 109 : index
    %94 = vector.load %arg16[%c0_69, %c109] : memref<48x656xbf16, #tpu.memory_space<vmem>>, vector<48x400xbf16>
    %c384 = arith.constant 384 : index
    %c0_70 = arith.constant 0 : index
    %95 = vector.load %arg19[%c384, %c0_70] : memref<1200x400xbf16, #tpu.memory_space<vmem>>, vector<48x400xbf16>
    tpu.vector_store %arg19[%c384, %c0_70], %94 {strides = array<i32>} : memref<1200x400xbf16, #tpu.memory_space<vmem>>, vector<48x400xbf16>,
    %c0_71 = arith.constant 0 : index
    %c110 = arith.constant 110 : index
    %96 = vector.load %arg16[%c0_71, %c110] : memref<48x656xbf16, #tpu.memory_space<vmem>>, vector<48x400xbf16>
    %c432 = arith.constant 432 : index
    %c0_72 = arith.constant 0 : index
    %97 = vector.load %arg19[%c432, %c0_72] : memref<1200x400xbf16, #tpu.memory_space<vmem>>, vector<48x400xbf16>
    tpu.vector_store %arg19[%c432, %c0_72], %96 {strides = array<i32>} : memref<1200x400xbf16, #tpu.memory_space<vmem>>, vector<48x400xbf16>,
    %c0_73 = arith.constant 0 : index
    %c126 = arith.constant 126 : index
    %98 = vector.load %arg16[%c0_73, %c126] : memref<48x656xbf16, #tpu.memory_space<vmem>>, vector<48x400xbf16>
    %c480 = arith.constant 480 : index
    %c0_74 = arith.constant 0 : index
    %99 = vector.load %arg19[%c480, %c0_74] : memref<1200x400xbf16, #tpu.memory_space<vmem>>, vector<48x400xbf16>
    tpu.vector_store %arg19[%c480, %c0_74], %98 {strides = array<i32>} : memref<1200x400xbf16, #tpu.memory_space<vmem>>, vector<48x400xbf16>,
    %c0_75 = arith.constant 0 : index
    %c127 = arith.constant 127 : index
    %100 = vector.load %arg16[%c0_75, %c127] : memref<48x656xbf16, #tpu.memory_space<vmem>>, vector<48x400xbf16>
    %c528 = arith.constant 528 : index
    %c0_76 = arith.constant 0 : index
    %101 = vector.load %arg19[%c528, %c0_76] : memref<1200x400xbf16, #tpu.memory_space<vmem>>, vector<48x400xbf16>
    tpu.vector_store %arg19[%c528, %c0_76], %100 {strides = array<i32>} : memref<1200x400xbf16, #tpu.memory_space<vmem>>, vector<48x400xbf16>,
    %c0_77 = arith.constant 0 : index
    %c128_78 = arith.constant 128 : index
    %102 = vector.load %arg16[%c0_77, %c128_78] : memref<48x656xbf16, #tpu.memory_space<vmem>>, vector<48x400xbf16>
    %c576 = arith.constant 576 : index
    %c0_79 = arith.constant 0 : index
    %103 = vector.load %arg19[%c576, %c0_79] : memref<1200x400xbf16, #tpu.memory_space<vmem>>, vector<48x400xbf16>
    tpu.vector_store %arg19[%c576, %c0_79], %102 {strides = array<i32>} : memref<1200x400xbf16, #tpu.memory_space<vmem>>, vector<48x400xbf16>,
    %c0_80 = arith.constant 0 : index
    %c129 = arith.constant 129 : index
    %104 = vector.load %arg16[%c0_80, %c129] : memref<48x656xbf16, #tpu.memory_space<vmem>>, vector<48x400xbf16>
    %c624 = arith.constant 624 : index
    %c0_81 = arith.constant 0 : index
    %105 = vector.load %arg19[%c624, %c0_81] : memref<1200x400xbf16, #tpu.memory_space<vmem>>, vector<48x400xbf16>
    tpu.vector_store %arg19[%c624, %c0_81], %104 {strides = array<i32>} : memref<1200x400xbf16, #tpu.memory_space<vmem>>, vector<48x400xbf16>,
    %c0_82 = arith.constant 0 : index
    %c130 = arith.constant 130 : index
    %106 = vector.load %arg16[%c0_82, %c130] : memref<48x656xbf16, #tpu.memory_space<vmem>>, vector<48x400xbf16>
    %c672 = arith.constant 672 : index
    %c0_83 = arith.constant 0 : index
    %107 = vector.load %arg19[%c672, %c0_83] : memref<1200x400xbf16, #tpu.memory_space<vmem>>, vector<48x400xbf16>
    tpu.vector_store %arg19[%c672, %c0_83], %106 {strides = array<i32>} : memref<1200x400xbf16, #tpu.memory_space<vmem>>, vector<48x400xbf16>,
    %c0_84 = arith.constant 0 : index
    %c146 = arith.constant 146 : index
    %108 = vector.load %arg16[%c0_84, %c146] : memref<48x656xbf16, #tpu.memory_space<vmem>>, vector<48x400xbf16>
    %c720 = arith.constant 720 : index
    %c0_85 = arith.constant 0 : index
    %109 = vector.load %arg19[%c720, %c0_85] : memref<1200x400xbf16, #tpu.memory_space<vmem>>, vector<48x400xbf16>
    tpu.vector_store %arg19[%c720, %c0_85], %108 {strides = array<i32>} : memref<1200x400xbf16, #tpu.memory_space<vmem>>, vector<48x400xbf16>,
    %c0_86 = arith.constant 0 : index
    %c147 = arith.constant 147 : index
    %110 = vector.load %arg16[%c0_86, %c147] : memref<48x656xbf16, #tpu.memory_space<vmem>>, vector<48x400xbf16>
    %c768 = arith.constant 768 : index
    %c0_87 = arith.constant 0 : index
    %111 = vector.load %arg19[%c768, %c0_87] : memref<1200x400xbf16, #tpu.memory_space<vmem>>, vector<48x400xbf16>
    tpu.vector_store %arg19[%c768, %c0_87], %110 {strides = array<i32>} : memref<1200x400xbf16, #tpu.memory_space<vmem>>, vector<48x400xbf16>,
    %c0_88 = arith.constant 0 : index
    %c148 = arith.constant 148 : index
    %112 = vector.load %arg16[%c0_88, %c148] : memref<48x656xbf16, #tpu.memory_space<vmem>>, vector<48x400xbf16>
    %c816 = arith.constant 816 : index
    %c0_89 = arith.constant 0 : index
    %113 = vector.load %arg19[%c816, %c0_89] : memref<1200x400xbf16, #tpu.memory_space<vmem>>, vector<48x400xbf16>
    tpu.vector_store %arg19[%c816, %c0_89], %112 {strides = array<i32>} : memref<1200x400xbf16, #tpu.memory_space<vmem>>, vector<48x400xbf16>,
    %c0_90 = arith.constant 0 : index
    %c149 = arith.constant 149 : index
    %114 = vector.load %arg16[%c0_90, %c149] : memref<48x656xbf16, #tpu.memory_space<vmem>>, vector<48x400xbf16>
    %c864 = arith.constant 864 : index
    %c0_91 = arith.constant 0 : index
    %115 = vector.load %arg19[%c864, %c0_91] : memref<1200x400xbf16, #tpu.memory_space<vmem>>, vector<48x400xbf16>
    tpu.vector_store %arg19[%c864, %c0_91], %114 {strides = array<i32>} : memref<1200x400xbf16, #tpu.memory_space<vmem>>, vector<48x400xbf16>,
    %c0_92 = arith.constant 0 : index
    %c150 = arith.constant 150 : index
    %116 = vector.load %arg16[%c0_92, %c150] : memref<48x656xbf16, #tpu.memory_space<vmem>>, vector<48x400xbf16>
    %c912 = arith.constant 912 : index
    %c0_93 = arith.constant 0 : index
    %117 = vector.load %arg19[%c912, %c0_93] : memref<1200x400xbf16, #tpu.memory_space<vmem>>, vector<48x400xbf16>
    tpu.vector_store %arg19[%c912, %c0_93], %116 {strides = array<i32>} : memref<1200x400xbf16, #tpu.memory_space<vmem>>, vector<48x400xbf16>,
    %c0_94 = arith.constant 0 : index
    %c166 = arith.constant 166 : index
    %118 = vector.load %arg16[%c0_94, %c166] : memref<48x656xbf16, #tpu.memory_space<vmem>>, vector<48x400xbf16>
    %c960 = arith.constant 960 : index
    %c0_95 = arith.constant 0 : index
    %119 = vector.load %arg19[%c960, %c0_95] : memref<1200x400xbf16, #tpu.memory_space<vmem>>, vector<48x400xbf16>
    tpu.vector_store %arg19[%c960, %c0_95], %118 {strides = array<i32>} : memref<1200x400xbf16, #tpu.memory_space<vmem>>, vector<48x400xbf16>,
    %c0_96 = arith.constant 0 : index
    %c167 = arith.constant 167 : index
    %120 = vector.load %arg16[%c0_96, %c167] : memref<48x656xbf16, #tpu.memory_space<vmem>>, vector<48x400xbf16>
    %c1008 = arith.constant 1008 : index
    %c0_97 = arith.constant 0 : index
    %121 = vector.load %arg19[%c1008, %c0_97] : memref<1200x400xbf16, #tpu.memory_space<vmem>>, vector<48x400xbf16>
    tpu.vector_store %arg19[%c1008, %c0_97], %120 {strides = array<i32>} : memref<1200x400xbf16, #tpu.memory_space<vmem>>, vector<48x400xbf16>,
    %c0_98 = arith.constant 0 : index
    %c168 = arith.constant 168 : index
    %122 = vector.load %arg16[%c0_98, %c168] : memref<48x656xbf16, #tpu.memory_space<vmem>>, vector<48x400xbf16>
    %c1056 = arith.constant 1056 : index
    %c0_99 = arith.constant 0 : index
    %123 = vector.load %arg19[%c1056, %c0_99] : memref<1200x400xbf16, #tpu.memory_space<vmem>>, vector<48x400xbf16>
    tpu.vector_store %arg19[%c1056, %c0_99], %122 {strides = array<i32>} : memref<1200x400xbf16, #tpu.memory_space<vmem>>, vector<48x400xbf16>,
    %c0_100 = arith.constant 0 : index
    %c169 = arith.constant 169 : index
    %124 = vector.load %arg16[%c0_100, %c169] : memref<48x656xbf16, #tpu.memory_space<vmem>>, vector<48x400xbf16>
    %c1104 = arith.constant 1104 : index
    %c0_101 = arith.constant 0 : index
    %125 = vector.load %arg19[%c1104, %c0_101] : memref<1200x400xbf16, #tpu.memory_space<vmem>>, vector<48x400xbf16>
    tpu.vector_store %arg19[%c1104, %c0_101], %124 {strides = array<i32>} : memref<1200x400xbf16, #tpu.memory_space<vmem>>, vector<48x400xbf16>,
    %c0_102 = arith.constant 0 : index
    %c170 = arith.constant 170 : index
    %126 = vector.load %arg16[%c0_102, %c170] : memref<48x656xbf16, #tpu.memory_space<vmem>>, vector<48x400xbf16>
    %c1152 = arith.constant 1152 : index
    %c0_103 = arith.constant 0 : index
    %127 = vector.load %arg19[%c1152, %c0_103] : memref<1200x400xbf16, #tpu.memory_space<vmem>>, vector<48x400xbf16>
    tpu.vector_store %arg19[%c1152, %c0_103], %126 {strides = array<i32>} : memref<1200x400xbf16, #tpu.memory_space<vmem>>, vector<48x400xbf16>,
    %c0_104 = arith.constant 0 : index
    %c0_105 = arith.constant 0 : index
    %128 = vector.load %arg10[%c0_104, %c0_105] : memref<48x1200xbf16, #tpu.memory_space<vmem>>, vector<48x1200xbf16>
    %c0_106 = arith.constant 0 : index
    %c0_107 = arith.constant 0 : index
    %129 = vector.load %arg19[%c0_106, %c0_107] : memref<1200x400xbf16, #tpu.memory_space<vmem>>, vector<1200x400xbf16>
    %cst_108 = arith.constant dense<0.000000e+00> : vector<48x400xf32>
    %130 = tpu.matmul %128, %129, %cst_108 {dimension_numbers = #tpu.dot_dimension_numbers<[1], [0], [0], [1], [0, 0, 1, 1], [], []>} : vector<48x1200xbf16>, vector<1200x400xbf16>, vector<48x400xf32> -> vector<48x400xf32>
    %c0_109 = arith.constant 0 : index
    %c0_110 = arith.constant 0 : index
    %131 = vector.load %arg11[%c0_109, %c0_110] : memref<48x1xf32, #tpu.memory_space<vmem>>, vector<48x1xf32>
    %132 = vector.broadcast %131 : vector<48x1xf32> to vector<48x400xf32>
    %133 = arith.addf %130, %132 : vector<48x400xf32>
    %cst_111 = arith.constant 0.000000e+00 : f32
    %134 = vector.broadcast %cst_111 : f32 to vector<48x400xf32>
    %135 = arith.maximumf %133, %134 : vector<48x400xf32>
    %cst_112 = arith.constant 0.000000e+00 : f32
    %136 = vector.shape_cast %11 : vector<1x400xi1> to vector<1x400xi1>
    %137 = vector.broadcast %136 : vector<1x400xi1> to vector<48x400xi1>
    %138 = vector.broadcast %cst_112 : f32 to vector<48x400xf32>
    %139 = arith.select %137, %135, %138 : vector<48x400xi1>, vector<48x400xf32>
    %140 = arith.truncf %139 : vector<48x400xf32> to vector<48x400xbf16>
    %c0_113 = arith.constant 0 : index
    %c128_114 = arith.constant 128 : index
    %141 = vector.load %arg17[%c0_113, %c128_114] : memref<48x656xbf16, #tpu.memory_space<vmem>>, vector<48x400xbf16>
    tpu.vector_store %arg17[%c0_113, %c128_114], %140 {strides = array<i32>} : memref<48x656xbf16, #tpu.memory_space<vmem>>, vector<48x400xbf16>,
    %c0_115 = arith.constant 0 : index
    %c86_116 = arith.constant 86 : index
    %142 = vector.load %arg17[%c0_115, %c86_116] : memref<48x656xbf16, #tpu.memory_space<vmem>>, vector<48x400xbf16>
    %c0_117 = arith.constant 0 : index
    %c0_118 = arith.constant 0 : index
    %143 = vector.load %arg19[%c0_117, %c0_118] : memref<1200x400xbf16, #tpu.memory_space<vmem>>, vector<48x400xbf16>
    tpu.vector_store %arg19[%c0_117, %c0_118], %142 {strides = array<i32>} : memref<1200x400xbf16, #tpu.memory_space<vmem>>, vector<48x400xbf16>,
    %c0_119 = arith.constant 0 : index
    %c87_120 = arith.constant 87 : index
    %144 = vector.load %arg17[%c0_119, %c87_120] : memref<48x656xbf16, #tpu.memory_space<vmem>>, vector<48x400xbf16>
    %c48_121 = arith.constant 48 : index
    %c0_122 = arith.constant 0 : index
    %145 = vector.load %arg19[%c48_121, %c0_122] : memref<1200x400xbf16, #tpu.memory_space<vmem>>, vector<48x400xbf16>
    tpu.vector_store %arg19[%c48_121, %c0_122], %144 {strides = array<i32>} : memref<1200x400xbf16, #tpu.memory_space<vmem>>, vector<48x400xbf16>,
    %c0_123 = arith.constant 0 : index
    %c88_124 = arith.constant 88 : index
    %146 = vector.load %arg17[%c0_123, %c88_124] : memref<48x656xbf16, #tpu.memory_space<vmem>>, vector<48x400xbf16>
    %c96_125 = arith.constant 96 : index
    %c0_126 = arith.constant 0 : index
    %147 = vector.load %arg19[%c96_125, %c0_126] : memref<1200x400xbf16, #tpu.memory_space<vmem>>, vector<48x400xbf16>
    tpu.vector_store %arg19[%c96_125, %c0_126], %146 {strides = array<i32>} : memref<1200x400xbf16, #tpu.memory_space<vmem>>, vector<48x400xbf16>,
    %c0_127 = arith.constant 0 : index
    %c89_128 = arith.constant 89 : index
    %148 = vector.load %arg17[%c0_127, %c89_128] : memref<48x656xbf16, #tpu.memory_space<vmem>>, vector<48x400xbf16>
    %c144_129 = arith.constant 144 : index
    %c0_130 = arith.constant 0 : index
    %149 = vector.load %arg19[%c144_129, %c0_130] : memref<1200x400xbf16, #tpu.memory_space<vmem>>, vector<48x400xbf16>
    tpu.vector_store %arg19[%c144_129, %c0_130], %148 {strides = array<i32>} : memref<1200x400xbf16, #tpu.memory_space<vmem>>, vector<48x400xbf16>,
    %c0_131 = arith.constant 0 : index
    %c90_132 = arith.constant 90 : index
    %150 = vector.load %arg17[%c0_131, %c90_132] : memref<48x656xbf16, #tpu.memory_space<vmem>>, vector<48x400xbf16>
    %c192_133 = arith.constant 192 : index
    %c0_134 = arith.constant 0 : index
    %151 = vector.load %arg19[%c192_133, %c0_134] : memref<1200x400xbf16, #tpu.memory_space<vmem>>, vector<48x400xbf16>
    tpu.vector_store %arg19[%c192_133, %c0_134], %150 {strides = array<i32>} : memref<1200x400xbf16, #tpu.memory_space<vmem>>, vector<48x400xbf16>,
    %c0_135 = arith.constant 0 : index
    %c106_136 = arith.constant 106 : index
    %152 = vector.load %arg17[%c0_135, %c106_136] : memref<48x656xbf16, #tpu.memory_space<vmem>>, vector<48x400xbf16>
    %c240_137 = arith.constant 240 : index
    %c0_138 = arith.constant 0 : index
    %153 = vector.load %arg19[%c240_137, %c0_138] : memref<1200x400xbf16, #tpu.memory_space<vmem>>, vector<48x400xbf16>
    tpu.vector_store %arg19[%c240_137, %c0_138], %152 {strides = array<i32>} : memref<1200x400xbf16, #tpu.memory_space<vmem>>, vector<48x400xbf16>,
    %c0_139 = arith.constant 0 : index
    %c107_140 = arith.constant 107 : index
    %154 = vector.load %arg17[%c0_139, %c107_140] : memref<48x656xbf16, #tpu.memory_space<vmem>>, vector<48x400xbf16>
    %c288_141 = arith.constant 288 : index
    %c0_142 = arith.constant 0 : index
    %155 = vector.load %arg19[%c288_141, %c0_142] : memref<1200x400xbf16, #tpu.memory_space<vmem>>, vector<48x400xbf16>
    tpu.vector_store %arg19[%c288_141, %c0_142], %154 {strides = array<i32>} : memref<1200x400xbf16, #tpu.memory_space<vmem>>, vector<48x400xbf16>,
    %c0_143 = arith.constant 0 : index
    %c108_144 = arith.constant 108 : index
    %156 = vector.load %arg17[%c0_143, %c108_144] : memref<48x656xbf16, #tpu.memory_space<vmem>>, vector<48x400xbf16>
    %c336_145 = arith.constant 336 : index
    %c0_146 = arith.constant 0 : index
    %157 = vector.load %arg19[%c336_145, %c0_146] : memref<1200x400xbf16, #tpu.memory_space<vmem>>, vector<48x400xbf16>
    tpu.vector_store %arg19[%c336_145, %c0_146], %156 {strides = array<i32>} : memref<1200x400xbf16, #tpu.memory_space<vmem>>, vector<48x400xbf16>,
    %c0_147 = arith.constant 0 : index
    %c109_148 = arith.constant 109 : index
    %158 = vector.load %arg17[%c0_147, %c109_148] : memref<48x656xbf16, #tpu.memory_space<vmem>>, vector<48x400xbf16>
    %c384_149 = arith.constant 384 : index
    %c0_150 = arith.constant 0 : index
    %159 = vector.load %arg19[%c384_149, %c0_150] : memref<1200x400xbf16, #tpu.memory_space<vmem>>, vector<48x400xbf16>
    tpu.vector_store %arg19[%c384_149, %c0_150], %158 {strides = array<i32>} : memref<1200x400xbf16, #tpu.memory_space<vmem>>, vector<48x400xbf16>,
    %c0_151 = arith.constant 0 : index
    %c110_152 = arith.constant 110 : index
    %160 = vector.load %arg17[%c0_151, %c110_152] : memref<48x656xbf16, #tpu.memory_space<vmem>>, vector<48x400xbf16>
    %c432_153 = arith.constant 432 : index
    %c0_154 = arith.constant 0 : index
    %161 = vector.load %arg19[%c432_153, %c0_154] : memref<1200x400xbf16, #tpu.memory_space<vmem>>, vector<48x400xbf16>
    tpu.vector_store %arg19[%c432_153, %c0_154], %160 {strides = array<i32>} : memref<1200x400xbf16, #tpu.memory_space<vmem>>, vector<48x400xbf16>,
    %c0_155 = arith.constant 0 : index
    %c126_156 = arith.constant 126 : index
    %162 = vector.load %arg17[%c0_155, %c126_156] : memref<48x656xbf16, #tpu.memory_space<vmem>>, vector<48x400xbf16>
    %c480_157 = arith.constant 480 : index
    %c0_158 = arith.constant 0 : index
    %163 = vector.load %arg19[%c480_157, %c0_158] : memref<1200x400xbf16, #tpu.memory_space<vmem>>, vector<48x400xbf16>
    tpu.vector_store %arg19[%c480_157, %c0_158], %162 {strides = array<i32>} : memref<1200x400xbf16, #tpu.memory_space<vmem>>, vector<48x400xbf16>,
    %c0_159 = arith.constant 0 : index
    %c127_160 = arith.constant 127 : index
    %164 = vector.load %arg17[%c0_159, %c127_160] : memref<48x656xbf16, #tpu.memory_space<vmem>>, vector<48x400xbf16>
    %c528_161 = arith.constant 528 : index
    %c0_162 = arith.constant 0 : index
    %165 = vector.load %arg19[%c528_161, %c0_162] : memref<1200x400xbf16, #tpu.memory_space<vmem>>, vector<48x400xbf16>
    tpu.vector_store %arg19[%c528_161, %c0_162], %164 {strides = array<i32>} : memref<1200x400xbf16, #tpu.memory_space<vmem>>, vector<48x400xbf16>,
    %c0_163 = arith.constant 0 : index
    %c128_164 = arith.constant 128 : index
    %166 = vector.load %arg17[%c0_163, %c128_164] : memref<48x656xbf16, #tpu.memory_space<vmem>>, vector<48x400xbf16>
    %c576_165 = arith.constant 576 : index
    %c0_166 = arith.constant 0 : index
    %167 = vector.load %arg19[%c576_165, %c0_166] : memref<1200x400xbf16, #tpu.memory_space<vmem>>, vector<48x400xbf16>
    tpu.vector_store %arg19[%c576_165, %c0_166], %166 {strides = array<i32>} : memref<1200x400xbf16, #tpu.memory_space<vmem>>, vector<48x400xbf16>,
    %c0_167 = arith.constant 0 : index
    %c129_168 = arith.constant 129 : index
    %168 = vector.load %arg17[%c0_167, %c129_168] : memref<48x656xbf16, #tpu.memory_space<vmem>>, vector<48x400xbf16>
    %c624_169 = arith.constant 624 : index
    %c0_170 = arith.constant 0 : index
    %169 = vector.load %arg19[%c624_169, %c0_170] : memref<1200x400xbf16, #tpu.memory_space<vmem>>, vector<48x400xbf16>
    tpu.vector_store %arg19[%c624_169, %c0_170], %168 {strides = array<i32>} : memref<1200x400xbf16, #tpu.memory_space<vmem>>, vector<48x400xbf16>,
    %c0_171 = arith.constant 0 : index
    %c130_172 = arith.constant 130 : index
    %170 = vector.load %arg17[%c0_171, %c130_172] : memref<48x656xbf16, #tpu.memory_space<vmem>>, vector<48x400xbf16>
    %c672_173 = arith.constant 672 : index
    %c0_174 = arith.constant 0 : index
    %171 = vector.load %arg19[%c672_173, %c0_174] : memref<1200x400xbf16, #tpu.memory_space<vmem>>, vector<48x400xbf16>
    tpu.vector_store %arg19[%c672_173, %c0_174], %170 {strides = array<i32>} : memref<1200x400xbf16, #tpu.memory_space<vmem>>, vector<48x400xbf16>,
    %c0_175 = arith.constant 0 : index
    %c146_176 = arith.constant 146 : index
    %172 = vector.load %arg17[%c0_175, %c146_176] : memref<48x656xbf16, #tpu.memory_space<vmem>>, vector<48x400xbf16>
    %c720_177 = arith.constant 720 : index
    %c0_178 = arith.constant 0 : index
    %173 = vector.load %arg19[%c720_177, %c0_178] : memref<1200x400xbf16, #tpu.memory_space<vmem>>, vector<48x400xbf16>
    tpu.vector_store %arg19[%c720_177, %c0_178], %172 {strides = array<i32>} : memref<1200x400xbf16, #tpu.memory_space<vmem>>, vector<48x400xbf16>,
    %c0_179 = arith.constant 0 : index
    %c147_180 = arith.constant 147 : index
    %174 = vector.load %arg17[%c0_179, %c147_180] : memref<48x656xbf16, #tpu.memory_space<vmem>>, vector<48x400xbf16>
    %c768_181 = arith.constant 768 : index
    %c0_182 = arith.constant 0 : index
    %175 = vector.load %arg19[%c768_181, %c0_182] : memref<1200x400xbf16, #tpu.memory_space<vmem>>, vector<48x400xbf16>
    tpu.vector_store %arg19[%c768_181, %c0_182], %174 {strides = array<i32>} : memref<1200x400xbf16, #tpu.memory_space<vmem>>, vector<48x400xbf16>,
    %c0_183 = arith.constant 0 : index
    %c148_184 = arith.constant 148 : index
    %176 = vector.load %arg17[%c0_183, %c148_184] : memref<48x656xbf16, #tpu.memory_space<vmem>>, vector<48x400xbf16>
    %c816_185 = arith.constant 816 : index
    %c0_186 = arith.constant 0 : index
    %177 = vector.load %arg19[%c816_185, %c0_186] : memref<1200x400xbf16, #tpu.memory_space<vmem>>, vector<48x400xbf16>
    tpu.vector_store %arg19[%c816_185, %c0_186], %176 {strides = array<i32>} : memref<1200x400xbf16, #tpu.memory_space<vmem>>, vector<48x400xbf16>,
    %c0_187 = arith.constant 0 : index
    %c149_188 = arith.constant 149 : index
    %178 = vector.load %arg17[%c0_187, %c149_188] : memref<48x656xbf16, #tpu.memory_space<vmem>>, vector<48x400xbf16>
    %c864_189 = arith.constant 864 : index
    %c0_190 = arith.constant 0 : index
    %179 = vector.load %arg19[%c864_189, %c0_190] : memref<1200x400xbf16, #tpu.memory_space<vmem>>, vector<48x400xbf16>
    tpu.vector_store %arg19[%c864_189, %c0_190], %178 {strides = array<i32>} : memref<1200x400xbf16, #tpu.memory_space<vmem>>, vector<48x400xbf16>,
    %c0_191 = arith.constant 0 : index
    %c150_192 = arith.constant 150 : index
    %180 = vector.load %arg17[%c0_191, %c150_192] : memref<48x656xbf16, #tpu.memory_space<vmem>>, vector<48x400xbf16>
    %c912_193 = arith.constant 912 : index
    %c0_194 = arith.constant 0 : index
    %181 = vector.load %arg19[%c912_193, %c0_194] : memref<1200x400xbf16, #tpu.memory_space<vmem>>, vector<48x400xbf16>
    tpu.vector_store %arg19[%c912_193, %c0_194], %180 {strides = array<i32>} : memref<1200x400xbf16, #tpu.memory_space<vmem>>, vector<48x400xbf16>,
    %c0_195 = arith.constant 0 : index
    %c166_196 = arith.constant 166 : index
    %182 = vector.load %arg17[%c0_195, %c166_196] : memref<48x656xbf16, #tpu.memory_space<vmem>>, vector<48x400xbf16>
    %c960_197 = arith.constant 960 : index
    %c0_198 = arith.constant 0 : index
    %183 = vector.load %arg19[%c960_197, %c0_198] : memref<1200x400xbf16, #tpu.memory_space<vmem>>, vector<48x400xbf16>
    tpu.vector_store %arg19[%c960_197, %c0_198], %182 {strides = array<i32>} : memref<1200x400xbf16, #tpu.memory_space<vmem>>, vector<48x400xbf16>,
    %c0_199 = arith.constant 0 : index
    %c167_200 = arith.constant 167 : index
    %184 = vector.load %arg17[%c0_199, %c167_200] : memref<48x656xbf16, #tpu.memory_space<vmem>>, vector<48x400xbf16>
    %c1008_201 = arith.constant 1008 : index
    %c0_202 = arith.constant 0 : index
    %185 = vector.load %arg19[%c1008_201, %c0_202] : memref<1200x400xbf16, #tpu.memory_space<vmem>>, vector<48x400xbf16>
    tpu.vector_store %arg19[%c1008_201, %c0_202], %184 {strides = array<i32>} : memref<1200x400xbf16, #tpu.memory_space<vmem>>, vector<48x400xbf16>,
    %c0_203 = arith.constant 0 : index
    %c168_204 = arith.constant 168 : index
    %186 = vector.load %arg17[%c0_203, %c168_204] : memref<48x656xbf16, #tpu.memory_space<vmem>>, vector<48x400xbf16>
    %c1056_205 = arith.constant 1056 : index
    %c0_206 = arith.constant 0 : index
    %187 = vector.load %arg19[%c1056_205, %c0_206] : memref<1200x400xbf16, #tpu.memory_space<vmem>>, vector<48x400xbf16>
    tpu.vector_store %arg19[%c1056_205, %c0_206], %186 {strides = array<i32>} : memref<1200x400xbf16, #tpu.memory_space<vmem>>, vector<48x400xbf16>,
    %c0_207 = arith.constant 0 : index
    %c169_208 = arith.constant 169 : index
    %188 = vector.load %arg17[%c0_207, %c169_208] : memref<48x656xbf16, #tpu.memory_space<vmem>>, vector<48x400xbf16>
    %c1104_209 = arith.constant 1104 : index
    %c0_210 = arith.constant 0 : index
    %189 = vector.load %arg19[%c1104_209, %c0_210] : memref<1200x400xbf16, #tpu.memory_space<vmem>>, vector<48x400xbf16>
    tpu.vector_store %arg19[%c1104_209, %c0_210], %188 {strides = array<i32>} : memref<1200x400xbf16, #tpu.memory_space<vmem>>, vector<48x400xbf16>,
    %c0_211 = arith.constant 0 : index
    %c170_212 = arith.constant 170 : index
    %190 = vector.load %arg17[%c0_211, %c170_212] : memref<48x656xbf16, #tpu.memory_space<vmem>>, vector<48x400xbf16>
    %c1152_213 = arith.constant 1152 : index
    %c0_214 = arith.constant 0 : index
    %191 = vector.load %arg19[%c1152_213, %c0_214] : memref<1200x400xbf16, #tpu.memory_space<vmem>>, vector<48x400xbf16>
    tpu.vector_store %arg19[%c1152_213, %c0_214], %190 {strides = array<i32>} : memref<1200x400xbf16, #tpu.memory_space<vmem>>, vector<48x400xbf16>,
    %c0_215 = arith.constant 0 : index
    %c0_216 = arith.constant 0 : index
    %192 = vector.load %arg12[%c0_215, %c0_216] : memref<1x1200xbf16, #tpu.memory_space<vmem>>, vector<1x1200xbf16>
    %c0_217 = arith.constant 0 : index
    %c0_218 = arith.constant 0 : index
    %193 = vector.load %arg19[%c0_217, %c0_218] : memref<1200x400xbf16, #tpu.memory_space<vmem>>, vector<1200x400xbf16>
    %cst_219 = arith.constant dense<0.000000e+00> : vector<1x400xf32>
    %194 = tpu.matmul %192, %193, %cst_219 {dimension_numbers = #tpu.dot_dimension_numbers<[1], [0], [0], [1], [0, 0, 1, 1], [], []>} : vector<1x1200xbf16>, vector<1200x400xbf16>, vector<1x400xf32> -> vector<1x400xf32>
    %c0_220 = arith.constant 0 : index
    %c0_221 = arith.constant 0 : index
    %195 = memref.load %arg13[%c0_220, %c0_221] : memref<1x1xf32, #tpu.memory_space<smem>>
    %196 = vector.broadcast %195 : f32 to vector<1x400xf32>
    %197 = arith.addf %194, %196 : vector<1x400xf32>
    %cst_222 = arith.constant 0.000000e+00 : f32
    %198 = vector.broadcast %cst_222 : f32 to vector<1x400xf32>
    %199 = arith.select %11, %197, %198 : vector<1x400xi1>, vector<1x400xf32>
    %c0_223 = arith.constant 0 : index
    %c0_224 = arith.constant 0 : index
    %200 = memref.load %arg14[%c0_223, %c0_224] : memref<1x1xf32, #tpu.memory_space<smem>>
    %c0_225 = arith.constant 0 : index
    %c0_226 = arith.constant 0 : index
    %201 = vector.load %arg7[%c0_225, %c0_226] : memref<400x256xf32, #tpu.memory_space<vmem>>, vector<400x256xf32>
    %cst_227 = arith.constant dense<0.000000e+00> : vector<1x256xf32>
    %202 = tpu.matmul %199, %201, %cst_227 {dimension_numbers = #tpu.dot_dimension_numbers<[1], [0], [0], [1], [0, 0, 1, 1], [], []>} : vector<1x400xf32>, vector<400x256xf32>, vector<1x256xf32> -> vector<1x256xf32>
    %203 = vector.broadcast %200 : f32 to vector<1x256xf32>
    %204 = arith.mulf %203, %8 : vector<1x256xf32>
    %205 = arith.addf %204, %202 : vector<1x256xf32>
    %c0_228 = arith.constant 0 : index
    %c0_229 = arith.constant 0 : index
    %c0_230 = arith.constant 0 : index
    %206 = vector.load %arg15[%c0_228, %c0_229, %c0_230] : memref<1x1x256xf32, #tpu.memory_space<vmem>>, vector<1x1x256xf32>
    %207 = vector.shape_cast %206 : vector<1x1x256xf32> to vector<1x256xf32>
    %208 = vector.shape_cast %205 : vector<1x256xf32> to vector<1x1x256xf32>
    tpu.vector_store %arg15[%c0_228, %c0_229, %c0_230], %208 {strides = array<i32>} : memref<1x1x256xf32, #tpu.memory_space<vmem>>, vector<1x1x256xf32>,
    return
  }
  func.func @transform_0(%arg0: i32) -> (i32, i32, i32) {
    %c0_i32 = arith.constant 0 : i32
    %c0_i32_0 = arith.constant 0 : i32
    %c0_i32_1 = arith.constant 0 : i32
    return %arg0, %c0_i32, %c0_i32_0 : i32, i32, i32
  }
  func.func @transform_1(%arg0: i32) -> (i32, i32, i32) {
    %c0_i32 = arith.constant 0 : i32
    %c0_i32_0 = arith.constant 0 : i32
    %c0_i32_1 = arith.constant 0 : i32
    return %arg0, %c0_i32, %c0_i32_0 : i32, i32, i32
  }
  func.func @transform_2(%arg0: i32) -> (i32, i32, i32) {
    %c0_i32 = arith.constant 0 : i32
    %c0_i32_0 = arith.constant 0 : i32
    %c0_i32_1 = arith.constant 0 : i32
    return %arg0, %c0_i32, %c0_i32_0 : i32, i32, i32
  }
  func.func @transform_3(%arg0: i32) -> (i32, i32) {
    %c0_i32 = arith.constant 0 : i32
    %c0_i32_0 = arith.constant 0 : i32
    %c0_i32_1 = arith.constant 0 : i32
    return %c0_i32, %c0_i32_0 : i32, i32
  }
  func.func @transform_4(%arg0: i32) -> (i32, i32) {
    %c0_i32 = arith.constant 0 : i32
    %c0_i32_0 = arith.constant 0 : i32
    %c0_i32_1 = arith.constant 0 : i32
    return %c0_i32, %c0_i32_0 : i32, i32
  }
  func.func @transform_5(%arg0: i32) -> (i32, i32) {
    %c0_i32 = arith.constant 0 : i32
    %c0_i32_0 = arith.constant 0 : i32
    %c0_i32_1 = arith.constant 0 : i32
    return %c0_i32, %c0_i32_0 : i32, i32
  }
  func.func @transform_6(%arg0: i32) -> (i32, i32) {
    %c0_i32 = arith.constant 0 : i32
    %c0_i32_0 = arith.constant 0 : i32
    %c0_i32_1 = arith.constant 0 : i32
    return %c0_i32, %c0_i32_0 : i32, i32
  }
  func.func @transform_7(%arg0: i32) -> (i32, i32) {
    %c0_i32 = arith.constant 0 : i32
    %c0_i32_0 = arith.constant 0 : i32
    %c0_i32_1 = arith.constant 0 : i32
    return %c0_i32, %c0_i32_0 : i32, i32
  }
  func.func @transform_8(%arg0: i32) -> (i32, i32) {
    %c0_i32 = arith.constant 0 : i32
    %c0_i32_0 = arith.constant 0 : i32
    %c0_i32_1 = arith.constant 0 : i32
    return %c0_i32, %c0_i32_0 : i32, i32
  }
  func.func @transform_9(%arg0: i32) -> (i32, i32) {
    %c0_i32 = arith.constant 0 : i32
    %c0_i32_0 = arith.constant 0 : i32
    %c0_i32_1 = arith.constant 0 : i32
    return %c0_i32, %c0_i32_0 : i32, i32
  }
  func.func @transform_10(%arg0: i32) -> (i32, i32) {
    %c0_i32 = arith.constant 0 : i32
    %c0_i32_0 = arith.constant 0 : i32
    %c0_i32_1 = arith.constant 0 : i32
    return %c0_i32, %c0_i32_0 : i32, i32
  }
  func.func @transform_11(%arg0: i32) -> (i32, i32) {
    %c0_i32 = arith.constant 0 : i32
    %c0_i32_0 = arith.constant 0 : i32
    %c0_i32_1 = arith.constant 0 : i32
    return %c0_i32, %c0_i32_0 : i32, i32
  }
  func.func @transform_12(%arg0: i32) -> (i32, i32) {
    %c0_i32 = arith.constant 0 : i32
    %c0_i32_0 = arith.constant 0 : i32
    %c0_i32_1 = arith.constant 0 : i32
    return %c0_i32, %c0_i32_0 : i32, i32
  }
  func.func @transform_13(%arg0: i32) -> (i32, i32) {
    %c0_i32 = arith.constant 0 : i32
    %c0_i32_0 = arith.constant 0 : i32
    %c0_i32_1 = arith.constant 0 : i32
    return %c0_i32, %c0_i32_0 : i32, i32
  }
  func.func @transform_14(%arg0: i32) -> (i32, i32, i32) {
    %c0_i32 = arith.constant 0 : i32
    %c0_i32_0 = arith.constant 0 : i32
    %c0_i32_1 = arith.constant 0 : i32
    return %arg0, %c0_i32, %c0_i32_0 : i32, i32, i32
  }
}

</mosaic_0001>

<bundles_post_ra>
// kernel: tpu_custom_call.1
= control target key start
LH: loop header
LB: loop body
LE: loop exit
PB: predicated region body
PF: predicated region fallthrough
CT: control target
= control target key end

     0   :  { %s14014_s0 = inlined_call_operand.vmem [shape: bf16[2,1,656], index: 0, kind: input, shape index: {}]   ;;  %s14015_s1 = inlined_call_operand.vmem [shape: f32[2,1,256], index: 1, kind: input, shape index: {}]   ;;  %s14016_s2 = inlined_call_operand.vmem [shape: f32[2,1,64], index: 2, kind: input, shape index: {}]   ;;  %s14017_s3 = inlined_call_operand.vmem [shape: f32[64,256], index: 3, kind: input, shape index: {}]   ;;  %s14018_s4 = inlined_call_operand.vmem [shape: f32[256,64], index: 4, kind: input, shape index: {}]   ;;  %s14019_s5 = inlined_call_operand.vmem [shape: f32[1,400], index: 5, kind: input, shape index: {}]   ;;  %s14020_s6 = inlined_call_operand.hbm [shape: f32[400,256], index: 6, kind: input, shape index: {}]   ;;  %s14021_s7 = inlined_call_operand.vmem [shape: bf16[48,25], index: 7, kind: input, shape index: {}]   ;;  %s14022_s8 = inlined_call_operand.vmem [shape: f32[48,1], index: 8, kind: input, shape index: {}]   ;;  %s14023_s9 = inlined_call_operand.vmem [shape: bf16[48,1200], index: 9, kind: input, shape index: {}]   ;;  %s14024_s10 = inlined_call_operand.vmem [shape: f32[48,1], index: 10, kind: input, shape index: {}]   ;;  %s14025_s11 = inlined_call_operand.vmem [shape: bf16[1,1200], index: 11, kind: input, shape index: {}]   ;;  %s14026_s12 = inlined_call_operand.<no memory space> [shape: f32[1,1], index: 12, kind: input, shape index: {}]   ;;  %s14027_s13 = inlined_call_operand.<no memory space> [shape: f32[1,1], index: 13, kind: input, shape index: {}]   ;;  %s14028_s14 = inlined_call_operand.hbm [shape: f32[2,1,256], index: 14, kind: output, shape index: {}]  }
   0x1   :  { %14218 = sst [smem:[#allocation68_spill]] %s14014_s0 }
   0x2   :  { %14219 = sst [smem:[#allocation69_spill]] %s14015_s1 }
   0x3   :  { %14220 = sst [smem:[#allocation70_spill]] %s14016_s2 }
   0x4   :  { %14221 = sst [smem:[#allocation71_spill]] %s14017_s3 }
   0x5   :  { %14222 = sst [smem:[#allocation72_spill]] %s14018_s4 }
   0x6   :  { %14223 = sst [smem:[#allocation73_spill]] %s14019_s5 }
   0x7   :  { %14224 = sst [smem:[#allocation74_spill]] %s14020_s6 }
   0x8   :  { %14225 = sst [smem:[#allocation75_spill]] %s14021_s7 }
   0x9   :  { %14226 = sst [smem:[#allocation76_spill]] %s14022_s8 }
   0xa   :  { %14227 = sst [smem:[#allocation77_spill]] %s14024_s10 }
   0xb   :  { %14228 = sst [smem:[#allocation78_spill]] %s14028_s14 }
   0xc   :  { %19 = sst [smem:[#allocation6]] %s14026_s12 }
   0xd   :  { %20 = sst [smem:[#allocation7]] %s14027_s13 }
   0xe   :  { %21 = vsyncpa [#allocation9], 0 }
   0xf   :  { %22 = vsyncpa [#allocation10], 0 }
  0x10   :  { %24 = vsyncpa [#allocation10 + $0x1], 0  ;;  %s9036_s17 = smov 0   ;;  %s9038_s18 = smov 0  }
  0x11   :  { %s9040_s19 = smov 0   ;;  %s9042_s20 = smov 0  }
  0x12 LB: > { %14229 = sst [smem:[#allocation14_spill]] %s8908_s17  ;;  %s9057_s12 = sadd.s32 4294967295, %s8920_s20   ;;  %s8920_s20 = sphi %s9042_s20, %s14932_s20   ;;  %s8916_s19 = sphi %s9040_s19, %s14935_s19   ;;  %s8912_s18 = sphi %s9038_s18, %s14934_s18   ;;  %s8908_s17 = sphi %s9036_s17, %s14933_s17  }
  0x13   : > { %14230 = sst [smem:[#allocation15_spill]] %s8912_s18  ;;  %s8192_s13 = sadd.s32 4294967294, %s8920_s20  }
  0x14   : > { %14231 = sst [smem:[#allocation16_spill]] %s8916_s19  ;;  %s9061_s21 = sadd.s32 1, %s8920_s20  }
  0x15   : > { %14232 = sst [smem:[#allocation17_spill]] %s8920_s20  ;;  %s346_s22 = sadd.s32 1, %s8916_s19 }
  0x16   : > { %14233 = sst [smem:[#allocation18_spill]] %s9057_s12  ;;  %s343_s23 = ssub.s32 %s8920_s20, %s9061_s21 }
  0x17   : > { %14234 = sst [smem:[#allocation19_spill]] %s9061_s21  ;;  %p356_p0 = scmp.ne.s32.totalorder %s8916_s19, %s8912_s18 }
  0x18   : > { %p344_p1 = scmp.eq.s32.totalorder %s343_s23, 0  ;;  %p357_p2 = scmp.eq.s32.totalorder %s9057_s12, 1 }
  0x19   : > { %p362_p3 = scmp.ne.s32.totalorder %s8912_s18, %s8908_s17  ;;  %p363_p4 = scmp.eq.s32.totalorder %s8192_s13, 1 }
  0x1a   : > { %s9072_s24 = scalar_select %p344_p1, %s8916_s19, %s346_s22  }
  0x1b   : > { %p9074_p5 = por %p357_p2, %p356_p0  ;;  %p9078_p6 = por %p363_p4, %p362_p3 }
  0x1c   : > { %14235 = sst [smem:[#allocation20_spill]] %s9072_s24  ;;  %p8193_p7 = scmp.ge.s32.totalorder %s8920_s20, 1 }
  0x1d   : > { %s14236_s25 = scalar_select %p9074_p5, 1, 0 }
  0x1e   : > { %s14238_s26 = scalar_select %p9078_p6, 1, 0 }
  0x1f   : > { %14237 = sst [smem:[#allocation21_spill]] %s14236_s25  ;;  %p370_p8 = scmp.lt.s32.totalorder %s8920_s20, 3 }
  0x20   : > { %14239 = sst [smem:[#allocation22_spill]] %s14238_s26  ;;  %p14030_p9 = scmp.eq.s32.totalorder %s9057_s12, 0 }
  0x21   : > { %p9085_p10 = pnand %p8193_p7, %p370_p8  ;;  %s8922_s28 = smov [#allocation8]  }
  0x22   : > { %s391_s29 = sshll.u32 %s8922_s28, 4  ;;  %s14242_s6 = sld [smem:[#allocation74_spill]]  ;;  %s392_s29 = int_to_ptr.vmem [resolvable:$true] %s391_s29 }
  0x23   : > { %s14240_s27 = scalar_select %p9085_p10, 1, 0 }
  0x24   : > { %p8612_p11 = pneg %p9085_p10 }
  0x26   : > { %p9093_p12 = pnand %p14030_p9, %p8612_p11 }
  0x28   : > { %s8826_s13 = scalar_lea.hbm %s14242_s6, 12800  ;;  %p8828_p0 = pneg %p9093_p12 }
  0x29   : > { %p8827_p13 = scmp.ne.s32.totalorder %s14242_s6, %s8826_s13  ;;  %p8833_p3 = scmp.lt.u32.totalorder %s8826_s13, %s14242_s6 }
  0x2b   : > { %p8829_p1 = pnand %p8828_p0, %p8827_p13 }
  0x2d   : > { %p8830_p2 = pneg %p8829_p1 }
  0x2f   : > { %p8835_p4 = pnand %p8833_p3, %p8830_p2 }
  0x31   : > { %8838 = shalt.err (!%p8835_p4)
}
  0x32   : > { %s8839_s19 = scalar_lea.vmem %s392_s29, 12800  ;;  %p8847_p9 = scmp.lt.s32.totalorder %s392_s29, %s392_s29 }
  0x33   : > { %p8840_p7 = scmp.ne.s32.totalorder %s392_s29, %s8839_s19  ;;  %p8848_p6 = scmp.lt.s32.totalorder %s8839_s19, %s8839_s19 }
  0x35   : > { %p8842_p8 = pnand %p8840_p7, %p8828_p0  ;;  %p8849_p5 = por %p8848_p6, %p8847_p9 }
  0x37   : > { %p8843_p11 = pneg %p8842_p8 }
  0x39   : > { %p8850_p10 = pnand %p8849_p5, %p8843_p11 }
  0x3b   : > { %8853 = shalt.err (!%p8850_p10)
}
  0x3c   : > { %s8923_s15 = smov 256   ;;  %s8924_s16 = smov 16  }
  0x3d   : > { %8615 = dma.hbm_to_vmem [thread:$0]  (!%p9093_p12), %s14242_s6, 12800, %s392_s29, [#allocation9], %s8923_s15, %s8923_s15, %s8924_s16  }
  0x3e   : > { %p14243_p13 = scmp.ne.s32.totalorder %s14240_s27, 0 }
  0x40   : > { %448 = sbr.rel (%p14243_p13) target bundleno = 2659 (0xa63), region = 76 }
  0x47   : > { %p14244_p1 = scmp.eq.s32.totalorder %s9057_s12, 0 }
  0x49   : > { %8899 = dma.done.wait (%p14244_p1), [#allocation9], 12800   ;;  %p14245_p0 = pmov %p14244_p1 }
  0x4a   : > { %p500_p5 = scmp.lt.s32.totalorder %s9057_s12, 1  ;;  %v14113_v0 = vlaneseq  ;;  %v8925_v1 = vmov 1935823168   ;;  %v8926_v4 = vmov 0   ;;  %s14247_s0 = sld [smem:[#allocation68_spill]]  ;;  %vm903_vm0 = vcmask 1042434  }
  0x4b   : > { %8901 = vsyncadd (%p14245_p0), [#allocation9], 4294954496  ;;  %v724_v2 = vunpack.c.l.s4 %v8925_v1  ;;  %8748 = vset.pattern.permute.xlu1 %v8926_v4  ;;  %8747 = vset.pattern.permute.xlu0 %v8926_v4  ;;  %s14248_s4 = sld [smem:[#allocation72_spill]]  ;;  %s14035_s15 = smov 40   ;;  %vm904_vm1 = vsmask.f32 2304 }
  0x4c   : > { %s9121_s19 = scalar_select %p500_p5, %s9057_s12, 1  ;;  %v9124_v3 = vshrl.u32 %v14113_v0, 7  ;;  %vm907_vm2 = vsmask.f32 6400  ;;  %vm906_vm3 = vcmask 1046534   ;;  %vm14065_vm4 = vcmask 1043456   ;;  %vm905_vm5 = vmand %vm903_vm0, %vm904_vm1 }
  0x4d   : > { %v725_v5 = vunpack.c.0.s8 %v724_v2  ;;  %s14107_s6 = smov 42   ;;  %s14249_s1 = sld [smem:[#allocation69_spill]]  ;;  %vm913_vm6 = vcmask 129030   ;;  %vm908_vm7 = vmand %vm906_vm3, %vm907_vm2  ;;  %vm933_vm11 = vsmask.f32 7946 }
  0x4e   : > { %14246 = vst [vmem:[#allocation23_spill] sm:$0xff] %v9124_v3  ;;  %s8605_s24 = smul.u32 6, %s9121_s19  ;;  %s8199_s28 = sshll.u32 %s9121_s19, 1  ;;  %v9199_v35 = vsub.s32 1, %v9124_v3  ;;  %vm9311_vm8 = vmor %vm908_vm7, %vm905_vm5  ;;  %vm935_vm12 = vsmask.f32 7962 }
  0x4f   : > { %v9130_v6 = vsub.s32 %v725_v5, %v9124_v3  ;;  %s14047_s16 = smov 19   ;;  %s14053_s22 = smov 38   ;;  %vm914_vm9 = vmand %vm913_vm6, %vm907_vm2  ;;  %vm14071_vm7 = vcmask 1045509  }
  0x50   : > { %s503_s30 = scalar_lea.vmem %s14247_s0, %s8605_s24  ;;  %14250 = vst [vmem:[#allocation24_spill] sm:$0xff] %v9199_v35  ;;  %vm9323_vm10 = vmor %vm914_vm9, %vm905_vm5  ;;  %s14041_s23 = smov 109   ;;  %vm829_vm5 = vsmask.f32 5376 }
  0x51   : > { %v529_v7 = vld [vmem:[%s14248_s4 + $0x80] sm:$0xff]  ;;  %v530_v8 = vld [vmem:[%s14248_s4 + $0x88] sm:$0xff]  ;;  %v531_v13 = vld [vmem:[%s14248_s4 + $0x90] sm:$0xff]  ;;  %s14039_s24 = smov 107   ;;  %s14049_s29 = smov 88  }
  0x52   : > { %v513_v9 = vld [vmem:[%s14248_s4] sm:$0xff]  ;;  %v8299_v10 = vpack.c.bf16 %v530_v8, %v529_v7  ;;  %v514_v11 = vld [vmem:[%s14248_s4 + $0x8] sm:$0xff]  ;;  %v532_v16 = vld [vmem:[%s14248_s4 + $0x98] sm:$0xff]  ;;  %s14063_s13 = smov 41   ;;  %s14055_s21 = smov 39  }
  0x53   : > { %v9147_v12 = vld [vmem:[%s503_s30] sm:$0x3f]  ;;  %v8301_v14 = vpack.c.bf16 %v514_v11, %v513_v9  ;;  %v515_v17 = vld [vmem:[%s14248_s4 + $0x10] sm:$0xff]  ;;  %v516_v18 = vld [vmem:[%s14248_s4 + $0x18] sm:$0xff]  ;;  %v8303_v20 = vpack.c.bf16 %v532_v16, %v531_v13  ;;  %s507_s27 = scalar_lea.vmem %s14249_s1, %s8199_s28  ;;  %s14051_s28 = smov 21  }
  0x54   : > { %v729_v15 = vrot.slane %v9147_v12, %v9130_v6  ;;  %v868_v19 = vcombine.low %v9147_v12, %v9147_v12  ;;  %8300 = vmatprep.subr.bf16.mxu0 %v8299_v10  ;;  %v533_v21 = vld [vmem:[%s14248_s4 + $0xa0] sm:$0xff]  ;;  %v534_v22 = vld [vmem:[%s14248_s4 + $0xa8] sm:$0xff]  ;;  %v8305_v24 = vpack.c.bf16 %v516_v18, %v515_v17  ;;  %v535_v32 = vld [vmem:[%s14248_s4 + $0xb0] sm:$0xff]  ;;  %v1045_v61 = vcombine.high %v9147_v12, %v9147_v12  ;;  %s14045_s30 = smov 2   ;;  %s14260_s3 = sld [smem:[#allocation71_spill]] }
  0x55   : > { %8302 = vmatpush3.bf16.msra.mxu0 %v8301_v14  ;;  %v8307_v26 = vpack.c.bf16 %v534_v22, %v533_v21  ;;  %v517_v27 = vld [vmem:[%s14248_s4 + $0x20] sm:$0xff]  ;;  %v518_v28 = vld [vmem:[%s14248_s4 + $0x28] sm:$0xff]  ;;  %v536_v33 = vld [vmem:[%s14248_s4 + $0xb8] sm:$0xff]  ;;  %v9285_v10 = vsub.s32 0, %v9124_v3  ;;  %s14288_s8 = sld [smem:[#allocation76_spill]]  ;;  %s14378_s7 = sld [smem:[#allocation75_spill]] }
  0x56   : > { %v9172_v23 = vrot.slane %v729_v15, %v9130_v6  ;;  %v805_v25 = vcombine.low %v729_v15, %v729_v15  ;;  %8304 = vmatprep.subr.bf16.mxu0 %v8303_v20  ;;  %v875_v30 = vrot.slane %v868_v19, %v9130_v6  ;;  %v730_v31 = vcombine.high %v729_v15, %v729_v15  ;;  %v519_v37 = vld [vmem:[%s14248_s4 + $0x30] sm:$0xff]  ;;  %v520_v38 = vld [vmem:[%s14248_s4 + $0x38] sm:$0xff]  ;;  %v537_v41 = vld [vmem:[%s14248_s4 + $0xc0] sm:$0xff]  ;;  %s14379_s2 = sld [smem:[#allocation70_spill]]  ;;  %s14380_s5 = sld [smem:[#allocation73_spill]] }
  0x57   : > { %v8309_v34 = vpack.c.bf16 %v518_v28, %v517_v27  ;;  %v8311_v36 = vpack.c.bf16 %v536_v33, %v535_v32  ;;  %v538_v42 = vld [vmem:[%s14248_s4 + $0xc8] sm:$0xff]  ;;  %v9223_v43 = vld [vmem:[%s507_s27] sm:$0x3]  ;;  %v8313_v44 = vpack.c.bf16 %v520_v38, %v519_v37  ;;  %v539_v51 = vld [vmem:[%s14248_s4 + $0xd0] sm:$0xff]  ;;  %v1052_v8 = vrot.slane %v1045_v61, %v9130_v6  ;;  %14251 = vst [vmem:[#allocation25_spill] sm:$0xff] %v9285_v10  ;;  %s14043_s27 = smov 126  }
  0x58   : > { %815 = vrot.lane.b32.xlu1 %v9172_v23, %s14035_s15  ;;  %745 = vrot.lane.b32.xlu0 %v9172_v23, %s14107_s6  ;;  %v9186_v29 = vrot.slane %v805_v25, %v9130_v6  ;;  %v9212_v39 = vrot.slane %v875_v30, %v9130_v6  ;;  %v9215_v40 = vrot.slane %v730_v31, %v9130_v6  ;;  %v521_v47 = vld [vmem:[%s14248_s4 + $0x40] sm:$0xff]  ;;  %v522_v48 = vld [vmem:[%s14248_s4 + $0x48] sm:$0xff]  ;;  %v1118_v18 = vrot.slane %v9172_v23, 4  ;;  %v1123_v19 = vld [vmem:[#allocation4 + $0x10] sm:$0x44]  ;;  %s14428_s1 = smov 2  }
  0x59   : > { %8306 = vmatpush3.bf16.msra.mxu0 %v8305_v24  ;;  %v553_v45 = vrot.slane %v9223_v43, %v9199_v35  ;;  %v8315_v46 = vpack.c.bf16 %v538_v42, %v537_v41  ;;  %v876_v49 = vcombine.high %v875_v30, %v875_v30  ;;  %v946_v50 = vcombine.low %v875_v30, %v875_v30  ;;  %v540_v52 = vld [vmem:[%s14248_s4 + $0xd8] sm:$0xff]  ;;  %v523_v55 = vld [vmem:[%s14248_s4 + $0x50] sm:$0xff]  ;;  %v541_v57 = vld [vmem:[%s14248_s4 + $0xe0] sm:$0xff]  ;;  %s14505_s17 = smov 107   ;;  %s14512_s25 = smov 106  }
  0x5a   : > { %8308 = vmatprep.subr.bf16.mxu0 %v8307_v26  ;;  %v8317_v53 = vpack.c.bf16 %v522_v48, %v521_v47  ;;  %v8319_v54 = vpack.c.bf16 %v540_v52, %v539_v51  ;;  %v524_v56 = vld [vmem:[%s14248_s4 + $0x58] sm:$0xff]  ;;  %v542_v60 = vld [vmem:[%s14248_s4 + $0xe8] sm:$0xff]  ;;  %v525_v1 = vld [vmem:[%s14248_s4 + $0x60] sm:$0xff]  ;;  %v1116_v11 = vrot.slane %v9212_v39, 4  ;;  %v1053_v16 = vcombine.low %v1052_v8, %v1052_v8  ;;  %s14525_s26 = smov 90   ;;  %s14573_s10 = sld [smem:[#allocation77_spill]] }
  0x5b   : > { %620 = vmatprep.mubr.f32.mxu0 %v553_v45  ;;  %v9257_v58 = vrot.slane %v876_v49, %v9130_v6  ;;  %v9260_v59 = vrot.slane %v946_v50, %v9130_v6  ;;  %v8321_v62 = vpack.c.bf16 %v524_v56, %v523_v55  ;;  %v8323_v63 = vpack.c.bf16 %v542_v60, %v541_v57  ;;  %v526_v2 = vld [vmem:[%s14248_s4 + $0x68] sm:$0xff]  ;;  %v543_v5 = vld [vmem:[%s14248_s4 + $0xf0] sm:$0xff]  ;;  %v544_v7 = vld [vmem:[%s14248_s4 + $0xf8] sm:$0xff] }
  0x5c   : > { %813 = vrot.lane.b32.xlu1 %v9186_v29, %s14035_s15  ;;  %1009 = vrot.lane.b32.xlu0 %v9172_v23, %s14047_s16  ;;  %v8325_v9 = vpack.c.bf16 %v526_v2, %v525_v1  ;;  %v8327_v12 = vpack.c.bf16 %v544_v7, %v543_v5  ;;  %v527_v13 = vld [vmem:[%s14248_s4 + $0x70] sm:$0xff]  ;;  %v528_v14 = vld [vmem:[%s14248_s4 + $0x78] sm:$0xff]  ;;  %v1060_v21 = vrot.slane %v1053_v16, %v9130_v6  ;;  %v14252_v25 = vmov 0  ;;  %s14037_s15 = smov 90   ;;  %vm934_vm13 = vmand %vm903_vm0, %vm933_vm11  ;;  %s510_s0 = scalar_lea.vmem %s14379_s2, %s9121_s19 }
  0x5d   : > { %8310 = vmatpush3.bf16.msra.mxu0 %v8309_v34  ;;  %v1117_v15 = vrot.slane %v9257_v58, 4  ;;  %v8329_v17 = vpack.c.bf16 %v528_v14, %v527_v13  ;;  %v1126_v22 = vld [vmem:[#allocation4 + $0x18] sm:$0x44]  ;;  %v549_v24 = vrot.slane %v9223_v43, %v9285_v10  ;;  %v14253_v25 = vsel %vm9311_vm8, 4294967295, %v14252_v25  ;;  %vm936_vm14 = vmand %vm906_vm3, %vm935_vm12  ;;  %v628_v49 = vld [vmem:[%s14260_s3] sm:$0xff]  ;;  %s14403_s19 = smov 18  }
  0x5e   : > { %8312 = vmatprep.subr.bf16.mxu0 %v8311_v36  ;;  %v9347_v31 = vrot.slane %v1052_v8, %v9130_v6  ;;  %v775_v32 = vshll.u32 %v9172_v23, 16  ;;  %v778_v33 = vshll.u32 %v9215_v40, 16  ;;  %vm9364_vm15 = vmor %vm936_vm14, %vm934_vm13  ;;  %v14256_v43 = vmov 0  ;;  %v631_v47 = vld [vmem:[%s14260_s3 + $0x18] sm:$0xff]  ;;  %v630_v50 = vld [vmem:[%s14260_s3 + $0x10] sm:$0xff]  ;;  %s14444_s2 = smov 1  }
  0x5f   : > { %v1119_v20 = vsel %vm14065_vm4, %v1116_v11, %v1117_v15  ;;  %v1120_v26 = vsel %vm14065_vm4, %v1117_v15, %v1118_v18  ;;  %v14257_v43 = vsel %vm9364_vm15, 4294967295, %v14256_v43  ;;  %vm941_vm1 = vmand %vm913_vm6, %vm935_vm12  ;;  %v14258_v45 = vmov 0  ;;  %v633_v52 = vld [vmem:[%s14260_s3 + $0x28] sm:$0xff]  ;;  %v634_v57 = vld [vmem:[%s14260_s3 + $0x30] sm:$0xff]  ;;  %s14478_s4 = smov 110  }
  0x60   : > { %956 = vrot.lane.b32.xlu1 %v9212_v39, %s14051_s28  ;;  %747 = vrot.lane.b32.xlu0 %v9215_v40, %s14107_s6  ;;  %v1124_v27 = vsel %vm9311_vm8, %v1119_v20, %v1123_v19  ;;  %v1127_v30 = vsel %vm9323_vm10, %v1120_v26, %v1126_v22  ;;  %v841_v34 = vrot.slane %v775_v32, 7  ;;  %v842_v36 = vrot.slane %v778_v33, 7  ;;  %vm9373_vm2 = vmor %vm941_vm1, %vm934_vm13  ;;  %v639_v60 = vld [vmem:[%s14260_s3 + $0x58] sm:$0xff]  ;;  %v641_v7 = vld [vmem:[%s14260_s3 + $0x68] sm:$0xff] }
  0x61   : > { %8314 = vmatpush3.bf16.msra.mxu0 %v8313_v44  ;;  %1125 = vst [vmem:[#allocation4 + $0x10] sm:$0x44] %v1124_v27  ;;  %1128 = vst [vmem:[#allocation4 + $0x18] sm:$0x44] %v1127_v30  ;;  %v9354_v37 = vpack.i.bf16 %v778_v33, %v775_v32  ;;  %v919_v38 = vrot.slane %v775_v32, 6  ;;  %v982_v41 = vrot.slane %v775_v32, 5  ;;  %v8333_v51 = vpack.c.bf16 %v630_v50, %v628_v49 }
  0x62   : > { %8316 = vmatprep.subr.bf16.mxu0 %v8315_v46  ;;  %v9360_v6 = vpack.i.bf16 %v842_v36, %v841_v34  ;;  %v983_v42 = vrot.slane %v778_v33, 5  ;;  %v14259_v45 = vsel %vm9373_vm2, 4294967295, %v14258_v45  ;;  %v629_v46 = vld [vmem:[%s14260_s3 + $0x8] sm:$0xff]  ;;  %v1091_v55 = vshll.u32 %v9347_v31, 16  ;;  %v643_v8 = vld [vmem:[%s14260_s3 + $0x78] sm:$0xff]  ;;  %v640_v11 = vld [vmem:[%s14260_s3 + $0x60] sm:$0xff] }
  0x63   : > { %v8331_v48 = vpack.c.bf16 %v631_v47, %v629_v46  ;;  %vm14073_vm0 = vcmask 1041409   ;;  %vm826_vm3 = vsmask.f32 1280  ;;  %vm14070_vm6 = vcmask 128005   ;;  %vm830_vm12 = vmand %vm14071_vm7, %vm829_vm5  ;;  %v838_v16 = vld [vmem:[#allocation4 + $0x8] sm:$0x22] }
  0x64   : > { %1011 = vrot.lane.b32.xlu1 %v9215_v40, %s14047_s16  ;;  %891 = vrot.lane.b32.xlu0 %v9212_v39, %s14053_s22  ;;  %v8702_v44 = vpack.i.bf16 %v983_v42, %v982_v41  ;;  %v1093_v1 = vrot.slane %v1091_v55, 7  ;;  %v1129_v2 = vrot.slane %v1091_v55, 6  ;;  %v1174_v13 = vrot.slane %v1091_v55, 5  ;;  %s14081_s16 = smov 106   ;;  %vm827_vm9 = vmand %vm14073_vm0, %vm826_vm3 }
  0x65   : > { %8318 = vmatpush3.bf16.msra.mxu0 %v8317_v53  ;;  %8332 = vmatprep.subr.bf16.mxu1 %v8331_v48  ;;  %v635_v53 = vld [vmem:[%s14260_s3 + $0x38] sm:$0xff]  ;;  %vm836_vm11 = vmand %vm14070_vm6, %vm829_vm5  ;;  %vm14074_vm13 = vcmask 326656   ;;  %vm14072_vm14 = vcmask 1043459   ;;  %vm967_vm1 = vsmask.f32 3328  ;;  %vm14075_vm15 = vcmask 130055  }
  0x66   : > { %8320 = vmatprep.subr.bf16.mxu0 %v8319_v54  ;;  %8334 = vmatpush1.bf16.msra.mxu1 %v8333_v51  ;;  %v632_v54 = vld [vmem:[%s14260_s3 + $0x20] sm:$0xff]  ;;  %v8335_v56 = vpack.c.bf16 %v635_v53, %v633_v52  ;;  %vm9456_vm4 = vmor %vm836_vm11, %vm827_vm9  ;;  %vm14076_vm2 = vsmask.f32 7424  ;;  %vm758_vm3 = vcmask 1040384   ;;  %vm759_vm6 = vsmask.f32 256 }
  0x67   : > { %vm9460_vm8 = vmor %vm830_vm12, %vm827_vm9  ;;  %vm762_vm11 = vsmask.f32 4352  ;;  %vm14077_vm7 = vcmask 126980   ;;  %vm14091_vm12 = vcmask 1044484   ;;  %vm14269_vm0 = vcmask 1043456  }
  0x68   : > { %893 = vrot.lane.b32.xlu1 %v9257_v58, %s14053_s22  ;;  %954 = vrot.lane.b32.xlu0 %v9260_v59, %s14051_s28  ;;  %s14061_s22 = smov 22   ;;  %vm9466_vm5 = vmand %vm14072_vm14, %vm967_vm1  ;;  %v765_v48 = vld [vmem:[#allocation4] sm:$0x11]  ;;  %s14377_s28 = smov 21  }
  0x69   : > { %8322 = vmatpush3.bf16.msra.mxu0 %v8321_v62  ;;  %8336 = vmatprep.subr.bf16.mxu1 %v8335_v56  ;;  %v636_v62 = vld [vmem:[%s14260_s3 + $0x40] sm:$0xff]  ;;  %vm977_vm9 = vmand %vm14075_vm15, %vm14076_vm2  ;;  %vm14272_vm15 = vcmask 326656   ;;  %vm14087_vm2 = vcmask 171008  }
  0x6a   : > { %8324 = vmatprep.subr.bf16.mxu0 %v8323_v63  ;;  %v638_v63 = vld [vmem:[%s14260_s3 + $0x50] sm:$0xff]  ;;  %vm9475_vm1 = vmand %vm758_vm3, %vm759_vm6 }
  0x6b   : > { %v8341_v5 = vpack.c.bf16 %v638_v63, %v636_v62  ;;  %vm769_vm14 = vmand %vm14077_vm7, %vm762_vm11  ;;  %vm14078_vm7 = vcmask 343040  }
  0x6c   : > { %1063 = vrot.lane.b32.xlu1 %v9172_v23, %s14045_s30  ;;  %1061 = vrot.lane.b32.xlu0 %v9186_v29, %s14045_s30  ;;  %vm9491_vm6 = vmor %vm977_vm9, %vm9466_vm5 }
  0x6d   : > { %8326 = vmatpush3.bf16.msra.mxu0 %v8325_v9  ;;  %v8343_v9 = vpack.c.bf16 %v643_v8, %v641_v7 }
  0x6e   : > { %8328 = vmatprep.subr.bf16.mxu0 %v8327_v12  ;;  %v642_v12 = vld [vmem:[%s14260_s3 + $0x70] sm:$0xff] }
  0x6f   : > { %v8345_v14 = vpack.c.bf16 %v642_v12, %v640_v11  ;;  %v916_v11 = vld [vmem:[#allocation4 + $0x8] sm:$0x44] }
  0x70   : > { %1154 = vrot.lane.b32.xlu1 %v9212_v39, %s14043_s27  ;;  %1152 = vrot.lane.b32.xlu0 %v9260_v59, %s14043_s27 }
  0x71   : > { %8330 = vmatpush3.bf16.msra.mxu0 %v8329_v17 }
  0x74   : > { %1156 = vrot.lane.b32.xlu1 %v9186_v29, %s14043_s27  ;;  %1065 = vrot.lane.b32.xlu0 %v1060_v21, %s14045_s30  ;;  %s14101_s27 = smov 127   ;;  %s14335_s30 = smov 40  }
  0x75   : > { %621 = vmatmul.mubr.f32.vlgmr.msra.gmra.mrb[0].mxu0 %v549_v24 }
  0x76   : > { %1617 = vmatprep.mubr.bf16.mxu0 %v8926_v4 }
  0x78   : > { %1199 = vrot.lane.b32.xlu1 %v9215_v40, %s14041_s23  ;;  %1197 = vrot.lane.b32.xlu0 %v9172_v23, %s14041_s23 }
  0x7c   : > { %1243 = vrot.lane.b32.xlu1 %v9172_v23, %s14039_s24  ;;  %1241 = vrot.lane.b32.xlu0 %v9186_v29, %s14039_s24 }
  0x80   : > { %1287 = vrot.lane.b32.xlu1 %v9257_v58, %s14037_s15  ;;  %1285 = vrot.lane.b32.xlu0 %v9212_v39, %s14037_s15  ;;  %v8337_v58 = vpack.c.bf16 %v634_v57, %v632_v54 }
  0x82   : > { %8338 = vmatpush1.bf16.msra.mxu1 %v8337_v58 }
  0x84   : > { %1331 = vrot.lane.b32.xlu1 %v9212_v39, %s14049_s29  ;;  %1329 = vrot.lane.b32.xlu0 %v9260_v59, %s14049_s29  ;;  %v920_v39 = vrot.slane %v778_v33, 6  ;;  %v637_v59 = vld [vmem:[%s14260_s3 + $0x48] sm:$0xff]  ;;  %v1077_v33 = vld [vmem:[#allocation4 + $0x10] sm:$0x22]  ;;  %s14473_s3 = smov 126  }
  0x85   : > { %v8339_v61 = vpack.c.bf16 %v639_v60, %v637_v59  ;;  %v1024_v59 = vld [vmem:[#allocation4 + $0x18] sm:$0x11] }
  0x87   : > { %8340 = vmatprep.subr.bf16.mxu1 %v8339_v61  ;;  %v1021_v61 = vld [vmem:[#allocation4 + $0x10] sm:$0x11] }
  0x88   : > { %1245 = vrot.lane.b32.xlu1 %v1060_v21, %s14039_s24  ;;  %1201 = vrot.lane.b32.xlu0 %v9347_v31, %s14041_s23  ;;  %s14085_s23 = smov 110   ;;  %s14083_s24 = smov 108   ;;  %v8951_v21 = vmov 0.0  }
  0x89   : > { %8342 = vmatpush1.bf16.msra.mxu1 %v8341_v5  ;;  %712 = vmatprep.mubr.f32.mxu1 %v8951_v21 }
  0x8a   : > { %8344 = vmatprep.subr.bf16.mxu1 %v8343_v9 }
  0x8c   : > { %1333 = vrot.lane.b32.xlu1 %v9186_v29, %s14049_s29  ;;  %1289 = vrot.lane.b32.xlu0 %v9172_v23, %s14037_s15  ;;  %v8697_v29 = vpack.i.bf16 %v920_v39, %v919_v38  ;;  %s14057_s15 = smov 18   ;;  %s14103_s29 = smov 1  }
  0x8d   : > { %8346 = vmatpush1.bf16.msra.mxu1 %v8345_v14  ;;  %v910_v14 = vld [vmem:[#allocation4] sm:$0x44] }
  0x90   : > { %8688 = vrot.lane.b32.xlu0 %v9354_v37, %s14063_s13  ;;  %8693 = vrot.lane.b32.xlu1 %v9360_v6, %s14055_s21  ;;  %s14059_s21 = smov 20   ;;  %s14298_s13 = smov 41  }
  0x94   : > { %8698 = vrot.lane.b32.xlu0 %v8697_v29, %s14061_s22  ;;  %8703 = vrot.lane.b32.xlu1 %v8702_v44, %s14059_s21  ;;  %s14105_s21 = smov 89   ;;  %s14109_s22 = smov 86  }
  0x98   : > { %8708 = vrot.lane.b32.xlu0 %v9354_v37, %s14057_s15  ;;  %8713 = vrot.lane.b32.xlu1 %v9360_v6, %s14103_s29  ;;  %s14111_s15 = smov 87  }
  0x9c   : > { %8718 = vrot.lane.b32.xlu0 %v8697_v29, %s14101_s27  ;;  %8723 = vrot.lane.b32.xlu1 %v8702_v44, %s14085_s23 }
  0xa0   : > { %1098 = vrot.lane.b32.xlu0 %v1093_v1, %s14103_s29  ;;  %1134 = vrot.lane.b32.xlu1 %v1129_v2, %s14101_s27  ;;  %s14390_s29 = smov 89   ;;  %s14401_s27 = smov 20  }
  0xa4   : > { %1179 = vrot.lane.b32.xlu0 %v1174_v13, %s14085_s23  ;;  %8728 = vrot.lane.b32.xlu1 %v9354_v37, %s14083_s24  ;;  %v979_v37 = vld [vmem:[#allocation4 + $0x8] sm:$0x88]  ;;  %s14361_s23 = smov 39  }
  0xa8   : > { %8733 = vrot.lane.b32.xlu0 %v9360_v6, %s14081_s16  ;;  %8738 = vrot.lane.b32.xlu1 %v8697_v29, %s14105_s21  ;;  %v14275_v29 = vmov 0 }
  0xac   : > { %8743 = vrot.lane.b32.xlu0 %v8702_v44, %s14111_s15  ;;  %1373 = vrot.lane.b32.xlu1 %v9172_v23, %s14109_s22  ;;  %v771_v44 = vld [vmem:[#allocation4 + $0x8] sm:$0x11] }
  0xb0   : > { %1375 = vrot.lane.b32.xlu0 %v9215_v40, %s14109_s22  ;;  %1223 = vrot.lane.b32.xlu1 %v1091_v55, %s14083_s24  ;;  %s14367_s24 = smov 38  }
  0xb4   : > { %1267 = vrot.lane.b32.xlu0 %v1093_v1, %s14081_s16  ;;  %1311 = vrot.lane.b32.xlu1 %v1129_v2, %s14105_s21  ;;  %s14375_s16 = smov 22   ;;  %s14385_s21 = smov 88  }
  0xb8   : > { %1355 = vrot.lane.b32.xlu0 %v1174_v13, %s14111_s15  ;;  %1377 = vrot.lane.b32.xlu1 %v9347_v31, %s14109_s22  ;;  %v832_v31 = vld [vmem:[#allocation4] sm:$0x22]  ;;  %s14387_s15 = smov 86   ;;  %s14388_s22 = smov 42  }
  0xca   : > { %v816_v23 = vpop.permute.xlu1 %815  ;;  %v746_v40 = vpop.permute.xlu0 %745 }
  0xcb   : > { %v818_v17 = vrot.slane %v816_v23, 4  ;;  %v749_v41 = vrot.slane %v746_v40, 4 }
  0xcd   : > { %v822_v19 = vsel %vm14074_vm13, %v816_v23, %v818_v17  ;;  %vm9484_vm13 = vmand %vm14091_vm12, %vm762_vm11  ;;  %vm14279_vm11 = vcmask 1043456   ;;  %vm792_vm12 = vsmask.f32 7938 }
  0xce   : > { %v839_v22 = vsel %vm9456_vm4, %v822_v19, %v838_v16  ;;  %v814_v24 = vpop.permute.xlu1 %813  ;;  %v1010_v26 = vpop.permute.xlu0 %1009  ;;  %vm14280_vm9 = vmmov %vm14279_vm11 }
  0xcf   : > { %840 = vst [vmem:[#allocation4 + $0x8] sm:$0x22] %v839_v22  ;;  %v817_v27 = vrot.slane %v814_v24, 4  ;;  %v1013_v57 = vrot.slane %v1010_v26, 4 }
  0xd1   : > { %v819_v32 = vsel %vm14269_vm0, %v817_v27, %v818_v17  ;;  %vm9499_vm0 = vmor %vm769_vm14, %vm9475_vm1  ;;  %vm14079_vm14 = vcmask 154624  }
  0xd2   : > { %v821_v34 = vsel %vm14272_vm15, %v814_v24, %v819_v32  ;;  %v957_v38 = vpop.permute.xlu1 %956  ;;  %v748_v39 = vpop.permute.xlu0 %747  ;;  %v14276_v29 = vsel %vm9499_vm0, 4294967295, %v14275_v29  ;;  %vm9507_vm15 = vmor %vm9484_vm13, %vm9475_vm1  ;;  %vm14080_vm13 = vcmask 1047559   ;;  %vm14281_vm1 = vsmask.f32 7424 }
  0xd3   : > { %v833_v6 = vsel %vm9460_vm8, %v821_v34, %v832_v31  ;;  %v959_v42 = vrot.slane %v957_v38, 4  ;;  %v750_v46 = vrot.slane %v748_v39, 4 }
  0xd4   : > { %834 = vst [vmem:[#allocation4] sm:$0x22] %v833_v6 }
  0xd5   : > { %v963_v49 = vsel %vm14087_vm2, %v957_v38, %v959_v42  ;;  %v752_v50 = vsel %vm14279_vm11, %v749_v41, %v750_v46  ;;  %v755_v51 = vsel %vm14078_vm7, %v748_v39, %v750_v46  ;;  %vm971_vm11 = vmand %vm14080_vm13, %vm14281_vm1  ;;  %vm14284_vm1 = vcmask 1043456  }
  0xd6   : > { %v980_v52 = vsel %vm9491_vm6, %v963_v49, %v979_v37  ;;  %v754_v53 = vsel %vm14078_vm7, %v746_v40, %v752_v50  ;;  %v772_v54 = vsel %vm9499_vm0, %v755_v51, %v771_v44  ;;  %v1012_v55 = vpop.permute.xlu1 %1011  ;;  %v892_v56 = vpop.permute.xlu0 %891  ;;  %vm14090_vm7 = vcmask 310272   ;;  %v973_v40 = vld [vmem:[#allocation4] sm:$0x88]  ;;  %v1168_v44 = vld [vmem:[#allocation4 + $0x10] sm:$0x88] }
  0xd7   : > { %981 = vst [vmem:[#allocation4 + $0x8] sm:$0x88] %v980_v52  ;;  %v766_v58 = vsel %vm9507_vm15, %v754_v53, %v765_v48  ;;  %773 = vst [vmem:[#allocation4 + $0x8] sm:$0x11] %v772_v54  ;;  %v1014_v60 = vrot.slane %v1012_v55, 4  ;;  %v895_v9 = vrot.slane %v892_v56, 4 }
  0xd8   : > { %767 = vst [vmem:[#allocation4] sm:$0x11] %v766_v58  ;;  %vm14089_vm13 = vcmask 15360   ;;  %v1411_v51 = vld [vmem:[%s14288_s8 + $0x10] sm:$0xff]  ;;  %v1412_v52 = vld [vmem:[%s14288_s8 + $0x18] sm:$0xff]  ;;  %v1414_v58 = vld [vmem:[%s14288_s8 + $0x28] sm:$0xff] }
  0xd9   : > { %v1015_v62 = vsel %vm14280_vm9, %v1013_v57, %v1014_v60  ;;  %v1018_v63 = vsel %vm14079_vm14, %v1012_v55, %v1014_v60  ;;  %vm9532_vm9 = vmor %vm971_vm11, %vm9466_vm5  ;;  %vm14286_vm5 = vnez %v14253_v25  ;;  %vm14088_vm11 = vcmask 1031168   ;;  %v1171_v54 = vld [vmem:[#allocation4 + $0x18] sm:$0x88]  ;;  %1427 = vperm.xlu0 %8747, %v1411_v51   ;;  %1432 = vperm.xlu1 %8748, %v1412_v52   ;;  %v1080_v57 = vld [vmem:[#allocation4 + $0x18] sm:$0x22] }
  0xda   : > { %v1017_v1 = vsel %vm14079_vm14, %v1010_v26, %v1015_v62  ;;  %v1025_v2 = vsel %vm9499_vm0, %v1018_v63, %v1024_v59  ;;  %v894_v5 = vpop.permute.xlu1 %893  ;;  %v955_v7 = vpop.permute.xlu0 %954  ;;  %vm14285_vm14 = vmmov %vm14284_vm1  ;;  %v1413_v59 = vld [vmem:[%s14288_s8 + $0x20] sm:$0xff] }
  0xdb   : > { %v1022_v8 = vsel %vm9507_vm15, %v1017_v1, %v1021_v61  ;;  %1026 = vst [vmem:[#allocation4 + $0x18] sm:$0x11] %v1025_v2  ;;  %v896_v12 = vrot.slane %v894_v5, 4  ;;  %v958_v13 = vrot.slane %v955_v7, 4 }
  0xdc   : > { %1023 = vst [vmem:[#allocation4 + $0x10] sm:$0x11] %v1022_v8 }
  0xdd   : > { %v897_v16 = vsel %vm14284_vm1, %v895_v9, %v896_v12  ;;  %v900_v17 = vsel %vm14090_vm7, %v894_v5, %v896_v12  ;;  %v960_v19 = vsel %vm14285_vm14, %v958_v13, %v959_v42  ;;  %vm14287_vm14 = vmmov %vm14284_vm1  ;;  %1442 = vperm.xlu0 %8747, %v1414_v58   ;;  %1437 = vperm.xlu1 %8748, %v1413_v59   ;;  %v1410_v12 = vld [vmem:[%s14288_s8 + $0x8] sm:$0xff]  ;;  %v1409_v13 = vld [vmem:[%s14288_s8] sm:$0xff]  ;;  %s14496_s8 = smov 108  }
  0xde   : > { %v899_v21 = vsel %vm14090_vm7, %v892_v56, %v897_v16  ;;  %v917_v22 = vsel %vm9323_vm10, %v900_v17, %v916_v11  ;;  %v962_v24 = vsel %vm14087_vm2, %v955_v7, %v960_v19  ;;  %v1064_v26 = vpop.permute.xlu1 %1063  ;;  %v1062_v20 = vpop.permute.xlu0 %1061  ;;  %vm14095_vm2 = vcmask 891904   ;;  %v1213_v11 = vld [vmem:[#allocation4 + $0x20] sm:$0x11] }
  0xdf   : > { %v911_v27 = vsel %vm14286_vm5, %v899_v21, %v910_v14  ;;  %918 = vst [vmem:[#allocation4 + $0x8] sm:$0x44] %v917_v22  ;;  %v974_v30 = vsel %vm9532_vm9, %v962_v24, %v973_v40  ;;  %v1068_v31 = vrot.slane %v1064_v26, 4  ;;  %v1067_v32 = vrot.slane %v1062_v20, 4  ;;  %v1257_v24 = vld [vmem:[#allocation4 + $0x20] sm:$0x22] }
  0xe0   : > { %912 = vst [vmem:[#allocation4] sm:$0x44] %v911_v27  ;;  %975 = vst [vmem:[#allocation4] sm:$0x88] %v974_v30 }
  0xe1   : > { %v1070_v34 = vsel %vm14287_vm14, %v1067_v32, %v1068_v31  ;;  %vm14289_vm14 = vmmov %vm14284_vm1  ;;  %1422 = vperm.xlu0 %8747, %v1410_v12   ;;  %1417 = vperm.xlu1 %8748, %v1409_v13  }
  0xe2   : > { %v1072_v37 = vsel %vm14089_vm13, %v1062_v20, %v1070_v34  ;;  %v1155_v38 = vpop.permute.xlu1 %1154  ;;  %v1153_v39 = vpop.permute.xlu0 %1152 }
  0xe3   : > { %v1078_v41 = vsel %vm9460_vm8, %v1072_v37, %v1077_v33  ;;  %v1159_v6 = vrot.slane %v1155_v38, 4  ;;  %v1158_v42 = vrot.slane %v1153_v39, 4  ;;  %v1301_v37 = vld [vmem:[#allocation4 + $0x20] sm:$0x44] }
  0xe4   : > { %1079 = vst [vmem:[#allocation4 + $0x10] sm:$0x22] %v1078_v41 }
  0xe5   : > { %v1161_v46 = vsel %vm14284_vm1, %v1158_v42, %v1159_v6 }
  0xe6   : > { %v1163_v48 = vsel %vm14088_vm11, %v1161_v46, %v1155_v38  ;;  %v1157_v49 = vpop.permute.xlu1 %1156  ;;  %v1066_v50 = vpop.permute.xlu0 %1065  ;;  %v9597_v38 = vld [vmem:[#allocation2 + $0x30] sm:$0xff] }
  0xe7   : > { %v1169_v53 = vsel %vm9532_vm9, %v1163_v48, %v1168_v44  ;;  %v1160_v55 = vrot.slane %v1157_v49, 4  ;;  %v1069_v56 = vrot.slane %v1066_v50, 4  ;;  %v1345_v48 = vld [vmem:[#allocation4 + $0x20] sm:$0x88] }
  0xe8   : > { %1170 = vst [vmem:[#allocation4 + $0x10] sm:$0x88] %v1169_v53 }
  0xe9   : > { %v1164_v60 = vsel %vm14289_vm14, %v1159_v6, %v1160_v55  ;;  %v1073_v61 = vsel %vm14284_vm1, %v1068_v31, %v1069_v56  ;;  %vm14290_vm14 = vmmov %vm14284_vm1  ;;  %vm14094_vm1 = vcmask 875520   ;;  %v1260_v56 = vld [vmem:[#allocation4 + $0x28] sm:$0x22] }
  0xea   : > { %v1165_v62 = vsel %vm14088_vm11, %v1164_v60, %v1157_v49  ;;  %v1074_v63 = vsel %vm14089_vm13, %v1064_v26, %v1073_v61  ;;  %v9571_v1 = vpop.permute.xlu1 %1199  ;;  %v1198_v2 = vpop.permute.xlu0 %1197  ;;  %v9589_v26 = vld [vmem:[#allocation2] sm:$0xff]  ;;  %vm14291_vm11 = vmmov %vm14290_vm14 }
  0xeb   : > { %v1172_v5 = vsel %vm9491_vm6, %v1165_v62, %v1171_v54  ;;  %v1081_v7 = vsel %vm9456_vm4, %v1074_v63, %v1080_v57  ;;  %v1204_v8 = vrot.slane %v9571_v1, 4  ;;  %v1203_v9 = vrot.slane %v1198_v2, 4  ;;  %1766 = vrot.lane.b32.xlu1 %v9589_v26, %s14107_s6  ;;  %vm14292_vm13 = vmmov %vm14291_vm11  ;;  %v9605_v49 = vld [vmem:[#allocation2 + $0x60] sm:$0xff]  ;;  %v1216_v57 = vld [vmem:[#allocation4 + $0x28] sm:$0x11] }
  0xec   : > { %1173 = vst [vmem:[#allocation4 + $0x18] sm:$0x88] %v1172_v5  ;;  %1082 = vst [vmem:[#allocation4 + $0x18] sm:$0x22] %v1081_v7 }
  0xed   : > { %v1206_v14 = vsel %vm14290_vm14, %v1203_v9, %v1204_v8  ;;  %vm14092_vm14 = vcmask 736256   ;;  %vm14293_vm7 = vmmov %vm14291_vm11  ;;  %v1348_v9 = vld [vmem:[#allocation4 + $0x28] sm:$0x88] }
  0xee   : > { %v1208_v40 = vsel %vm14095_vm2, %v1206_v14, %v9571_v1  ;;  %v1244_v16 = vpop.permute.xlu1 %1243  ;;  %v1242_v17 = vpop.permute.xlu0 %1241 }
  0xef   : > { %v1214_v19 = vsel %vm9507_vm15, %v1208_v40, %v1213_v11  ;;  %v1248_v21 = vrot.slane %v1244_v16, 4  ;;  %v1247_v22 = vrot.slane %v1242_v17, 4  ;;  %1774 = vrot.lane.b32.xlu1 %v9597_v38, %s14107_s6  ;;  %v1304_v11 = vld [vmem:[#allocation4 + $0x28] sm:$0x44] }
  0xf0   : > { %1215 = vst [vmem:[#allocation4 + $0x20] sm:$0x11] %v1214_v19 }
  0xf1   : > { %v1250_v20 = vsel %vm14291_vm11, %v1247_v22, %v1248_v21 }
  0xf2   : > { %v1252_v27 = vsel %vm14094_vm1, %v1250_v20, %v1244_v16  ;;  %v1288_v30 = vpop.permute.xlu1 %1287  ;;  %v1286_v31 = vpop.permute.xlu0 %1285 }
  0xf3   : > { %v1258_v32 = vsel %vm9460_vm8, %v1252_v27, %v1257_v24  ;;  %v1292_v33 = vrot.slane %v1288_v30, 4  ;;  %v1291_v34 = vrot.slane %v1286_v31, 4  ;;  %vm14093_vm8 = vcmask 719872   ;;  %1782 = vrot.lane.b32.xlu1 %v9605_v49, %s14107_s6  ;;  %v1006_v27 = vld [vmem:[#allocation4 + $0x8] sm:$0x88]  ;;  %s14384_s6 = smov 87  }
  0xf4   : > { %1259 = vst [vmem:[#allocation4 + $0x20] sm:$0x22] %v1258_v32 }
  0xf5   : > { %v1294_v39 = vsel %vm14292_vm13, %v1291_v34, %v1292_v33  ;;  %vm855_vm13 = vsmask.f32 7942 }
  0xf6   : > { %v1296_v41 = vsel %vm14092_vm14, %v1294_v39, %v1288_v30  ;;  %v1332_v6 = vpop.permute.xlu1 %1331  ;;  %v1330_v42 = vpop.permute.xlu0 %1329  ;;  %vm14295_vm14 = vcmask 1041409  }
  0xf7   : > { %v1302_v18 = vsel %vm14286_vm5, %v1296_v41, %v1301_v37  ;;  %v1336_v44 = vrot.slane %v1332_v6, 4  ;;  %v1335_v46 = vrot.slane %v1330_v42, 4  ;;  %vm14096_vm5 = vsmask.f32 7958  ;;  %1847 = vrot.lane.b32.xlu1 %v9589_v26, %s14298_s13 }
  0xf8   : > { %1303 = vst [vmem:[#allocation4 + $0x20] sm:$0x44] %v1302_v18 }
  0xf9   : > { %v1338_v50 = vsel %vm14291_vm11, %v1335_v46, %v1336_v44  ;;  %vm14294_vm11 = vmmov %vm14293_vm7 }
  0xfa   : > { %v1340_v51 = vsel %vm14093_vm8, %v1338_v50, %v1332_v6  ;;  %v1246_v52 = vpop.permute.xlu1 %1245  ;;  %v1202_v53 = vpop.permute.xlu0 %1201  ;;  %vm9618_vm8 = vmand %vm14295_vm14, %vm855_vm13  ;;  %vm14304_vm14 = vcmask 1043456   ;;  %v797_v50 = vld [vmem:[#allocation4] sm:$0x11] }
  0xfb   : > { %v1346_v25 = vsel %vm9532_vm9, %v1340_v51, %v1345_v48  ;;  %v1249_v54 = vrot.slane %v1246_v52, 4  ;;  %v1205_v55 = vrot.slane %v1202_v53, 4  ;;  %vm794_vm9 = vsmask.f32 7954  ;;  %vm14305_vm13 = vmmov %vm14304_vm14  ;;  %1855 = vrot.lane.b32.xlu1 %v9597_v38, %s14298_s13  ;;  %v1039_v48 = vld [vmem:[#allocation4 + $0x10] sm:$0x11] }
  0xfc   : > { %1347 = vst [vmem:[#allocation4 + $0x20] sm:$0x88] %v1346_v25 }
  0xfd   : > { %v1253_v58 = vsel %vm14293_vm7, %v1248_v21, %v1249_v54  ;;  %v1209_v59 = vsel %vm14294_vm11, %v1204_v8, %v1205_v55  ;;  %vm14299_vm7 = vcmask 1045509   ;;  %v1001_v54 = vld [vmem:[#allocation4] sm:$0x88] }
  0xfe   : > { %v1254_v60 = vsel %vm14094_vm1, %v1253_v58, %v1246_v52  ;;  %v1210_v23 = vsel %vm14095_vm2, %v1209_v59, %v1202_v53  ;;  %v1334_v61 = vpop.permute.xlu1 %1333  ;;  %v1290_v62 = vpop.permute.xlu0 %1289  ;;  %vm9630_vm11 = vmand %vm14299_vm7, %vm14096_vm5  ;;  %vm14306_vm1 = vcmask 719872   ;;  %vm14307_vm7 = vcmask 736256  }
  0xff   : > { %v1261_v1 = vsel %vm9456_vm4, %v1254_v60, %v1260_v56  ;;  %v1217_v2 = vsel %vm9499_vm0, %v1210_v23, %v1216_v57  ;;  %v1337_v5 = vrot.slane %v1334_v61, 4  ;;  %v1293_v7 = vrot.slane %v1290_v62, 4  ;;  %vm9636_vm4 = vmand %vm758_vm3, %vm792_vm12  ;;  %1863 = vrot.lane.b32.xlu1 %v9605_v49, %s14298_s13  ;;  %v860_v56 = vld [vmem:[#allocation4] sm:$0x22]  ;;  %v802_v60 = vld [vmem:[#allocation4 + $0x8] sm:$0x11] }
 0x100   : > { %1262 = vst [vmem:[#allocation4 + $0x28] sm:$0x22] %v1261_v1  ;;  %1218 = vst [vmem:[#allocation4 + $0x28] sm:$0x11] %v1217_v2  ;;  %vm14099_vm2 = vcmask 334848   ;;  %vm14308_vm5 = vcmask 1044484  }
 0x101   : > { %v1341_v12 = vsel %vm14304_vm14, %v1336_v44, %v1337_v5  ;;  %v1297_v13 = vsel %vm14305_vm13, %v1292_v33, %v1293_v7  ;;  %vm9646_vm0 = vmand %vm14308_vm5, %vm794_vm9  ;;  %vm14311_vm3 = vcmask 126980   ;;  %vm14100_vm13 = vcmask 146432  }
 0x102   : > { %v1342_v14 = vsel %vm14306_vm1, %v1341_v12, %v1334_v61  ;;  %v1298_v40 = vsel %vm14307_vm7, %v1297_v13, %v1290_v62  ;;  %v8689_v17 = vpop.permute.xlu0 %8688  ;;  %v8694_v19 = vpop.permute.xlu1 %8693  ;;  %vm9656_vm12 = vmand %vm14311_vm3, %vm794_vm9  ;;  %vm14321_vm9 = vcmask 1043459  }
 0x103   : > { %v1349_v21 = vsel %vm9491_vm6, %v1342_v14, %v1348_v9  ;;  %v1305_v22 = vsel %vm9323_vm10, %v1298_v40, %v1304_v11  ;;  %v8691_v24 = vunpack.i.h.bf16 %v8689_v17  ;;  %v8690_v20 = vunpack.i.l.bf16 %v8689_v17  ;;  %vm9666_vm1 = vmor %vm9630_vm11, %vm9618_vm8  ;;  %1928 = vrot.lane.b32.xlu1 %v9589_v26, %s14335_s30  ;;  %v938_v17 = vld [vmem:[#allocation4] sm:$0x44] }
 0x104   : > { %1350 = vst [vmem:[#allocation4 + $0x28] sm:$0x88] %v1349_v21  ;;  %1306 = vst [vmem:[#allocation4 + $0x28] sm:$0x44] %v1305_v22  ;;  %vm14098_vm10 = vcmask 318464   ;;  %v8696_v28 = vunpack.i.h.bf16 %v8694_v19  ;;  %v8695_v30 = vunpack.i.l.bf16 %v8694_v19 }
 0x105   : > { %vm996_vm6 = vsmask.f32 7950  ;;  %vm9674_vm5 = vmor %vm9646_vm0, %vm9636_vm4  ;;  %v785_v32 = vrot.slane %v8691_v24, 4  ;;  %v784_v33 = vrot.slane %v8690_v20, 4  ;;  %vm998_vm11 = vsmask.f32 7966 }
 0x106   : > { %v848_v34 = vrot.slane %v8696_v28, 4  ;;  %v847_v37 = vrot.slane %v8695_v30, 4  ;;  %v8699_v39 = vpop.permute.xlu0 %8698  ;;  %v8704_v41 = vpop.permute.xlu1 %8703  ;;  %vm9682_vm7 = vmor %vm9656_vm12, %vm9636_vm4  ;;  %vm14325_vm12 = vcmask 130055  }
 0x107   : > { %v789_v42 = vsel %vm14099_vm2, %v8691_v24, %v785_v32  ;;  %vm14320_vm0 = vmmov %vm14304_vm14  ;;  %v8701_v44 = vunpack.i.h.bf16 %v8699_v39  ;;  %v8700_v46 = vunpack.i.l.bf16 %v8699_v39  ;;  %v8706_v25 = vunpack.i.h.bf16 %v8704_v41  ;;  %1936 = vrot.lane.b32.xlu1 %v9597_v38, %s14335_s30 }
 0x108   : > { %v786_v18 = vsel %vm14320_vm0, %v784_v33, %v785_v32  ;;  %vm9690_vm14 = vmand %vm14321_vm9, %vm996_vm6  ;;  %v9698_v52 = vsel %vm14098_vm10, %v8696_v28, %v848_v34  ;;  %v8705_v62 = vunpack.i.l.bf16 %v8704_v41  ;;  %vm14328_vm9 = vcmask 1047559  }
 0x109   : > { %v788_v51 = vsel %vm14099_vm2, %v8690_v20, %v786_v18  ;;  %vm14324_vm4 = vmmov %vm14320_vm0  ;;  %v926_v58 = vrot.slane %v8701_v44, 4  ;;  %v925_v59 = vrot.slane %v8700_v46, 4  ;;  %v989_v61 = vrot.slane %v8706_v25, 4  ;;  %v943_v20 = vld [vmem:[#allocation4 + $0x8] sm:$0x44] }
 0x10a   : > { %v849_v53 = vsel %vm14324_vm4, %v847_v37, %v848_v34  ;;  %vm9703_vm0 = vmand %vm14325_vm12, %vm998_vm11  ;;  %v798_v55 = vsel %vm9674_vm5, %v788_v51, %v797_v50  ;;  %v8709_v1 = vpop.permute.xlu0 %8708  ;;  %v9712_v2 = vpop.permute.xlu1 %8713  ;;  %v803_v7 = vsel %vm9682_vm7, %v789_v42, %v802_v60  ;;  %vm14331_vm12 = vcmask 179200  }
 0x10b   : > { %v851_v57 = vsel %vm14098_vm10, %v8695_v30, %v849_v53  ;;  %799 = vst [vmem:[#allocation4] sm:$0x11] %v798_v55  ;;  %vm9716_vm4 = vmand %vm14328_vm9, %vm998_vm11  ;;  %v930_v8 = vsel %vm14331_vm12, %v8701_v44, %v926_v58  ;;  %vm14332_vm10 = vcmask 1043456   ;;  %v8711_v11 = vunpack.i.h.bf16 %v8709_v1  ;;  %1944 = vrot.lane.b32.xlu1 %v9605_v49, %s14335_s30  ;;  %v1326_v47 = vld [vmem:[#allocation4 + $0x28] sm:$0x44] }
 0x10c   : > { %v861_v23 = vsel %vm9666_vm1, %v851_v57, %v860_v56  ;;  %v927_v9 = vsel %vm14332_vm10, %v925_v59, %v926_v58  ;;  %v8710_v15 = vunpack.i.l.bf16 %v8709_v1  ;;  %vm9728_vm6 = vmor %vm9703_vm0, %vm9690_vm14  ;;  %804 = vst [vmem:[#allocation4 + $0x8] sm:$0x11] %v803_v7  ;;  %vm14337_vm9 = vcmask 162816   ;;  %v1146_v58 = vld [vmem:[#allocation4 + $0x10] sm:$0x44] }
 0x10d   : > { %862 = vst [vmem:[#allocation4] sm:$0x22] %v861_v23  ;;  %vm14336_vm11 = vmmov %vm14331_vm12  ;;  %v993_v14 = vsel %vm14337_vm9, %v8706_v25, %v989_v61  ;;  %v988_v40 = vrot.slane %v8705_v62, 4  ;;  %v8716_v16 = vunpack.i.h.bf16 %v9712_v2  ;;  %v1032_v19 = vrot.slane %v8711_v11, 4  ;;  %v865_v23 = vld [vmem:[#allocation4 + $0x8] sm:$0x22] }
 0x10e   : > { %v929_v13 = vsel %vm14336_vm11, %v8700_v46, %v927_v9  ;;  %v1031_v21 = vrot.slane %v8710_v15, 4  ;;  %v8715_v22 = vunpack.i.l.bf16 %v9712_v2  ;;  %vm14338_vm10 = vnez %v14257_v43  ;;  %v8719_v33 = vpop.permute.xlu0 %8718  ;;  %v8724_v34 = vpop.permute.xlu1 %8723  ;;  %vm9755_vm3 = vmor %vm9716_vm4, %vm9690_vm14  ;;  %v1113_v2 = vld [vmem:[#allocation4 + $0x18] sm:$0x22] }
 0x10f   : > { %v939_v24 = vsel %vm14338_vm10, %v929_v13, %v938_v17  ;;  %vm14339_vm0 = vsmask.f32 7958  ;;  %vm14340_vm12 = vcmask 128005   ;;  %vm14343_vm11 = vcmask 1043456   ;;  %v1149_v17 = vld [vmem:[#allocation4 + $0x18] sm:$0x44]  ;;  %2009 = vrot.lane.b32.xlu1 %v9589_v26, %s14361_s23 }
 0x110   : > { %vm9742_vm2 = vmand %vm14340_vm12, %vm14339_vm0  ;;  %v990_v30 = vsel %vm14343_vm11, %v988_v40, %v989_v61  ;;  %v1101_v32 = vrot.slane %v8716_v16, 4  ;;  %940 = vst [vmem:[#allocation4] sm:$0x44] %v939_v24  ;;  %vm14344_vm9 = vnez %v14259_v45  ;;  %v1007_v41 = vsel %vm9728_vm6, %v993_v14, %v1006_v27  ;;  %v1110_v61 = vld [vmem:[#allocation4 + $0x10] sm:$0x22] }
 0x111   : > { %v944_v37 = vsel %vm14344_vm9, %v930_v8, %v943_v20  ;;  %vm14347_vm0 = vcmask 162816   ;;  %v1036_v18 = vsel %vm14100_vm13, %v8711_v11, %v1032_v19  ;;  %vm14348_vm12 = vmmov %vm14343_vm11  ;;  %v1100_v46 = vrot.slane %v8715_v22, 4  ;;  %1008 = vst [vmem:[#allocation4 + $0x8] sm:$0x88] %v1007_v41  ;;  %v1042_v14 = vld [vmem:[#allocation4 + $0x18] sm:$0x11] }
 0x112   : > { %v992_v42 = vsel %vm14347_vm0, %v8705_v62, %v990_v30  ;;  %v1033_v44 = vsel %vm14348_vm12, %v1031_v21, %v1032_v19  ;;  %945 = vst [vmem:[#allocation4 + $0x8] sm:$0x44] %v944_v37  ;;  %v8721_v51 = vunpack.i.h.bf16 %v8719_v33  ;;  %v8720_v53 = vunpack.i.l.bf16 %v8719_v33  ;;  %vm14349_vm14 = vmmov %vm14343_vm11  ;;  %v1099_v8 = vpop.permute.xlu0 %1098  ;;  %v1135_v9 = vpop.permute.xlu1 %1134 }
 0x113   : > { %v1035_v50 = vsel %vm14100_vm13, %v8710_v15, %v1033_v44  ;;  %v8726_v25 = vunpack.i.h.bf16 %v8724_v34  ;;  %v1103_v56 = vsel %vm14349_vm14, %v1100_v46, %v1101_v32  ;;  %v8725_v57 = vunpack.i.l.bf16 %v8724_v34  ;;  %vm9776_vm4 = vmor %vm9742_vm2, %vm9618_vm8  ;;  %v1191_v34 = vld [vmem:[#allocation4 + $0x10] sm:$0x88]  ;;  %2017 = vrot.lane.b32.xlu1 %v9597_v38, %s14361_s23 }
 0x114   : > { %v1040_v55 = vsel %vm9674_vm5, %v1035_v50, %v1039_v48  ;;  %v1002_v59 = vsel %vm9755_vm3, %v992_v42, %v1001_v54  ;;  %vm14352_vm11 = vcmask 7168   ;;  %v1137_v1 = vrot.slane %v8721_v51, 4  ;;  %vm14353_vm2 = vmmov %vm14348_vm12 }
 0x115   : > { %1041 = vst [vmem:[#allocation4 + $0x10] sm:$0x11] %v1040_v55  ;;  %v1105_v62 = vsel %vm14352_vm11, %v8715_v22, %v1103_v56  ;;  %v1136_v5 = vrot.slane %v8720_v53, 4  ;;  %v1182_v7 = vrot.slane %v8726_v25, 4  ;;  %1003 = vst [vmem:[#allocation4] sm:$0x88] %v1002_v59  ;;  %v1043_v19 = vsel %vm9682_vm7, %v1036_v18, %v1042_v14 }
 0x116   : > { %v1111_v63 = vsel %vm9666_vm1, %v1105_v62, %v1110_v61  ;;  %v1181_v11 = vrot.slane %v8725_v57, 4  ;;  %v1102_v15 = vrot.slane %v1099_v8, 4  ;;  %v1138_v13 = vrot.slane %v1135_v9, 4  ;;  %vm14355_vm0 = vmmov %vm14353_vm2  ;;  %1044 = vst [vmem:[#allocation4 + $0x18] sm:$0x11] %v1043_v19  ;;  %v1180_v37 = vpop.permute.xlu0 %1179  ;;  %v8729_v41 = vpop.permute.xlu1 %8728 }
 0x117   : > { %1112 = vst [vmem:[#allocation4 + $0x10] sm:$0x22] %v1111_v63  ;;  %v1139_v40 = vsel %vm14353_vm2, %v1136_v5, %v1137_v1  ;;  %v866_v21 = vsel %vm9776_vm4, %v9698_v52, %v865_v23  ;;  %vm14354_vm8 = vcmask 1039360   ;;  %vm14356_vm12 = vmmov %vm14355_vm0  ;;  %vm14358_vm11 = vcmask 900096   ;;  %v1235_v62 = vld [vmem:[#allocation4 + $0x20] sm:$0x11]  ;;  %2025 = vrot.lane.b32.xlu1 %v9605_v49, %s14361_s23 }
 0x118   : > { %v1141_v22 = vsel %vm14354_vm8, %v1139_v40, %v8721_v51  ;;  %v1184_v24 = vsel %vm14355_vm0, %v1181_v11, %v1182_v7  ;;  %v1106_v20 = vsel %vm14356_vm12, %v1101_v32, %v1102_v15  ;;  %vm14357_vm14 = vmmov %vm14355_vm0  ;;  %867 = vst [vmem:[#allocation4 + $0x8] sm:$0x22] %v866_v21  ;;  %vm14359_vm2 = vcmask 7168   ;;  %v1194_v51 = vld [vmem:[#allocation4 + $0x18] sm:$0x88] }
 0x119   : > { %v1142_v27 = vsel %vm14357_vm14, %v1137_v1, %v1138_v13  ;;  %v1186_v28 = vsel %vm14358_vm11, %v1184_v24, %v8726_v25  ;;  %v1107_v30 = vsel %vm14359_vm2, %v8716_v16, %v1106_v20  ;;  %v1147_v33 = vsel %vm14338_vm10, %v1141_v22, %v1146_v58  ;;  %vm14360_vm13 = vmmov %vm14354_vm8  ;;  %v1279_v19 = vld [vmem:[#allocation4 + $0x20] sm:$0x22]  ;;  %v1323_v24 = vld [vmem:[#allocation4 + $0x20] sm:$0x44] }
 0x11a   : > { %v1143_v52 = vsel %vm14360_vm13, %v1142_v27, %v1135_v9  ;;  %1148 = vst [vmem:[#allocation4 + $0x10] sm:$0x44] %v1147_v33  ;;  %v1183_v42 = vrot.slane %v1180_v37, 4  ;;  %v1192_v18 = vsel %vm9755_vm3, %v1186_v28, %v1191_v34  ;;  %v8731_v44 = vunpack.i.h.bf16 %v8729_v41  ;;  %vm14362_vm13 = vmmov %vm14355_vm0  ;;  %v8734_v54 = vpop.permute.xlu0 %8733  ;;  %v8739_v55 = vpop.permute.xlu1 %8738 }
 0x11b   : > { %v1150_v32 = vsel %vm14344_vm9, %v1143_v52, %v1149_v17  ;;  %1193 = vst [vmem:[#allocation4 + $0x10] sm:$0x88] %v1192_v18  ;;  %v8730_v16 = vunpack.i.l.bf16 %v8729_v41  ;;  %v1114_v46 = vsel %vm9776_vm4, %v1107_v30, %v1113_v2  ;;  %vm14363_vm8 = vmmov %vm14358_vm11  ;;  %vm1229_vm0 = vcmask 883712   ;;  %2090 = vrot.lane.b32.xlu1 %v9589_v26, %s14367_s24 }
 0x11c   : > { %1151 = vst [vmem:[#allocation4 + $0x18] sm:$0x44] %v1150_v32  ;;  %v1187_v48 = vsel %vm14362_vm13, %v1182_v7, %v1183_v42  ;;  %v1226_v50 = vrot.slane %v8731_v44, 4  ;;  %1115 = vst [vmem:[#allocation4 + $0x18] sm:$0x22] %v1114_v46  ;;  %v8736_v57 = vunpack.i.h.bf16 %v8734_v54  ;;  %v8735_v58 = vunpack.i.l.bf16 %v8734_v54 }
 0x11d   : > { %v1188_v53 = vsel %vm14363_vm8, %v1187_v48, %v1180_v37  ;;  %v1225_v25 = vrot.slane %v8730_v16, 4  ;;  %v8741_v59 = vunpack.i.h.bf16 %v8739_v55  ;;  %vm1273_vm14 = vcmask 867328   ;;  %vm14364_vm2 = vmmov %vm14356_vm12  ;;  %v1367_v42 = vld [vmem:[#allocation4 + $0x20] sm:$0x88] }
 0x11e   : > { %v1195_v56 = vsel %vm9728_vm6, %v1188_v53, %v1194_v51  ;;  %v8740_v61 = vunpack.i.l.bf16 %v8739_v55  ;;  %v1270_v5 = vrot.slane %v8736_v57, 4  ;;  %v1269_v7 = vrot.slane %v8735_v58, 4  ;;  %v8744_v11 = vpop.permute.xlu0 %8743  ;;  %v1374_v15 = vpop.permute.xlu1 %1373  ;;  %vm14365_vm13 = vmmov %vm14364_vm2  ;;  %v1238_v51 = vld [vmem:[#allocation4 + $0x28] sm:$0x11] }
 0x11f   : > { %1196 = vst [vmem:[#allocation4 + $0x18] sm:$0x88] %v1195_v56  ;;  %v1228_v23 = vsel %vm14356_vm12, %v1225_v25, %v1226_v50  ;;  %v1314_v8 = vrot.slane %v8741_v59, 4  ;;  %vm1317_vm11 = vcmask 728064   ;;  %v8746_v14 = vunpack.i.h.bf16 %v8744_v11  ;;  %vm14366_vm12 = vmmov %vm14364_vm2  ;;  %2098 = vrot.lane.b32.xlu1 %v9597_v38, %s14367_s24 }
 0x120   : > { %v1230_v1 = vsel %vm1229_vm0, %v1228_v23, %v8731_v44  ;;  %v1313_v63 = vrot.slane %v8740_v61, 4  ;;  %v1272_v13 = vsel %vm14364_vm2, %v1269_v7, %v1270_v5  ;;  %v8745_v40 = vunpack.i.l.bf16 %v8744_v11  ;;  %v1389_v44 = vld [vmem:[#allocation4 + $0x30] sm:$0x11] }
 0x121   : > { %v1236_v9 = vsel %vm9674_vm5, %v1230_v1, %v1235_v62  ;;  %v1274_v21 = vsel %vm1273_vm14, %v1272_v13, %v8736_v57  ;;  %vm1361_vm8 = vcmask 711680   ;;  %v1358_v27 = vrot.slane %v8746_v14, 4 }
 0x122   : > { %1237 = vst [vmem:[#allocation4 + $0x20] sm:$0x11] %v1236_v9  ;;  %v8753_v17 = vld [vmem:[#allocation4 + $0x4] ss:$16 sps:$4 sm:$0xff]   ;;  %v1316_v22 = vsel %vm14365_vm13, %v1313_v63, %v1314_v8  ;;  %v1280_v31 = vsel %vm9666_vm1, %v1274_v21, %v1279_v19  ;;  %v1357_v28 = vrot.slane %v8745_v40, 4  ;;  %vm1383_vm5 = vcmask 703488   ;;  %v1376_v33 = vpop.permute.xlu0 %1375  ;;  %v1224_v52 = vpop.permute.xlu1 %1223  ;;  %vm14368_vm1 = vmmov %vm14364_vm2 }
 0x123   : > { %v1318_v20 = vsel %vm1317_vm11, %v1316_v22, %v8741_v59  ;;  %1522 = vmatprep.subr.bf16.mxu1 %v8753_v17  ;;  %1281 = vst [vmem:[#allocation4 + $0x20] sm:$0x22] %v1280_v31  ;;  %v1379_v37 = vrot.slane %v1374_v15, 4  ;;  %v1380_v41 = vrot.slane %v1376_v33, 4  ;;  %v1227_v36 = vrot.slane %v1224_v52, 4  ;;  %vm14371_vm2 = vmmov %vm14368_vm1  ;;  %2106 = vrot.lane.b32.xlu1 %v9605_v49, %s14367_s24  ;;  %v8760_v31 = vld [vmem:[%s14378_s7] sm:$0xff]  }
 0x124   : > { %v1324_v30 = vsel %vm14338_vm10, %v1318_v20, %v1323_v24  ;;  %v1360_v34 = vsel %vm14366_vm12, %v1357_v28, %v1358_v27  ;;  %vm14369_vm10 = vmmov %vm14368_vm1  ;;  %v1282_v59 = vld [vmem:[#allocation4 + $0x28] sm:$0x22]  ;;  %v1370_v15 = vld [vmem:[#allocation4 + $0x28] sm:$0x88]  ;;  %v8952_v40 = vmov 65535   ;;  %vm644_vm12 = vcmask 523264  }
 0x125   : > { %1325 = vst [vmem:[#allocation4 + $0x20] sm:$0x44] %v1324_v30  ;;  %v1362_v18 = vsel %vm1361_vm8, %v1360_v34, %v8746_v14  ;;  %v1382_v16 = vsel %vm14368_vm1, %v1379_v37, %v1380_v41  ;;  %v1231_v46 = vsel %vm14369_vm10, %v1226_v50, %v1227_v36  ;;  %vm14376_vm13 = vmmov %vm14368_vm1  ;;  %v626_v20 = vld [vmem:[%s510_s0] sm:$0x1]  ;;  %v8765_v30 = vld [vmem:[%s14378_s7 + $0x10] sm:$0xff]   ;;  %s14402_s0 = smov 19  }
 0x126   : > { %v8754_v32 = vld [vmem:[#allocation4 + $0x8] ss:$16 sps:$4 sm:$0xff]   ;;  %v8756_v2 = vld [vmem:[#allocation4 + $0xc] ss:$16 sps:$4 sm:$0xff]   ;;  %v1368_v43 = vsel %vm9755_vm3, %v1362_v18, %v1367_v42  ;;  %v1384_v48 = vsel %vm1383_vm5, %v1382_v16, %v1376_v33  ;;  %v1232_v53 = vsel %vm1229_vm0, %v1231_v46, %v1224_v52  ;;  %v1268_v25 = vpop.permute.xlu0 %1267  ;;  %v1312_v54 = vpop.permute.xlu1 %1311  ;;  %vm14370_vm3 = vmmov %vm14368_vm1  ;;  %v1508_v17 = vsel %vm14376_vm13, 4294967295, %v8952_v40 }
 0x127   : > { %1369 = vst [vmem:[#allocation4 + $0x20] sm:$0x88] %v1368_v43  ;;  %1585 = vmatprep.subr.bf16.mxu0 %v8756_v2  ;;  %v1390_v55 = vsel %vm9507_vm15, %v1384_v48, %v1389_v44  ;;  %v1239_v39 = vsel %vm9682_vm7, %v1232_v53, %v1238_v51  ;;  %v1271_v56 = vrot.slane %v1268_v25, 4  ;;  %v1315_v57 = vrot.slane %v1312_v54, 4  ;;  %vm14372_vm15 = vmmov %vm14368_vm1  ;;  %2171 = vrot.lane.b32.xlu1 %v9589_v26, %s14375_s16  ;;  %v8751_v33 = vld [vmem:[#allocation4] ss:$16 sps:$4 sm:$0xff]  }
 0x128   : > { %1586 = vmatpush1.bf16.msra.mxu0 %v8754_v32  ;;  %1391 = vst [vmem:[#allocation4 + $0x30] sm:$0x11] %v1390_v55  ;;  %1240 = vst [vmem:[#allocation4 + $0x28] sm:$0x11] %v1239_v39  ;;  %v9906_v32 = vld [vmem:[%s14380_s5] sm:$0xf] }
 0x129   : > { %v1275_v50 = vsel %vm14370_vm3, %v1270_v5, %v1271_v56  ;;  %v1319_v58 = vsel %vm14371_vm2, %v1314_v8, %v1315_v57  ;;  %v1392_v5 = vld [vmem:[#allocation4 + $0x38] sm:$0x11]  ;;  %vm14373_vm7 = vmmov %vm14368_vm1  ;;  %14381 = vst [vmem:[#allocation26_spill] sm:$0xff] %v9906_v32  ;;  %vm720_vm1 = vcmp.gt.f32.partialorder %v9906_v32, 0.5  ;;  %v14114_v44 = vsub.s32 2, %v9124_v3  ;;  %s14461_s5 = smov 127  }
 0x12a   : > { %v1276_v23 = vsel %vm1273_vm14, %v1275_v50, %v1268_v25  ;;  %v1320_v61 = vsel %vm1317_vm11, %v1319_v58, %v1312_v54  ;;  %v1356_v6 = vpop.permute.xlu0 %1355  ;;  %v1378_v62 = vpop.permute.xlu1 %1377  ;;  %v9917_v2 = vsel %vm720_vm1, 1, %v8926_v4  ;;  %v14115_v43 = vsub.s32 3, %v9124_v3 }
 0x12b   : > { %v1283_v1 = vsel %vm9776_vm4, %v1276_v23, %v1282_v59  ;;  %v1327_v7 = vsel %vm14344_vm9, %v1320_v61, %v1326_v47  ;;  %v1359_v9 = vrot.slane %v1356_v6, 4  ;;  %v1381_v63 = vrot.slane %v1378_v62, 4  ;;  %2179 = vrot.lane.b32.xlu1 %v9597_v38, %s14375_s16 }
 0x12c   : > { %1284 = vst [vmem:[#allocation4 + $0x28] sm:$0x22] %v1283_v1  ;;  %1328 = vst [vmem:[#allocation4 + $0x28] sm:$0x44] %v1327_v7  ;;  %vm14374_vm9 = vnez %v14276_v29  ;;  %vm1507_vm4 = vcmask 1044480   ;;  %v9925_v48 = vrot.slane %v9917_v2, %v14114_v44  ;;  %v9931_v25 = vrot.slane %v9917_v2, %v14115_v43 }
 0x12d   : > { %v1363_v8 = vsel %vm14372_vm15, %v1358_v27, %v1359_v9  ;;  %v1385_v11 = vsel %vm14373_vm7, %v1380_v41, %v1381_v63  ;;  %v1509_v29 = vsel %vm1507_vm4, %v1508_v17, 0  ;;  %vm1732_vm2 = vcmask 130048  }
 0x12e   : > { %v1364_v13 = vsel %vm1361_vm8, %v1363_v8, %v1356_v6  ;;  %v1386_v60 = vsel %vm1383_vm5, %v1385_v11, %v1378_v62  ;;  %14382 = vst [vmem:[#allocation27_spill] sm:$0xff] %v9925_v48  ;;  %14383 = vst [vmem:[#allocation28_spill] sm:$0xff] %v9931_v25  ;;  %vm1691_vm10 = vcmp.eq.s32.totalorder %v9925_v48, 1  ;;  %vm1692_vm3 = vcmp.eq.s32.totalorder %v9931_v25, 1 }
 0x12f   : > { %v1371_v45 = vsel %vm9728_vm6, %v1364_v13, %v1370_v15  ;;  %v1393_v14 = vsel %vm14374_vm9, %v1386_v60, %v1392_v5  ;;  %2187 = vrot.lane.b32.xlu1 %v9605_v49, %s14375_s16  ;;  %vm1496_vm6 = vcmask 203776   ;;  %v8761_v49 = vld [vmem:[%s14378_s7 + $0x8] sm:$0xff]   ;;  %v8764_v27 = vld [vmem:[#allocation4 + $0x24] ss:$16 sps:$4 sm:$0x1f]   ;;  %vm14413_vm9 = vcmask 334848  }
 0x130   : > { %1372 = vst [vmem:[#allocation4 + $0x28] sm:$0x88] %v1371_v45  ;;  %1394 = vst [vmem:[#allocation4 + $0x38] sm:$0x11] %v1393_v14  ;;  %v1514_v34 = vand.u32 %v8764_v27, %v1509_v29  ;;  %vm14414_vm4 = vcmask 326656   ;;  %vm14415_vm13 = vcmask 318464  }
 0x131   : > { %v8762_v52 = vld [vmem:[#allocation4 + $0x20] ss:$16 sps:$4 sm:$0x1f]   ;;  %s14484_s7 = smov 109  }
 0x132   : > { %v1511_v37 = vand.u32 %v8762_v52, %v1509_v29 }
 0x133   : > { %2252 = vrot.lane.b32.xlu1 %v9589_v26, %s14377_s28 }
 0x137   : > { %v8757_v19 = vld [vmem:[#allocation4 + $0x28] ss:$16 sps:$4 sm:$0x1f]   ;;  %v8759_v12 = vld [vmem:[#allocation4 + $0x2c] ss:$16 sps:$4 sm:$0x1f]   ;;  %2260 = vrot.lane.b32.xlu1 %v9597_v38, %s14377_s28 }
 0x138   : > { %v1517_v21 = vand.u32 %v8757_v19, %v1509_v29  ;;  %v1520_v22 = vand.u32 %v8759_v12, %v1509_v29 }
 0x13a   : > { %1587 = vmatprep.subr.bf16.mxu0 %v1520_v22 }
 0x13b   : > { %1588 = vmatpush1.bf16.msra.mxu0 %v1517_v21 }
 0x13e   : > { %8215 = vmatmul.mubr.msk.bf16.vlgmr.msra.gmra.mrb[4].mxu0 %vm1496_vm6, %v8760_v31 }
 0x13f   : > { %1627 = vmatprep.mubr.bf16.mxu0 %v8926_v4 }
 0x146   : > { %8216 = vmatmul.mubr.msk.bf16.gmra.mrb[8].mxu0 %vm1496_vm6, %v8761_v49 }
 0x147   : > { %1637 = vmatprep.mubr.bf16.mxu0 %v8926_v4 }
 0x148   : > { %v8296_v26 = vpop.f32.mrb[0].mxu0 }
 0x149   : > { %v8297_v24 = vpop.f32.mrb[1].mxu0 }
 0x14a   : > { %v8298_v38 = vadd.f32 %v8297_v24, %v8296_v26 }
 0x14c   : > { %v627_v28 = vsub.f32 %v8298_v38, %v626_v20 }
 0x14e   : > { %8200 = vmatmul.mubr.msk.f32.vlgmr.msra.gmra.mrb[0].mxu1 %vm644_vm12, %v627_v28  ;;  %8217 = vmatmul.mubr.msk.bf16.gmra.mrb[12].mxu0 %vm1496_vm6, %v8765_v30  ;;  %vm14419_vm12 = vcmask 179200  }
 0x14f   : > { %1523 = vmatpush1.bf16.msra.mxu1 %v8751_v33  ;;  %1554 = vmatprep.mubr.bf16.mxu1 %v8926_v4 }
 0x150   : > { %1524 = vmatprep.subr.bf16.mxu1 %v1514_v34 }
 0x153   : > { %1525 = vmatpush1.bf16.msra.mxu1 %v1511_v37 }
 0x156   : > { %8212 = vmatmul.mubr.msk.bf16.vlgmr.msra.gmra.mrb[4].mxu1 %vm1496_vm6, %v8760_v31 }
 0x157   : > { %1564 = vmatprep.mubr.bf16.mxu1 %v8926_v4 }
 0x158   : > { %v9899_v41 = vpop.permute.xlu1 %1432  ;;  %v9901_v36 = vpop.permute.xlu0 %1427 }
 0x15c   : > { %v9909_v42 = vpop.permute.xlu1 %1437  ;;  %v9911_v18 = vpop.permute.xlu0 %1442 }
 0x15e   : > { %8213 = vmatmul.mubr.msk.bf16.gmra.mrb[8].mxu1 %vm1496_vm6, %v8761_v49 }
 0x15f   : > { %1574 = vmatprep.mubr.bf16.mxu1 %v8926_v4 }
 0x160   : > { %v9920_v16 = vpop.permute.xlu1 %1417  ;;  %v9933_v4 = vpop.permute.xlu0 %1422 }
 0x164   : > { %v9939_v59 = vpop.permute.xlu1 %1766 }
 0x166   : > { %8214 = vmatmul.mubr.msk.bf16.gmra.mrb[12].mxu1 %vm1496_vm6, %v8765_v30  ;;  %vm14417_vm6 = vcmask 310272  }
 0x168   : > { %v9959_v13 = vpop.permute.xlu1 %1774 }
 0x16c   : > { %v9982_v38 = vpop.permute.xlu1 %1782 }
 0x211   : > { %v1619_v46 = vpop.f32.mrb[4].mxu0 }
 0x212   : > { %v1620_v51 = vadd.f32 %v1619_v46, %v9920_v16  ;;  %v1621_v53 = vpop.f32.mrb[5].mxu0 }
 0x213   : > { %v1622_v54 = vadd.f32 %v1621_v53, %v9920_v16  ;;  %v1623_v55 = vpop.f32.mrb[6].mxu0 }
 0x214   : > { %v1650_v39 = vmax.f32 %v1620_v51, 0.0  ;;  %v1624_v56 = vadd.f32 %v1623_v55, %v9933_v4  ;;  %v1625_v57 = vpop.f32.mrb[7].mxu0 }
 0x215   : > { %v1651_v50 = vmax.f32 %v1622_v54, 0.0  ;;  %v1626_v58 = vadd.f32 %v1625_v57, %v9933_v4 }
 0x216   : > { %v1654_v23 = vmax.f32 %v1624_v56, 0.0  ;;  %v1695_v61 = vsel %vm1691_vm10, %v1650_v39, 0.0  ;;  %v1676_v39 = vrot.slane %v9917_v2, %v9285_v10 }
 0x217   : > { %v1655_v47 = vmax.f32 %v1626_v58, 0.0  ;;  %v1696_v62 = vsel %vm1692_vm3, %v1651_v50, 0.0  ;;  %v10004_v50 = vpop.permute.xlu1 %1847  ;;  %v1680_v58 = vrot.slane %v9917_v2, %v9199_v35 }
 0x218   : > { %v1699_v6 = vsel %vm1691_vm10, %v1654_v23, 0.0  ;;  %vm10021_vm15 = vcmp.eq.s32.totalorder %v1676_v39, 1 }
 0x219   : > { %v9948_v1 = vpack.c.bf16 %v1699_v6, %v1695_v61  ;;  %v1700_v7 = vsel %vm1692_vm3, %v1655_v47, 0.0  ;;  %v1629_v9 = vpop.f32.mrb[8].mxu0  ;;  %vm10033_vm7 = vcmp.eq.s32.totalorder %v1680_v58, 1 }
 0x21a   : > { %v1720_v63 = vpack.c.bf16 %v1700_v7, %v1696_v62  ;;  %v1630_v5 = vadd.f32 %v1629_v9, %v9901_v36  ;;  %v1631_v8 = vpop.f32.mrb[9].mxu0 }
 0x21b   : > { %1731 = vst [vmem:[#allocation2 + $0x18] sm:$0xff] %v9948_v1  ;;  %v1632_v11 = vadd.f32 %v1631_v8, %v9901_v36  ;;  %v1633_v15 = vpop.f32.mrb[10].mxu0  ;;  %3606 = vrot.lane.b32.xlu1 %v9948_v1, %s14384_s6  ;;  %3525 = vrot.lane.b32.xlu0 %v9948_v1, %s14385_s21 }
 0x21c   : > { %1733 = vst.msk [vmem:[#allocation2 + $0x20] sm:$0xff] %vm1732_vm2, %v1720_v63  ;;  %v1658_v60 = vmax.f32 %v1630_v5, 0.0  ;;  %v1634_v45 = vadd.f32 %v1633_v15, %v9899_v41  ;;  %v1635_v14 = vpop.f32.mrb[11].mxu0 }
 0x21d   : > { %v1659_v40 = vmax.f32 %v1632_v11, 0.0  ;;  %v1636_v17 = vadd.f32 %v1635_v14, %v9899_v41 }
 0x21e   : > { %v1662_v19 = vmax.f32 %v1634_v45, 0.0  ;;  %v1703_v21 = vsel %vm1691_vm10, %v1658_v60, 0.0  ;;  %v14392_v60 = vmov 0 }
 0x21f   : > { %v1663_v12 = vmax.f32 %v1636_v17, 0.0  ;;  %3687 = vrot.lane.b32.xlu0 %v9948_v1, %s14387_s15  ;;  %1772 = vrot.lane.b32.xlu1 %v9948_v1, %s14388_s22  ;;  %v1704_v49 = vsel %vm1692_vm3, %v1659_v40, 0.0  ;;  %v14393_v60 = vsel %vm10021_vm15, 4294967295, %v14392_v60  ;;  %v14396_v40 = vmov 0 }
 0x220   : > { %v1707_v22 = vsel %vm1691_vm10, %v1662_v19, 0.0  ;;  %14394 = vst [vmem:[#allocation32_spill] sm:$0xff] %v14393_v60  ;;  %v14397_v40 = vsel %vm10033_vm7, 4294967295, %v14396_v40 }
 0x221   : > { %v9964_v29 = vpop.f32.mrb[0].mxu1  ;;  %v9978_v26 = vpack.c.bf16 %v1707_v22, %v1703_v21  ;;  %v1708_v24 = vsel %vm1692_vm3, %v1663_v12, 0.0  ;;  %v1639_v20 = vpop.f32.mrb[12].mxu0  ;;  %14398 = vst [vmem:[#allocation34_spill] sm:$0xff] %v14397_v40 }
 0x222   : > { %14386 = vst [vmem:[#allocation29_spill] sm:$0xff] %v9964_v29  ;;  %v9974_v31 = vpop.f32.mrb[1].mxu1  ;;  %v1724_v27 = vpack.c.bf16 %v1708_v24, %v1704_v49  ;;  %v1640_v28 = vadd.f32 %v1639_v20, %v9909_v42  ;;  %v1641_v30 = vpop.f32.mrb[13].mxu0 }
 0x223   : > { %14389 = vst [vmem:[#allocation30_spill] sm:$0xff] %v9974_v31  ;;  %1736 = vst [vmem:[#allocation2 + $0x48] sm:$0xff] %v9978_v26  ;;  %v1642_v33 = vadd.f32 %v1641_v30, %v9909_v42  ;;  %v1643_v52 = vpop.f32.mrb[14].mxu0  ;;  %3452 = vrot.lane.b32.xlu0 %v9978_v26, %s14390_s29  ;;  %1853 = vrot.lane.b32.xlu1 %v9948_v1, %s14298_s13  ;;  %v9991_v34 = vld [vmem:[#allocation2 + $0x20] sm:$0xff] }
 0x224   : > { %14391 = vst [vmem:[#allocation31_spill] sm:$0xff] %v9991_v34  ;;  %1737 = vst.msk [vmem:[#allocation2 + $0x50] sm:$0xff] %vm1732_vm2, %v1724_v27  ;;  %v1666_v37 = vmax.f32 %v1640_v28, 0.0  ;;  %v1644_v46 = vadd.f32 %v1643_v52, %v9911_v18  ;;  %v1645_v51 = vpop.f32.mrb[15].mxu0 }
 0x225   : > { %2759 = vst.msk [vmem:[#allocation5 + $0x498] sm:$0xff] %vm1732_vm2, %v9991_v34  ;;  %v1667_v53 = vmax.f32 %v1642_v33, 0.0  ;;  %v1646_v54 = vadd.f32 %v1645_v51, %v9911_v18 }
 0x226   : > { %v1670_v55 = vmax.f32 %v1644_v46, 0.0  ;;  %v1711_v23 = vsel %vm1691_vm10, %v1666_v37, 0.0 }
 0x227   : > { %v1671_v56 = vmax.f32 %v1646_v54, 0.0  ;;  %3614 = vrot.lane.b32.xlu0 %v9978_v26, %s14384_s6  ;;  %1934 = vrot.lane.b32.xlu1 %v9948_v1, %s14335_s30  ;;  %v1712_v62 = vsel %vm1692_vm3, %v1667_v53, 0.0 }
 0x228   : > { %v1715_v47 = vsel %vm1691_vm10, %v1670_v55, 0.0 }
 0x229   : > { %v1556_v57 = vpop.f32.mrb[4].mxu1  ;;  %v10015_v7 = vpack.c.bf16 %v1715_v47, %v1711_v23  ;;  %v1716_v9 = vsel %vm1692_vm3, %v1671_v56, 0.0 }
 0x22a   : > { %v1557_v61 = vadd.f32 %v1556_v57, %v9920_v16  ;;  %v1558_v6 = vpop.f32.mrb[5].mxu1  ;;  %v1728_v5 = vpack.c.bf16 %v1716_v9, %v1712_v62 }
 0x22b   : > { %v1559_v63 = vadd.f32 %v1558_v6, %v9920_v16  ;;  %v1560_v2 = vpop.f32.mrb[6].mxu1  ;;  %1740 = vst [vmem:[#allocation2 + $0x78] sm:$0xff] %v10015_v7  ;;  %3541 = vrot.lane.b32.xlu0 %v10015_v7, %s14385_s21  ;;  %2015 = vrot.lane.b32.xlu1 %v9948_v1, %s14361_s23  ;;  %v10031_v16 = vld [vmem:[#allocation2 + $0x50] sm:$0xff] }
 0x22c   : > { %v1648_v8 = vmax.f32 %v1557_v61, 0.0  ;;  %v1561_v11 = vadd.f32 %v1560_v2, %v9933_v4  ;;  %v1562_v15 = vpop.f32.mrb[7].mxu1  ;;  %14395 = vst [vmem:[#allocation33_spill] sm:$0xff] %v10031_v16  ;;  %1741 = vst.msk [vmem:[#allocation2 + $0x80] sm:$0xff] %vm1732_vm2, %v1728_v5 }
 0x22d   : > { %v1649_v45 = vmax.f32 %v1559_v63, 0.0  ;;  %v1563_v14 = vadd.f32 %v1562_v15, %v9933_v4  ;;  %2763 = vst.msk [vmem:[#allocation5 + $0x4b8] sm:$0xff] %vm1732_vm2, %v10031_v16  ;;  %v10040_v4 = vpop.permute.xlu1 %1855 }
 0x22e   : > { %v1652_v17 = vmax.f32 %v1561_v11, 0.0  ;;  %v1693_v12 = vsel %vm10021_vm15, %v1648_v8, 0.0 }
 0x22f   : > { %v1653_v19 = vmax.f32 %v1563_v14, 0.0  ;;  %v1694_v22 = vsel %vm10033_vm7, %v1649_v45, 0.0  ;;  %3703 = vrot.lane.b32.xlu0 %v10015_v7, %s14387_s15  ;;  %2096 = vrot.lane.b32.xlu1 %v9948_v1, %s14367_s24 }
 0x230   : > { %v1697_v21 = vsel %vm10021_vm15, %v1652_v17, 0.0 }
 0x231   : > { %v10048_v49 = vpack.c.bf16 %v1697_v21, %v1693_v12  ;;  %v1698_v24 = vsel %vm10033_vm7, %v1653_v19, 0.0  ;;  %v1566_v20 = vpop.f32.mrb[8].mxu1  ;;  %v10068_v55 = vpop.permute.xlu1 %1863 }
 0x232   : > { %v10056_v27 = vpack.c.bf16 %v1698_v24, %v1694_v22  ;;  %v1567_v28 = vadd.f32 %v1566_v20, %v9901_v36  ;;  %v1568_v30 = vpop.f32.mrb[9].mxu1  ;;  %14399 = vst [vmem:[#allocation35_spill] sm:$0xff] %v10068_v55 }
 0x233   : > { %1729 = vst [vmem:[#allocation2 + $0x8] sm:$0xff] %v10048_v49  ;;  %v1569_v33 = vadd.f32 %v1568_v30, %v9901_v36  ;;  %v1570_v52 = vpop.f32.mrb[10].mxu1  ;;  %2177 = vrot.lane.b32.xlu1 %v9948_v1, %s14375_s16  ;;  %3602 = vrot.lane.b32.xlu0 %v10048_v49, %s14384_s6  ;;  %v10070_v39 = vld [vmem:[#allocation2 + $0x80] sm:$0xff] }
 0x234   : > { %1730 = vst [vmem:[#allocation2 + $0x10] sm:$0xff] %v10056_v27  ;;  %v1656_v37 = vmax.f32 %v1567_v28, 0.0  ;;  %v1571_v46 = vadd.f32 %v1570_v52, %v9899_v41  ;;  %v1572_v51 = vpop.f32.mrb[11].mxu1  ;;  %14400 = vst [vmem:[#allocation36_spill] sm:$0xff] %v10070_v39 }
 0x235   : > { %v1657_v53 = vmax.f32 %v1569_v33, 0.0  ;;  %v1573_v54 = vadd.f32 %v1572_v51, %v9899_v41  ;;  %2767 = vst.msk [vmem:[#allocation5 + $0x4d8] sm:$0xff] %vm1732_vm2, %v10070_v39  ;;  %v10093_v5 = vpop.permute.xlu1 %1928  ;;  %v10579_v39 = vld [vmem:[#allocation2 + $0x80] sm:$0xff] }
 0x236   : > { %v1660_v36 = vmax.f32 %v1571_v46, 0.0  ;;  %v1701_v57 = vsel %vm10021_vm15, %v1656_v37, 0.0 }
 0x237   : > { %v1661_v56 = vmax.f32 %v1573_v54, 0.0  ;;  %v1702_v58 = vsel %vm10033_vm7, %v1657_v53, 0.0  ;;  %2258 = vrot.lane.b32.xlu1 %v9948_v1, %s14377_s28  ;;  %1768 = vrot.lane.b32.xlu0 %v10048_v49, %s14388_s22 }
 0x238   : > { %v1705_v41 = vsel %vm10021_vm15, %v1660_v36, 0.0 }
 0x239   : > { %v10080_v23 = vpack.c.bf16 %v1705_v41, %v1701_v57  ;;  %v1706_v47 = vsel %vm10033_vm7, %v1661_v56, 0.0  ;;  %v1576_v61 = vpop.f32.mrb[12].mxu1  ;;  %v10116_v24 = vpop.permute.xlu1 %1936 }
 0x23a   : > { %v10088_v6 = vpack.c.bf16 %v1706_v47, %v1702_v58  ;;  %v1577_v62 = vadd.f32 %v1576_v61, %v9909_v42  ;;  %v1578_v9 = vpop.f32.mrb[13].mxu1 }
 0x23b   : > { %1734 = vst [vmem:[#allocation2 + $0x38] sm:$0xff] %v10080_v23  ;;  %v1579_v63 = vadd.f32 %v1578_v9, %v9909_v42  ;;  %v1580_v2 = vpop.f32.mrb[14].mxu1  ;;  %2339 = vrot.lane.b32.xlu1 %v9948_v1, %s14401_s27  ;;  %1849 = vrot.lane.b32.xlu0 %v10048_v49, %s14298_s13 }
 0x23c   : > { %1735 = vst [vmem:[#allocation2 + $0x40] sm:$0xff] %v10088_v6  ;;  %v1664_v8 = vmax.f32 %v1577_v62, 0.0  ;;  %v1581_v11 = vadd.f32 %v1580_v2, %v9911_v18  ;;  %v1582_v15 = vpop.f32.mrb[15].mxu1 }
 0x23d   : > { %v1665_v45 = vmax.f32 %v1579_v63, 0.0  ;;  %v1583_v14 = vadd.f32 %v1582_v15, %v9911_v18  ;;  %v10126_v28 = vpop.permute.xlu1 %1944 }
 0x23e   : > { %v1668_v17 = vmax.f32 %v1581_v11, 0.0  ;;  %v1709_v19 = vsel %vm10021_vm15, %v1664_v8, 0.0  ;;  %14404 = vst [vmem:[#allocation37_spill] sm:$0xff] %v10126_v28 }
 0x23f   : > { %v1669_v42 = vmax.f32 %v1583_v14, 0.0  ;;  %v1710_v21 = vsel %vm10033_vm7, %v1665_v45, 0.0  ;;  %2420 = vrot.lane.b32.xlu1 %v9948_v1, %s14402_s0  ;;  %1930 = vrot.lane.b32.xlu0 %v10048_v49, %s14335_s30 }
 0x240   : > { %v1713_v12 = vsel %vm10021_vm15, %v1668_v17, 0.0 }
 0x241   : > { %v10108_v22 = vpack.c.bf16 %v1713_v12, %v1709_v19  ;;  %v1714_v18 = vsel %vm10033_vm7, %v1669_v42, 0.0  ;;  %v10136_v30 = vpop.permute.xlu1 %2009 }
 0x242   : > { %v10118_v20 = vpack.c.bf16 %v1714_v18, %v1710_v21 }
 0x243   : > { %1738 = vst [vmem:[#allocation2 + $0x68] sm:$0xff] %v10108_v22  ;;  %2501 = vrot.lane.b32.xlu1 %v9948_v1, %s14403_s19  ;;  %2011 = vrot.lane.b32.xlu0 %v10048_v49, %s14361_s23 }
 0x244   : > { %1739 = vst [vmem:[#allocation2 + $0x70] sm:$0xff] %v10118_v20 }
 0x245   : > { %v10142_v33 = vpop.permute.xlu1 %2017 }
 0x247   : > { %3533 = vrot.lane.b32.xlu1 %v9978_v26, %s14385_s21  ;;  %2092 = vrot.lane.b32.xlu0 %v10048_v49, %s14367_s24 }
 0x249   : > { %v10152_v52 = vpop.permute.xlu1 %2025 }
 0x24a   : > { %14405 = vst [vmem:[#allocation38_spill] sm:$0xff] %v10152_v52 }
 0x24b   : > { %3695 = vrot.lane.b32.xlu1 %v9978_v26, %s14387_s15  ;;  %2173 = vrot.lane.b32.xlu0 %v10048_v49, %s14375_s16 }
 0x24d   : > { %v10158_v37 = vpop.permute.xlu1 %2090 }
 0x24f   : > { %1780 = vrot.lane.b32.xlu1 %v9978_v26, %s14388_s22  ;;  %2254 = vrot.lane.b32.xlu0 %v10048_v49, %s14377_s28 }
 0x251   : > { %v10168_v46 = vpop.permute.xlu1 %2098 }
 0x253   : > { %1861 = vrot.lane.b32.xlu1 %v9978_v26, %s14298_s13  ;;  %3604 = vrot.lane.b32.xlu0 %v10056_v27, %s14384_s6 }
 0x255   : > { %v10174_v51 = vpop.permute.xlu1 %2106 }
 0x257   : > { %1942 = vrot.lane.b32.xlu1 %v9978_v26, %s14335_s30  ;;  %1770 = vrot.lane.b32.xlu0 %v10056_v27, %s14388_s22 }
 0x259   : > { %v10184_v53 = vpop.permute.xlu1 %2171 }
 0x25b   : > { %2023 = vrot.lane.b32.xlu1 %v9978_v26, %s14361_s23  ;;  %1851 = vrot.lane.b32.xlu0 %v10056_v27, %s14298_s13 }
 0x25d   : > { %v10190_v54 = vpop.permute.xlu1 %2179 }
 0x25f   : > { %2104 = vrot.lane.b32.xlu1 %v9978_v26, %s14367_s24  ;;  %1932 = vrot.lane.b32.xlu0 %v10056_v27, %s14335_s30 }
 0x261   : > { %v10200_v36 = vpop.permute.xlu1 %2187 }
 0x263   : > { %2185 = vrot.lane.b32.xlu1 %v9978_v26, %s14375_s16  ;;  %2013 = vrot.lane.b32.xlu0 %v10056_v27, %s14361_s23 }
 0x265   : > { %v10206_v56 = vpop.permute.xlu1 %2252 }
 0x267   : > { %2266 = vrot.lane.b32.xlu1 %v9978_v26, %s14377_s28  ;;  %2094 = vrot.lane.b32.xlu0 %v10056_v27, %s14367_s24 }
 0x269   : > { %v10216_v57 = vpop.permute.xlu1 %2260 }
 0x26b   : > { %2347 = vrot.lane.b32.xlu1 %v9978_v26, %s14401_s27  ;;  %2175 = vrot.lane.b32.xlu0 %v10056_v27, %s14375_s16 }
 0x26f   : > { %2428 = vrot.lane.b32.xlu1 %v9978_v26, %s14402_s0  ;;  %2256 = vrot.lane.b32.xlu0 %v10056_v27, %s14377_s28 }
 0x273   : > { %2509 = vrot.lane.b32.xlu1 %v9978_v26, %s14403_s19  ;;  %2337 = vrot.lane.b32.xlu0 %v10056_v27, %s14401_s27 }
 0x277   : > { %3460 = vrot.lane.b32.xlu1 %v10015_v7, %s14390_s29  ;;  %2418 = vrot.lane.b32.xlu0 %v10056_v27, %s14402_s0 }
 0x27b   : > { %3622 = vrot.lane.b32.xlu1 %v10015_v7, %s14384_s6  ;;  %2499 = vrot.lane.b32.xlu0 %v10056_v27, %s14403_s19 }
 0x27f   : > { %1788 = vrot.lane.b32.xlu1 %v10015_v7, %s14388_s22  ;;  %3529 = vrot.lane.b32.xlu0 %v10080_v23, %s14385_s21 }
 0x283   : > { %1869 = vrot.lane.b32.xlu1 %v10015_v7, %s14298_s13  ;;  %3691 = vrot.lane.b32.xlu0 %v10080_v23, %s14387_s15 }
 0x287   : > { %1950 = vrot.lane.b32.xlu1 %v10015_v7, %s14335_s30  ;;  %1776 = vrot.lane.b32.xlu0 %v10080_v23, %s14388_s22 }
 0x28b   : > { %2031 = vrot.lane.b32.xlu1 %v10015_v7, %s14361_s23  ;;  %1857 = vrot.lane.b32.xlu0 %v10080_v23, %s14298_s13 }
 0x28d   : > { %v10222_v41 = vpop.permute.xlu1 %3606  ;;  %v10224_v58 = vpop.permute.xlu0 %3525 }
 0x28e   : > { %14406 = vst [vmem:[#allocation39_spill] sm:$0xff] %v10222_v41  ;;  %14407 = vst [vmem:[#allocation40_spill] sm:$0xff] %v10224_v58 }
 0x28f   : > { %2112 = vrot.lane.b32.xlu1 %v10015_v7, %s14367_s24  ;;  %1938 = vrot.lane.b32.xlu0 %v10080_v23, %s14335_s30 }
 0x291   : > { %v10230_v47 = vpop.permute.xlu0 %3687  ;;  %v10232_v61 = vpop.permute.xlu1 %1772 }
 0x292   : > { %14408 = vst [vmem:[#allocation41_spill] sm:$0xff] %v10230_v47  ;;  %1814 = vst.msk [vmem:[#allocation5 + $0x18] sm:$0xff] %vm1732_vm2, %v10232_v61 }
 0x293   : > { %2193 = vrot.lane.b32.xlu1 %v10015_v7, %s14375_s16  ;;  %2019 = vrot.lane.b32.xlu0 %v10080_v23, %s14361_s23 }
 0x295   : > { %v10240_v62 = vpop.permute.xlu0 %3452  ;;  %v10242_v9 = vpop.permute.xlu1 %1853 }
 0x296   : > { %14409 = vst [vmem:[#allocation42_spill] sm:$0xff] %v10240_v62  ;;  %1895 = vst.msk [vmem:[#allocation5 + $0x78] sm:$0xff] %vm1732_vm2, %v10242_v9 }
 0x297   : > { %2274 = vrot.lane.b32.xlu1 %v10015_v7, %s14377_s28  ;;  %2100 = vrot.lane.b32.xlu0 %v10080_v23, %s14367_s24 }
 0x299   : > { %v10250_v63 = vpop.permute.xlu0 %3614  ;;  %v10252_v2 = vpop.permute.xlu1 %1934 }
 0x29a   : > { %14410 = vst [vmem:[#allocation43_spill] sm:$0xff] %v10250_v63  ;;  %1976 = vst.msk [vmem:[#allocation5 + $0xd8] sm:$0xff] %vm1732_vm2, %v10252_v2 }
 0x29b   : > { %2355 = vrot.lane.b32.xlu1 %v10015_v7, %s14401_s27  ;;  %2181 = vrot.lane.b32.xlu0 %v10080_v23, %s14375_s16 }
 0x29d   : > { %v10260_v8 = vpop.permute.xlu0 %3541  ;;  %v10262_v11 = vpop.permute.xlu1 %2015 }
 0x29e   : > { %14411 = vst [vmem:[#allocation44_spill] sm:$0xff] %v10260_v8  ;;  %2057 = vst.msk [vmem:[#allocation5 + $0x138] sm:$0xff] %vm1732_vm2, %v10262_v11 }
 0x29f   : > { %2436 = vrot.lane.b32.xlu1 %v10015_v7, %s14402_s0  ;;  %2262 = vrot.lane.b32.xlu0 %v10080_v23, %s14377_s28 }
 0x2a1   : > { %v10270_v15 = vpop.permute.xlu0 %3703  ;;  %v10272_v45 = vpop.permute.xlu1 %2096 }
 0x2a2   : > { %14412 = vst [vmem:[#allocation45_spill] sm:$0xff] %v10270_v15  ;;  %2138 = vst.msk [vmem:[#allocation5 + $0x198] sm:$0xff] %vm1732_vm2, %v10272_v45 }
 0x2a3   : > { %2517 = vrot.lane.b32.xlu1 %v10015_v7, %s14403_s19  ;;  %3531 = vrot.lane.b32.xlu0 %v10088_v6, %s14385_s21 }
 0x2a5   : > { %v10280_v14 = vpop.permute.xlu1 %2177  ;;  %v10282_v17 = vpop.permute.xlu0 %3602 }
 0x2a6   : > { %2219 = vst.msk [vmem:[#allocation5 + $0x1f8] sm:$0xff] %vm1732_vm2, %v10280_v14 }
 0x2a7   : > { %3521 = vrot.lane.b32.xlu1 %v10048_v49, %s14385_s21  ;;  %3693 = vrot.lane.b32.xlu0 %v10088_v6, %s14387_s15 }
 0x2a9   : > { %v10290_v42 = vpop.permute.xlu1 %2258  ;;  %v1769_v19 = vpop.permute.xlu0 %1768 }
 0x2aa   : > { %2300 = vst.msk [vmem:[#allocation5 + $0x258] sm:$0xff] %vm1732_vm2, %v10290_v42 }
 0x2ab   : > { %3683 = vrot.lane.b32.xlu1 %v10048_v49, %s14387_s15  ;;  %1778 = vrot.lane.b32.xlu0 %v10088_v6, %s14388_s22 }
 0x2ad   : > { %v10298_v12 = vpop.permute.xlu1 %2339  ;;  %v1850_v21 = vpop.permute.xlu0 %1849 }
 0x2ae   : > { %2381 = vst.msk [vmem:[#allocation5 + $0x2b8] sm:$0xff] %vm1732_vm2, %v10298_v12  ;;  %v1871_v18 = vsel %vm14413_vm9, %v10004_v50, %v1850_v21  ;;  %vm14420_vm9 = vcmask 171008  }
 0x2af   : > { %1892 = vst [vmem:[#allocation5 + $0x60] sm:$0xff] %v1871_v18  ;;  %3523 = vrot.lane.b32.xlu1 %v10056_v27, %s14385_s21  ;;  %1859 = vrot.lane.b32.xlu0 %v10088_v6, %s14298_s13 }
 0x2b1   : > { %v10308_v0 = vpop.permute.xlu1 %2420  ;;  %v1931_v44 = vpop.permute.xlu0 %1930 }
 0x2b2   : > { %2462 = vst.msk [vmem:[#allocation5 + $0x318] sm:$0xff] %vm1732_vm2, %v10308_v0  ;;  %v1952_v43 = vsel %vm14414_vm4, %v10093_v5, %v1931_v44  ;;  %vm14421_vm4 = vcmask 343040  }
 0x2b3   : > { %1973 = vst [vmem:[#allocation5 + $0xc0] sm:$0xff] %v1952_v43  ;;  %3685 = vrot.lane.b32.xlu1 %v10056_v27, %s14387_s15  ;;  %1940 = vrot.lane.b32.xlu0 %v10088_v6, %s14335_s30 }
 0x2b5   : > { %v10318_v50 = vpop.permute.xlu1 %2501  ;;  %v10320_v18 = vpop.permute.xlu0 %2011 }
 0x2b6   : > { %2543 = vst.msk [vmem:[#allocation5 + $0x378] sm:$0xff] %vm1732_vm2, %v10318_v50  ;;  %v2033_v31 = vsel %vm14415_vm13, %v10136_v30, %v10320_v18  ;;  %vm14422_vm13 = vmmov %vm14421_vm4 }
 0x2b7   : > { %2054 = vst [vmem:[#allocation5 + $0x120] sm:$0xff] %v2033_v31  ;;  %3448 = vrot.lane.b32.xlu1 %v10080_v23, %s14390_s29  ;;  %2021 = vrot.lane.b32.xlu0 %v10088_v6, %s14361_s23 }
 0x2b9   : > { %v10331_v43 = vpop.permute.xlu1 %3533  ;;  %v10333_v5 = vpop.permute.xlu0 %2092 }
 0x2ba   : > { %14416 = vst [vmem:[#allocation46_spill] sm:$0xff] %v10331_v43  ;;  %v2114_v29 = vsel %vm14417_vm6, %v10158_v37, %v10333_v5  ;;  %vm14423_vm6 = vmmov %vm14421_vm4 }
 0x2bb   : > { %2135 = vst [vmem:[#allocation5 + $0x180] sm:$0xff] %v2114_v29  ;;  %3610 = vrot.lane.b32.xlu1 %v10080_v23, %s14384_s6  ;;  %2102 = vrot.lane.b32.xlu0 %v10088_v6, %s14367_s24  ;;  %v1790_v25 = vsel %vm14423_vm6, %v9939_v59, %v1769_v19  ;;  %vm14429_vm6 = vcmask 318464  }
 0x2bd   : > { %v10342_v31 = vpop.permute.xlu1 %3695  ;;  %v10344_v30 = vpop.permute.xlu0 %2173 }
 0x2be   : > { %14418 = vst [vmem:[#allocation47_spill] sm:$0xff] %v10342_v31  ;;  %v2195_v10 = vsel %vm14419_vm12, %v10184_v53, %v10344_v30  ;;  %vm14424_vm12 = vcmask 334848  }
 0x2bf   : > { %2216 = vst [vmem:[#allocation5 + $0x1e0] sm:$0xff] %v2195_v10  ;;  %3450 = vrot.lane.b32.xlu1 %v10088_v6, %s14390_s29  ;;  %2183 = vrot.lane.b32.xlu0 %v10088_v6, %s14375_s16 }
 0x2c1   : > { %v10353_v29 = vpop.permute.xlu1 %1780  ;;  %v10355_v37 = vpop.permute.xlu0 %2254 }
 0x2c2   : > { %1818 = vst.msk [vmem:[#allocation5 + $0x38] sm:$0xff] %vm1732_vm2, %v10353_v29  ;;  %v2276_v35 = vsel %vm14420_vm9, %v10206_v56, %v10355_v37  ;;  %vm14425_vm9 = vmmov %vm14424_vm12 }
 0x2c3   : > { %2297 = vst [vmem:[#allocation5 + $0x240] sm:$0xff] %v2276_v35  ;;  %3612 = vrot.lane.b32.xlu1 %v10088_v6, %s14384_s6  ;;  %2264 = vrot.lane.b32.xlu0 %v10088_v6, %s14377_s28 }
 0x2c5   : > { %v10366_v10 = vpop.permute.xlu1 %1861  ;;  %v10368_v53 = vpop.permute.xlu0 %3604 }
 0x2c6   : > { %1899 = vst.msk [vmem:[#allocation5 + $0x98] sm:$0xff] %vm1732_vm2, %v10366_v10 }
 0x2c7   : > { %3537 = vrot.lane.b32.xlu1 %v10108_v22, %s14385_s21  ;;  %2345 = vrot.lane.b32.xlu0 %v10088_v6, %s14401_s27 }
 0x2c9   : > { %v10376_v35 = vpop.permute.xlu1 %1942  ;;  %v1771_v56 = vpop.permute.xlu0 %1770 }
 0x2ca   : > { %1980 = vst.msk [vmem:[#allocation5 + $0xf8] sm:$0xff] %vm1732_vm2, %v10376_v35  ;;  %v1791_v32 = vsel %vm14421_vm4, %v1769_v19, %v1771_v56  ;;  %v1792_v3 = vsel %vm14422_vm13, %v1771_v56, %v10232_v61  ;;  %vm14426_vm4 = vcmask 326656  }
 0x2cb   : > { %1813 = vst [vmem:[#allocation5 + $0x10] sm:$0xff] %v1792_v3  ;;  %3699 = vrot.lane.b32.xlu1 %v10108_v22, %s14387_s15  ;;  %2426 = vrot.lane.b32.xlu0 %v10088_v6, %s14402_s0  ;;  %vm14427_vm13 = vmmov %vm14426_vm4 }
 0x2cc   : > { %4263 = vmatprep.subr.bf16.mxu1 %v1791_v32 }
 0x2cd   : > { %v10389_v48 = vpop.permute.xlu1 %2023  ;;  %v1852_v40 = vpop.permute.xlu0 %1851  ;;  %4264 = vmatpush1.bf16.msra.mxu1 %v1790_v25 }
 0x2ce   : > { %2061 = vst.msk [vmem:[#allocation5 + $0x158] sm:$0xff] %vm1732_vm2, %v10389_v48  ;;  %v1872_v61 = vsel %vm14424_vm12, %v1850_v21, %v1852_v40  ;;  %v1873_v3 = vsel %vm14425_vm9, %v1852_v40, %v10242_v9  ;;  %vm14430_vm12 = vmmov %vm14429_vm6  ;;  %v8811_v21 = vld [vmem:[#allocation2 + $0x60] sm:$0xff]  ;;  %vm14431_vm9 = vcmask 310272  }
 0x2cf   : > { %1893 = vst [vmem:[#allocation5 + $0x68] sm:$0xff] %v1872_v61  ;;  %1894 = vst [vmem:[#allocation5 + $0x70] sm:$0xff] %v1873_v3  ;;  %3539 = vrot.lane.b32.xlu1 %v10118_v20, %s14385_s21  ;;  %2507 = vrot.lane.b32.xlu0 %v10088_v6, %s14403_s19 }
 0x2d1   : > { %v10400_v32 = vpop.permute.xlu1 %2104  ;;  %v1933_v59 = vpop.permute.xlu0 %1932 }
 0x2d2   : > { %2142 = vst.msk [vmem:[#allocation5 + $0x1b8] sm:$0xff] %vm1732_vm2, %v10400_v32  ;;  %v1953_v25 = vsel %vm14426_vm4, %v1931_v44, %v1933_v59  ;;  %v1954_v19 = vsel %vm14427_vm13, %v1933_v59, %v10252_v2  ;;  %vm14432_vm4 = vmmov %vm14431_vm9  ;;  %vm14433_vm13 = vcmask 179200   ;;  %v10442_v59 = vld [vmem:[#allocation2 + $0x50] sm:$0xff] }
 0x2d3   : > { %1974 = vst [vmem:[#allocation5 + $0xc8] sm:$0xff] %v1953_v25  ;;  %1975 = vst [vmem:[#allocation5 + $0xd0] sm:$0xff] %v1954_v19  ;;  %2588 = vrot.lane.b32.xlu1 %v9948_v1, %s14428_s1  ;;  %3456 = vrot.lane.b32.xlu0 %v10108_v22, %s14390_s29 }
 0x2d5   : > { %v10411_v40 = vpop.permute.xlu1 %2185  ;;  %v2014_v9 = vpop.permute.xlu0 %2013 }
 0x2d6   : > { %2223 = vst.msk [vmem:[#allocation5 + $0x218] sm:$0xff] %vm1732_vm2, %v10411_v40  ;;  %v2034_v44 = vsel %vm14429_vm6, %v10320_v18, %v2014_v9  ;;  %v2035_v2 = vsel %vm14430_vm12, %v2014_v9, %v10262_v11  ;;  %vm14434_vm6 = vmmov %vm14433_vm13  ;;  %vm14435_vm12 = vcmask 171008  }
 0x2d7   : > { %2055 = vst [vmem:[#allocation5 + $0x128] sm:$0xff] %v2034_v44  ;;  %2056 = vst [vmem:[#allocation5 + $0x130] sm:$0xff] %v2035_v2  ;;  %2268 = vrot.lane.b32.xlu1 %v8811_v21, %s14377_s28  ;;  %3618 = vrot.lane.b32.xlu0 %v10108_v22, %s14384_s6 }
 0x2d9   : > { %v10422_v1 = vpop.permute.xlu1 %2266  ;;  %v2095_v56 = vpop.permute.xlu0 %2094 }
 0x2da   : > { %2304 = vst.msk [vmem:[#allocation5 + $0x278] sm:$0xff] %vm1732_vm2, %v10422_v1  ;;  %v2115_v18 = vsel %vm14431_vm9, %v10333_v5, %v2095_v56  ;;  %v2116_v11 = vsel %vm14432_vm4, %v2095_v56, %v10272_v45  ;;  %vm14436_vm9 = vmmov %vm14435_vm12  ;;  %vm14437_vm4 = vcmask 162816  }
 0x2db   : > { %2136 = vst [vmem:[#allocation5 + $0x188] sm:$0xff] %v2115_v18  ;;  %2137 = vst [vmem:[#allocation5 + $0x190] sm:$0xff] %v2116_v11  ;;  %2335 = vrot.lane.b32.xlu1 %v10048_v49, %s14401_s27  ;;  %1784 = vrot.lane.b32.xlu0 %v10108_v22, %s14388_s22 }
 0x2dd   : > { %v10434_v61 = vpop.permute.xlu1 %2347  ;;  %v2176_v3 = vpop.permute.xlu0 %2175 }
 0x2de   : > { %2385 = vst.msk [vmem:[#allocation5 + $0x2d8] sm:$0xff] %vm1732_vm2, %v10434_v61  ;;  %v2196_v5 = vsel %vm14433_vm13, %v10344_v30, %v2176_v3  ;;  %v2197_v45 = vsel %vm14434_vm6, %v2176_v3, %v10280_v14  ;;  %vm14439_vm13 = vcmask 154624   ;;  %vm14442_vm6 = vcmask 146432  }
 0x2df   : > { %2217 = vst [vmem:[#allocation5 + $0x1e8] sm:$0xff] %v2196_v5  ;;  %2218 = vst [vmem:[#allocation5 + $0x1f0] sm:$0xff] %v2197_v45  ;;  %2600 = vrot.lane.b32.xlu1 %v10442_v59, %s14428_s1  ;;  %1865 = vrot.lane.b32.xlu0 %v10108_v22, %s14298_s13  ;;  %v10513_v5 = vld [vmem:[#allocation2 + $0x20] sm:$0xff] }
 0x2e1   : > { %v10448_v25 = vpop.permute.xlu1 %2428  ;;  %v2257_v19 = vpop.permute.xlu0 %2256 }
 0x2e2   : > { %2466 = vst.msk [vmem:[#allocation5 + $0x338] sm:$0xff] %vm1732_vm2, %v10448_v25  ;;  %v2277_v30 = vsel %vm14435_vm12, %v10355_v37, %v2257_v19  ;;  %v2278_v14 = vsel %vm14436_vm9, %v2257_v19, %v10290_v42  ;;  %vm14447_vm12 = vcmask 334848   ;;  %vm14450_vm9 = vcmask 326656  }
 0x2e3   : > { %2298 = vst [vmem:[#allocation5 + $0x248] sm:$0xff] %v2277_v30  ;;  %2299 = vst [vmem:[#allocation5 + $0x250] sm:$0xff] %v2278_v14  ;;  %2596 = vrot.lane.b32.xlu1 %v10088_v6, %s14428_s1  ;;  %1946 = vrot.lane.b32.xlu0 %v10108_v22, %s14335_s30 }
 0x2e5   : > { %v10460_v9 = vpop.permute.xlu1 %2509  ;;  %v10462_v44 = vpop.permute.xlu0 %2337 }
 0x2e6   : > { %2547 = vst.msk [vmem:[#allocation5 + $0x398] sm:$0xff] %vm1732_vm2, %v10460_v9  ;;  %v2359_v37 = vsel %vm14437_vm4, %v10462_v44, %v10298_v12  ;;  %v10484_v12 = vld [vmem:[#allocation2 + $0x30] sm:$0xff]  ;;  %vm14452_vm4 = vcmask 318464  }
 0x2e7   : > { %2380 = vst [vmem:[#allocation5 + $0x2b0] sm:$0xff] %v2359_v37  ;;  %3701 = vrot.lane.b32.xlu1 %v10118_v20, %s14387_s15  ;;  %2027 = vrot.lane.b32.xlu0 %v10108_v22, %s14361_s23  ;;  %v10542_v37 = vld [vmem:[#allocation2] sm:$0xff] }
 0x2e9   : > { %v10473_v42 = vpop.permute.xlu1 %3460  ;;  %v10475_v2 = vpop.permute.xlu0 %2418 }
 0x2ea   : > { %14438 = vst [vmem:[#allocation48_spill] sm:$0xff] %v10473_v42  ;;  %v2440_v21 = vsel %vm14439_vm13, %v10475_v2, %v10308_v0  ;;  %vm14454_vm13 = vcmask 310272  }
 0x2eb   : > { %2461 = vst [vmem:[#allocation5 + $0x310] sm:$0xff] %v2440_v21  ;;  %2608 = vrot.lane.b32.xlu1 %v10015_v7, %s14428_s1  ;;  %2108 = vrot.lane.b32.xlu0 %v10108_v22, %s14367_s24 }
 0x2ed   : > { %v10486_v56 = vpop.permute.xlu1 %3622  ;;  %v10488_v18 = vpop.permute.xlu0 %2499 }
 0x2ee   : > { %14440 = vst [vmem:[#allocation49_spill] sm:$0xff] %v10486_v56  ;;  %14441 = vst [vmem:[#allocation50_spill] sm:$0xff] %v10488_v18  ;;  %v2521_v11 = vsel %vm14442_vm6, %v10488_v18, %v10318_v50  ;;  %vm14456_vm6 = vcmask 179200  }
 0x2ef   : > { %2542 = vst [vmem:[#allocation5 + $0x370] sm:$0xff] %v2521_v11  ;;  %2341 = vrot.lane.b32.xlu1 %v10484_v12, %s14401_s27  ;;  %2189 = vrot.lane.b32.xlu0 %v10108_v22, %s14375_s16 }
 0x2f1   : > { %v10497_v0 = vpop.permute.xlu1 %1788  ;;  %v10499_v7 = vpop.permute.xlu0 %3529 }
 0x2f2   : > { %1822 = vst.msk [vmem:[#allocation5 + $0x58] sm:$0xff] %vm1732_vm2, %v10497_v0 }
 0x2f3   : > { %2351 = vrot.lane.b32.xlu1 %v10108_v22, %s14401_s27  ;;  %2270 = vrot.lane.b32.xlu0 %v10108_v22, %s14377_s28 }
 0x2f5   : > { %v10507_v50 = vpop.permute.xlu1 %1869  ;;  %v10509_v3 = vpop.permute.xlu0 %3691 }
 0x2f6   : > { %14443 = vst [vmem:[#allocation51_spill] sm:$0xff] %v10507_v50  ;;  %1903 = vst.msk [vmem:[#allocation5 + $0xb8] sm:$0xff] %vm1732_vm2, %v10507_v50 }
 0x2f7   : > { %2686 = vrot.lane.b32.xlu1 %v10513_v5, %s14444_s2  ;;  %3458 = vrot.lane.b32.xlu0 %v10118_v20, %s14390_s29 }
 0x2f9   : > { %v10519_v45 = vpop.permute.xlu1 %1950  ;;  %v10521_v19 = vpop.permute.xlu0 %1776 }
 0x2fa   : > { %14445 = vst [vmem:[#allocation52_spill] sm:$0xff] %v10519_v45  ;;  %1984 = vst.msk [vmem:[#allocation5 + $0x118] sm:$0xff] %vm1732_vm2, %v10519_v45 }
 0x2fb   : > { %2682 = vrot.lane.b32.xlu1 %v10056_v27, %s14444_s2  ;;  %2590 = vrot.lane.b32.xlu0 %v10513_v5, %s14428_s1 }
 0x2fd   : > { %v10529_v22 = vpop.permute.xlu1 %2031  ;;  %v10531_v30 = vpop.permute.xlu0 %1857 }
 0x2fe   : > { %14446 = vst [vmem:[#allocation53_spill] sm:$0xff] %v10529_v22  ;;  %2065 = vst.msk [vmem:[#allocation5 + $0x178] sm:$0xff] %vm1732_vm2, %v10529_v22  ;;  %v1874_v14 = vsel %vm14447_vm12, %v10040_v4, %v10531_v30  ;;  %vm14458_vm12 = vcmask 171008   ;;  %v10674_v22 = vld [vmem:[#allocation2 + $0x78] sm:$0xff] }
 0x2ff   : > { %1896 = vst [vmem:[#allocation5 + $0x80] sm:$0xff] %v1874_v14  ;;  %2694 = vrot.lane.b32.xlu1 %v9978_v26, %s14444_s2  ;;  %2586 = vrot.lane.b32.xlu0 %v10056_v27, %s14428_s1 }
 0x301   : > { %v10544_v21 = vpop.permute.xlu1 %2112  ;;  %v10546_v11 = vpop.permute.xlu0 %1938 }
 0x302   : > { %14448 = vst [vmem:[#allocation54_spill] sm:$0xff] %v10544_v21  ;;  %14449 = vst [vmem:[#allocation55_spill] sm:$0xff] %v10546_v11  ;;  %v1955_v4 = vsel %vm14450_vm9, %v10116_v24, %v10546_v11  ;;  %vm4253_vm9 = vcmask 392192  }
 0x303   : > { %2146 = vst.msk [vmem:[#allocation5 + $0x1d8] sm:$0xff] %vm1732_vm2, %v10544_v21  ;;  %1977 = vst [vmem:[#allocation5 + $0xe0] sm:$0xff] %v1955_v4  ;;  %2414 = vrot.lane.b32.xlu1 %v10542_v37, %s14402_s0  ;;  %2598 = vrot.lane.b32.xlu0 %v9978_v26, %s14428_s1 }
 0x305   : > { %v10557_v27 = vpop.permute.xlu1 %2193  ;;  %v10559_v14 = vpop.permute.xlu0 %2019 }
 0x306   : > { %14451 = vst [vmem:[#allocation56_spill] sm:$0xff] %v10557_v27  ;;  %2227 = vst.msk [vmem:[#allocation5 + $0x238] sm:$0xff] %vm1732_vm2, %v10557_v27  ;;  %v2036_v60 = vsel %vm14452_vm4, %v10142_v33, %v10559_v14  ;;  %vm14460_vm4 = vcmask 343040  }
 0x307   : > { %2058 = vst [vmem:[#allocation5 + $0x140] sm:$0xff] %v2036_v60  ;;  %2424 = vrot.lane.b32.xlu1 %v10080_v23, %s14402_s0  ;;  %2333 = vrot.lane.b32.xlu0 %v10542_v37, %s14401_s27  ;;  %v10585_v60 = vld [vmem:[#allocation2 + $0x60] sm:$0xff] }
 0x309   : > { %v10570_v24 = vpop.permute.xlu1 %2274  ;;  %v10572_v26 = vpop.permute.xlu0 %2100 }
 0x30a   : > { %14453 = vst [vmem:[#allocation57_spill] sm:$0xff] %v10570_v24  ;;  %2308 = vst.msk [vmem:[#allocation5 + $0x298] sm:$0xff] %vm1732_vm2, %v10570_v24  ;;  %v2117_v4 = vsel %vm14454_vm13, %v10168_v46, %v10572_v26 }
 0x30b   : > { %2139 = vst [vmem:[#allocation5 + $0x1a0] sm:$0xff] %v2117_v4  ;;  %2706 = vrot.lane.b32.xlu1 %v10579_v39, %s14444_s2  ;;  %2343 = vrot.lane.b32.xlu0 %v10080_v23, %s14401_s27  ;;  %vm14462_vm13 = vmmov %vm14460_vm4 }
 0x30c   : > { %v1793_v24 = vsel %vm14462_vm13, %v9959_v13, %v10521_v19  ;;  %vm14467_vm13 = vcmask 310272  }
 0x30d   : > { %v10587_v33 = vpop.permute.xlu1 %2355  ;;  %v10589_v34 = vpop.permute.xlu0 %2181 }
 0x30e   : > { %14455 = vst [vmem:[#allocation58_spill] sm:$0xff] %v10587_v33  ;;  %2389 = vst.msk [vmem:[#allocation5 + $0x2f8] sm:$0xff] %vm1732_vm2, %v10587_v33  ;;  %v2198_v46 = vsel %vm14456_vm6, %v10190_v54, %v10589_v34  ;;  %vm14464_vm6 = vcmask 326656  }
 0x30f   : > { %2220 = vst [vmem:[#allocation5 + $0x200] sm:$0xff] %v2198_v46  ;;  %2430 = vrot.lane.b32.xlu1 %v10585_v60, %s14402_s0  ;;  %3620 = vrot.lane.b32.xlu0 %v10118_v20, %s14384_s6  ;;  %v10619_v46 = vld [vmem:[#allocation2 + $0x18] sm:$0xff] }
 0x311   : > { %v10600_v23 = vpop.permute.xlu1 %2436  ;;  %v10602_v4 = vpop.permute.xlu0 %2262 }
 0x312   : > { %14457 = vst [vmem:[#allocation59_spill] sm:$0xff] %v10600_v23  ;;  %2470 = vst.msk [vmem:[#allocation5 + $0x358] sm:$0xff] %vm1732_vm2, %v10600_v23  ;;  %v2279_v16 = vsel %vm14458_vm12, %v10216_v57, %v10602_v4  ;;  %vm14465_vm12 = vcmask 318464  }
 0x313   : > { %2301 = vst [vmem:[#allocation5 + $0x260] sm:$0xff] %v2279_v16  ;;  %2495 = vrot.lane.b32.xlu1 %v10542_v37, %s14403_s19  ;;  %2610 = vrot.lane.b32.xlu0 %v10579_v39, %s14428_s1 }
 0x315   : > { %v10613_v54 = vpop.permute.xlu1 %2517  ;;  %v10615_v20 = vpop.permute.xlu0 %3531 }
 0x316   : > { %14459 = vst [vmem:[#allocation60_spill] sm:$0xff] %v10613_v54  ;;  %2551 = vst.msk [vmem:[#allocation5 + $0x3b8] sm:$0xff] %vm1732_vm2, %v10613_v54  ;;  %v8768_v54 = vld [vmem:[%s14023_s9 + $0x24] ss:$40 sps:$4 sm:$0xff]  }
 0x317   : > { %2503 = vrot.lane.b32.xlu1 %v10484_v12, %s14403_s19  ;;  %2684 = vrot.lane.b32.xlu0 %v10619_v46, %s14444_s2 }
 0x318   : > { %8248 = vmatprep.mubr.msk.bf16.mxu0 %vm4253_vm9, %v8768_v54 }
 0x319   : > { %v10625_v16 = vpop.permute.xlu1 %3521  ;;  %v10627_v57 = vpop.permute.xlu0 %3693 }
 0x31b   : > { %2511 = vrot.lane.b32.xlu1 %v10585_v60, %s14403_s19  ;;  %2349 = vrot.lane.b32.xlu0 %v10585_v60, %s14401_s27 }
 0x31d   : > { %v10636_v18 = vpop.permute.xlu1 %3683  ;;  %v10638_v23 = vpop.permute.xlu0 %1778 }
 0x31e   : > { %v1794_v33 = vsel %vm14460_vm4, %v10521_v19, %v10638_v23  ;;  %vm14466_vm4 = vmmov %vm14465_vm12 }
 0x31f   : > { %2798 = vrot.lane.b32.xlu1 %v10513_v5, %s14461_s5  ;;  %2416 = vrot.lane.b32.xlu0 %v10048_v49, %s14402_s0 }
 0x320   : > { %4265 = vmatprep.subr.bf16.mxu1 %v1794_v33 }
 0x321   : > { %v10651_v27 = vpop.permute.xlu1 %3523  ;;  %v10653_v21 = vpop.permute.xlu0 %1859  ;;  %4266 = vmatpush1.bf16.msra.mxu1 %v1793_v24 }
 0x323   : > { %2582 = vrot.lane.b32.xlu1 %v10542_v37, %s14428_s1  ;;  %2696 = vrot.lane.b32.xlu0 %v10442_v59, %s14444_s2 }
 0x325   : > { %v10659_v54 = vpop.permute.xlu1 %3685  ;;  %v10661_v52 = vpop.permute.xlu0 %1940 }
 0x326   : > { %14463 = vst [vmem:[#allocation61_spill] sm:$0xff] %v10661_v52  ;;  %v1957_v13 = vsel %vm14464_vm6, %v10661_v52, %v10376_v35  ;;  %vm14468_vm6 = vmmov %vm14467_vm13 }
 0x327   : > { %1979 = vst [vmem:[#allocation5 + $0xf0] sm:$0xff] %v1957_v13  ;;  %2806 = vrot.lane.b32.xlu1 %v10442_v59, %s14461_s5  ;;  %2692 = vrot.lane.b32.xlu0 %v10088_v6, %s14444_s2 }
 0x329   : > { %v3449_v49 = vpop.permute.xlu1 %3448  ;;  %v2022_v19 = vpop.permute.xlu0 %2021 }
 0x32a   : > { %v2037_v24 = vsel %vm14465_vm12, %v10559_v14, %v2022_v19  ;;  %v2038_v33 = vsel %vm14466_vm4, %v2022_v19, %v10389_v48  ;;  %vm14469_vm12 = vcmask 179200  }
 0x32b   : > { %2059 = vst [vmem:[#allocation5 + $0x148] sm:$0xff] %v2037_v24  ;;  %2060 = vst [vmem:[#allocation5 + $0x150] sm:$0xff] %v2038_v33  ;;  %2592 = vrot.lane.b32.xlu1 %v10484_v12, %s14428_s1  ;;  %2704 = vrot.lane.b32.xlu0 %v10674_v22, %s14444_s2 }
 0x32c   : > { %vm14470_vm4 = vmmov %vm14469_vm12 }
 0x32d   : > { %v10680_v35 = vpop.permute.xlu1 %3610  ;;  %v2103_v6 = vpop.permute.xlu0 %2102 }
 0x32e   : > { %v2118_v13 = vsel %vm14467_vm13, %v10572_v26, %v2103_v6  ;;  %v2119_v14 = vsel %vm14468_vm6, %v2103_v6, %v10400_v32  ;;  %v10697_v6 = vld [vmem:[#allocation2 + $0x68] sm:$0xff]  ;;  %vm14471_vm13 = vcmask 171008  }
 0x32f   : > { %2140 = vst [vmem:[#allocation5 + $0x1a8] sm:$0xff] %v2118_v13  ;;  %2141 = vst [vmem:[#allocation5 + $0x1b0] sm:$0xff] %v2119_v14  ;;  %2814 = vrot.lane.b32.xlu1 %v10579_v39, %s14461_s5  ;;  %2422 = vrot.lane.b32.xlu0 %v10484_v12, %s14402_s0  ;;  %v10709_v14 = vld [vmem:[#allocation2 + $0x8] sm:$0xff] }
 0x330   : > { %vm14472_vm6 = vmmov %vm14471_vm13 }
 0x331   : > { %v3451_v48 = vpop.permute.xlu1 %3450  ;;  %v2184_v19 = vpop.permute.xlu0 %2183 }
 0x332   : > { %v3467_v24 = vsel %vm1317_vm11, %v3449_v49, %v3451_v48  ;;  %v3468_v33 = vsel %vm1317_vm11, %v3451_v48, %v10240_v62  ;;  %v2199_v26 = vsel %vm14469_vm12, %v10589_v34, %v2184_v19  ;;  %v2200_v32 = vsel %vm14470_vm4, %v2184_v19, %v10411_v40  ;;  %v10779_v62 = vld [vmem:[#allocation2 + $0x48] sm:$0xff] }
 0x333   : > { %2221 = vst [vmem:[#allocation5 + $0x208] sm:$0xff] %v2199_v26  ;;  %2222 = vst [vmem:[#allocation5 + $0x210] sm:$0xff] %v2200_v32  ;;  %2602 = vrot.lane.b32.xlu1 %v10585_v60, %s14428_s1  ;;  %2432 = vrot.lane.b32.xlu0 %v10697_v6, %s14402_s0  ;;  %vm14474_vm12 = vcmask 162816   ;;  %vm14475_vm4 = vcmask 154624  }
 0x334   : > { %4515 = vmatprep.subr.bf16.mxu0 %v3468_v33 }
 0x335   : > { %v10703_v49 = vpop.permute.xlu1 %3612  ;;  %v2265_v13 = vpop.permute.xlu0 %2264  ;;  %4516 = vmatpush1.bf16.msra.mxu0 %v3467_v24  ;;  %v10722_v24 = vld [vmem:[#allocation2 + $0x38] sm:$0xff] }
 0x336   : > { %v2280_v34 = vsel %vm14471_vm13, %v10602_v4, %v2265_v13  ;;  %v2281_v40 = vsel %vm14472_vm6, %v2265_v13, %v10422_v1  ;;  %vm14476_vm13 = vcmask 146432   ;;  %v10746_v13 = vld [vmem:[#allocation2 + $0x70] sm:$0xff]  ;;  %vm14477_vm6 = vmmov %vm14474_vm12 }
 0x337   : > { %2302 = vst [vmem:[#allocation5 + $0x268] sm:$0xff] %v2280_v34  ;;  %2303 = vst [vmem:[#allocation5 + $0x270] sm:$0xff] %v2281_v40  ;;  %2879 = vrot.lane.b32.xlu1 %v10513_v5, %s14473_s3  ;;  %2497 = vrot.lane.b32.xlu0 %v10709_v14, %s14403_s19 }
 0x339   : > { %v10715_v48 = vpop.permute.xlu1 %3537  ;;  %v10717_v19 = vpop.permute.xlu0 %2345 }
 0x33a   : > { %v2362_v4 = vsel %vm14474_vm12, %v10717_v19, %v10434_v61  ;;  %vm14483_vm12 = vcmask 310272  }
 0x33b   : > { %2384 = vst [vmem:[#allocation5 + $0x2d0] sm:$0xff] %v2362_v4  ;;  %2678 = vrot.lane.b32.xlu1 %v10542_v37, %s14444_s2  ;;  %2505 = vrot.lane.b32.xlu0 %v10722_v24, %s14403_s19 }
 0x33d   : > { %v10728_v1 = vpop.permute.xlu1 %3699  ;;  %v10730_v33 = vpop.permute.xlu0 %2426 }
 0x33e   : > { %v2443_v26 = vsel %vm14475_vm4, %v10730_v33, %v10448_v25  ;;  %vm14486_vm4 = vcmask 179200  }
 0x33f   : > { %2465 = vst [vmem:[#allocation5 + $0x330] sm:$0xff] %v2443_v26  ;;  %2887 = vrot.lane.b32.xlu1 %v10442_v59, %s14473_s3  ;;  %2513 = vrot.lane.b32.xlu0 %v10697_v6, %s14403_s19 }
 0x341   : > { %v10739_v61 = vpop.permute.xlu1 %3539  ;;  %v10741_v37 = vpop.permute.xlu0 %2507 }
 0x342   : > { %v2524_v32 = vsel %vm14476_vm13, %v10741_v37, %v10460_v9  ;;  %vm14488_vm13 = vcmask 171008  }
 0x343   : > { %2546 = vst [vmem:[#allocation5 + $0x390] sm:$0xff] %v2524_v32  ;;  %2688 = vrot.lane.b32.xlu1 %v10484_v12, %s14444_s2  ;;  %1786 = vrot.lane.b32.xlu0 %v10746_v13, %s14388_s22 }
 0x345   : > { %v10752_v25 = vpop.permute.xlu1 %2588  ;;  %v3457_v34 = vpop.permute.xlu0 %3456 }
 0x347   : > { %2895 = vrot.lane.b32.xlu1 %v10579_v39, %s14473_s3  ;;  %2796 = vrot.lane.b32.xlu0 %v10619_v46, %s14461_s5 }
 0x349   : > { %v2269_v40 = vpop.permute.xlu1 %2268  ;;  %v10758_v9 = vpop.permute.xlu0 %3618 }
 0x34b   : > { %2698 = vrot.lane.b32.xlu1 %v10585_v60, %s14444_s2  ;;  %2584 = vrot.lane.b32.xlu0 %v10709_v14, %s14428_s1 }
 0x34d   : > { %v10764_v12 = vpop.permute.xlu1 %2335  ;;  %v10766_v4 = vpop.permute.xlu0 %1784 }
 0x34e   : > { %v2358_v26 = vsel %vm14477_vm6, %v10764_v12, %v10462_v44  ;;  %vm14489_vm6 = vcmask 719872  }
 0x34f   : > { %2379 = vst [vmem:[#allocation5 + $0x2a8] sm:$0xff] %v2358_v26  ;;  %2960 = vrot.lane.b32.xlu1 %v10513_v5, %s14478_s4  ;;  %1867 = vrot.lane.b32.xlu0 %v10746_v13, %s14298_s13 }
 0x351   : > { %v10775_v32 = vpop.permute.xlu1 %2600  ;;  %v10777_v60 = vpop.permute.xlu0 %1865 }
 0x352   : > { %14479 = vst [vmem:[#allocation62_spill] sm:$0xff] %v10777_v60 }
 0x353   : > { %2968 = vrot.lane.b32.xlu1 %v10442_v59, %s14478_s4  ;;  %2804 = vrot.lane.b32.xlu0 %v10779_v62, %s14461_s5 }
 0x355   : > { %v10785_v44 = vpop.permute.xlu1 %2596  ;;  %v10787_v26 = vpop.permute.xlu0 %1946 }
 0x356   : > { %14480 = vst [vmem:[#allocation63_spill] sm:$0xff] %v10787_v26 }
 0x357   : > { %2976 = vrot.lane.b32.xlu1 %v10579_v39, %s14478_s4  ;;  %2594 = vrot.lane.b32.xlu0 %v10722_v24, %s14428_s1 }
 0x359   : > { %v10793_v28 = vpop.permute.xlu1 %3701  ;;  %v10795_v45 = vpop.permute.xlu0 %2027 }
 0x35a   : > { %14481 = vst [vmem:[#allocation64_spill] sm:$0xff] %v10795_v45 }
 0x35b   : > { %2702 = vrot.lane.b32.xlu1 %v10746_v13, %s14444_s2  ;;  %1948 = vrot.lane.b32.xlu0 %v10746_v13, %s14335_s30 }
 0x35d   : > { %v10801_v11 = vpop.permute.xlu1 %2608  ;;  %v10803_v52 = vpop.permute.xlu0 %2108 }
 0x35e   : > { %14482 = vst [vmem:[#allocation65_spill] sm:$0xff] %v10803_v52  ;;  %v2120_v26 = vsel %vm14483_vm12, %v10174_v51, %v10803_v52  ;;  %vm14490_vm12 = vcmask 15360  }
 0x35f   : > { %2143 = vst [vmem:[#allocation5 + $0x1c0] sm:$0xff] %v2120_v26  ;;  %3041 = vrot.lane.b32.xlu1 %v10513_v5, %s14484_s7  ;;  %2812 = vrot.lane.b32.xlu0 %v10674_v22, %s14461_s5 }
 0x361   : > { %v10812_v45 = vpop.permute.xlu1 %2341  ;;  %v10814_v55 = vpop.permute.xlu0 %2189 }
 0x362   : > { %14485 = vst [vmem:[#allocation66_spill] sm:$0xff] %v10814_v55  ;;  %v2201_v50 = vsel %vm14486_vm4, %v10200_v36, %v10814_v55  ;;  %vm14491_vm4 = vmmov %vm14489_vm6 }
 0x363   : > { %2224 = vst [vmem:[#allocation5 + $0x220] sm:$0xff] %v2201_v50  ;;  %2792 = vrot.lane.b32.xlu1 %v10709_v14, %s14461_s5  ;;  %2604 = vrot.lane.b32.xlu0 %v10697_v6, %s14428_s1 }
 0x365   : > { %v10823_v51 = vpop.permute.xlu1 %2351  ;;  %v10825_v26 = vpop.permute.xlu0 %2270 }
 0x366   : > { %14487 = vst [vmem:[#allocation67_spill] sm:$0xff] %v10825_v26  ;;  %v2282_v52 = vsel %vm14488_vm13, %v2269_v40, %v10825_v26  ;;  %vm14492_vm13 = vmmov %vm14491_vm4 }
 0x367   : > { %2305 = vst [vmem:[#allocation5 + $0x280] sm:$0xff] %v2282_v52  ;;  %3049 = vrot.lane.b32.xlu1 %v10442_v59, %s14484_s7  ;;  %2029 = vrot.lane.b32.xlu0 %v10746_v13, %s14361_s23  ;;  %v3546_v52 = vsel %vm14489_vm6, %v10651_v27, %v10224_v58  ;;  %vm14493_vm6 = vmmov %vm14490_vm12  ;;  %v11373_v58 = vld [vmem:[#allocation2 + $0x8] sm:$0xff] }
 0x369   : > { %v10833_v36 = vpop.permute.xlu1 %2686  ;;  %v3459_v50 = vpop.permute.xlu0 %3458 }
 0x36a   : > { %v3470_v55 = vsel %vm1317_vm11, %v3457_v34, %v3459_v50  ;;  %v3471_v60 = vsel %vm1317_vm11, %v3459_v50, %v10473_v42 }
 0x36b   : > { %2800 = vrot.lane.b32.xlu1 %v10722_v24, %s14461_s5  ;;  %2877 = vrot.lane.b32.xlu0 %v10619_v46, %s14473_s3 }
 0x36c   : > { %4517 = vmatprep.subr.bf16.mxu0 %v3471_v60  ;;  %v3545_v60 = vsel %vm14491_vm4, %v10625_v16, %v10651_v27  ;;  %v3552_v16 = vsel %vm14491_vm4, %v10739_v61, %v10260_v8  ;;  %v14564_v8 = vld [vmem:[#allocation57_spill] sm:$0xff] }
 0x36d   : > { %v10845_v40 = vpop.permute.xlu1 %2682  ;;  %v2591_v26 = vpop.permute.xlu0 %2590  ;;  %4518 = vmatpush1.bf16.msra.mxu0 %v3470_v55  ;;  %v3549_v55 = vsel %vm14492_vm13, %v10615_v20, %v10331_v43  ;;  %vm14495_vm13 = vmmov %vm14493_vm6 }
 0x36e   : > { %v2615_v34 = vsel %vm14490_vm12, %v10752_v25, %v2591_v26  ;;  %4519 = vmatprep.subr.bf16.mxu0 %v3546_v52  ;;  %vm14494_vm12 = vmmov %vm14491_vm4 }
 0x36f   : > { %2639 = vst.msk [vmem:[#allocation5 + $0x3d8] sm:$0xff] %vm1732_vm2, %v2615_v34  ;;  %3057 = vrot.lane.b32.xlu1 %v10579_v39, %s14484_s7  ;;  %2680 = vrot.lane.b32.xlu0 %v10709_v14, %s14444_s2  ;;  %v3548_v27 = vsel %vm14494_vm12, %v10499_v7, %v10615_v20  ;;  %v10891_v7 = vld [vmem:[%s14023_s9 + $0x4] ss:$40 sps:$4 sm:$0xff]   ;;  %vm14497_vm12 = vmmov %vm14491_vm4  ;;  %vm14498_vm4 = vcmask 154624  }
 0x370   : > { %v3551_v20 = vsel %vm14497_vm12, %v10715_v48, %v10739_v61  ;;  %4295 = vmatprep.mubr.bf16.mxu1 %v10891_v7  ;;  %v3626_v48 = vsel %vm1361_vm8, %v10282_v17, %v10368_v53  ;;  %v3629_v17 = vsel %vm1361_vm8, %v10680_v35, %v10703_v49  ;;  %v3708_v35 = vsel %vm1383_vm5, %v10659_v54, %v10230_v47 }
 0x371   : > { %v10860_v50 = vpop.permute.xlu1 %2694  ;;  %v10862_v26 = vpop.permute.xlu0 %2586  ;;  %4520 = vmatpush1.bf16.msra.mxu0 %v3545_v60 }
 0x372   : > { %v2614_v52 = vsel %vm14493_vm6, %v10862_v26, %v10752_v25  ;;  %4521 = vmatprep.subr.bf16.mxu0 %v3549_v55 }
 0x373   : > { %2638 = vst [vmem:[#allocation5 + $0x3d0] sm:$0xff] %v2614_v52  ;;  %2808 = vrot.lane.b32.xlu1 %v10697_v6, %s14461_s5  ;;  %2110 = vrot.lane.b32.xlu0 %v10746_v13, %s14367_s24 }
 0x375   : > { %v10877_v34 = vpop.permute.xlu1 %2414  ;;  %v2599_v60 = vpop.permute.xlu0 %2598  ;;  %4522 = vmatpush1.bf16.msra.mxu0 %v3548_v27 }
 0x376   : > { %v2618_v25 = vsel %vm14495_vm13, %v10785_v44, %v2599_v60  ;;  %v2619_v55 = vsel %vm14493_vm6, %v2599_v60, %v10775_v32  ;;  %4523 = vmatprep.subr.bf16.mxu0 %v3552_v16  ;;  %v3627_v32 = vsel %vm1361_vm8, %v10368_v53, %v10222_v41  ;;  %vm14499_vm13 = vcmask 162816  }
 0x377   : > { %2642 = vst [vmem:[#allocation5 + $0x3f0] sm:$0xff] %v2618_v25  ;;  %2643 = vst.msk [vmem:[#allocation5 + $0x3f8] sm:$0xff] %vm1732_vm2, %v2619_v55  ;;  %3122 = vrot.lane.b32.xlu1 %v10513_v5, %s14496_s8  ;;  %2885 = vrot.lane.b32.xlu0 %v10779_v62, %s14473_s3 }
 0x378   : > { %vm14500_vm6 = vmmov %vm14499_vm13 }
 0x379   : > { %v10899_v52 = vpop.permute.xlu1 %2424  ;;  %v2334_v27 = vpop.permute.xlu0 %2333  ;;  %4524 = vmatpush1.bf16.msra.mxu0 %v3551_v20  ;;  %vm14501_vm12 = vmmov %vm14500_vm6 }
 0x37a   : > { %v2442_v16 = vsel %vm14498_vm4, %v10899_v52, %v10730_v33  ;;  %v2357_v60 = vsel %vm14499_vm13, %v2334_v27, %v10764_v12  ;;  %4525 = vmatprep.subr.bf16.mxu0 %v3627_v32  ;;  %v3630_v33 = vsel %vm1361_vm8, %v10703_v49, %v10250_v63  ;;  %vm14502_vm4 = vcmask 15360   ;;  %v3846_v63 = vld [vmem:[#allocation5 + $0x260] sm:$0xff] }
 0x37b   : > { %2464 = vst [vmem:[#allocation5 + $0x328] sm:$0xff] %v2442_v16  ;;  %2378 = vst [vmem:[#allocation5 + $0x2a0] sm:$0xff] %v2357_v60  ;;  %2873 = vrot.lane.b32.xlu1 %v10709_v14, %s14473_s3  ;;  %2690 = vrot.lane.b32.xlu0 %v10722_v24, %s14444_s2  ;;  %v3707_v27 = vsel %vm1383_vm5, %v10636_v18, %v10659_v54  ;;  %v3711_v16 = vsel %vm1383_vm5, %v10627_v57, %v10342_v31  ;;  %vm14503_vm13 = vcmask 7168   ;;  %v14558_v31 = vld [vmem:[#allocation56_spill] sm:$0xff] }
 0x37c   : > { %v3710_v18 = vsel %vm1383_vm5, %v10509_v3, %v10627_v57  ;;  %v3714_v54 = vsel %vm1383_vm5, %v10793_v28, %v10270_v15  ;;  %v3713_v3 = vsel %vm1383_vm5, %v10728_v1, %v10793_v28  ;;  %v8766_v57 = vld [vmem:[%s14023_s9 + $0x20] ss:$40 sps:$4 sm:$0xff]   ;;  %v3772_v1 = vld [vmem:[#allocation5 + $0x10] sm:$0xff] }
 0x37d   : > { %v10917_v61 = vpop.permute.xlu1 %2706  ;;  %v2344_v12 = vpop.permute.xlu0 %2343  ;;  %4526 = vmatpush1.bf16.msra.mxu0 %v3626_v48 }
 0x37e   : > { %v2360_v25 = vsel %vm14500_vm6, %v10812_v45, %v2344_v12  ;;  %v2361_v55 = vsel %vm14501_vm12, %v2344_v12, %v10717_v19  ;;  %4527 = vmatprep.subr.bf16.mxu0 %v3630_v33  ;;  %vm14504_vm6 = vmmov %vm14503_vm13 }
 0x37f   : > { %2382 = vst [vmem:[#allocation5 + $0x2c0] sm:$0xff] %v2360_v25  ;;  %2383 = vst [vmem:[#allocation5 + $0x2c8] sm:$0xff] %v2361_v55  ;;  %3130 = vrot.lane.b32.xlu1 %v10442_v59, %s14496_s8  ;;  %2191 = vrot.lane.b32.xlu0 %v10746_v13, %s14375_s16 }
 0x381   : > { %v10930_v53 = vpop.permute.xlu1 %2430  ;;  %v3621_v20 = vpop.permute.xlu0 %3620  ;;  %4528 = vmatpush1.bf16.msra.mxu0 %v3629_v17 }
 0x382   : > { %v3632_v45 = vsel %vm1361_vm8, %v10758_v9, %v3621_v20  ;;  %v3633_v19 = vsel %vm1361_vm8, %v3621_v20, %v10486_v56  ;;  %v11329_v56 = vld [vmem:[#allocation2 + $0x38] sm:$0xff] }
 0x383   : > { %2881 = vrot.lane.b32.xlu1 %v10722_v24, %s14473_s3  ;;  %2893 = vrot.lane.b32.xlu0 %v10674_v22, %s14473_s3 }
 0x384   : > { %4529 = vmatprep.subr.bf16.mxu0 %v3633_v19  ;;  %v8769_v19 = vld [vmem:[%s14023_s9 + $0x74] ss:$40 sps:$4 sm:$0xff]  }
 0x385   : > { %v10943_v49 = vpop.permute.xlu1 %2495  ;;  %v2611_v32 = vpop.permute.xlu0 %2610  ;;  %4530 = vmatpush1.bf16.msra.mxu0 %v3632_v45  ;;  %v3773_v45 = vld [vmem:[#allocation5 + $0x18] sm:$0xff] }
 0x386   : > { %v2623_v9 = vsel %vm14502_vm4, %v10801_v11, %v2611_v32  ;;  %4531 = vmatprep.subr.bf16.mxu0 %v3708_v35  ;;  %vm14506_vm4 = vcmask 154624  }
 0x387   : > { %2647 = vst.msk [vmem:[#allocation5 + $0x418] sm:$0xff] %vm1732_vm2, %v2623_v9  ;;  %3138 = vrot.lane.b32.xlu1 %v10579_v39, %s14496_s8  ;;  %2700 = vrot.lane.b32.xlu0 %v10697_v6, %s14444_s2 }
 0x389   : > { %v10958_v60 = vpop.permute.xlu1 %2503  ;;  %v2685_v48 = vpop.permute.xlu0 %2684  ;;  %4532 = vmatpush1.bf16.msra.mxu0 %v3707_v27  ;;  %v3777_v27 = vld [vmem:[#allocation5 + $0x38] sm:$0xff] }
 0x38a   : > { %v2710_v33 = vsel %vm14503_vm13, %v10845_v40, %v2685_v48  ;;  %v2711_v12 = vsel %vm14504_vm6, %v2685_v48, %v10833_v36  ;;  %4533 = vmatprep.subr.bf16.mxu0 %v3711_v16  ;;  %vm14507_vm13 = vmmov %vm14506_vm4  ;;  %v8771_v16 = vld [vmem:[%s14023_s9 + $0x70] ss:$40 sps:$4 sm:$0xff]  }
 0x38b   : > { %2734 = vst [vmem:[#allocation5 + $0x430] sm:$0xff] %v2710_v33  ;;  %2735 = vst.msk [vmem:[#allocation5 + $0x438] sm:$0xff] %vm1732_vm2, %v2711_v12  ;;  %2889 = vrot.lane.b32.xlu1 %v10697_v6, %s14473_s3  ;;  %2272 = vrot.lane.b32.xlu0 %v10746_v13, %s14377_s28  ;;  %v3781_v12 = vld [vmem:[#allocation5 + $0x58] sm:$0xff] }
 0x38d   : > { %v10975_v25 = vpop.permute.xlu1 %2511  ;;  %v2350_v36 = vpop.permute.xlu0 %2349  ;;  %4534 = vmatpush1.bf16.msra.mxu0 %v3710_v18 }
 0x38e   : > { %v2363_v55 = vsel %vm14501_vm12, %v2350_v36, %v10823_v51  ;;  %4535 = vmatprep.subr.bf16.mxu0 %v3714_v54  ;;  %vm14508_vm12 = vcmask 343040  }
 0x38f   : > { %2386 = vst [vmem:[#allocation5 + $0x2e0] sm:$0xff] %v2363_v55  ;;  %3203 = vrot.lane.b32.xlu1 %v10513_v5, %s14505_s17  ;;  %2958 = vrot.lane.b32.xlu0 %v10619_v46, %s14478_s4 }
 0x391   : > { %v10989_v17 = vpop.permute.xlu1 %2798  ;;  %v2417_v20 = vpop.permute.xlu0 %2416  ;;  %4536 = vmatpush1.bf16.msra.mxu0 %v3713_v3 }
 0x392   : > { %2840 = vst.msk [vmem:[#allocation5 + $0x4f8] sm:$0xff] %vm1732_vm2, %v10989_v17  ;;  %v2438_v35 = vsel %vm14506_vm4, %v10877_v34, %v2417_v20  ;;  %v2439_v28 = vsel %vm14507_vm13, %v2417_v20, %v10475_v2  ;;  %4578 = vmatprep.subr.bf16.mxu0 %v3773_v45  ;;  %v1795_v34 = vsel %vm14508_vm12, %v10638_v23, %v10353_v29  ;;  %vm14509_vm4 = vmmov %vm14504_vm6  ;;  %vm14513_vm12 = vcmask 146432  }
 0x393   : > { %2459 = vst [vmem:[#allocation5 + $0x300] sm:$0xff] %v2438_v35  ;;  %2460 = vst [vmem:[#allocation5 + $0x308] sm:$0xff] %v2439_v28  ;;  %2954 = vrot.lane.b32.xlu1 %v10709_v14, %s14478_s4  ;;  %2966 = vrot.lane.b32.xlu0 %v10779_v62, %s14478_s4  ;;  %v11093_v28 = vld [vmem:[#allocation2 + $0x50] sm:$0xff] }
 0x394   : > { %4548 = vmatmul.mubr.bf16.vlgmr.msra.gmra.mrb[16].mxu0 %v8766_v57  ;;  %vm14510_vm13 = vmmov %vm14509_vm4 }
 0x395   : > { %v11004_v32 = vpop.permute.xlu1 %2582  ;;  %v2697_v9 = vpop.permute.xlu0 %2696  ;;  %4579 = vmatpush1.bf16.msra.mxu0 %v3772_v1  ;;  %8249 = vmatprep.mubr.msk.bf16.mxu0 %vm4253_vm9, %v8769_v19  ;;  %v11095_v1 = vld [vmem:[#allocation2 + $0x10] sm:$0xff] }
 0x396   : > { %v2715_v2 = vsel %vm14504_vm6, %v10860_v50, %v2697_v9  ;;  %4580 = vmatprep.subr.bf16.mxu0 %v3777_v27  ;;  %vm14511_vm6 = vcmask 154624  }
 0x397   : > { %2739 = vst.msk [vmem:[#allocation5 + $0x458] sm:$0xff] %vm1732_vm2, %v2715_v2  ;;  %3211 = vrot.lane.b32.xlu1 %v10442_v59, %s14505_s17  ;;  %2353 = vrot.lane.b32.xlu0 %v10746_v13, %s14401_s27  ;;  %v8772_v59 = vld [vmem:[%s14023_s9 + $0xc4] ss:$40 sps:$4 sm:$0xff]  }
 0x399   : > { %v11020_v48 = vpop.permute.xlu1 %2806  ;;  %v11022_v33 = vpop.permute.xlu0 %2692  ;;  %4581 = vmatpush1.bf16.msra.mxu0 %v1795_v34 }
 0x39a   : > { %2844 = vst.msk [vmem:[#allocation5 + $0x518] sm:$0xff] %vm1732_vm2, %v11020_v48  ;;  %v2714_v29 = vsel %vm14509_vm4, %v11022_v33, %v10860_v50  ;;  %4582 = vmatprep.subr.bf16.mxu0 %v3781_v12  ;;  %v8774_v50 = vld [vmem:[%s14023_s9 + $0xc0] ss:$40 sps:$4 sm:$0xff]   ;;  %vm14514_vm4 = vmmov %vm14513_vm12  ;;  %v3785_v12 = vld [vmem:[#allocation5 + $0x78] sm:$0xff] }
 0x39b   : > { %2738 = vst [vmem:[#allocation5 + $0x450] sm:$0xff] %v2714_v29  ;;  %2962 = vrot.lane.b32.xlu1 %v10722_v24, %s14478_s4  ;;  %2974 = vrot.lane.b32.xlu0 %v10674_v22, %s14478_s4 }
 0x39c   : > { %4558 = vmatmul.mubr.bf16.gmra.mrb[20].mxu0 %v8771_v16  ;;  %v11120_v16 = vld [vmem:[#allocation2 + $0x40] sm:$0xff] }
 0x39d   : > { %v11036_v23 = vpop.permute.xlu1 %2592  ;;  %v11038_v18 = vpop.permute.xlu0 %2704  ;;  %8250 = vmatprep.mubr.msk.bf16.mxu0 %vm4253_vm9, %v8772_v59 }
 0x39e   : > { %v2719_v54 = vsel %vm14510_vm13, %v11038_v18, %v10917_v61  ;;  %vm14515_vm13 = vmmov %vm14514_vm4 }
 0x39f   : > { %2743 = vst.msk [vmem:[#allocation5 + $0x478] sm:$0xff] %vm1732_vm2, %v2719_v54  ;;  %3219 = vrot.lane.b32.xlu1 %v10579_v39, %s14505_s17  ;;  %2434 = vrot.lane.b32.xlu0 %v10746_v13, %s14402_s0  ;;  %v3789_v54 = vld [vmem:[#allocation5 + $0x98] sm:$0xff] }
 0x3a1   : > { %v11052_v36 = vpop.permute.xlu1 %2814  ;;  %v11054_v55 = vpop.permute.xlu0 %2422 }
 0x3a2   : > { %2848 = vst.msk [vmem:[#allocation5 + $0x538] sm:$0xff] %vm1732_vm2, %v11052_v36 }
 0x3a3   : > { %2970 = vrot.lane.b32.xlu1 %v10697_v6, %s14478_s4  ;;  %2515 = vrot.lane.b32.xlu0 %v10746_v13, %s14403_s19 }
 0x3a4   : > { %4568 = vmatmul.mubr.bf16.gmra.mrb[24].mxu0 %v8774_v50 }
 0x3a5   : > { %v11062_v61 = vpop.permute.xlu1 %2602  ;;  %v11064_v3 = vpop.permute.xlu0 %2432  ;;  %4610 = vmatprep.mubr.bf16.mxu0 %v10891_v7 }
 0x3a6   : > { %v2444_v57 = vsel %vm14511_vm6, %v10930_v53, %v11064_v3  ;;  %vm14516_vm6 = vmmov %vm14514_vm4 }
 0x3a7   : > { %2467 = vst [vmem:[#allocation5 + $0x340] sm:$0xff] %v2444_v57  ;;  %3284 = vrot.lane.b32.xlu1 %v10513_v5, %s14512_s25  ;;  %2606 = vrot.lane.b32.xlu0 %v10746_v13, %s14428_s1 }
 0x3a9   : > { %v11074_v20 = vpop.permute.xlu1 %2879  ;;  %v11076_v45 = vpop.permute.xlu0 %2497 }
 0x3aa   : > { %2921 = vst.msk [vmem:[#allocation5 + $0x558] sm:$0xff] %vm1732_vm2, %v11074_v20  ;;  %v2519_v7 = vsel %vm14513_vm12, %v10943_v49, %v11076_v45  ;;  %vm14517_vm12 = vcmask 343040  }
 0x3ab   : > { %2540 = vst [vmem:[#allocation5 + $0x360] sm:$0xff] %v2519_v7  ;;  %3035 = vrot.lane.b32.xlu1 %v10709_v14, %s14484_s7  ;;  %3039 = vrot.lane.b32.xlu0 %v10619_v46, %s14484_s7 }
 0x3ad   : > { %v11087_v5 = vpop.permute.xlu1 %2678  ;;  %v2506_v53 = vpop.permute.xlu0 %2505 }
 0x3ae   : > { %v2522_v19 = vsel %vm14514_vm4, %v10958_v60, %v2506_v53  ;;  %v2523_v35 = vsel %vm14515_vm13, %v2506_v53, %v10741_v37  ;;  %vm14518_vm4 = vmmov %vm14517_vm12 }
 0x3af   : > { %2544 = vst [vmem:[#allocation5 + $0x380] sm:$0xff] %v2522_v19  ;;  %2545 = vst [vmem:[#allocation5 + $0x388] sm:$0xff] %v2523_v35  ;;  %3292 = vrot.lane.b32.xlu1 %v11093_v28, %s14512_s25  ;;  %2794 = vrot.lane.b32.xlu0 %v11095_v1, %s14461_s5  ;;  %v11151_v19 = vld [vmem:[#allocation2 + $0x20] sm:$0xff] }
 0x3b0   : > { %vm14519_vm13 = vmmov %vm14518_vm4 }
 0x3b1   : > { %v11101_v49 = vpop.permute.xlu1 %2887  ;;  %v11103_v9 = vpop.permute.xlu0 %2513 }
 0x3b2   : > { %2925 = vst.msk [vmem:[#allocation5 + $0x578] sm:$0xff] %vm1732_vm2, %v11101_v49  ;;  %v2525_v37 = vsel %vm14516_vm6, %v10975_v25, %v11103_v9  ;;  %v1796_v25 = vsel %vm14519_vm13, %v9982_v38, %v10766_v4  ;;  %vm14520_vm6 = vcmask 1039360   ;;  %v3784_v38 = vld [vmem:[#allocation5 + $0x70] sm:$0xff] }
 0x3b3   : > { %2548 = vst [vmem:[#allocation5 + $0x3a0] sm:$0xff] %v2525_v37  ;;  %3043 = vrot.lane.b32.xlu1 %v10722_v24, %s14484_s7  ;;  %3047 = vrot.lane.b32.xlu0 %v10779_v62, %s14484_s7 }
 0x3b5   : > { %v11114_v60 = vpop.permute.xlu1 %2688  ;;  %v1787_v27 = vpop.permute.xlu0 %1786 }
 0x3b6   : > { %v1797_v2 = vsel %vm14517_vm12, %v10766_v4, %v1787_v27  ;;  %v1798_v34 = vsel %vm14518_vm4, %v1787_v27, %v10497_v0  ;;  %v3783_v0 = vld [vmem:[#allocation5 + $0x68] sm:$0xff]  ;;  %v3782_v4 = vld [vmem:[#allocation5 + $0x60] sm:$0xff]  ;;  %vm14521_vm12 = vcmask 334848   ;;  %vm14522_vm4 = vcmask 15360  }
 0x3b7   : > { %3300 = vrot.lane.b32.xlu1 %v10579_v39, %s14512_s25  ;;  %2802 = vrot.lane.b32.xlu0 %v11120_v16, %s14461_s5  ;;  %v1875_v50 = vsel %vm14521_vm12, %v10531_v30, %v10653_v21  ;;  %vm14523_vm13 = vmmov %vm14522_vm4  ;;  %v3786_v30 = vld [vmem:[#allocation5 + $0x80] sm:$0xff] }
 0x3b8   : > { %4267 = vmatprep.subr.bf16.mxu1 %v1797_v2  ;;  %4583 = vmatpush1.bf16.msra.mxu0 %v1798_v34  ;;  %v14528_v27 = vld [vmem:[#allocation51_spill] sm:$0xff] }
 0x3b9   : > { %v11129_v59 = vpop.permute.xlu1 %2895  ;;  %v11131_v29 = vpop.permute.xlu0 %2796  ;;  %4268 = vmatpush1.bf16.msra.mxu1 %v1796_v25  ;;  %4584 = vmatprep.subr.bf16.mxu0 %v3785_v12  ;;  %v14530_v34 = vld [vmem:[#allocation35_spill] sm:$0xff]  ;;  %v3797_v12 = vld [vmem:[#allocation5 + $0xd8] sm:$0xff] }
 0x3ba   : > { %2929 = vst.msk [vmem:[#allocation5 + $0x598] sm:$0xff] %vm1732_vm2, %v11129_v59  ;;  %v2818_v39 = vsel %vm14520_vm6, %v11131_v29, %v10989_v17  ;;  %4269 = vmatprep.subr.bf16.mxu1 %v3783_v0  ;;  %vm14524_vm6 = vmmov %vm14521_vm12 }
 0x3bb   : > { %2839 = vst [vmem:[#allocation5 + $0x4f0] sm:$0xff] %v2818_v39  ;;  %3051 = vrot.lane.b32.xlu1 %v10697_v6, %s14484_s7  ;;  %3055 = vrot.lane.b32.xlu0 %v10674_v22, %s14484_s7  ;;  %v1876_v35 = vsel %vm14524_vm6, %v10653_v21, %v10366_v10  ;;  %v14526_v10 = vld [vmem:[#allocation62_spill] sm:$0xff]  ;;  %vm14527_vm12 = vmmov %vm14524_vm6 }
 0x3bc   : > { %4585 = vmatpush1.bf16.msra.mxu0 %v3784_v38  ;;  %v3795_v38 = vld [vmem:[#allocation5 + $0xc8] sm:$0xff] }
 0x3bd   : > { %v11145_v57 = vpop.permute.xlu1 %2698  ;;  %v2585_v7 = vpop.permute.xlu0 %2584  ;;  %4270 = vmatpush1.bf16.msra.mxu1 %v3782_v4  ;;  %4586 = vmatprep.subr.bf16.mxu0 %v3789_v54  ;;  %v3796_v4 = vld [vmem:[#allocation5 + $0xd0] sm:$0xff]  ;;  %v3794_v54 = vld [vmem:[#allocation5 + $0xc0] sm:$0xff] }
 0x3be   : > { %v2612_v17 = vsel %vm14522_vm4, %v11004_v32, %v2585_v7  ;;  %v2613_v53 = vsel %vm14523_vm13, %v2585_v7, %v10862_v26  ;;  %4271 = vmatprep.subr.bf16.mxu1 %v1875_v50  ;;  %v3793_v32 = vld [vmem:[#allocation5 + $0xb8] sm:$0xff]  ;;  %vm14529_vm4 = vmmov %vm14524_vm6  ;;  %vm14532_vm6 = vcmask 1039360  }
 0x3bf   : > { %2636 = vst [vmem:[#allocation5 + $0x3c0] sm:$0xff] %v2612_v17  ;;  %2637 = vst [vmem:[#allocation5 + $0x3c8] sm:$0xff] %v2613_v53  ;;  %3365 = vrot.lane.b32.xlu1 %v11151_v19, %s14525_s26  ;;  %2810 = vrot.lane.b32.xlu0 %v10746_v13, %s14461_s5  ;;  %v3801_v50 = vld [vmem:[#allocation5 + $0xf8] sm:$0xff]  ;;  %v14534_v17 = vld [vmem:[#allocation55_spill] sm:$0xff] }
 0x3c0   : > { %4587 = vmatpush1.bf16.msra.mxu0 %v1876_v35  ;;  %vm14531_vm13 = vmmov %vm14529_vm4  ;;  %v14533_v7 = vld [vmem:[#allocation61_spill] sm:$0xff] }
 0x3c1   : > { %v11160_v37 = vpop.permute.xlu1 %2960  ;;  %v1868_v26 = vpop.permute.xlu0 %1867  ;;  %4272 = vmatpush1.bf16.msra.mxu1 %v3786_v30  ;;  %4588 = vmatprep.subr.bf16.mxu0 %v3793_v32  ;;  %v1877_v25 = vsel %vm14531_vm13, %v14530_v34, %v14526_v10  ;;  %v3798_v32 = vld [vmem:[#allocation5 + $0xe0] sm:$0xff] }
 0x3c2   : > { %3002 = vst.msk [vmem:[#allocation5 + $0x5b8] sm:$0xff] %vm1732_vm2, %v11160_v37  ;;  %v1878_v21 = vsel %vm14527_vm12, %v14526_v10, %v1868_v26  ;;  %v1879_v2 = vsel %vm14529_vm4, %v1868_v26, %v14528_v27  ;;  %vm14535_vm12 = vcmask 326656   ;;  %v3805_v26 = vld [vmem:[#allocation5 + $0x118] sm:$0xff]  ;;  %vm14536_vm4 = vcmask 7168  }
 0x3c3   : > { %3116 = vrot.lane.b32.xlu1 %v10709_v14, %s14496_s8  ;;  %3120 = vrot.lane.b32.xlu0 %v10619_v46, %s14496_s8  ;;  %v1956_v53 = vsel %vm14535_vm12, %v14534_v17, %v14533_v7  ;;  %vm14538_vm13 = vmmov %vm14535_vm12  ;;  %v3808_v17 = vld [vmem:[#allocation5 + $0x130] sm:$0xff] }
 0x3c4   : > { %4273 = vmatprep.subr.bf16.mxu1 %v1878_v21  ;;  %4589 = vmatpush1.bf16.msra.mxu0 %v1879_v2  ;;  %v14537_v2 = vld [vmem:[#allocation63_spill] sm:$0xff] }
 0x3c5   : > { %v11175_v0 = vpop.permute.xlu1 %2968  ;;  %v11177_v39 = vpop.permute.xlu0 %2804  ;;  %4274 = vmatpush1.bf16.msra.mxu1 %v1877_v25  ;;  %4590 = vmatprep.subr.bf16.mxu0 %v3797_v12  ;;  %v11210_v12 = vld [vmem:[#allocation2 + $0x80] sm:$0xff] }
 0x3c6   : > { %3006 = vst.msk [vmem:[#allocation5 + $0x5d8] sm:$0xff] %vm1732_vm2, %v11175_v0  ;;  %v2821_v46 = vsel %vm14532_vm6, %v11177_v39, %v11020_v48  ;;  %4275 = vmatprep.subr.bf16.mxu1 %v3795_v38  ;;  %v3800_v48 = vld [vmem:[#allocation5 + $0xf0] sm:$0xff]  ;;  %vm14540_vm6 = vmmov %vm14535_vm12 }
 0x3c7   : > { %2843 = vst [vmem:[#allocation5 + $0x510] sm:$0xff] %v2821_v46  ;;  %3373 = vrot.lane.b32.xlu1 %v11093_v28, %s14525_s26  ;;  %2875 = vrot.lane.b32.xlu0 %v11095_v1, %s14473_s3  ;;  %v14541_v38 = vld [vmem:[#allocation37_spill] sm:$0xff]  ;;  %vm14542_vm12 = vmmov %vm14540_vm6 }
 0x3c8   : > { %4591 = vmatpush1.bf16.msra.mxu0 %v3796_v4  ;;  %v1958_v46 = vsel %vm14542_vm12, %v14541_v38, %v14537_v2 }
 0x3c9   : > { %v11191_v35 = vpop.permute.xlu1 %2976  ;;  %v11193_v30 = vpop.permute.xlu0 %2594  ;;  %4276 = vmatpush1.bf16.msra.mxu1 %v3794_v54  ;;  %4592 = vmatprep.subr.bf16.mxu0 %v3801_v50  ;;  %v3807_v50 = vld [vmem:[#allocation5 + $0x128] sm:$0xff] }
 0x3ca   : > { %3010 = vst.msk [vmem:[#allocation5 + $0x5f8] sm:$0xff] %vm1732_vm2, %v11191_v35  ;;  %4277 = vmatprep.subr.bf16.mxu1 %v1956_v53  ;;  %v3806_v53 = vld [vmem:[#allocation5 + $0x120] sm:$0xff] }
 0x3cb   : > { %3124 = vrot.lane.b32.xlu1 %v10722_v24, %s14496_s8  ;;  %3128 = vrot.lane.b32.xlu0 %v10779_v62, %s14496_s8  ;;  %v14539_v24 = vld [vmem:[#allocation52_spill] sm:$0xff] }
 0x3cc   : > { %4593 = vmatpush1.bf16.msra.mxu0 %v3800_v48  ;;  %v3813_v48 = vld [vmem:[#allocation5 + $0x158] sm:$0xff] }
 0x3cd   : > { %v11201_v10 = vpop.permute.xlu1 %2702  ;;  %v1949_v21 = vpop.permute.xlu0 %1948  ;;  %4278 = vmatpush1.bf16.msra.mxu1 %v3798_v32  ;;  %4594 = vmatprep.subr.bf16.mxu0 %v3805_v26 }
 0x3ce   : > { %v2718_v27 = vsel %vm14536_vm4, %v11201_v10, %v11038_v18  ;;  %v1959_v34 = vsel %vm14538_vm13, %v14537_v2, %v1949_v21  ;;  %v1960_v25 = vsel %vm14540_vm6, %v1949_v21, %v14539_v24  ;;  %v3809_v18 = vld [vmem:[#allocation5 + $0x138] sm:$0xff]  ;;  %vm14543_vm4 = vcmask 1039360   ;;  %v3811_v21 = vld [vmem:[#allocation5 + $0x148] sm:$0xff] }
 0x3cf   : > { %2742 = vst [vmem:[#allocation5 + $0x470] sm:$0xff] %v2718_v27  ;;  %3381 = vrot.lane.b32.xlu1 %v11210_v12, %s14525_s26  ;;  %2883 = vrot.lane.b32.xlu0 %v11120_v16, %s14473_s3  ;;  %vm14545_vm13 = vcmask 318464  }
 0x3d0   : > { %4279 = vmatprep.subr.bf16.mxu1 %v1959_v34  ;;  %4595 = vmatpush1.bf16.msra.mxu0 %v1960_v25  ;;  %v14544_v34 = vld [vmem:[#allocation64_spill] sm:$0xff]  ;;  %v14546_v25 = vld [vmem:[#allocation53_spill] sm:$0xff]  ;;  %vm14547_vm6 = vmmov %vm14545_vm13 }
 0x3d1   : > { %v11219_v4 = vpop.permute.xlu1 %3041  ;;  %v11221_v54 = vpop.permute.xlu0 %2812  ;;  %4280 = vmatpush1.bf16.msra.mxu1 %v1958_v46  ;;  %4596 = vmatprep.subr.bf16.mxu0 %v3809_v18  ;;  %v11248_v46 = vld [vmem:[#allocation2 + $0x18] sm:$0xff]  ;;  %vm14549_vm12 = vmmov %vm14547_vm6 }
 0x3d2   : > { %3083 = vst.msk [vmem:[#allocation5 + $0x618] sm:$0xff] %vm1732_vm2, %v11219_v4  ;;  %v2824_v7 = vsel %vm14543_vm4, %v11221_v54, %v11052_v36  ;;  %4281 = vmatprep.subr.bf16.mxu1 %v3807_v50  ;;  %v3817_v36 = vld [vmem:[#allocation5 + $0x178] sm:$0xff]  ;;  %vm14550_vm4 = vcmask 1031168  }
 0x3d3   : > { %2847 = vst [vmem:[#allocation5 + $0x530] sm:$0xff] %v2824_v7  ;;  %3132 = vrot.lane.b32.xlu1 %v10697_v6, %s14496_s8  ;;  %3136 = vrot.lane.b32.xlu0 %v10674_v22, %s14496_s8  ;;  %v3812_v6 = vld [vmem:[#allocation5 + $0x150] sm:$0xff]  ;;  %v3810_v22 = vld [vmem:[#allocation5 + $0x140] sm:$0xff]  ;;  %v3821_v50 = vld [vmem:[#allocation5 + $0x198] sm:$0xff] }
 0x3d4   : > { %4597 = vmatpush1.bf16.msra.mxu0 %v3808_v17 }
 0x3d5   : > { %v11232_v32 = vpop.permute.xlu1 %2792  ;;  %v11234_v26 = vpop.permute.xlu0 %2604  ;;  %4282 = vmatpush1.bf16.msra.mxu1 %v3806_v53  ;;  %4598 = vmatprep.subr.bf16.mxu0 %v3813_v48  ;;  %v3819_v53 = vld [vmem:[#allocation5 + $0x188] sm:$0xff]  ;;  %v3820_v48 = vld [vmem:[#allocation5 + $0x190] sm:$0xff] }
 0x3d6   : > { %4283 = vmatprep.subr.bf16.mxu1 %v3811_v21  ;;  %v3818_v21 = vld [vmem:[#allocation5 + $0x180] sm:$0xff] }
 0x3d7   : > { %3446 = vrot.lane.b32.xlu1 %v11151_v19, %s14390_s29  ;;  %2891 = vrot.lane.b32.xlu0 %v10746_v13, %s14473_s3  ;;  %v14548_v13 = vld [vmem:[#allocation38_spill] sm:$0xff] }
 0x3d8   : > { %4599 = vmatpush1.bf16.msra.mxu0 %v3812_v6  ;;  %v2039_v18 = vsel %vm14549_vm12, %v14548_v13, %v14544_v34  ;;  %v3825_v6 = vld [vmem:[#allocation5 + $0x1b8] sm:$0xff]  ;;  %vm14555_vm12 = vmmov %vm14550_vm4 }
 0x3d9   : > { %v11240_v27 = vpop.permute.xlu1 %3049  ;;  %v2030_v2 = vpop.permute.xlu0 %2029  ;;  %4284 = vmatpush1.bf16.msra.mxu1 %v3810_v22  ;;  %4600 = vmatprep.subr.bf16.mxu0 %v3817_v36  ;;  %v14551_v13 = vld [vmem:[#allocation65_spill] sm:$0xff] }
 0x3da   : > { %3087 = vst.msk [vmem:[#allocation5 + $0x638] sm:$0xff] %vm1732_vm2, %v11240_v27  ;;  %v2040_v24 = vsel %vm14545_vm13, %v14544_v34, %v2030_v2  ;;  %v2041_v38 = vsel %vm14547_vm6, %v2030_v2, %v14546_v25  ;;  %v3823_v2 = vld [vmem:[#allocation5 + $0x1a8] sm:$0xff]  ;;  %v3822_v34 = vld [vmem:[#allocation5 + $0x1a0] sm:$0xff]  ;;  %vm14552_vm13 = vcmask 310272  }
 0x3db   : > { %3197 = vrot.lane.b32.xlu1 %v10709_v14, %s14505_s17  ;;  %3201 = vrot.lane.b32.xlu0 %v11248_v46, %s14505_s17  ;;  %vm14554_vm6 = vmmov %vm14552_vm13 }
 0x3dc   : > { %4285 = vmatprep.subr.bf16.mxu1 %v2040_v24  ;;  %4601 = vmatpush1.bf16.msra.mxu0 %v2041_v38  ;;  %v3829_v24 = vld [vmem:[#allocation5 + $0x1d8] sm:$0xff] }
 0x3dd   : > { %v11257_v7 = vpop.permute.xlu1 %2800  ;;  %v11259_v17 = vpop.permute.xlu0 %2877  ;;  %4286 = vmatpush1.bf16.msra.mxu1 %v2039_v18  ;;  %4602 = vmatprep.subr.bf16.mxu0 %v3821_v50  ;;  %v14553_v50 = vld [vmem:[#allocation54_spill] sm:$0xff] }
 0x3de   : > { %v2899_v14 = vsel %vm14550_vm4, %v11259_v17, %v11074_v20  ;;  %4287 = vmatprep.subr.bf16.mxu1 %v3819_v53  ;;  %v3824_v20 = vld [vmem:[#allocation5 + $0x1b0] sm:$0xff]  ;;  %vm14557_vm4 = vcmask 179200  }
 0x3df   : > { %2920 = vst [vmem:[#allocation5 + $0x550] sm:$0xff] %v2899_v14  ;;  %3207 = vrot.lane.b32.xlu1 %v11120_v16, %s14505_s17  ;;  %2956 = vrot.lane.b32.xlu0 %v11095_v1, %s14478_s4  ;;  %v11284_v14 = vld [vmem:[#allocation2 + $0x68] sm:$0xff] }
 0x3e0   : > { %4603 = vmatpush1.bf16.msra.mxu0 %v3820_v48  ;;  %v3833_v48 = vld [vmem:[#allocation5 + $0x1f8] sm:$0xff] }
 0x3e1   : > { %v11268_v22 = vpop.permute.xlu1 %3057  ;;  %v11270_v36 = vpop.permute.xlu0 %2680  ;;  %4288 = vmatpush1.bf16.msra.mxu1 %v3818_v21  ;;  %4604 = vmatprep.subr.bf16.mxu0 %v3825_v6 }
 0x3e2   : > { %3091 = vst.msk [vmem:[#allocation5 + $0x658] sm:$0xff] %vm1732_vm2, %v11268_v22  ;;  %4289 = vmatprep.subr.bf16.mxu1 %v3823_v2  ;;  %v3831_v2 = vld [vmem:[#allocation5 + $0x1e8] sm:$0xff] }
 0x3e3   : > { %3462 = vrot.lane.b32.xlu1 %v11210_v12, %s14390_s29  ;;  %3209 = vrot.lane.b32.xlu0 %v10779_v62, %s14505_s17  ;;  %v3826_v62 = vld [vmem:[#allocation5 + $0x1c0] sm:$0xff] }
 0x3e4   : > { %4605 = vmatpush1.bf16.msra.mxu0 %v3824_v20 }
 0x3e5   : > { %v11278_v25 = vpop.permute.xlu1 %2808  ;;  %v2111_v38 = vpop.permute.xlu0 %2110  ;;  %4290 = vmatpush1.bf16.msra.mxu1 %v3822_v34  ;;  %4606 = vmatprep.subr.bf16.mxu0 %v3829_v24  ;;  %v11299_v34 = vld [vmem:[#allocation2 + $0x78] sm:$0xff]  ;;  %v3832_v24 = vld [vmem:[#allocation5 + $0x1f0] sm:$0xff] }
 0x3e6   : > { %v2121_v18 = vsel %vm14552_vm13, %v14551_v13, %v2111_v38  ;;  %v2122_v53 = vsel %vm14554_vm6, %v2111_v38, %v14553_v50  ;;  %v3830_v38 = vld [vmem:[#allocation5 + $0x1e0] sm:$0xff]  ;;  %v3837_v13 = vld [vmem:[#allocation5 + $0x218] sm:$0xff]  ;;  %vm14559_vm13 = vmmov %vm14557_vm4 }
 0x3e7   : > { %3213 = vrot.lane.b32.xlu1 %v11284_v14, %s14505_s17  ;;  %2964 = vrot.lane.b32.xlu0 %v11120_v16, %s14478_s4  ;;  %vm14560_vm6 = vmmov %vm14555_vm12 }
 0x3e8   : > { %4291 = vmatprep.subr.bf16.mxu1 %v2121_v18  ;;  %4607 = vmatpush1.bf16.msra.mxu0 %v2122_v53  ;;  %v8775_v18 = vld [vmem:[%s14023_s9] ss:$40 sps:$4 sm:$0xff]  }
 0x3e9   : > { %v11290_v21 = vpop.permute.xlu1 %3122  ;;  %v11292_v6 = vpop.permute.xlu0 %2885  ;;  %4292 = vmatpush1.bf16.msra.mxu1 %v3826_v62  ;;  %4608 = vmatprep.subr.bf16.mxu0 %v3833_v48  ;;  %v3835_v53 = vld [vmem:[#allocation5 + $0x208] sm:$0xff]  ;;  %v11312_v62 = vld [vmem:[#allocation2 + $0x70] sm:$0xff] }
 0x3ea   : > { %3164 = vst.msk [vmem:[#allocation5 + $0x678] sm:$0xff] %vm1732_vm2, %v11290_v21  ;;  %v2902_v20 = vsel %vm14555_vm12, %v11292_v6, %v11101_v49  ;;  %4293 = vmatprep.subr.bf16.mxu1 %v3831_v2  ;;  %v8778_v48 = vld [vmem:[%s14023_s9 + $0x54] ss:$40 sps:$4 sm:$0xff]   ;;  %vm14563_vm12 = vcmask 171008  }
 0x3eb   : > { %2924 = vst [vmem:[#allocation5 + $0x570] sm:$0xff] %v2902_v20  ;;  %3280 = vrot.lane.b32.xlu1 %v11095_v1, %s14512_s25  ;;  %3217 = vrot.lane.b32.xlu0 %v11299_v34, %s14505_s17  ;;  %v3836_v2 = vld [vmem:[#allocation5 + $0x210] sm:$0xff]  ;;  %v3834_v20 = vld [vmem:[#allocation5 + $0x200] sm:$0xff] }
 0x3ec   : > { %4609 = vmatpush1.bf16.msra.mxu0 %v3832_v24 }
 0x3ed   : > { %v11308_v50 = vpop.permute.xlu1 %2873  ;;  %v11310_v49 = vpop.permute.xlu0 %2690  ;;  %4294 = vmatpush1.bf16.msra.mxu1 %v3830_v38  ;;  %4641 = vmatprep.subr.bf16.mxu0 %v3837_v13  ;;  %v3841_v13 = vld [vmem:[#allocation5 + $0x238] sm:$0xff] }
 0x3ee   : > { %4326 = vmatprep.subr.bf16.mxu1 %v3835_v53  ;;  %v14556_v53 = vld [vmem:[#allocation66_spill] sm:$0xff] }
 0x3ef   : > { %3535 = vrot.lane.b32.xlu1 %v11093_v28, %s14385_s21  ;;  %2972 = vrot.lane.b32.xlu0 %v11312_v62, %s14478_s4 }
 0x3f0   : > { %4611 = vmatmul.mubr.bf16.vlgmr.msra.gmra.mrb[28].mxu0 %v8775_v18  ;;  %4296 = vmatmul.mubr.bf16.vlgmr.msra.gmra.mrb[16].mxu1 %v8775_v18  ;;  %v3838_v18 = vld [vmem:[#allocation5 + $0x220] sm:$0xff] }
 0x3f1   : > { %v11321_v24 = vpop.permute.xlu1 %3130  ;;  %v2192_v38 = vpop.permute.xlu0 %2191  ;;  %4642 = vmatpush1.bf16.msra.mxu0 %v3836_v2  ;;  %4327 = vmatpush1.bf16.msra.mxu1 %v3834_v20  ;;  %v8780_v2 = vld [vmem:[%s14023_s9 + $0x50] ss:$40 sps:$4 sm:$0xff]  }
 0x3f2   : > { %3168 = vst.msk [vmem:[#allocation5 + $0x698] sm:$0xff] %vm1732_vm2, %v11321_v24  ;;  %v2202_v15 = vsel %vm14557_vm4, %v14556_v53, %v2192_v38  ;;  %v2203_v47 = vsel %vm14559_vm13, %v2192_v38, %v14558_v31  ;;  %4643 = vmatprep.subr.bf16.mxu0 %v3841_v13  ;;  %4620 = vmatprep.mubr.bf16.mxu0 %v8778_v48  ;;  %v3845_v38 = vld [vmem:[#allocation5 + $0x258] sm:$0xff]  ;;  %v3843_v13 = vld [vmem:[#allocation5 + $0x248] sm:$0xff]  ;;  %vm14565_vm4 = vmmov %vm14563_vm12  ;;  %vm14568_vm13 = vcmask 162816  }
 0x3f3   : > { %3286 = vrot.lane.b32.xlu1 %v11329_v56, %s14512_s25  ;;  %3282 = vrot.lane.b32.xlu0 %v11248_v46, %s14512_s25 }
 0x3f4   : > { %4328 = vmatprep.subr.bf16.mxu1 %v2202_v15  ;;  %4305 = vmatprep.mubr.bf16.mxu1 %v8778_v48  ;;  %v3844_v15 = vld [vmem:[#allocation5 + $0x250] sm:$0xff]  ;;  %v3842_v48 = vld [vmem:[#allocation5 + $0x240] sm:$0xff] }
 0x3f5   : > { %v11338_v20 = vpop.permute.xlu1 %2881  ;;  %v11340_v31 = vpop.permute.xlu0 %2893  ;;  %4644 = vmatpush1.bf16.msra.mxu0 %v2203_v47  ;;  %4329 = vmatpush1.bf16.msra.mxu1 %v3838_v18  ;;  %v8781_v47 = vld [vmem:[%s14023_s9 + $0xa4] ss:$40 sps:$4 sm:$0xff]  }
 0x3f6   : > { %v2905_v53 = vsel %vm14560_vm6, %v11340_v31, %v11129_v59  ;;  %4645 = vmatprep.subr.bf16.mxu0 %v3845_v38  ;;  %4330 = vmatprep.subr.bf16.mxu1 %v3843_v13  ;;  %v3849_v38 = vld [vmem:[#allocation5 + $0x278] sm:$0xff]  ;;  %v3847_v13 = vld [vmem:[#allocation5 + $0x268] sm:$0xff]  ;;  %vm14570_vm6 = vmmov %vm14568_vm13 }
 0x3f7   : > { %2928 = vst [vmem:[#allocation5 + $0x590] sm:$0xff] %v2905_v53  ;;  %3296 = vrot.lane.b32.xlu1 %v11312_v62, %s14512_s25  ;;  %3037 = vrot.lane.b32.xlu0 %v11095_v1, %s14484_s7  ;;  %v11358_v53 = vld [vmem:[#allocation2 + $0x48] sm:$0xff] }
 0x3f8   : > { %4621 = vmatmul.mubr.bf16.gmra.mrb[32].mxu0 %v8780_v2  ;;  %4306 = vmatmul.mubr.bf16.gmra.mrb[20].mxu1 %v8780_v2  ;;  %v3848_v2 = vld [vmem:[#allocation5 + $0x270] sm:$0xff] }
 0x3f9   : > { %v11352_v18 = vpop.permute.xlu1 %3138  ;;  %v11354_v59 = vpop.permute.xlu0 %2700  ;;  %4646 = vmatpush1.bf16.msra.mxu0 %v3844_v15  ;;  %4331 = vmatpush1.bf16.msra.mxu1 %v3842_v48  ;;  %v8783_v15 = vld [vmem:[%s14023_s9 + $0xa0] ss:$40 sps:$4 sm:$0xff]  }
 0x3fa   : > { %14561 = vst [vmem:[#allocation62_spill] sm:$0xff] %v11352_v18  ;;  %3172 = vst.msk [vmem:[#allocation5 + $0x6b8] sm:$0xff] %vm1732_vm2, %v11352_v18  ;;  %4647 = vmatprep.subr.bf16.mxu0 %v3849_v38  ;;  %4332 = vmatprep.subr.bf16.mxu1 %v3847_v13  ;;  %v3853_v38 = vld [vmem:[#allocation5 + $0x298] sm:$0xff]  ;;  %v14562_v13 = vld [vmem:[#allocation67_spill] sm:$0xff] }
 0x3fb   : > { %3608 = vrot.lane.b32.xlu1 %v11151_v19, %s14384_s6  ;;  %3290 = vrot.lane.b32.xlu0 %v11358_v53, %s14512_s25 }
 0x3fc   : > { %4630 = vmatprep.mubr.bf16.mxu0 %v8781_v47  ;;  %4315 = vmatprep.mubr.bf16.mxu1 %v8781_v47  ;;  %v3850_v47 = vld [vmem:[#allocation5 + $0x280] sm:$0xff] }
 0x3fd   : > { %v11367_v48 = vpop.permute.xlu1 %2889  ;;  %v2273_v41 = vpop.permute.xlu0 %2272  ;;  %4648 = vmatpush1.bf16.msra.mxu0 %v3848_v2  ;;  %4333 = vmatpush1.bf16.msra.mxu1 %v3846_v63  ;;  %v8786_v63 = vld [vmem:[%s14023_s9 + $0xc] ss:$40 sps:$4 sm:$0xff]  }
 0x3fe   : > { %v2283_v19 = vsel %vm14563_vm12, %v14562_v13, %v2273_v41  ;;  %v2284_v43 = vsel %vm14565_vm4, %v2273_v41, %v14564_v8  ;;  %4649 = vmatprep.subr.bf16.mxu0 %v3853_v38  ;;  %v3857_v41 = vld [vmem:[#allocation5 + $0x2b8] sm:$0xff]  ;;  %v3855_v8 = vld [vmem:[#allocation5 + $0x2a8] sm:$0xff]  ;;  %v3856_v38 = vld [vmem:[#allocation5 + $0x2b0] sm:$0xff]  ;;  %vm14572_vm12 = vcmask 154624  }
 0x3ff   : > { %3359 = vrot.lane.b32.xlu1 %v11373_v58, %s14525_s26  ;;  %3045 = vrot.lane.b32.xlu0 %v11120_v16, %s14484_s7  ;;  %vm14574_vm4 = vmmov %vm14572_vm12 }
 0x400   : > { %4334 = vmatprep.subr.bf16.mxu1 %v2283_v19  ;;  %4631 = vmatmul.mubr.bf16.gmra.mrb[36].mxu0 %v8783_v15  ;;  %v3854_v19 = vld [vmem:[#allocation5 + $0x2a0] sm:$0xff] }
 0x401   : > { %v11382_v2 = vpop.permute.xlu1 %3203  ;;  %v11384_v13 = vpop.permute.xlu0 %2958  ;;  %4650 = vmatpush1.bf16.msra.mxu0 %v2284_v43  ;;  %4335 = vmatpush1.bf16.msra.mxu1 %v3850_v47  ;;  %v3861_v47 = vld [vmem:[#allocation5 + $0x2d8] sm:$0xff] }
 0x402   : > { %14566 = vst [vmem:[#allocation51_spill] sm:$0xff] %v11382_v2  ;;  %3245 = vst.msk [vmem:[#allocation5 + $0x6d8] sm:$0xff] %vm1732_vm2, %v11382_v2  ;;  %4651 = vmatprep.subr.bf16.mxu0 %v3857_v41  ;;  %4336 = vmatprep.subr.bf16.mxu1 %v3855_v8  ;;  %v3859_v2 = vld [vmem:[#allocation5 + $0x2c8] sm:$0xff]  ;;  %v3860_v41 = vld [vmem:[#allocation5 + $0x2d0] sm:$0xff] }
 0x403   : > { %3369 = vrot.lane.b32.xlu1 %v11120_v16, %s14525_s26  ;;  %3298 = vrot.lane.b32.xlu0 %v11299_v34, %s14512_s25  ;;  %v3858_v8 = vld [vmem:[#allocation5 + $0x2c0] sm:$0xff] }
 0x404   : > { %4316 = vmatmul.mubr.bf16.gmra.mrb[24].mxu1 %v8783_v15  ;;  %4673 = vmatprep.mubr.bf16.mxu0 %v8786_v63 }
 0x405   : > { %v11392_v42 = vpop.permute.xlu1 %2954  ;;  %v11394_v43 = vpop.permute.xlu0 %2966  ;;  %4652 = vmatpush1.bf16.msra.mxu0 %v3856_v38  ;;  %4337 = vmatpush1.bf16.msra.mxu1 %v3854_v19  ;;  %v3865_v38 = vld [vmem:[#allocation5 + $0x2f8] sm:$0xff] }
 0x406   : > { %4653 = vmatprep.subr.bf16.mxu0 %v3861_v47  ;;  %4338 = vmatprep.subr.bf16.mxu1 %v3859_v2  ;;  %v14569_v19 = vld [vmem:[#allocation58_spill] sm:$0xff] }
 0x407   : > { %3624 = vrot.lane.b32.xlu1 %v11210_v12, %s14384_s6  ;;  %3053 = vrot.lane.b32.xlu0 %v11312_v62, %s14484_s7 }
 0x408   : > { %4358 = vmatprep.mubr.bf16.mxu1 %v8786_v63  ;;  %v3862_v63 = vld [vmem:[#allocation5 + $0x2e0] sm:$0xff] }
 0x409   : > { %v11400_v15 = vpop.permute.xlu1 %3211  ;;  %v2354_v18 = vpop.permute.xlu0 %2353  ;;  %4654 = vmatpush1.bf16.msra.mxu0 %v3860_v41  ;;  %4339 = vmatpush1.bf16.msra.mxu1 %v3858_v8  ;;  %v3869_v8 = vld [vmem:[#allocation5 + $0x318] sm:$0xff] }
 0x40a   : > { %14567 = vst [vmem:[#allocation35_spill] sm:$0xff] %v11400_v15  ;;  %3249 = vst.msk [vmem:[#allocation5 + $0x6f8] sm:$0xff] %vm1732_vm2, %v11400_v15  ;;  %v2364_v2 = vsel %vm14568_vm13, %v10823_v51, %v2354_v18  ;;  %v2365_v12 = vsel %vm14570_vm6, %v2354_v18, %v14569_v19  ;;  %4655 = vmatprep.subr.bf16.mxu0 %v3865_v38  ;;  %v3867_v51 = vld [vmem:[#allocation5 + $0x308] sm:$0xff]  ;;  %v3868_v18 = vld [vmem:[#allocation5 + $0x310] sm:$0xff]  ;;  %vm14578_vm6 = vcmask 146432  }
 0x40b   : > { %3375 = vrot.lane.b32.xlu1 %v11284_v14, %s14525_s26  ;;  %3363 = vrot.lane.b32.xlu0 %v11248_v46, %s14525_s26  ;;  %v3866_v38 = vld [vmem:[#allocation5 + $0x300] sm:$0xff]  ;;  %v3873_v15 = vld [vmem:[#allocation5 + $0x338] sm:$0xff]  ;;  %vm14576_vm13 = vmmov %vm14574_vm4 }
 0x40c   : > { %4340 = vmatprep.subr.bf16.mxu1 %v2364_v2 }
 0x40d   : > { %v11412_v47 = vpop.permute.xlu1 %2962  ;;  %v11414_v41 = vpop.permute.xlu0 %2974  ;;  %4656 = vmatpush1.bf16.msra.mxu0 %v2365_v12  ;;  %4341 = vmatpush1.bf16.msra.mxu1 %v3862_v63  ;;  %v3871_v12 = vld [vmem:[#allocation5 + $0x328] sm:$0xff]  ;;  %v4070_v63 = vld [vmem:[%s14573_s10] sm:$0xff] }
 0x40e   : > { %4657 = vmatprep.subr.bf16.mxu0 %v3869_v8  ;;  %4342 = vmatprep.subr.bf16.mxu1 %v3867_v51  ;;  %v3872_v8 = vld [vmem:[#allocation5 + $0x330] sm:$0xff] }
 0x40f   : > { %3442 = vrot.lane.b32.xlu1 %v11095_v1, %s14390_s29  ;;  %3118 = vrot.lane.b32.xlu0 %v11095_v1, %s14496_s8  ;;  %v2441_v1 = vsel %vm14572_vm12, %v11054_v55, %v10899_v52  ;;  %v14575_v52 = vld [vmem:[#allocation59_spill] sm:$0xff]  ;;  %vm14580_vm12 = vmmov %vm14578_vm6 }
 0x411   : > { %v11420_v2 = vpop.permute.xlu1 %3219  ;;  %v2435_v19 = vpop.permute.xlu0 %2434  ;;  %4658 = vmatpush1.bf16.msra.mxu0 %v3868_v18  ;;  %4343 = vmatpush1.bf16.msra.mxu1 %v3866_v38  ;;  %v4072_v38 = vld [vmem:[%s14573_s10 + $0x10] sm:$0xff] }
 0x412   : > { %14571 = vst [vmem:[#allocation61_spill] sm:$0xff] %v11420_v2  ;;  %3253 = vst.msk [vmem:[#allocation5 + $0x718] sm:$0xff] %vm1732_vm2, %v11420_v2  ;;  %4659 = vmatprep.subr.bf16.mxu0 %v3873_v15  ;;  %4344 = vmatprep.subr.bf16.mxu1 %v3871_v12  ;;  %v2445_v51 = vsel %vm14574_vm4, %v11064_v3, %v2435_v19  ;;  %v2446_v55 = vsel %vm14576_vm13, %v2435_v19, %v14575_v52  ;;  %v3874_v3 = vld [vmem:[#allocation5 + $0x340] sm:$0xff]  ;;  %v11481_v2 = vld [vmem:[#allocation2 + $0x10] sm:$0xff]  ;;  %vm14584_vm13 = vcmask 15360  }
 0x413   : > { %3697 = vrot.lane.b32.xlu1 %v11093_v28, %s14387_s15  ;;  %3371 = vrot.lane.b32.xlu0 %v11358_v53, %s14525_s26  ;;  %v3877_v28 = vld [vmem:[#allocation5 + $0x358] sm:$0xff]  ;;  %v3878_v19 = vld [vmem:[#allocation5 + $0x360] sm:$0xff]  ;;  %vm14583_vm4 = vmmov %vm14578_vm6 }
 0x414   : > { %v14577_v12 = vld [vmem:[#allocation50_spill] sm:$0xff] }
 0x415   : > { %v11436_v15 = vpop.permute.xlu1 %2970  ;;  %v2516_v18 = vpop.permute.xlu0 %2515  ;;  %4660 = vmatpush1.bf16.msra.mxu0 %v3872_v8  ;;  %4345 = vmatpush1.bf16.msra.mxu1 %v2441_v1  ;;  %v2520_v8 = vsel %vm14578_vm6, %v11076_v45, %v14577_v12  ;;  %v4074_v45 = vld [vmem:[%s14573_s10 + $0x20] sm:$0xff]  ;;  %vm14587_vm6 = vmmov %vm14584_vm13 }
 0x416   : > { %4661 = vmatprep.subr.bf16.mxu0 %v3877_v28  ;;  %4346 = vmatprep.subr.bf16.mxu1 %v2445_v51  ;;  %v3882_v12 = vld [vmem:[#allocation5 + $0x380] sm:$0xff] }
 0x417   : > { %4078 = vperm.xlu1 %8748, %v4070_v63   ;;  %3126 = vrot.lane.b32.xlu0 %v11120_v16, %s14496_s8  ;;  %v3881_v63 = vld [vmem:[#allocation5 + $0x378] sm:$0xff]  ;;  %v3880_v16 = vld [vmem:[#allocation5 + $0x370] sm:$0xff] }
 0x419   : > { %v11448_v1 = vpop.permute.xlu1 %3284  ;;  %v11450_v28 = vpop.permute.xlu0 %2606  ;;  %4662 = vmatpush1.bf16.msra.mxu0 %v2446_v55  ;;  %4347 = vmatpush1.bf16.msra.mxu1 %v3874_v3  ;;  %v3885_v55 = vld [vmem:[#allocation5 + $0x398] sm:$0xff]  ;;  %v3883_v3 = vld [vmem:[#allocation5 + $0x388] sm:$0xff] }
 0x41a   : > { %14579 = vst [vmem:[#allocation55_spill] sm:$0xff] %v11448_v1  ;;  %3326 = vst.msk [vmem:[#allocation5 + $0x738] sm:$0xff] %vm1732_vm2, %v11448_v1  ;;  %4663 = vmatprep.subr.bf16.mxu0 %v3881_v63  ;;  %4348 = vmatprep.subr.bf16.mxu1 %v2520_v8  ;;  %v2526_v8 = vsel %vm14580_vm12, %v11103_v9, %v2516_v18 }
 0x41b   : > { %4088 = vperm.xlu1 %8748, %v4072_v38   ;;  %3379 = vrot.lane.b32.xlu0 %v11299_v34, %s14525_s26  ;;  %v3884_v38 = vld [vmem:[#allocation5 + $0x390] sm:$0xff]  ;;  %vm14588_vm12 = vmmov %vm14587_vm6 }
 0x41d   : > { %v11459_v51 = vpop.permute.xlu1 %3035  ;;  %v11461_v52 = vpop.permute.xlu0 %3039  ;;  %4664 = vmatpush1.bf16.msra.mxu0 %v3880_v16  ;;  %4349 = vmatpush1.bf16.msra.mxu1 %v3878_v19  ;;  %v3889_v16 = vld [vmem:[#allocation5 + $0x3b8] sm:$0xff] }
 0x41e   : > { %4665 = vmatprep.subr.bf16.mxu0 %v3885_v55  ;;  %4350 = vmatprep.subr.bf16.mxu1 %v3883_v3  ;;  %v3886_v55 = vld [vmem:[#allocation5 + $0x3a0] sm:$0xff] }
 0x41f   : > { %4098 = vperm.xlu1 %8748, %v4074_v45   ;;  %3134 = vrot.lane.b32.xlu0 %v11312_v62, %s14496_s8  ;;  %v14582_v45 = vld [vmem:[#allocation60_spill] sm:$0xff] }
 0x420   : > { %v2527_v19 = vsel %vm14583_vm4, %v2516_v18, %v14582_v45  ;;  %v2617_v18 = vsel %vm14584_vm13, %v11193_v30, %v10785_v44  ;;  %v3896_v44 = vld [vmem:[#allocation5 + $0x3f0] sm:$0xff]  ;;  %vm14589_vm4 = vmmov %vm14587_vm6 }
 0x421   : > { %v11467_v63 = vpop.permute.xlu1 %3292  ;;  %v11469_v1 = vpop.permute.xlu0 %2794  ;;  %4666 = vmatpush1.bf16.msra.mxu0 %v3884_v38  ;;  %4351 = vmatpush1.bf16.msra.mxu1 %v3882_v12  ;;  %v3893_v38 = vld [vmem:[#allocation5 + $0x3d8] sm:$0xff]  ;;  %v3891_v12 = vld [vmem:[#allocation5 + $0x3c8] sm:$0xff]  ;;  %vm14590_vm13 = vmmov %vm14589_vm4 }
 0x422   : > { %14581 = vst [vmem:[#allocation63_spill] sm:$0xff] %v11467_v63  ;;  %3330 = vst.msk [vmem:[#allocation5 + $0x758] sm:$0xff] %vm1732_vm2, %v11467_v63  ;;  %4667 = vmatprep.subr.bf16.mxu0 %v3889_v16  ;;  %4352 = vmatprep.subr.bf16.mxu1 %v2526_v8  ;;  %v3892_v8 = vld [vmem:[#allocation5 + $0x3d0] sm:$0xff]  ;;  %v3890_v16 = vld [vmem:[#allocation5 + $0x3c0] sm:$0xff] }
 0x423   : > { %3444 = vrot.lane.b32.xlu0 %v11248_v46, %s14390_s29 }
 0x425   : > { %v11477_v9 = vpop.permute.xlu1 %3043  ;;  %v11479_v3 = vpop.permute.xlu0 %3047  ;;  %4668 = vmatpush1.bf16.msra.mxu0 %v2527_v19  ;;  %4353 = vmatpush1.bf16.msra.mxu1 %v3886_v55  ;;  %v3897_v19 = vld [vmem:[#allocation5 + $0x3f8] sm:$0xff] }
 0x426   : > { %4669 = vmatprep.subr.bf16.mxu0 %v3893_v38  ;;  %4354 = vmatprep.subr.bf16.mxu1 %v3891_v12  ;;  %v14586_v55 = vld [vmem:[#allocation33_spill] sm:$0xff]  ;;  %v2616_v38 = vsel %vm14587_vm6, %v11036_v23, %v11193_v30  ;;  %v8784_v12 = vld [vmem:[%s14023_s9 + $0x8] ss:$40 sps:$4 sm:$0xff]   ;;  %v8787_v23 = vld [vmem:[%s14023_s9 + $0x5c] ss:$40 sps:$4 sm:$0xff]   ;;  %v2620_v30 = vsel %vm14589_vm4, %v11062_v61, %v11234_v26  ;;  %vm14591_vm6 = vcmask 7168  }
 0x427   : > { %3199 = vrot.lane.b32.xlu0 %v11481_v2, %s14505_s17  ;;  %v8789_v61 = vld [vmem:[%s14023_s9 + $0x58] ss:$40 sps:$4 sm:$0xff]   ;;  %vm14593_vm4 = vmmov %vm14591_vm6 }
 0x429   : > { %v11488_v45 = vpop.permute.xlu1 %3300  ;;  %v11490_v63 = vpop.permute.xlu0 %2802  ;;  %4670 = vmatpush1.bf16.msra.mxu0 %v3892_v8  ;;  %4355 = vmatpush1.bf16.msra.mxu1 %v3890_v16  ;;  %v2621_v8 = vsel %vm14588_vm12, %v11234_v26, %v11450_v28  ;;  %vm14592_vm12 = vmmov %vm14591_vm6  ;;  %v2713_v26 = vsel %vm14593_vm4, %v11310_v49, %v11022_v33 }
 0x42a   : > { %14585 = vst [vmem:[#allocation52_spill] sm:$0xff] %v11488_v45  ;;  %3334 = vst.msk [vmem:[#allocation5 + $0x778] sm:$0xff] %vm1732_vm2, %v11488_v45  ;;  %4671 = vmatprep.subr.bf16.mxu0 %v3897_v19  ;;  %4356 = vmatprep.subr.bf16.mxu1 %v2617_v18  ;;  %v3901_v18 = vld [vmem:[#allocation5 + $0x418] sm:$0xff]  ;;  %v2622_v45 = vsel %vm14590_vm13, %v11450_v28, %v10801_v11  ;;  %v2708_v11 = vsel %vm14592_vm12, %v11087_v5, %v11270_v36  ;;  %v14594_v5 = vld [vmem:[#allocation31_spill] sm:$0xff] }
 0x42b   : > { %3454 = vrot.lane.b32.xlu0 %v14586_v55, %s14390_s29  ;;  %vm14595_vm13 = vmmov %vm14593_vm4 }
 0x42c   : > { %v2712_v33 = vsel %vm14595_vm13, %v11114_v60, %v11310_v49  ;;  %vm14597_vm12 = vmmov %vm14593_vm4  ;;  %v8792_v49 = vld [vmem:[%s14023_s9 + $0xa8] ss:$40 sps:$4 sm:$0xff]  }
 0x42d   : > { %v11505_v16 = vpop.permute.xlu1 %3051  ;;  %v11507_v19 = vpop.permute.xlu0 %3055  ;;  %4672 = vmatpush1.bf16.msra.mxu0 %v3896_v44  ;;  %4357 = vmatpush1.bf16.msra.mxu1 %v2616_v38  ;;  %v2709_v38 = vsel %vm14591_vm6, %v11270_v36, %v10845_v40  ;;  %v3904_v40 = vld [vmem:[#allocation5 + $0x430] sm:$0xff]  ;;  %vm14596_vm6 = vmmov %vm14593_vm4  ;;  %v2716_v60 = vsel %vm14597_vm12, %v11145_v57, %v11354_v59  ;;  %vm14599_vm4 = vcmask 1039360  }
 0x42e   : > { %4704 = vmatprep.subr.bf16.mxu0 %v3901_v18  ;;  %4389 = vmatprep.subr.bf16.mxu1 %v2621_v8  ;;  %v3905_v18 = vld [vmem:[#allocation5 + $0x438] sm:$0xff]  ;;  %v8790_v36 = vld [vmem:[%s14023_s9 + $0xac] ss:$40 sps:$4 sm:$0xff]   ;;  %vm14600_vm13 = vmmov %vm14599_vm4 }
 0x42f   : > { %3205 = vrot.lane.b32.xlu0 %v11329_v56, %s14505_s17  ;;  %v8795_v57 = vld [vmem:[%s14023_s9 + $0x14] ss:$40 sps:$4 sm:$0xff]   ;;  %vm14602_vm12 = vmmov %vm14599_vm4 }
 0x430   : > { %4674 = vmatmul.mubr.bf16.vlgmr.msra.gmra.mrb[28].mxu0 %v8784_v12  ;;  %4359 = vmatmul.mubr.bf16.vlgmr.msra.gmra.mrb[16].mxu1 %v8784_v12  ;;  %v3909_v12 = vld [vmem:[#allocation5 + $0x458] sm:$0xff] }
 0x431   : > { %v11523_v44 = vpop.permute.xlu1 %3365  ;;  %v11525_v8 = vpop.permute.xlu0 %2810  ;;  %4705 = vmatpush1.bf16.msra.mxu0 %v2622_v45  ;;  %4390 = vmatpush1.bf16.msra.mxu1 %v2620_v30  ;;  %v2717_v30 = vsel %vm14596_vm6, %v11354_v59, %v11201_v10  ;;  %v3912_v10 = vld [vmem:[#allocation5 + $0x470] sm:$0xff]  ;;  %vm14601_vm6 = vmmov %vm14599_vm4 }
 0x432   : > { %3407 = vst.msk [vmem:[#allocation5 + $0x798] sm:$0xff] %vm1732_vm2, %v11523_v44  ;;  %4706 = vmatprep.subr.bf16.mxu0 %v3905_v18  ;;  %4391 = vmatprep.subr.bf16.mxu1 %v2709_v38 }
 0x433   : > { %3215 = vrot.lane.b32.xlu0 %v11312_v62, %s14505_s17  ;;  %4683 = vmatprep.mubr.bf16.mxu0 %v8787_v23 }
 0x434   : > { %4368 = vmatprep.mubr.bf16.mxu1 %v8787_v23  ;;  %v3908_v23 = vld [vmem:[#allocation5 + $0x450] sm:$0xff] }
 0x435   : > { %v11540_v28 = vpop.permute.xlu1 %3116  ;;  %v11542_v45 = vpop.permute.xlu0 %3120  ;;  %4707 = vmatpush1.bf16.msra.mxu0 %v3904_v40  ;;  %4392 = vmatpush1.bf16.msra.mxu1 %v2708_v11  ;;  %v3913_v11 = vld [vmem:[#allocation5 + $0x478] sm:$0xff] }
 0x436   : > { %4708 = vmatprep.subr.bf16.mxu0 %v3909_v12  ;;  %4393 = vmatprep.subr.bf16.mxu1 %v2713_v26  ;;  %v3917_v26 = vld [vmem:[#allocation5 + $0x498] sm:$0xff]  ;;  %v3259_v12 = vld [vmem:[#allocation2 + $0x40] sm:$0xff] }
 0x437   : > { %3527 = vrot.lane.b32.xlu0 %v14594_v5, %s14385_s21 }
 0x438   : > { %4684 = vmatmul.mubr.bf16.gmra.mrb[32].mxu0 %v8789_v61  ;;  %4369 = vmatmul.mubr.bf16.gmra.mrb[20].mxu1 %v8789_v61 }
 0x439   : > { %v11555_v38 = vpop.permute.xlu1 %3373  ;;  %v11557_v18 = vpop.permute.xlu0 %2875  ;;  %4709 = vmatpush1.bf16.msra.mxu0 %v3908_v23  ;;  %4394 = vmatpush1.bf16.msra.mxu1 %v2712_v33  ;;  %v3921_v33 = vld [vmem:[#allocation5 + $0x4b8] sm:$0xff]  ;;  %v14598_v23 = vld [vmem:[#allocation36_spill] sm:$0xff] }
 0x43a   : > { %3411 = vst.msk [vmem:[#allocation5 + $0x7b8] sm:$0xff] %vm1732_vm2, %v11555_v38  ;;  %4710 = vmatprep.subr.bf16.mxu0 %v3913_v11  ;;  %4395 = vmatprep.subr.bf16.mxu1 %v2717_v30 }
 0x43b   : > { %3278 = vrot.lane.b32.xlu0 %v11373_v58, %s14512_s25  ;;  %4693 = vmatprep.mubr.bf16.mxu0 %v8790_v36 }
 0x43c   : > { %4378 = vmatprep.mubr.bf16.mxu1 %v8790_v36 }
 0x43d   : > { %v11569_v40 = vpop.permute.xlu1 %3124  ;;  %v11571_v61 = vpop.permute.xlu0 %3128  ;;  %4711 = vmatpush1.bf16.msra.mxu0 %v3912_v10  ;;  %4396 = vmatpush1.bf16.msra.mxu1 %v2716_v60  ;;  %v2817_v60 = vsel %vm14599_vm4, %v11469_v1, %v11131_v29  ;;  %v2816_v29 = vsel %vm14600_vm13, %v11232_v32, %v11469_v1  ;;  %v2819_v32 = vsel %vm14602_vm12, %v11257_v7, %v11490_v63  ;;  %vm14603_vm13 = vmmov %vm14599_vm4 }
 0x43e   : > { %4712 = vmatprep.subr.bf16.mxu0 %v3917_v26  ;;  %4397 = vmatprep.subr.bf16.mxu1 %v11481_v2  ;;  %v3928_v26 = vld [vmem:[#allocation5 + $0x4f0] sm:$0xff]  ;;  %v2822_v7 = vsel %vm14603_vm13, %v11278_v25, %v11525_v8 }
 0x43f   : > { %3288 = vrot.lane.b32.xlu0 %v3259_v12, %s14512_s25 }
 0x440   : > { %4694 = vmatmul.mubr.bf16.gmra.mrb[36].mxu0 %v8792_v49  ;;  %4379 = vmatmul.mubr.bf16.gmra.mrb[24].mxu1 %v8792_v49 }
 0x441   : > { %v11578_v59 = vpop.permute.xlu1 %3381  ;;  %v11580_v36 = vpop.permute.xlu0 %2883  ;;  %4713 = vmatpush1.bf16.msra.mxu0 %v11248_v46  ;;  %4398 = vmatpush1.bf16.msra.mxu1 %v11373_v58  ;;  %v3925_v46 = vld [vmem:[#allocation5 + $0x4d8] sm:$0xff] }
 0x442   : > { %3415 = vst.msk [vmem:[#allocation5 + $0x7d8] sm:$0xff] %vm1732_vm2, %v11578_v59  ;;  %4714 = vmatprep.subr.bf16.mxu0 %v3921_v33  ;;  %4399 = vmatprep.subr.bf16.mxu1 %v3259_v12 }
 0x443   : > { %3543 = vrot.lane.b32.xlu0 %v14598_v23, %s14385_s21  ;;  %4736 = vmatprep.mubr.bf16.mxu0 %v8795_v57 }
 0x444   : > { %4421 = vmatprep.mubr.bf16.mxu1 %v8795_v57  ;;  %v3933_v57 = vld [vmem:[#allocation5 + $0x518] sm:$0xff] }
 0x445   : > { %v11588_v30 = vpop.permute.xlu1 %3132  ;;  %v11590_v11 = vpop.permute.xlu0 %3136  ;;  %4715 = vmatpush1.bf16.msra.mxu0 %v11358_v53  ;;  %4400 = vmatpush1.bf16.msra.mxu1 %v11329_v56  ;;  %v3929_v53 = vld [vmem:[#allocation5 + $0x4f8] sm:$0xff] }
 0x446   : > { %4716 = vmatprep.subr.bf16.mxu0 %v3925_v46  ;;  %4401 = vmatprep.subr.bf16.mxu1 %v11312_v62  ;;  %v3937_v46 = vld [vmem:[#allocation5 + $0x538] sm:$0xff] }
 0x447   : > { %3294 = vrot.lane.b32.xlu0 %v11284_v14, %s14512_s25 }
 0x449   : > { %v11600_v10 = vpop.permute.xlu1 %3446  ;;  %v11602_v49 = vpop.permute.xlu0 %2891  ;;  %4717 = vmatpush1.bf16.msra.mxu0 %v11299_v34  ;;  %4402 = vmatpush1.bf16.msra.mxu1 %v11284_v14  ;;  %v2820_v34 = vsel %vm14601_vm6, %v11490_v63, %v11177_v39  ;;  %v2823_v39 = vsel %vm14599_vm4, %v11525_v8, %v11221_v54  ;;  %v3936_v63 = vld [vmem:[#allocation5 + $0x530] sm:$0xff]  ;;  %vm14604_vm6 = vcmask 1031168  }
 0x44a   : > { %3488 = vst.msk [vmem:[#allocation5 + $0x7f8] sm:$0xff] %vm1732_vm2, %v11600_v10  ;;  %4718 = vmatprep.subr.bf16.mxu0 %v3929_v53  ;;  %4403 = vmatprep.subr.bf16.mxu1 %v2817_v60  ;;  %v2898_v54 = vsel %vm14604_vm6, %v11557_v18, %v11259_v17  ;;  %v3941_v53 = vld [vmem:[#allocation5 + $0x558] sm:$0xff]  ;;  %vm14605_vm12 = vmmov %vm14604_vm6  ;;  %v3940_v17 = vld [vmem:[#allocation5 + $0x550] sm:$0xff] }
 0x44b   : > { %3361 = vrot.lane.b32.xlu0 %v11481_v2, %s14525_s26  ;;  %v3932_v2 = vld [vmem:[#allocation5 + $0x510] sm:$0xff]  ;;  %vm14606_vm4 = vmmov %vm14604_vm6 }
 0x44c   : > { %v2901_v25 = vsel %vm14606_vm4, %v11580_v36, %v11292_v6  ;;  %vm14607_vm13 = vmmov %vm14606_vm4 }
 0x44d   : > { %v11616_v12 = vpop.permute.xlu1 %3197  ;;  %v11618_v14 = vpop.permute.xlu0 %3201  ;;  %4719 = vmatpush1.bf16.msra.mxu0 %v3928_v26  ;;  %4404 = vmatpush1.bf16.msra.mxu1 %v2816_v29  ;;  %v3945_v26 = vld [vmem:[#allocation5 + $0x578] sm:$0xff]  ;;  %vm14608_vm6 = vmmov %vm14606_vm4 }
 0x44e   : > { %4720 = vmatprep.subr.bf16.mxu0 %v3933_v57  ;;  %4405 = vmatprep.subr.bf16.mxu1 %v2820_v34  ;;  %v2904_v6 = vsel %vm14608_vm6, %v11602_v49, %v11340_v31  ;;  %v3949_v57 = vld [vmem:[#allocation5 + $0x598] sm:$0xff] }
 0x44f   : > { %3616 = vrot.lane.b32.xlu0 %v14586_v55, %s14384_s6 }
 0x451   : > { %v11628_v1 = vpop.permute.xlu1 %3207  ;;  %v2957_v33 = vpop.permute.xlu0 %2956  ;;  %4721 = vmatpush1.bf16.msra.mxu0 %v3932_v2  ;;  %4406 = vmatpush1.bf16.msra.mxu1 %v2819_v32  ;;  %v3953_v2 = vld [vmem:[#allocation5 + $0x5b8] sm:$0xff] }
 0x452   : > { %4722 = vmatprep.subr.bf16.mxu0 %v3937_v46  ;;  %4407 = vmatprep.subr.bf16.mxu1 %v2823_v39 }
 0x453   : > { %3367 = vrot.lane.b32.xlu0 %v11329_v56, %s14525_s26  ;;  %v2897_v56 = vsel %vm14605_vm12, %v11308_v50, %v11557_v18  ;;  %v2900_v50 = vsel %vm14607_vm13, %v11338_v20, %v11580_v36  ;;  %vm14609_vm12 = vmmov %vm14606_vm4  ;;  %vm14610_vm4 = vcmask 900096  }
 0x454   : > { %v2903_v20 = vsel %vm14609_vm12, %v11367_v48, %v11602_v49  ;;  %v2979_v31 = vsel %vm14610_vm4, %v2957_v33, %v11384_v13  ;;  %vm14611_vm13 = vmmov %vm14610_vm4  ;;  %v4071_v49 = vld [vmem:[%s14573_s10 + $0x8] sm:$0xff] }
 0x455   : > { %v11638_v55 = vpop.permute.xlu1 %3462  ;;  %v11640_v60 = vpop.permute.xlu0 %3209  ;;  %4723 = vmatpush1.bf16.msra.mxu0 %v3936_v63  ;;  %4408 = vmatpush1.bf16.msra.mxu1 %v2822_v7  ;;  %vm14612_vm6 = vmmov %vm14610_vm4 }
 0x456   : > { %3496 = vst.msk [vmem:[#allocation5 + $0x838] sm:$0xff] %vm1732_vm2, %v11638_v55  ;;  %4724 = vmatprep.subr.bf16.mxu0 %v3941_v53  ;;  %4409 = vmatprep.subr.bf16.mxu1 %v2898_v54  ;;  %v2978_v48 = vsel %vm14612_vm6, %v11392_v42, %v2957_v33  ;;  %vm14613_vm12 = vmmov %vm14610_vm4  ;;  %v2983_v42 = vsel %vm14610_vm4, %v11394_v43, %v11175_v0  ;;  %v3961_v53 = vld [vmem:[#allocation5 + $0x5f8] sm:$0xff] }
 0x457   : > { %3377 = vrot.lane.b32.xlu0 %v11312_v62, %s14525_s26  ;;  %v3944_v62 = vld [vmem:[#allocation5 + $0x570] sm:$0xff]  ;;  %vm14615_vm6 = vmmov %vm14610_vm4 }
 0x459   : > { %v11652_v8 = vpop.permute.xlu1 %3213  ;;  %v2965_v29 = vpop.permute.xlu0 %2964  ;;  %4725 = vmatpush1.bf16.msra.mxu0 %v3940_v17  ;;  %4410 = vmatpush1.bf16.msra.mxu1 %v2897_v56  ;;  %v8793_v56 = vld [vmem:[%s14023_s9 + $0x10] ss:$40 sps:$4 sm:$0xff]  }
 0x45a   : > { %4726 = vmatprep.subr.bf16.mxu0 %v3945_v26  ;;  %4411 = vmatprep.subr.bf16.mxu1 %v2901_v25  ;;  %v2982_v39 = vsel %vm14613_vm12, %v2965_v29, %v11394_v43  ;;  %vm14616_vm12 = vmmov %vm14610_vm4 }
 0x45b   : > { %3689 = vrot.lane.b32.xlu0 %v14594_v5, %s14387_s15  ;;  %v3948_v5 = vld [vmem:[#allocation5 + $0x590] sm:$0xff]  ;;  %v2986_v0 = vsel %vm14616_vm12, %v11414_v41, %v11191_v35  ;;  %v3965_v35 = vld [vmem:[#allocation5 + $0x618] sm:$0xff] }
 0x45d   : > { %v11662_v18 = vpop.permute.xlu1 %3280  ;;  %v11664_v34 = vpop.permute.xlu0 %3217  ;;  %4727 = vmatpush1.bf16.msra.mxu0 %v3944_v62  ;;  %4412 = vmatpush1.bf16.msra.mxu1 %v2900_v50 }
 0x45e   : > { %4728 = vmatprep.subr.bf16.mxu0 %v3949_v57  ;;  %4413 = vmatprep.subr.bf16.mxu1 %v2904_v6  ;;  %v3969_v6 = vld [vmem:[#allocation5 + $0x638] sm:$0xff] }
 0x45f   : > { %3440 = vrot.lane.b32.xlu0 %v11373_v58, %s14390_s29  ;;  %v2980_v58 = vsel %vm14611_vm13, %v11384_v13, %v11160_v37  ;;  %vm14614_vm13 = vmmov %vm14610_vm4  ;;  %v4073_v13 = vld [vmem:[%s14573_s10 + $0x18] sm:$0xff] }
 0x460   : > { %v2981_v37 = vsel %vm14614_vm13, %v11412_v47, %v2965_v29  ;;  %v4075_v47 = vld [vmem:[%s14573_s10 + $0x28] sm:$0xff]  ;;  %vm14617_vm13 = vcmask 891904  }
 0x461   : > { %v11673_v36 = vpop.permute.xlu1 %3535  ;;  %v2973_v32 = vpop.permute.xlu0 %2972  ;;  %4729 = vmatpush1.bf16.msra.mxu0 %v3948_v5  ;;  %4414 = vmatpush1.bf16.msra.mxu1 %v2903_v20  ;;  %v11744_v5 = vld [vmem:[#allocation3 + $0x30] sm:$0xff] }
 0x462   : > { %3573 = vst.msk [vmem:[#allocation5 + $0x878] sm:$0xff] %vm1732_vm2, %v11673_v36  ;;  %4730 = vmatprep.subr.bf16.mxu0 %v3953_v2  ;;  %4415 = vmatprep.subr.bf16.mxu1 %v2979_v31  ;;  %v2985_v33 = vsel %vm14615_vm6, %v2973_v32, %v11414_v41  ;;  %v2984_v43 = vsel %vm14610_vm4, %v11436_v15, %v2973_v32  ;;  %v8796_v41 = vld [vmem:[%s14023_s9 + $0x64] ss:$40 sps:$4 sm:$0xff]   ;;  %vm14618_vm6 = vmmov %vm14617_vm13 }
 0x463   : > { %3705 = vrot.lane.b32.xlu0 %v14598_v23, %s14387_s15  ;;  %v3957_v23 = vld [vmem:[#allocation5 + $0x5d8] sm:$0xff]  ;;  %v3061_v15 = vsel %vm14618_vm6, %v11461_v52, %v11219_v4  ;;  %vm14619_vm12 = vmmov %vm14618_vm6 }
 0x464   : > { %vm14620_vm4 = vmmov %vm14618_vm6 }
 0x465   : > { %v11689_v46 = vpop.permute.xlu1 %3286  ;;  %v11691_v7 = vpop.permute.xlu0 %3282  ;;  %4731 = vmatpush1.bf16.msra.mxu0 %v2980_v58  ;;  %4416 = vmatpush1.bf16.msra.mxu1 %v2978_v48  ;;  %vm14622_vm6 = vmmov %vm14620_vm4  ;;  %v3973_v48 = vld [vmem:[#allocation5 + $0x658] sm:$0xff] }
 0x466   : > { %4732 = vmatprep.subr.bf16.mxu0 %v3957_v23  ;;  %4417 = vmatprep.subr.bf16.mxu1 %v2982_v39  ;;  %v3064_v31 = vsel %vm14622_vm6, %v11479_v3, %v11240_v27  ;;  %v8799_v27 = vld [vmem:[%s14023_s9 + $0xb4] ss:$40 sps:$4 sm:$0xff]   ;;  %vm14627_vm6 = vcmask 875520  }
 0x467   : > { %4083 = vperm.xlu0 %8747, %v4071_v49   ;;  %v11738_v4 = vpop.f32.mrb[16].mxu0 }
 0x469   : > { %v11703_v63 = vpop.permute.xlu1 %3296  ;;  %v3038_v54 = vpop.permute.xlu0 %3037  ;;  %4733 = vmatpush1.bf16.msra.mxu0 %v2983_v42  ;;  %4418 = vmatpush1.bf16.msra.mxu1 %v2981_v37 }
 0x46a   : > { %4734 = vmatprep.subr.bf16.mxu0 %v3961_v53  ;;  %4419 = vmatprep.subr.bf16.mxu1 %v2985_v33  ;;  %v3060_v17 = vsel %vm14617_vm13, %v3038_v54, %v11461_v52  ;;  %v3059_v26 = vsel %vm14619_vm12, %v11459_v51, %v3038_v54  ;;  %vm14621_vm13 = vmmov %vm14620_vm4  ;;  %v11740_v52 = vld [vmem:[#allocation3] sm:$0xff]  ;;  %v11742_v51 = vpop.f32.mrb[17].mxu0 }
 0x46b   : > { %4093 = vperm.xlu0 %8747, %v4073_v13   ;;  %v11752_v32 = vpop.f32.mrb[18].mxu0  ;;  %4989 = vrot.lane.b32.xlu1 %v11740_v52, %s14388_s22  ;;  %vm14623_vm12 = vmmov %vm14620_vm4  ;;  %v3977_v13 = vld [vmem:[#allocation5 + $0x678] sm:$0xff] }
 0x46c   : > { %v3067_v39 = vsel %vm14623_vm12, %v11507_v19, %v11268_v22  ;;  %vm14629_vm12 = vmmov %vm14627_vm6 }
 0x46d   : > { %v11718_v25 = vpop.permute.xlu1 %3608  ;;  %v11720_v29 = vpop.permute.xlu0 %3290  ;;  %4735 = vmatpush1.bf16.msra.mxu0 %v2986_v0  ;;  %4420 = vmatpush1.bf16.msra.mxu1 %v2984_v43  ;;  %v3142_v0 = vsel %vm1229_vm0, %v11542_v45, %v11290_v21  ;;  %v8804_v21 = vld [vmem:[%s14023_s9 + $0x1c] ss:$40 sps:$4 sm:$0xff]  }
 0x46e   : > { %3650 = vst.msk [vmem:[#allocation5 + $0x8b8] sm:$0xff] %vm1732_vm2, %v11718_v25  ;;  %4767 = vmatprep.subr.bf16.mxu0 %v3965_v35  ;;  %4452 = vmatprep.subr.bf16.mxu1 %v3060_v17  ;;  %v3981_v17 = vld [vmem:[#allocation5 + $0x698] sm:$0xff] }
 0x46f   : > { %4103 = vperm.xlu0 %8747, %v4075_v47   ;;  %4997 = vrot.lane.b32.xlu1 %v11744_v5, %s14388_s22 }
 0x470   : > { %4737 = vmatmul.mubr.bf16.vlgmr.msra.gmra.mrb[28].mxu0 %v8793_v56  ;;  %4422 = vmatmul.mubr.bf16.vlgmr.msra.gmra.mrb[16].mxu1 %v8793_v56 }
 0x471   : > { %v11732_v50 = vpop.permute.xlu1 %3359  ;;  %v3046_v62 = vpop.permute.xlu0 %3045  ;;  %4768 = vmatpush1.bf16.msra.mxu0 %v3061_v15  ;;  %4453 = vmatpush1.bf16.msra.mxu1 %v3059_v26  ;;  %v3145_v15 = vsel %vm1229_vm0, %v11571_v61, %v11321_v24  ;;  %v14625_v24 = vld [vmem:[#allocation62_spill] sm:$0xff] }
 0x472   : > { %v3062_v57 = vsel %vm14620_vm4, %v11477_v9, %v3046_v62  ;;  %v3063_v20 = vsel %vm14621_vm13, %v3046_v62, %v11479_v3  ;;  %4769 = vmatprep.subr.bf16.mxu0 %v3969_v6  ;;  %4746 = vmatprep.mubr.bf16.mxu0 %v8796_v41  ;;  %v8798_v9 = vld [vmem:[%s14023_s9 + $0x60] ss:$40 sps:$4 sm:$0xff]   ;;  %v11765_v3 = vpop.f32.mrb[19].mxu0  ;;  %vm14624_vm13 = vmmov %vm14620_vm4 }
 0x473   : > { %4454 = vmatprep.subr.bf16.mxu1 %v3063_v20  ;;  %4431 = vmatprep.mubr.bf16.mxu1 %v8796_v41  ;;  %v11767_v49 = vpop.f32.mrb[20].mxu0 }
 0x474   : > { %5815 = vrot.lane.b32.xlu0 %v11744_v5, %s14428_s1  ;;  %v11772_v23 = vpop.f32.mrb[21].mxu0 }
 0x475   : > { %v11758_v2 = vpop.permute.xlu1 %3369  ;;  %v11760_v58 = vpop.permute.xlu0 %3298  ;;  %4770 = vmatpush1.bf16.msra.mxu0 %v3064_v31  ;;  %4455 = vmatpush1.bf16.msra.mxu1 %v3062_v57  ;;  %v3985_v57 = vld [vmem:[#allocation5 + $0x6b8] sm:$0xff] }
 0x476   : > { %4771 = vmatprep.subr.bf16.mxu0 %v3973_v48  ;;  %v11782_v22 = vpop.f32.mrb[22].mxu0 }
 0x477   : > { %v11786_v53 = vpop.f32.mrb[23].mxu0 }
 0x478   : > { %4747 = vmatmul.mubr.bf16.gmra.mrb[32].mxu0 %v8798_v9  ;;  %4432 = vmatmul.mubr.bf16.gmra.mrb[20].mxu1 %v8798_v9  ;;  %v11796_v43 = vpop.f32.mrb[24].mxu0  ;;  %v3148_v9 = vsel %vm1229_vm0, %v11590_v11, %v14625_v24 }
 0x479   : > { %v11774_v42 = vpop.permute.xlu1 %3624  ;;  %v3054_v37 = vpop.permute.xlu0 %3053  ;;  %4772 = vmatpush1.bf16.msra.mxu0 %v3067_v39  ;;  %4756 = vmatprep.mubr.bf16.mxu0 %v8799_v27 }
 0x47a   : > { %3658 = vst.msk [vmem:[#allocation5 + $0x8f8] sm:$0xff] %vm1732_vm2, %v11774_v42  ;;  %v3065_v33 = vsel %vm14620_vm4, %v11505_v16, %v3054_v37  ;;  %v3066_v54 = vsel %vm14624_vm13, %v3054_v37, %v11507_v19  ;;  %4773 = vmatprep.subr.bf16.mxu0 %v3977_v13  ;;  %4441 = vmatprep.mubr.bf16.mxu1 %v8799_v27  ;;  %v8801_v16 = vld [vmem:[%s14023_s9 + $0xb0] ss:$40 sps:$4 sm:$0xff]   ;;  %v11807_v35 = vpop.f32.mrb[25].mxu0  ;;  %v14626_v27 = vld [vmem:[#allocation51_spill] sm:$0xff]  ;;  %vm14631_vm4 = vmmov %vm14627_vm6 }
 0x47b   : > { %4456 = vmatprep.subr.bf16.mxu1 %v3066_v54  ;;  %v11794_v19 = vld [vmem:[#allocation3 + $0x60] sm:$0xff]  ;;  %5901 = vrot.lane.b32.xlu0 %v11740_v52, %s14444_s2  ;;  %v11811_v41 = vpop.f32.mrb[26].mxu0  ;;  %v3223_v39 = vsel %vm14627_vm6, %v11618_v14, %v14626_v27  ;;  %v3993_v13 = vld [vmem:[#allocation5 + $0x6f8] sm:$0xff]  ;;  %vm14634_vm13 = vmmov %vm14631_vm4 }
 0x47c   : > { %4457 = vmatpush1.bf16.msra.mxu1 %v3065_v33  ;;  %5005 = vrot.lane.b32.xlu1 %v11794_v19, %s14388_s22  ;;  %v11816_v26 = vpop.f32.mrb[27].mxu0  ;;  %vm14635_vm6 = vmmov %vm14631_vm4 }
 0x47d   : > { %v11800_v47 = vpop.permute.xlu1 %3375  ;;  %v11802_v56 = vpop.permute.xlu0 %3363  ;;  %4774 = vmatpush1.bf16.msra.mxu0 %v3142_v0  ;;  %v14628_v0 = vld [vmem:[#allocation35_spill] sm:$0xff] }
 0x47e   : > { %4775 = vmatprep.subr.bf16.mxu0 %v3981_v17 }
 0x47f   : > { %5921 = vrot.lane.b32.xlu0 %v11794_v19, %s14444_s2 }
 0x480   : > { %4757 = vmatmul.mubr.bf16.gmra.mrb[36].mxu0 %v8801_v16  ;;  %4442 = vmatmul.mubr.bf16.gmra.mrb[24].mxu1 %v8801_v16  ;;  %v3226_v16 = vsel %vm14629_vm12, %v11640_v60, %v14628_v0  ;;  %vm14636_vm12 = vmmov %vm14631_vm4 }
 0x481   : > { %v11818_v62 = vpop.permute.xlu1 %3442  ;;  %v3119_v6 = vpop.permute.xlu0 %3118  ;;  %4776 = vmatpush1.bf16.msra.mxu0 %v3145_v15  ;;  %4799 = vmatprep.mubr.bf16.mxu0 %v8804_v21 }
 0x482   : > { %v3140_v20 = vsel %vm1229_vm0, %v11540_v28, %v3119_v6  ;;  %v3141_v31 = vsel %vm1229_vm0, %v3119_v6, %v11542_v45  ;;  %4777 = vmatprep.subr.bf16.mxu0 %v3985_v57  ;;  %4484 = vmatprep.mubr.bf16.mxu1 %v8804_v21  ;;  %v3989_v45 = vld [vmem:[#allocation5 + $0x6d8] sm:$0xff] }
 0x483   : > { %4458 = vmatprep.subr.bf16.mxu1 %v3141_v31  ;;  %5070 = vrot.lane.b32.xlu1 %v11740_v52, %s14298_s13  ;;  %v3997_v21 = vld [vmem:[#allocation5 + $0x718] sm:$0xff]  ;;  %v14632_v31 = vld [vmem:[#allocation55_spill] sm:$0xff] }
 0x484   : > { %4459 = vmatpush1.bf16.msra.mxu1 %v3140_v20  ;;  %v4001_v6 = vld [vmem:[#allocation5 + $0x738] sm:$0xff]  ;;  %v3304_v24 = vsel %vm1273_vm14, %v11691_v7, %v14632_v31 }
 0x485   : > { %v11831_v48 = vpop.permute.xlu1 %3697  ;;  %v11833_v28 = vpop.permute.xlu0 %3371  ;;  %4778 = vmatpush1.bf16.msra.mxu0 %v3148_v9 }
 0x486   : > { %3735 = vst.msk [vmem:[#allocation5 + $0x938] sm:$0xff] %vm1732_vm2, %v11831_v48  ;;  %4779 = vmatprep.subr.bf16.mxu0 %v3989_v45  ;;  %v4005_v45 = vld [vmem:[#allocation5 + $0x758] sm:$0xff] }
 0x487   : > { %5078 = vrot.lane.b32.xlu1 %v11744_v5, %s14298_s13 }
 0x489   : > { %v3127_v37 = vpop.permute.xlu0 %3126  ;;  %4780 = vmatpush1.bf16.msra.mxu0 %v3223_v39  ;;  %v4009_v39 = vld [vmem:[#allocation5 + $0x778] sm:$0xff] }
 0x48a   : > { %v3143_v33 = vsel %vm1229_vm0, %v11569_v40, %v3127_v37  ;;  %v3144_v54 = vsel %vm1229_vm0, %v3127_v37, %v11571_v61  ;;  %4781 = vmatprep.subr.bf16.mxu0 %v3993_v13  ;;  %v14630_v40 = vld [vmem:[#allocation61_spill] sm:$0xff] }
 0x48b   : > { %4460 = vmatprep.subr.bf16.mxu1 %v3144_v54  ;;  %5086 = vrot.lane.b32.xlu1 %v11794_v19, %s14298_s13  ;;  %v3229_v61 = vsel %vm14631_vm4, %v11664_v34, %v14630_v40  ;;  %v14637_v54 = vld [vmem:[#allocation52_spill] sm:$0xff]  ;;  %vm14638_vm4 = vcmask 736256  }
 0x48c   : > { %4461 = vmatpush1.bf16.msra.mxu1 %v3143_v33  ;;  %v3225_v33 = vsel %vm14636_vm12, %v11628_v1, %v11640_v60  ;;  %v3310_v0 = vsel %vm1273_vm14, %v11760_v58, %v14637_v54 }
 0x48d   : > { %v11851_v17 = vpop.permute.xlu0 %3379  ;;  %4782 = vmatpush1.bf16.msra.mxu0 %v3226_v16 }
 0x48e   : > { %4783 = vmatprep.subr.bf16.mxu0 %v3997_v21  ;;  %v4017_v21 = vld [vmem:[#allocation5 + $0x7b8] sm:$0xff] }
 0x48f   : > { %5151 = vrot.lane.b32.xlu1 %v11740_v52, %s14335_s30 }
 0x491   : > { %v3135_v15 = vpop.permute.xlu0 %3134  ;;  %4784 = vmatpush1.bf16.msra.mxu0 %v3229_v61 }
 0x492   : > { %v3146_v57 = vsel %vm1229_vm0, %v11588_v30, %v3135_v15  ;;  %v3147_v20 = vsel %vm1229_vm0, %v3135_v15, %v11590_v11  ;;  %4785 = vmatprep.subr.bf16.mxu0 %v4001_v6  ;;  %v14633_v30 = vld [vmem:[#allocation63_spill] sm:$0xff]  ;;  %v4021_v6 = vld [vmem:[#allocation5 + $0x7d8] sm:$0xff] }
 0x493   : > { %4462 = vmatprep.subr.bf16.mxu1 %v3147_v20  ;;  %5159 = vrot.lane.b32.xlu1 %v11744_v5, %s14335_s30  ;;  %v3307_v11 = vsel %vm1273_vm14, %v11720_v29, %v14633_v30 }
 0x494   : > { %4463 = vmatpush1.bf16.msra.mxu1 %v3146_v57 }
 0x495   : > { %v11867_v9 = vpop.permute.xlu0 %3444  ;;  %4786 = vmatpush1.bf16.msra.mxu0 %v3304_v24  ;;  %v11925_v24 = vld [vmem:[%s14023_s9 + $0x6c] ss:$40 sps:$4 sm:$0xff]  }
 0x496   : > { %4787 = vmatprep.subr.bf16.mxu0 %v4005_v45 }
 0x497   : > { %5167 = vrot.lane.b32.xlu1 %v11794_v19, %s14335_s30 }
 0x499   : > { %v3200_v27 = vpop.permute.xlu0 %3199  ;;  %4788 = vmatpush1.bf16.msra.mxu0 %v3307_v11 }
 0x49a   : > { %v3221_v37 = vsel %vm14634_vm13, %v11616_v12, %v3200_v27  ;;  %v3222_v13 = vsel %vm14635_vm6, %v3200_v27, %v11618_v14  ;;  %4789 = vmatprep.subr.bf16.mxu0 %v4009_v39  ;;  %v4013_v12 = vld [vmem:[#allocation5 + $0x798] sm:$0xff]  ;;  %v3385_v14 = vsel %vm14638_vm4, %v11802_v56, %v11523_v44  ;;  %vm14639_vm13 = vmmov %vm14635_vm6 }
 0x49b   : > { %4464 = vmatprep.subr.bf16.mxu1 %v3222_v13  ;;  %5232 = vrot.lane.b32.xlu1 %v11740_v52, %s14361_s23  ;;  %vm14640_vm6 = vmmov %vm14638_vm4  ;;  %v4033_v27 = vld [vmem:[#allocation5 + $0x838] sm:$0xff] }
 0x49c   : > { %4465 = vmatpush1.bf16.msra.mxu1 %v3221_v37  ;;  %v3388_v61 = vsel %vm14640_vm6, %v11833_v28, %v11555_v38  ;;  %vm14641_vm4 = vmmov %vm14636_vm12  ;;  %v14644_v37 = vld [vmem:[#allocation48_spill] sm:$0xff] }
 0x49d   : > { %v3455_v16 = vpop.permute.xlu0 %3454  ;;  %4790 = vmatpush1.bf16.msra.mxu0 %v3310_v0  ;;  %4466 = vmatprep.subr.bf16.mxu1 %v3225_v33  ;;  %v3472_v13 = vsel %vm1317_vm11, %v14644_v37, %v11638_v55  ;;  %v3309_v33 = vsel %vm1273_vm14, %v11703_v63, %v11760_v58  ;;  %v11955_v0 = vld [vmem:[%s14023_s9 + $0xbc] ss:$40 sps:$4 sm:$0xff]   ;;  %v14645_v55 = vld [vmem:[#allocation40_spill] sm:$0xff]  ;;  %v14658_v37 = vld [vmem:[#allocation41_spill] sm:$0xff] }
 0x49e   : > { %3492 = vst.msk [vmem:[#allocation5 + $0x818] sm:$0xff] %vm1732_vm2, %v3455_v16  ;;  %4791 = vmatprep.subr.bf16.mxu0 %v4013_v12  ;;  %v4041_v12 = vld [vmem:[#allocation5 + $0x878] sm:$0xff] }
 0x49f   : > { %5240 = vrot.lane.b32.xlu1 %v11744_v5, %s14361_s23 }
 0x4a1   : > { %v3206_v60 = vpop.permute.xlu0 %3205  ;;  %4792 = vmatpush1.bf16.msra.mxu0 %v3385_v14 }
 0x4a2   : > { %v3224_v40 = vsel %vm14639_vm13, %v3206_v60, %v11628_v1  ;;  %4793 = vmatprep.subr.bf16.mxu0 %v4017_v21  ;;  %v3303_v1 = vsel %vm1273_vm14, %v11662_v18, %v11691_v7  ;;  %vm14642_vm13 = vmmov %vm14640_vm6  ;;  %v11920_v7 = vld [vmem:[%s14023_s9 + $0x18] ss:$40 sps:$4 sm:$0xff]   ;;  %vm14646_vm6 = vcmask 719872  }
 0x4a3   : > { %4467 = vmatpush1.bf16.msra.mxu1 %v3224_v40  ;;  %5248 = vrot.lane.b32.xlu1 %v11794_v19, %s14361_s23  ;;  %v3391_v38 = vsel %vm14642_vm13, %v11851_v17, %v11578_v59  ;;  %v14647_v60 = vld [vmem:[#allocation46_spill] sm:$0xff] }
 0x4a4   : > { %v11974_v40 = vld [vmem:[%s14023_s9 + $0xb8] ss:$40 sps:$4 sm:$0xff]  }
 0x4a5   : > { %v3216_v15 = vpop.permute.xlu0 %3215  ;;  %4794 = vmatpush1.bf16.msra.mxu0 %v3388_v61  ;;  %v4029_v31 = vld [vmem:[#allocation5 + $0x818] sm:$0xff] }
 0x4a6   : > { %v3227_v44 = vsel %vm14636_vm12, %v11652_v8, %v3216_v15  ;;  %v3228_v57 = vsel %vm14641_vm4, %v3216_v15, %v11664_v34  ;;  %4795 = vmatprep.subr.bf16.mxu0 %v4021_v6  ;;  %v4025_v8 = vld [vmem:[#allocation5 + $0x7f8] sm:$0xff]  ;;  %v3466_v34 = vsel %vm1317_vm11, %v11867_v9, %v11600_v10  ;;  %vm14648_vm12 = vmmov %vm14646_vm6 }
 0x4a7   : > { %4468 = vmatprep.subr.bf16.mxu1 %v3228_v57  ;;  %5313 = vrot.lane.b32.xlu1 %v11740_v52, %s14367_s24  ;;  %v14643_v10 = vld [vmem:[#allocation42_spill] sm:$0xff]  ;;  %v3550_v21 = vsel %vm14648_vm12, %v14647_v60, %v11673_v36  ;;  %vm14649_vm4 = vmmov %vm14642_vm13 }
 0x4a8   : > { %4469 = vmatpush1.bf16.msra.mxu1 %v3227_v44  ;;  %v3469_v30 = vsel %vm1317_vm11, %v14643_v10, %v3455_v16  ;;  %vm14650_vm13 = vmmov %vm14649_vm4  ;;  %v14652_v44 = vld [vmem:[#allocation44_spill] sm:$0xff] }
 0x4a9   : > { %v3528_v20 = vpop.permute.xlu0 %3527  ;;  %4796 = vmatpush1.bf16.msra.mxu0 %v3391_v38  ;;  %4470 = vmatprep.subr.bf16.mxu1 %v3303_v1 }
 0x4aa   : > { %3569 = vst.msk [vmem:[#allocation5 + $0x858] sm:$0xff] %vm1732_vm2, %v3528_v20  ;;  %4797 = vmatprep.subr.bf16.mxu0 %v4025_v8  ;;  %v3547_v58 = vsel %vm14646_vm6, %v14645_v55, %v3528_v20  ;;  %vm14651_vm6 = vmmov %vm14649_vm4  ;;  %v8817_v55 = vld [vmem:[%s14023_s9 + $0xc0] ss:$40 sps:$4 sm:$0xff]  }
 0x4ab   : > { %5321 = vrot.lane.b32.xlu1 %v11744_v5, %s14367_s24  ;;  %v3387_v36 = vsel %vm14651_vm6, %v11758_v2, %v11833_v28  ;;  %v14653_v28 = vld [vmem:[#allocation39_spill] sm:$0xff]  ;;  %vm14656_vm6 = vmmov %vm14649_vm4 }
 0x4ac   : > { %v3628_v38 = vsel %vm1361_vm8, %v14653_v28, %v11718_v25 }
 0x4ad   : > { %v3279_v59 = vpop.permute.xlu0 %3278  ;;  %4798 = vmatpush1.bf16.msra.mxu0 %v3466_v34 }
 0x4ae   : > { %v3302_v45 = vsel %vm1273_vm14, %v3279_v59, %v11662_v18  ;;  %4830 = vmatprep.subr.bf16.mxu0 %v4029_v31  ;;  %v14654_v31 = vld [vmem:[#allocation43_spill] sm:$0xff] }
 0x4af   : > { %4471 = vmatpush1.bf16.msra.mxu1 %v3302_v45  ;;  %5329 = vrot.lane.b32.xlu1 %v11794_v19, %s14367_s24 }
 0x4b0   : > { %4800 = vmatmul.mubr.bf16.vlgmr.msra.gmra.mrb[28].mxu0 %v11920_v7 }
 0x4b1   : > { %v3289_v11 = vpop.permute.xlu0 %3288  ;;  %4831 = vmatpush1.bf16.msra.mxu0 %v3469_v30  ;;  %4809 = vmatprep.mubr.bf16.mxu0 %v11925_v24  ;;  %v4037_v54 = vld [vmem:[#allocation5 + $0x858] sm:$0xff] }
 0x4b2   : > { %v3305_v39 = vsel %vm1273_vm14, %v11689_v46, %v3289_v11  ;;  %v3306_v18 = vsel %vm1273_vm14, %v3289_v11, %v11720_v29  ;;  %4832 = vmatprep.subr.bf16.mxu0 %v4033_v27  ;;  %v11950_v46 = vld [vmem:[%s14023_s9 + $0x68] ss:$40 sps:$4 sm:$0xff]   ;;  %v4057_v30 = vld [vmem:[#allocation5 + $0x8f8] sm:$0xff] }
 0x4b3   : > { %4472 = vmatprep.subr.bf16.mxu1 %v3306_v18  ;;  %5394 = vrot.lane.b32.xlu1 %v11740_v52, %s14375_s16 }
 0x4b4   : > { %4473 = vmatpush1.bf16.msra.mxu1 %v3305_v39 }
 0x4b5   : > { %v3544_v29 = vpop.permute.xlu0 %3543  ;;  %4833 = vmatpush1.bf16.msra.mxu0 %v3472_v13  ;;  %4474 = vmatprep.subr.bf16.mxu1 %v3309_v33 }
 0x4b6   : > { %3577 = vst.msk [vmem:[#allocation5 + $0x898] sm:$0xff] %vm1732_vm2, %v3544_v29  ;;  %4834 = vmatprep.subr.bf16.mxu0 %v4037_v54  ;;  %v3553_v57 = vsel %vm14648_vm12, %v14652_v44, %v3544_v29  ;;  %v14660_v54 = vld [vmem:[#allocation45_spill] sm:$0xff]  ;;  %vm14672_vm12 = vcmask 326656  }
 0x4b7   : > { %5402 = vrot.lane.b32.xlu1 %v11744_v5, %s14375_s16 }
 0x4b8   : > { %4810 = vmatmul.mubr.bf16.gmra.mrb[32].mxu0 %v11950_v46 }
 0x4b9   : > { %v3295_v16 = vpop.permute.xlu0 %3294  ;;  %4835 = vmatpush1.bf16.msra.mxu0 %v3547_v58  ;;  %4819 = vmatprep.mubr.bf16.mxu0 %v11955_v0  ;;  %v4079_v58 = vpop.permute.xlu1 %4078 }
 0x4ba   : > { %v3308_v14 = vsel %vm1273_vm14, %v3295_v16, %v11703_v63  ;;  %4836 = vmatprep.subr.bf16.mxu0 %v4041_v12 }
 0x4bb   : > { %4475 = vmatpush1.bf16.msra.mxu1 %v3308_v14  ;;  %5410 = vrot.lane.b32.xlu1 %v11794_v19, %s14375_s16 }
 0x4bd   : > { %v3362_v61 = vpop.permute.xlu0 %3361  ;;  %4837 = vmatpush1.bf16.msra.mxu0 %v3550_v21  ;;  %v4045_v15 = vld [vmem:[#allocation5 + $0x898] sm:$0xff]  ;;  %v12071_v16 = vpop.permute.xlu1 %4088 }
 0x4be   : > { %v3383_v63 = vsel %vm14649_vm4, %v11732_v50, %v3362_v61  ;;  %v3384_v6 = vsel %vm14650_vm13, %v3362_v61, %v11802_v56  ;;  %4838 = vmatprep.subr.bf16.mxu0 %v4045_v15  ;;  %v4049_v50 = vld [vmem:[#allocation5 + $0x8b8] sm:$0xff]  ;;  %v8812_v56 = vld [vmem:[%s14023_s9 + $0x24] ss:$40 sps:$4 sm:$0xff]   ;;  %vm14655_vm13 = vmmov %vm14649_vm4 }
 0x4bf   : > { %4476 = vmatprep.subr.bf16.mxu1 %v3384_v6  ;;  %5475 = vrot.lane.b32.xlu1 %v11740_v52, %s14377_s28 }
 0x4c0   : > { %4477 = vmatpush1.bf16.msra.mxu1 %v3383_v63  ;;  %4820 = vmatmul.mubr.bf16.gmra.mrb[36].mxu0 %v11974_v40 }
 0x4c1   : > { %v3617_v1 = vpop.permute.xlu0 %3616  ;;  %4839 = vmatpush1.bf16.msra.mxu0 %v3553_v57  ;;  %4478 = vmatprep.subr.bf16.mxu1 %v3387_v36  ;;  %v12073_v12 = vpop.permute.xlu1 %4098 }
 0x4c2   : > { %3654 = vst.msk [vmem:[#allocation5 + $0x8d8] sm:$0xff] %vm1732_vm2, %v3617_v1  ;;  %4840 = vmatprep.subr.bf16.mxu0 %v4049_v50  ;;  %8251 = vmatprep.mubr.msk.bf16.mxu0 %vm4253_vm9, %v8812_v56  ;;  %v3631_v45 = vsel %vm1361_vm8, %v14654_v31, %v3617_v1 }
 0x4c3   : > { %5483 = vrot.lane.b32.xlu1 %v11744_v5, %s14377_s28 }
 0x4c5   : > { %v3368_v20 = vpop.permute.xlu0 %3367  ;;  %4841 = vmatpush1.bf16.msra.mxu0 %v3628_v38 }
 0x4c6   : > { %v3386_v8 = vsel %vm14649_vm4, %v3368_v20, %v11758_v2  ;;  %v3465_v2 = vsel %vm1317_vm11, %v11818_v62, %v11867_v9 }
 0x4c7   : > { %4479 = vmatpush1.bf16.msra.mxu1 %v3386_v8  ;;  %5491 = vrot.lane.b32.xlu1 %v11794_v19, %s14377_s28 }
 0x4c9   : > { %v3378_v34 = vpop.permute.xlu0 %3377  ;;  %v4053_v59 = vld [vmem:[#allocation5 + $0x8d8] sm:$0xff] }
 0x4ca   : > { %v3389_v10 = vsel %vm14655_vm13, %v11800_v47, %v3378_v34  ;;  %v3390_v25 = vsel %vm14656_vm6, %v3378_v34, %v11851_v17  ;;  %4842 = vmatprep.subr.bf16.mxu0 %v4053_v59  ;;  %v14657_v47 = vld [vmem:[#allocation49_spill] sm:$0xff]  ;;  %vm14674_vm13 = vcmask 318464   ;;  %vm14675_vm6 = vmmov %vm14672_vm12 }
 0x4cb   : > { %4843 = vmatpush1.bf16.msra.mxu0 %v3631_v45  ;;  %4480 = vmatprep.subr.bf16.mxu1 %v3390_v25  ;;  %v3634_v27 = vsel %vm1361_vm8, %v14657_v47, %v11774_v42  ;;  %v4065_v42 = vld [vmem:[#allocation5 + $0x938] sm:$0xff] }
 0x4cc   : > { %4844 = vmatprep.subr.bf16.mxu0 %v4057_v30  ;;  %4481 = vmatpush1.bf16.msra.mxu1 %v3389_v10 }
 0x4cd   : > { %v3690_v11 = vpop.permute.xlu0 %3689  ;;  %4482 = vmatprep.subr.bf16.mxu1 %v3465_v2  ;;  %5556 = vrot.lane.b32.xlu1 %v11740_v52, %s14401_s27 }
 0x4ce   : > { %3731 = vst.msk [vmem:[#allocation5 + $0x918] sm:$0xff] %vm1732_vm2, %v3690_v11  ;;  %v3709_v13 = vsel %vm1383_vm5, %v14658_v37, %v3690_v11 }
 0x4cf   : > { %4845 = vmatpush1.bf16.msra.mxu0 %v3634_v27 }
 0x4d1   : > { %v3441_v17 = vpop.permute.xlu0 %3440  ;;  %5564 = vrot.lane.b32.xlu1 %v11744_v5, %s14401_s27 }
 0x4d2   : > { %v3464_v9 = vsel %vm1317_vm11, %v3441_v17, %v11818_v62  ;;  %v14659_v62 = vld [vmem:[#allocation47_spill] sm:$0xff] }
 0x4d3   : > { %4483 = vmatpush1.bf16.msra.mxu1 %v3464_v9  ;;  %v3712_v33 = vsel %vm1383_vm5, %v14659_v62, %v11831_v48  ;;  %v8813_v48 = vld [vmem:[%s14023_s9 + $0x20] ss:$40 sps:$4 sm:$0xff]  }
 0x4d5   : > { %v3706_v39 = vpop.permute.xlu0 %3705  ;;  %v4061_v18 = vld [vmem:[#allocation5 + $0x918] sm:$0xff]  ;;  %5572 = vrot.lane.b32.xlu1 %v11794_v19, %s14401_s27 }
 0x4d6   : > { %3739 = vst.msk [vmem:[#allocation5 + $0x958] sm:$0xff] %vm1732_vm2, %v3706_v39  ;;  %4846 = vmatprep.subr.bf16.mxu0 %v4061_v18  ;;  %4485 = vmatmul.mubr.bf16.vlgmr.msra.gmra.mrb[16].mxu1 %v11920_v7  ;;  %v3715_v7 = vsel %vm1383_vm5, %v14660_v54, %v3706_v39 }
 0x4d7   : > { %4847 = vmatpush1.bf16.msra.mxu0 %v3709_v13  ;;  %4494 = vmatprep.mubr.bf16.mxu1 %v11925_v24  ;;  %v8814_v24 = vld [vmem:[%s14023_s9 + $0x74] ss:$40 sps:$4 sm:$0xff]  }
 0x4d8   : > { %4848 = vmatprep.subr.bf16.mxu0 %v4065_v42 }
 0x4d9   : > { %5637 = vrot.lane.b32.xlu1 %v11740_v52, %s14402_s0 }
 0x4db   : > { %4849 = vmatpush1.bf16.msra.mxu0 %v3712_v33 }
 0x4dd   : > { %v4069_v29 = vld [vmem:[#allocation5 + $0x958] sm:$0xff]  ;;  %5645 = vrot.lane.b32.xlu1 %v11744_v5, %s14402_s0  ;;  %v12075_v14 = vpop.permute.xlu1 %4989 }
 0x4de   : > { %4850 = vmatprep.subr.bf16.mxu0 %v4069_v29  ;;  %4495 = vmatmul.mubr.bf16.gmra.mrb[20].mxu1 %v11950_v46  ;;  %v8815_v46 = vld [vmem:[%s14023_s9 + $0x70] ss:$40 sps:$4 sm:$0xff]  }
 0x4df   : > { %4851 = vmatpush1.bf16.msra.mxu0 %v3715_v7  ;;  %4504 = vmatprep.mubr.bf16.mxu1 %v11955_v0  ;;  %v8816_v0 = vld [vmem:[%s14023_s9 + $0xc4] ss:$40 sps:$4 sm:$0xff]  }
 0x4e1   : > { %5653 = vrot.lane.b32.xlu1 %v11794_v19, %s14402_s0  ;;  %v12077_v60 = vpop.permute.xlu1 %4997 }
 0x4e2   : > { %4863 = vmatmul.mubr.bf16.vlgmr.msra.gmra.mrb[28].mxu0 %v8813_v48 }
 0x4e3   : > { %8252 = vmatprep.mubr.msk.bf16.mxu0 %vm4253_vm9, %v8814_v24 }
 0x4e5   : > { %5718 = vrot.lane.b32.xlu1 %v11740_v52, %s14403_s19 }
 0x4e6   : > { %4505 = vmatmul.mubr.bf16.gmra.mrb[24].mxu1 %v11974_v40  ;;  %v4084_v56 = vpop.permute.xlu0 %4083 }
 0x4e9   : > { %5726 = vrot.lane.b32.xlu1 %v11744_v5, %s14403_s19 }
 0x4ea   : > { %4873 = vmatmul.mubr.bf16.gmra.mrb[32].mxu0 %v8815_v46  ;;  %v12112_v18 = vpop.permute.xlu0 %4093 }
 0x4eb   : > { %8253 = vmatprep.mubr.msk.bf16.mxu0 %vm4253_vm9, %v8816_v0 }
 0x4ed   : > { %5734 = vrot.lane.b32.xlu1 %v11794_v19, %s14403_s19 }
 0x4f1   : > { %5805 = vrot.lane.b32.xlu1 %v11740_v52, %s14428_s1  ;;  %v12079_v52 = vpop.permute.xlu1 %5005 }
 0x4f2   : > { %4883 = vmatmul.mubr.bf16.gmra.mrb[36].mxu0 %v8817_v55 }
 0x4f5   : > { %5825 = vrot.lane.b32.xlu1 %v11794_v19, %s14428_s1  ;;  %v12081_v21 = vpop.permute.xlu1 %5070 }
 0x4f9   : > { %5911 = vrot.lane.b32.xlu1 %v11744_v5, %s14444_s2  ;;  %v12083_v40 = vpop.permute.xlu1 %5078 }
 0x4fd   : > { %v12085_v61 = vpop.permute.xlu1 %5086 }
 0x501   : > { %v12087_v19 = vpop.permute.xlu1 %5151 }
 0x505   : > { %v12089_v5 = vpop.permute.xlu1 %5159 }
 0x509   : > { %v12091_v15 = vpop.permute.xlu1 %5167 }
 0x50d   : > { %v12093_v63 = vpop.permute.xlu1 %5232 }
 0x511   : > { %v12095_v6 = vpop.permute.xlu1 %5240 }
 0x515   : > { %v12097_v36 = vpop.permute.xlu1 %5248 }
 0x519   : > { %v12099_v57 = vpop.permute.xlu1 %5313 }
 0x51d   : > { %v12105_v2 = vpop.permute.xlu1 %5321 }
 0x521   : > { %v12132_v0 = vpop.permute.xlu1 %5329 }
 0x5a9   : > { %v4486_v44 = vpop.f32.mrb[16].mxu1 }
 0x5aa   : > { %v8447_v1 = vadd.f32 %v4486_v44, %v4079_v58  ;;  %v4488_v50 = vpop.f32.mrb[17].mxu1 }
 0x5ab   : > { %v8449_v28 = vadd.f32 %v4488_v50, %v4079_v58  ;;  %v4490_v38 = vpop.f32.mrb[18].mxu1 }
 0x5ac   : > { %v8448_v20 = vadd.f32 %v8447_v1, %v11738_v4  ;;  %v8451_v8 = vadd.f32 %v4490_v38, %v4084_v56  ;;  %v4492_v34 = vpop.f32.mrb[19].mxu1 }
 0x5ad   : > { %v8450_v59 = vadd.f32 %v8449_v28, %v11742_v51  ;;  %v8453_v31 = vadd.f32 %v4492_v34, %v4084_v56 }
 0x5ae   : > { %v4893_v45 = vmax.f32 %v8448_v20, 0.0  ;;  %v8452_v10 = vadd.f32 %v8451_v8, %v11752_v32 }
 0x5af   : > { %v4894_v25 = vmax.f32 %v8450_v59, 0.0  ;;  %v8454_v30 = vadd.f32 %v8453_v31, %v11765_v3 }
 0x5b0   : > { %v4897_v11 = vmax.f32 %v8452_v10, 0.0  ;;  %v4917_v9 = vsel %vm10021_vm15, %v4893_v45, 0.0 }
 0x5b1   : > { %v4898_v47 = vmax.f32 %v8454_v30, 0.0  ;;  %v4496_v27 = vpop.f32.mrb[20].mxu1  ;;  %v4918_v37 = vsel %vm10033_vm7, %v4894_v25, 0.0 }
 0x5b2   : > { %v4921_v4 = vsel %vm10021_vm15, %v4897_v11, 0.0  ;;  %v8455_v51 = vadd.f32 %v4496_v27, %v12071_v16  ;;  %v4498_v39 = vpop.f32.mrb[21].mxu1 }
 0x5b3   : > { %v12116_v3 = vpack.c.bf16 %v4921_v4, %v4917_v9  ;;  %v4922_v13 = vsel %vm10033_vm7, %v4898_v47, 0.0  ;;  %v8457_v42 = vadd.f32 %v4498_v39, %v12071_v16  ;;  %v4500_v62 = vpop.f32.mrb[22].mxu1 }
 0x5b4   : > { %v12121_v33 = vpack.c.bf16 %v4922_v13, %v4918_v37  ;;  %v8456_v29 = vadd.f32 %v8455_v51, %v11767_v49  ;;  %v8459_v54 = vadd.f32 %v4500_v62, %v12112_v18  ;;  %v4502_v7 = vpop.f32.mrb[23].mxu1  ;;  %v12158_v62 = vpop.permute.xlu0 %4103 }
 0x5b5   : > { %4953 = vst [vmem:[#allocation3 + $0x8] sm:$0xff] %v12116_v3  ;;  %v4864_v48 = vpop.f32.mrb[28].mxu0  ;;  %v8458_v24 = vadd.f32 %v8457_v42, %v11772_v23  ;;  %v8461_v46 = vadd.f32 %v4502_v7, %v12112_v18  ;;  %5903 = vrot.lane.b32.xlu0 %v12116_v3, %s14444_s2  ;;  %4991 = vrot.lane.b32.xlu1 %v12116_v3, %s14388_s22  ;;  %v12156_v42 = vpop.permute.xlu1 %5394 }
 0x5b6   : > { %4954 = vst [vmem:[#allocation3 + $0x10] sm:$0xff] %v12121_v33  ;;  %v8471_v49 = vadd.f32 %v4864_v48, %v4079_v58  ;;  %v4866_v55 = vpop.f32.mrb[29].mxu0  ;;  %v4901_v44 = vmax.f32 %v8456_v29, 0.0  ;;  %v8460_v1 = vadd.f32 %v8459_v54, %v11782_v22 }
 0x5b7   : > { %v8472_v50 = vadd.f32 %v4866_v55, %v4079_v58  ;;  %v4868_v28 = vpop.f32.mrb[30].mxu0  ;;  %v4902_v23 = vmax.f32 %v8458_v24, 0.0  ;;  %v8462_v38 = vadd.f32 %v8461_v46, %v11786_v53 }
 0x5b8   : > { %v4895_v20 = vmax.f32 %v8471_v49, 0.0  ;;  %v8473_v8 = vadd.f32 %v4868_v28, %v4084_v56  ;;  %v4870_v34 = vpop.f32.mrb[31].mxu0  ;;  %v4925_v59 = vsel %vm10021_vm15, %v4901_v44, 0.0  ;;  %v4905_v31 = vmax.f32 %v8460_v1, 0.0 }
 0x5b9   : > { %v4896_v45 = vmax.f32 %v8472_v50, 0.0  ;;  %v8474_v10 = vadd.f32 %v4870_v34, %v4084_v56  ;;  %v4926_v25 = vsel %vm10033_vm7, %v4902_v23, 0.0  ;;  %v4906_v30 = vmax.f32 %v8462_v38, 0.0  ;;  %v4506_v11 = vpop.f32.mrb[24].mxu1  ;;  %4993 = vrot.lane.b32.xlu0 %v12121_v33, %s14388_s22  ;;  %5072 = vrot.lane.b32.xlu1 %v12116_v3, %s14298_s13 }
 0x5ba   : > { %v4919_v53 = vsel %vm1691_vm10, %v4895_v20, 0.0  ;;  %v4899_v58 = vmax.f32 %v8473_v8, 0.0  ;;  %v4929_v47 = vsel %vm10021_vm15, %v4905_v31, 0.0  ;;  %v8463_v56 = vadd.f32 %v4506_v11, %v12073_v12  ;;  %v4508_v27 = vpop.f32.mrb[25].mxu1 }
 0x5bb   : > { %v4920_v4 = vsel %vm1692_vm3, %v4896_v45, 0.0  ;;  %v4900_v51 = vmax.f32 %v8474_v10, 0.0  ;;  %v12152_v39 = vpack.c.bf16 %v4929_v47, %v4925_v59  ;;  %v4930_v37 = vsel %vm10033_vm7, %v4906_v30, 0.0  ;;  %v4510_v13 = vpop.f32.mrb[26].mxu1 }
 0x5bc   : > { %v4923_v29 = vsel %vm1691_vm10, %v4899_v58, 0.0  ;;  %v12162_v54 = vpack.c.bf16 %v4930_v37, %v4926_v25  ;;  %v8464_v7 = vadd.f32 %v8463_v56, %v11796_v43  ;;  %v8465_v48 = vadd.f32 %v4508_v27, %v12073_v12  ;;  %v4512_v24 = vpop.f32.mrb[27].mxu1  ;;  %v6720_v46 = vld [vmem:[#allocation3 + $0x8] sm:$0xff] }
 0x5bd   : > { %v12166_v49 = vpack.c.bf16 %v4923_v29, %v4919_v53  ;;  %v4924_v55 = vsel %vm1692_vm3, %v4900_v51, 0.0  ;;  %4957 = vst [vmem:[#allocation3 + $0x38] sm:$0xff] %v12152_v39  ;;  %v4874_v44 = vpop.f32.mrb[32].mxu0  ;;  %v8467_v1 = vadd.f32 %v4510_v13, %v12158_v62  ;;  %v8469_v50 = vadd.f32 %v4512_v24, %v12158_v62  ;;  %5074 = vrot.lane.b32.xlu0 %v12121_v33, %s14298_s13  ;;  %v6721_v43 = vld [vmem:[#allocation3 + $0x10] sm:$0xff] }
 0x5be   : > { %5153 = vrot.lane.b32.xlu1 %v12116_v3, %s14335_s30  ;;  %5979 = vst [vmem:[#allocation5 + $0x480] sm:$0xff] %v6720_v46  ;;  %v4944_v28 = vpack.c.bf16 %v4924_v55, %v4920_v4  ;;  %4958 = vst [vmem:[#allocation3 + $0x40] sm:$0xff] %v12162_v54  ;;  %v8475_v23 = vadd.f32 %v4874_v44, %v12071_v16  ;;  %v4876_v38 = vpop.f32.mrb[33].mxu0  ;;  %v4909_v20 = vmax.f32 %v8464_v7, 0.0 }
 0x5bf   : > { %v8466_v8 = vadd.f32 %v8465_v48, %v11807_v35  ;;  %5980 = vst [vmem:[#allocation5 + $0x488] sm:$0xff] %v6721_v43  ;;  %4955 = vst [vmem:[#allocation3 + $0x18] sm:$0xff] %v12166_v49  ;;  %v8476_v34 = vadd.f32 %v4876_v38, %v12071_v16  ;;  %v4878_v59 = vpop.f32.mrb[34].mxu0  ;;  %v8468_v31 = vadd.f32 %v8467_v1, %v11811_v41  ;;  %v12192_v41 = vpop.permute.xlu1 %5402 }
 0x5c0   : > { %5981 = vst [vmem:[#allocation5 + $0x490] sm:$0xff] %v12166_v49  ;;  %v8470_v45 = vadd.f32 %v8469_v50, %v11816_v26  ;;  %4956 = vst.msk [vmem:[#allocation3 + $0x20] sm:$0xff] %vm1732_vm2, %v4944_v28  ;;  %v4903_v10 = vmax.f32 %v8475_v23, 0.0  ;;  %v8477_v25 = vadd.f32 %v4878_v59, %v12112_v18  ;;  %v4880_v30 = vpop.f32.mrb[35].mxu0  ;;  %v4933_v16 = vsel %vm10021_vm15, %v4909_v20, 0.0 }
 0x5c1   : > { %v4910_v11 = vmax.f32 %v8466_v8, 0.0  ;;  %v4904_v35 = vmax.f32 %v8476_v34, 0.0  ;;  %v8478_v53 = vadd.f32 %v4880_v30, %v12112_v18  ;;  %v4913_v58 = vmax.f32 %v8468_v31, 0.0  ;;  %5155 = vrot.lane.b32.xlu0 %v12121_v33, %s14335_s30 }
 0x5c2   : > { %v4914_v47 = vmax.f32 %v8470_v45, 0.0  ;;  %5234 = vrot.lane.b32.xlu1 %v12116_v3, %s14361_s23  ;;  %v4907_v26 = vmax.f32 %v8477_v25, 0.0  ;;  %v4927_v51 = vsel %vm1691_vm10, %v4903_v10, 0.0 }
 0x5c3   : > { %v4908_v56 = vmax.f32 %v8478_v53, 0.0  ;;  %v4934_v27 = vsel %vm10033_vm7, %v4910_v11, 0.0  ;;  %v4937_v18 = vsel %vm10021_vm15, %v4913_v58, 0.0  ;;  %v4928_v48 = vsel %vm1692_vm3, %v4904_v35, 0.0  ;;  %v12226_v28 = vpop.permute.xlu1 %5410 }
 0x5c4   : > { %v4938_v4 = vsel %vm10033_vm7, %v4914_v47, 0.0  ;;  %v4931_v37 = vsel %vm1691_vm10, %v4907_v26, 0.0  ;;  %v12206_v13 = vpack.c.bf16 %v4937_v18, %v4933_v16  ;;  %v6724_v7 = vld [vmem:[#allocation3 + $0x38] sm:$0xff]  ;;  %vm14670_vm15 = vcmask 334848  }
 0x5c5   : > { %v12208_v29 = vpack.c.bf16 %v4938_v4, %v4934_v27  ;;  %v12212_v24 = vpack.c.bf16 %v4931_v37, %v4927_v51  ;;  %v4932_v17 = vsel %vm1692_vm3, %v4908_v56, 0.0  ;;  %v4884_v32 = vpop.f32.mrb[36].mxu0  ;;  %5236 = vrot.lane.b32.xlu0 %v12121_v33, %s14361_s23  ;;  %v6725_v46 = vld [vmem:[#allocation3 + $0x40] sm:$0xff]  ;;  %5983 = vst [vmem:[#allocation5 + $0x4a0] sm:$0xff] %v6724_v7  ;;  %vm14673_vm4 = vmmov %vm14670_vm15 }
 0x5c6   : > { %5315 = vrot.lane.b32.xlu1 %v12116_v3, %s14367_s24  ;;  %v4948_v55 = vpack.c.bf16 %v4932_v17, %v4928_v48  ;;  %4961 = vst [vmem:[#allocation3 + $0x68] sm:$0xff] %v12206_v13  ;;  %v8479_v44 = vadd.f32 %v4884_v32, %v12073_v12  ;;  %v4886_v1 = vpop.f32.mrb[37].mxu0  ;;  %5984 = vst [vmem:[#allocation5 + $0x4a8] sm:$0xff] %v6725_v46  ;;  %v12358_v48 = vpop.permute.xlu0 %5815 }
 0x5c7   : > { %4962 = vst [vmem:[#allocation3 + $0x70] sm:$0xff] %v12208_v29  ;;  %4959 = vst [vmem:[#allocation3 + $0x48] sm:$0xff] %v12212_v24  ;;  %v8480_v50 = vadd.f32 %v4886_v1, %v12073_v12  ;;  %v4888_v43 = vpop.f32.mrb[38].mxu0  ;;  %v12228_v23 = vld [vmem:[#allocation3 + $0x20] sm:$0xff]  ;;  %v12251_v11 = vpop.permute.xlu1 %5475 }
 0x5c8   : > { %5985 = vst [vmem:[#allocation5 + $0x4b0] sm:$0xff] %v12212_v24  ;;  %14665 = vst [vmem:[#allocation37_spill] sm:$0xff] %v12228_v23  ;;  %v4911_v38 = vmax.f32 %v8479_v44, 0.0  ;;  %v8481_v20 = vadd.f32 %v4888_v43, %v12158_v62  ;;  %v4890_v8 = vpop.f32.mrb[39].mxu0 }
 0x5c9   : > { %4960 = vst.msk [vmem:[#allocation3 + $0x50] sm:$0xff] %vm1732_vm2, %v4948_v55  ;;  %5982 = vst.msk [vmem:[#allocation5 + $0x498] sm:$0xff] %vm1732_vm2, %v12228_v23  ;;  %v4912_v34 = vmax.f32 %v8480_v50, 0.0  ;;  %v8482_v59 = vadd.f32 %v4890_v8, %v12158_v62  ;;  %5317 = vrot.lane.b32.xlu0 %v12121_v33, %s14367_s24 }
 0x5ca   : > { %5396 = vrot.lane.b32.xlu1 %v12116_v3, %s14375_s16  ;;  %v4915_v12 = vmax.f32 %v8481_v20, 0.0  ;;  %v4935_v45 = vsel %vm1691_vm10, %v4911_v38, 0.0  ;;  %v5902_v32 = vpop.permute.xlu0 %5901 }
 0x5cb   : > { %v4916_v31 = vmax.f32 %v8482_v59, 0.0  ;;  %v4936_v25 = vsel %vm1692_vm3, %v4912_v34, 0.0  ;;  %v12262_v9 = vpop.permute.xlu1 %5483 }
 0x5cc   : > { %v4939_v10 = vsel %vm1691_vm10, %v4915_v12, 0.0  ;;  %vm14668_vm10 = vcmask 343040  }
 0x5cd   : > { %v4951_v30 = vpack.c.bf16 %v4939_v10, %v4935_v45  ;;  %v4940_v62 = vsel %vm1692_vm3, %v4916_v31, 0.0  ;;  %5398 = vrot.lane.b32.xlu0 %v12121_v33, %s14375_s16  ;;  %v5975_v22 = vld [vmem:[#allocation3 + $0x68] sm:$0xff]  ;;  %vm14669_vm3 = vcmask 7168   ;;  %vm14671_vm7 = vmmov %vm14668_vm10 }
 0x5ce   : > { %5477 = vrot.lane.b32.xlu1 %v12116_v3, %s14377_s28  ;;  %v5976_v35 = vld [vmem:[#allocation3 + $0x70] sm:$0xff]  ;;  %v4952_v53 = vpack.c.bf16 %v4940_v62, %v4936_v25  ;;  %5987 = vst [vmem:[#allocation5 + $0x4c0] sm:$0xff] %v5975_v22  ;;  %v12376_v55 = vpop.permute.xlu0 %5921 }
 0x5cf   : > { %5988 = vst [vmem:[#allocation5 + $0x4c8] sm:$0xff] %v5976_v35  ;;  %4963 = vst [vmem:[#allocation3 + $0x78] sm:$0xff] %v4951_v30  ;;  %v12276_v26 = vpop.permute.xlu1 %5491 }
 0x5d0   : > { %5989 = vst [vmem:[#allocation5 + $0x4d0] sm:$0xff] %v4951_v30  ;;  %4964 = vst.msk [vmem:[#allocation3 + $0x80] sm:$0xff] %vm1732_vm2, %v4952_v53  ;;  %v12254_v58 = vld [vmem:[#allocation3 + $0x50] sm:$0xff] }
 0x5d1   : > { %14666 = vst [vmem:[#allocation64_spill] sm:$0xff] %v12254_v58  ;;  %5479 = vrot.lane.b32.xlu0 %v12121_v33, %s14377_s28  ;;  %5986 = vst.msk [vmem:[#allocation5 + $0x4b8] sm:$0xff] %vm1732_vm2, %v12254_v58 }
 0x5d2   : > { %5558 = vrot.lane.b32.xlu1 %v12116_v3, %s14401_s27 }
 0x5d3   : > { %v12282_v16 = vpop.permute.xlu1 %5556 }
 0x5d5   : > { %5560 = vrot.lane.b32.xlu0 %v12121_v33, %s14401_s27 }
 0x5d6   : > { %5639 = vrot.lane.b32.xlu1 %v12116_v3, %s14402_s0 }
 0x5d7   : > { %v12268_v47 = vld [vmem:[#allocation3 + $0x80] sm:$0xff]  ;;  %v12292_v56 = vpop.permute.xlu1 %5564 }
 0x5d8   : > { %14667 = vst [vmem:[#allocation53_spill] sm:$0xff] %v12268_v47  ;;  %5990 = vst.msk [vmem:[#allocation5 + $0x4d8] sm:$0xff] %vm1732_vm2, %v12268_v47  ;;  %v8953_v47 = vmov 1966171168  }
 0x5d9   : > { %5641 = vrot.lane.b32.xlu0 %v12121_v33, %s14402_s0 }
 0x5da   : > { %5720 = vrot.lane.b32.xlu1 %v12116_v3, %s14403_s19 }
 0x5db   : > { %v12298_v27 = vpop.permute.xlu1 %5572 }
 0x5dd   : > { %5722 = vrot.lane.b32.xlu0 %v12121_v33, %s14403_s19 }
 0x5de   : > { %5807 = vrot.lane.b32.xlu1 %v12116_v3, %s14428_s1 }
 0x5df   : > { %v12308_v18 = vpop.permute.xlu1 %5637 }
 0x5e1   : > { %5809 = vrot.lane.b32.xlu0 %v12121_v33, %s14428_s1 }
 0x5e2   : > { %6015 = vrot.lane.b32.xlu1 %v12116_v3, %s14461_s5 }
 0x5e5   : > { %5817 = vrot.lane.b32.xlu0 %v12152_v39, %s14428_s1 }
 0x5e6   : > { %6096 = vrot.lane.b32.xlu1 %v12116_v3, %s14473_s3 }
 0x5e9   : > { %5001 = vrot.lane.b32.xlu0 %v12162_v54, %s14388_s22 }
 0x5ea   : > { %6177 = vrot.lane.b32.xlu1 %v12116_v3, %s14478_s4  ;;  %v12314_v3 = vpop.permute.xlu1 %5645 }
 0x5ed   : > { %5082 = vrot.lane.b32.xlu0 %v12162_v54, %s14298_s13 }
 0x5ee   : > { %5905 = vrot.lane.b32.xlu1 %v12121_v33, %s14444_s2  ;;  %v12324_v4 = vpop.permute.xlu1 %5653 }
 0x5f1   : > { %5163 = vrot.lane.b32.xlu0 %v12162_v54, %s14335_s30 }
 0x5f2   : > { %6017 = vrot.lane.b32.xlu1 %v12121_v33, %s14461_s5  ;;  %v12330_v51 = vpop.permute.xlu1 %5718 }
 0x5f5   : > { %5244 = vrot.lane.b32.xlu0 %v12162_v54, %s14361_s23 }
 0x5f6   : > { %6098 = vrot.lane.b32.xlu1 %v12121_v33, %s14473_s3 }
 0x5f9   : > { %5325 = vrot.lane.b32.xlu0 %v12162_v54, %s14367_s24 }
 0x5fa   : > { %6179 = vrot.lane.b32.xlu1 %v12121_v33, %s14478_s4  ;;  %v12340_v33 = vpop.permute.xlu1 %5726 }
 0x5fd   : > { %5406 = vrot.lane.b32.xlu0 %v12162_v54, %s14375_s16 }
 0x5fe   : > { %4999 = vrot.lane.b32.xlu1 %v12152_v39, %s14388_s22  ;;  %v12346_v37 = vpop.permute.xlu1 %5734 }
 0x601   : > { %5487 = vrot.lane.b32.xlu0 %v12162_v54, %s14377_s28 }
 0x602   : > { %5080 = vrot.lane.b32.xlu1 %v12152_v39, %s14298_s13  ;;  %v12356_v7 = vpop.permute.xlu1 %5805 }
 0x605   : > { %5568 = vrot.lane.b32.xlu0 %v12162_v54, %s14401_s27 }
 0x606   : > { %5161 = vrot.lane.b32.xlu1 %v12152_v39, %s14335_s30  ;;  %v12364_v17 = vpop.permute.xlu1 %5825 }
 0x609   : > { %5649 = vrot.lane.b32.xlu0 %v12162_v54, %s14402_s0 }
 0x60a   : > { %5242 = vrot.lane.b32.xlu1 %v12152_v39, %s14361_s23  ;;  %v12374_v46 = vpop.permute.xlu1 %5911 }
 0x60d   : > { %5730 = vrot.lane.b32.xlu0 %v12162_v54, %s14403_s19 }
 0x60e   : > { %5323 = vrot.lane.b32.xlu1 %v12152_v39, %s14367_s24 }
 0x611   : > { %5915 = vrot.lane.b32.xlu0 %v12162_v54, %s14444_s2 }
 0x612   : > { %5404 = vrot.lane.b32.xlu1 %v12152_v39, %s14375_s16 }
 0x615   : > { %5923 = vrot.lane.b32.xlu0 %v12206_v13, %s14444_s2 }
 0x616   : > { %5485 = vrot.lane.b32.xlu1 %v12152_v39, %s14377_s28 }
 0x619   : > { %5009 = vrot.lane.b32.xlu0 %v12208_v29, %s14388_s22 }
 0x61a   : > { %5566 = vrot.lane.b32.xlu1 %v12152_v39, %s14401_s27 }
 0x61d   : > { %5090 = vrot.lane.b32.xlu0 %v12208_v29, %s14298_s13 }
 0x61e   : > { %5647 = vrot.lane.b32.xlu1 %v12152_v39, %s14402_s0 }
 0x621   : > { %5171 = vrot.lane.b32.xlu0 %v12208_v29, %s14335_s30 }
 0x622   : > { %5728 = vrot.lane.b32.xlu1 %v12152_v39, %s14403_s19 }
 0x625   : > { %5252 = vrot.lane.b32.xlu0 %v12208_v29, %s14361_s23 }
 0x626   : > { %5913 = vrot.lane.b32.xlu1 %v12152_v39, %s14444_s2 }
 0x627   : > { %v4992_v44 = vpop.permute.xlu1 %4991  ;;  %v12382_v1 = vpop.permute.xlu0 %5903 }
 0x628   : > { %v5013_v50 = vsel %vm14668_vm10, %v12075_v14, %v4992_v44  ;;  %v5931_v43 = vsel %vm14669_vm3, %v5902_v32, %v12382_v1  ;;  %vm14676_vm10 = vcmask 310272   ;;  %vm14677_vm3 = vmmov %vm14674_vm13 }
 0x629   : > { %5955 = vst [vmem:[#allocation5 + $0x420] sm:$0xff] %v5931_v43  ;;  %5333 = vrot.lane.b32.xlu0 %v12208_v29, %s14367_s24 }
 0x62a   : > { %6023 = vrot.lane.b32.xlu1 %v12152_v39, %s14461_s5 }
 0x62b   : > { %v5073_v38 = vpop.permute.xlu1 %5072  ;;  %v12392_v20 = vpop.permute.xlu0 %4993 }
 0x62c   : > { %v12396_v8 = vsel %vm14670_vm15, %v12081_v21, %v5073_v38  ;;  %v5014_v14 = vsel %vm14671_vm7, %v4992_v44, %v12392_v20  ;;  %vm14678_vm15 = vcmask 179200   ;;  %vm14679_vm7 = vmmov %vm14676_vm10 }
 0x62d   : > { %5115 = vst [vmem:[#allocation5 + $0x60] sm:$0xff] %v12396_v8  ;;  %5414 = vrot.lane.b32.xlu0 %v12208_v29, %s14375_s16  ;;  %7352 = vmatprep.subr.bf16.mxu1 %v5014_v14 }
 0x62e   : > { %6104 = vrot.lane.b32.xlu1 %v12152_v39, %s14473_s3  ;;  %7353 = vmatpush1.bf16.msra.mxu1 %v5013_v50 }
 0x62f   : > { %v12405_v59 = vpop.permute.xlu0 %5074 }
 0x630   : > { %v5154_v34 = vpop.permute.xlu1 %5153  ;;  %v12413_v12 = vsel %vm14673_vm4, %v5073_v38, %v12405_v59  ;;  %vm14681_vm4 = vmmov %vm14678_vm15 }
 0x631   : > { %v12409_v21 = vsel %vm14672_vm12, %v12087_v19, %v5154_v34  ;;  %5116 = vst [vmem:[#allocation5 + $0x68] sm:$0xff] %v12413_v12  ;;  %5495 = vrot.lane.b32.xlu0 %v12208_v29, %s14377_s28  ;;  %vm14680_vm12 = vcmask 171008  }
 0x632   : > { %5196 = vst [vmem:[#allocation5 + $0xc0] sm:$0xff] %v12409_v21  ;;  %6185 = vrot.lane.b32.xlu1 %v12152_v39, %s14478_s4 }
 0x633   : > { %v12421_v45 = vpop.permute.xlu0 %5155 }
 0x634   : > { %v5235_v31 = vpop.permute.xlu1 %5234  ;;  %v12429_v10 = vsel %vm14675_vm6, %v5154_v34, %v12421_v45  ;;  %vm14684_vm6 = vmmov %vm14680_vm12 }
 0x635   : > { %v12425_v19 = vsel %vm14674_vm13, %v12093_v63, %v5235_v31  ;;  %5197 = vst [vmem:[#allocation5 + $0xc8] sm:$0xff] %v12429_v10  ;;  %5576 = vrot.lane.b32.xlu0 %v12208_v29, %s14401_s27  ;;  %vm14683_vm13 = vcmask 162816  }
 0x636   : > { %5277 = vst [vmem:[#allocation5 + $0x120] sm:$0xff] %v12425_v19  ;;  %5819 = vrot.lane.b32.xlu1 %v12162_v54, %s14428_s1 }
 0x637   : > { %v12437_v25 = vpop.permute.xlu0 %5236 }
 0x638   : > { %v5316_v39 = vpop.permute.xlu1 %5315  ;;  %v12445_v30 = vsel %vm14677_vm3, %v5235_v31, %v12437_v25  ;;  %vm14686_vm3 = vmmov %vm14683_vm13 }
 0x639   : > { %v12441_v63 = vsel %vm14676_vm10, %v12099_v57, %v5316_v39  ;;  %5278 = vst [vmem:[#allocation5 + $0x128] sm:$0xff] %v12445_v30  ;;  %5657 = vrot.lane.b32.xlu0 %v12208_v29, %s14402_s0  ;;  %vm14685_vm10 = vcmask 154624  }
 0x63a   : > { %5358 = vst [vmem:[#allocation5 + $0x180] sm:$0xff] %v12441_v63  ;;  %6025 = vrot.lane.b32.xlu1 %v12162_v54, %s14461_s5 }
 0x63b   : > { %v12453_v35 = vpop.permute.xlu0 %5317 }
 0x63c   : > { %v5397_v62 = vpop.permute.xlu1 %5396  ;;  %v12459_v53 = vsel %vm14679_vm7, %v5316_v39, %v12453_v35  ;;  %vm14688_vm7 = vmmov %vm14685_vm10 }
 0x63d   : > { %v5418_v57 = vsel %vm14678_vm15, %v12156_v42, %v5397_v62  ;;  %5359 = vst [vmem:[#allocation5 + $0x188] sm:$0xff] %v12459_v53  ;;  %5738 = vrot.lane.b32.xlu0 %v12208_v29, %s14403_s19  ;;  %vm14687_vm15 = vcmask 146432  }
 0x63e   : > { %5439 = vst [vmem:[#allocation5 + $0x1e0] sm:$0xff] %v5418_v57  ;;  %6106 = vrot.lane.b32.xlu1 %v12162_v54, %s14473_s3 }
 0x63f   : > { %v12466_v32 = vpop.permute.xlu0 %5398 }
 0x640   : > { %v5478_v22 = vpop.permute.xlu1 %5477  ;;  %v12472_v42 = vsel %vm14681_vm4, %v5397_v62, %v12466_v32  ;;  %vm14690_vm4 = vmmov %vm14687_vm15 }
 0x641   : > { %v5499_v44 = vsel %vm14680_vm12, %v12251_v11, %v5478_v22  ;;  %14682 = vst [vmem:[#allocation38_spill] sm:$0xff] %v12472_v42  ;;  %5440 = vst [vmem:[#allocation5 + $0x1e8] sm:$0xff] %v12472_v42  ;;  %5829 = vrot.lane.b32.xlu0 %v12208_v29, %s14428_s1  ;;  %vm14689_vm12 = vcmask 15360  }
 0x642   : > { %5520 = vst [vmem:[#allocation5 + $0x240] sm:$0xff] %v5499_v44  ;;  %6187 = vrot.lane.b32.xlu1 %v12162_v54, %s14478_s4 }
 0x643   : > { %v12479_v43 = vpop.permute.xlu0 %5479 }
 0x644   : > { %v5559_v50 = vpop.permute.xlu1 %5558  ;;  %v5500_v11 = vsel %vm14684_vm6, %v5478_v22, %v12479_v43  ;;  %vm14693_vm6 = vmmov %vm14689_vm12 }
 0x645   : > { %v5580_v38 = vsel %vm14683_vm13, %v12282_v16, %v5559_v50  ;;  %5521 = vst [vmem:[#allocation5 + $0x248] sm:$0xff] %v5500_v11  ;;  %4995 = vrot.lane.b32.xlu0 %v12166_v49, %s14388_s22  ;;  %vm14692_vm13 = vmmov %vm14689_vm12 }
 0x646   : > { %5601 = vst [vmem:[#allocation5 + $0x2a0] sm:$0xff] %v5580_v38  ;;  %5007 = vrot.lane.b32.xlu1 %v12206_v13, %s14388_s22 }
 0x647   : > { %v12489_v14 = vpop.permute.xlu0 %5560 }
 0x648   : > { %v5640_v54 = vpop.permute.xlu1 %5639  ;;  %v5581_v16 = vsel %vm14686_vm3, %v5559_v50, %v12489_v14  ;;  %vm14698_vm3 = vcmask 1039360  }
 0x649   : > { %v5661_v34 = vsel %vm14685_vm10, %v12308_v18, %v5640_v54  ;;  %5602 = vst [vmem:[#allocation5 + $0x2a8] sm:$0xff] %v5581_v16  ;;  %5076 = vrot.lane.b32.xlu0 %v12166_v49, %s14298_s13  ;;  %vm14696_vm10 = vcmask 7168  }
 0x64a   : > { %5682 = vst [vmem:[#allocation5 + $0x300] sm:$0xff] %v5661_v34  ;;  %5088 = vrot.lane.b32.xlu1 %v12206_v13, %s14298_s13 }
 0x64b   : > { %v12499_v39 = vpop.permute.xlu0 %5641 }
 0x64c   : > { %v5721_v31 = vpop.permute.xlu1 %5720  ;;  %v5662_v18 = vsel %vm14688_vm7, %v5640_v54, %v12499_v39  ;;  %vm14704_vm7 = vcmask 900096  }
 0x64d   : > { %v5742_v62 = vsel %vm14687_vm15, %v12330_v51, %v5721_v31  ;;  %5683 = vst [vmem:[#allocation5 + $0x308] sm:$0xff] %v5662_v18  ;;  %5157 = vrot.lane.b32.xlu0 %v12166_v49, %s14335_s30  ;;  %vm14701_vm15 = vcmask 1031168  }
 0x64e   : > { %5763 = vst [vmem:[#allocation5 + $0x360] sm:$0xff] %v5742_v62  ;;  %5169 = vrot.lane.b32.xlu1 %v12206_v13, %s14335_s30 }
 0x64f   : > { %v12509_v22 = vpop.permute.xlu0 %5722 }
 0x650   : > { %v5808_v57 = vpop.permute.xlu1 %5807  ;;  %v5743_v51 = vsel %vm14690_vm4, %v5721_v31, %v12509_v22 }
 0x651   : > { %v5835_v44 = vsel %vm14689_vm12, %v12356_v7, %v5808_v57  ;;  %5764 = vst [vmem:[#allocation5 + $0x368] sm:$0xff] %v5743_v51  ;;  %5238 = vrot.lane.b32.xlu0 %v12166_v49, %s14361_s23  ;;  %vm14706_vm12 = vcmask 343040  }
 0x652   : > { %5859 = vst [vmem:[#allocation5 + $0x3c0] sm:$0xff] %v5835_v44  ;;  %5250 = vrot.lane.b32.xlu1 %v12206_v13, %s14361_s23  ;;  %vm14707_vm4 = vmmov %vm14706_vm12 }
 0x653   : > { %v12519_v38 = vpop.permute.xlu0 %5809 }
 0x654   : > { %v6016_v50 = vpop.permute.xlu1 %6015  ;;  %14691 = vst [vmem:[#allocation65_spill] sm:$0xff] %v12519_v38  ;;  %v5836_v11 = vsel %vm14692_vm13, %v5808_v57, %v12519_v38  ;;  %v7271_v38 = vunpack.c.l.s4 %v8953_v47  ;;  %vm14709_vm13 = vcmask 334848   ;;  %v14711_v47 = vld [vmem:[#allocation23_spill] sm:$0xff] }
 0x655   : > { %5860 = vst [vmem:[#allocation5 + $0x3c8] sm:$0xff] %v5836_v11  ;;  %5319 = vrot.lane.b32.xlu0 %v12166_v49, %s14367_s24 }
 0x656   : > { %5331 = vrot.lane.b32.xlu1 %v12206_v13, %s14367_s24 }
 0x657   : > { %v12527_v54 = vpop.permute.xlu0 %5817 }
 0x658   : > { %v6097_v7 = vpop.permute.xlu1 %6096  ;;  %v5839_v34 = vsel %vm14693_vm6, %v12358_v48, %v12527_v54  ;;  %vm14710_vm6 = vmmov %vm14709_vm13 }
 0x659   : > { %5863 = vst [vmem:[#allocation5 + $0x3e0] sm:$0xff] %v5839_v34  ;;  %5400 = vrot.lane.b32.xlu0 %v12166_v49, %s14375_s16 }
 0x65a   : > { %5412 = vrot.lane.b32.xlu1 %v12206_v13, %s14375_s16 }
 0x65b   : > { %v12536_v31 = vpop.permute.xlu0 %5001 }
 0x65c   : > { %v6178_v16 = vpop.permute.xlu1 %6177  ;;  %14694 = vst [vmem:[#allocation54_spill] sm:$0xff] %v12536_v31 }
 0x65d   : > { %5481 = vrot.lane.b32.xlu0 %v12166_v49, %s14377_s28 }
 0x65e   : > { %5493 = vrot.lane.b32.xlu1 %v12206_v13, %s14377_s28 }
 0x65f   : > { %v12544_v18 = vpop.permute.xlu0 %5082 }
 0x660   : > { %v12542_v62 = vpop.permute.xlu1 %5905  ;;  %14695 = vst [vmem:[#allocation66_spill] sm:$0xff] %v12544_v18 }
 0x661   : > { %v5932_v48 = vsel %vm14696_vm10, %v12382_v1, %v12542_v62  ;;  %5562 = vrot.lane.b32.xlu0 %v12166_v49, %s14401_s27  ;;  %vm14715_vm10 = vcmask 326656  }
 0x662   : > { %5956 = vst [vmem:[#allocation5 + $0x428] sm:$0xff] %v5932_v48  ;;  %5574 = vrot.lane.b32.xlu1 %v12206_v13, %s14401_s27 }
 0x663   : > { %v12555_v44 = vpop.permute.xlu0 %5163 }
 0x664   : > { %v12553_v57 = vpop.permute.xlu1 %6017  ;;  %14697 = vst [vmem:[#allocation56_spill] sm:$0xff] %v12555_v44 }
 0x665   : > { %v6039_v51 = vsel %vm14698_vm3, %v6016_v50, %v12553_v57  ;;  %5643 = vrot.lane.b32.xlu0 %v12166_v49, %s14402_s0  ;;  %vm14716_vm3 = vmmov %vm14715_vm10 }
 0x666   : > { %6060 = vst [vmem:[#allocation5 + $0x4e0] sm:$0xff] %v6039_v51  ;;  %5655 = vrot.lane.b32.xlu1 %v12206_v13, %s14402_s0 }
 0x667   : > { %v12565_v11 = vpop.permute.xlu0 %5244 }
 0x668   : > { %v12563_v1 = vpop.permute.xlu1 %6098  ;;  %14700 = vst [vmem:[#allocation57_spill] sm:$0xff] %v12565_v11 }
 0x669   : > { %14699 = vst [vmem:[#allocation67_spill] sm:$0xff] %v12563_v1  ;;  %v6120_v34 = vsel %vm14701_vm15, %v6097_v7, %v12563_v1  ;;  %5724 = vrot.lane.b32.xlu0 %v12166_v49, %s14403_s19  ;;  %vm14719_vm15 = vcmask 318464  }
 0x66a   : > { %6141 = vst [vmem:[#allocation5 + $0x540] sm:$0xff] %v6120_v34  ;;  %5736 = vrot.lane.b32.xlu1 %v12206_v13, %s14403_s19 }
 0x66b   : > { %v12575_v48 = vpop.permute.xlu0 %5325 }
 0x66c   : > { %v12573_v50 = vpop.permute.xlu1 %6179  ;;  %14703 = vst [vmem:[#allocation59_spill] sm:$0xff] %v12575_v48 }
 0x66d   : > { %14702 = vst [vmem:[#allocation58_spill] sm:$0xff] %v12573_v50  ;;  %v6201_v51 = vsel %vm14704_vm7, %v6178_v16, %v12573_v50  ;;  %5907 = vrot.lane.b32.xlu0 %v12166_v49, %s14444_s2  ;;  %v7272_v16 = vunpack.c.0.s8 %v7271_v38  ;;  %vm14720_vm7 = vmmov %vm14719_vm15 }
 0x66e   : > { %6222 = vst [vmem:[#allocation5 + $0x5a0] sm:$0xff] %v6201_v51  ;;  %5827 = vrot.lane.b32.xlu1 %v12206_v13, %s14428_s1 }
 0x66f   : > { %v12583_v34 = vpop.permute.xlu0 %5406 }
 0x670   : > { %v5000_v7 = vpop.permute.xlu1 %4999  ;;  %14705 = vst [vmem:[#allocation50_spill] sm:$0xff] %v12583_v34 }
 0x671   : > { %v5016_v58 = vsel %vm14706_vm12, %v12077_v60, %v5000_v7  ;;  %v5017_v23 = vsel %vm14707_vm4, %v5000_v7, %v12536_v31  ;;  %6019 = vrot.lane.b32.xlu0 %v12166_v49, %s14461_s5  ;;  %v12604_v31 = vsub.s32 %v7272_v16, %v14711_v47  ;;  %vm14722_vm12 = vcmask 310272  }
 0x672   : > { %6031 = vrot.lane.b32.xlu1 %v12206_v13, %s14461_s5  ;;  %7354 = vmatprep.subr.bf16.mxu1 %v5017_v23  ;;  %vm14724_vm4 = vmmov %vm14722_vm12 }
 0x673   : > { %v12593_v42 = vpop.permute.xlu0 %5487  ;;  %7355 = vmatpush1.bf16.msra.mxu1 %v5016_v58  ;;  %14712 = vst [vmem:[#allocation33_spill] sm:$0xff] %v12604_v31 }
 0x674   : > { %v5081_v51 = vpop.permute.xlu1 %5080  ;;  %14708 = vst [vmem:[#allocation60_spill] sm:$0xff] %v12593_v42 }
 0x675   : > { %v12597_v60 = vsel %vm14709_vm13, %v12083_v40, %v5081_v51  ;;  %v12601_v7 = vsel %vm14710_vm6, %v5081_v51, %v12544_v18  ;;  %6100 = vrot.lane.b32.xlu0 %v12166_v49, %s14473_s3  ;;  %v12614_v40 = vld.sshfl [vmem:[%s14025_s11] sm:$0xff pattern:$0x75316420]  ;;  %vm14726_vm13 = vcmask 179200  }
 0x676   : > { %5119 = vst [vmem:[#allocation5 + $0x80] sm:$0xff] %v12597_v60  ;;  %6112 = vrot.lane.b32.xlu1 %v12206_v13, %s14473_s3  ;;  %14713 = vst [vmem:[#allocation31_spill] sm:$0xff] %v12614_v40  ;;  %v7284_v51 = vcombine.high %v12614_v40, %v12614_v40  ;;  %v12646_v40 = vld [vmem:[#allocation3 + $0x20] sm:$0xff] }
 0x677   : > { %v12616_v58 = vpop.permute.xlu0 %5568  ;;  %vm14728_vm6 = vmmov %vm14726_vm13 }
 0x678   : > { %v5162_v23 = vpop.permute.xlu1 %5161  ;;  %14714 = vst [vmem:[#allocation36_spill] sm:$0xff] %v12616_v58  ;;  %v12634_v47 = vrot.slane %v7284_v51, %v12604_v31 }
 0x679   : > { %v12620_v38 = vsel %vm14715_vm10, %v12089_v5, %v5162_v23  ;;  %v12624_v16 = vsel %vm14716_vm3, %v5162_v23, %v12555_v44  ;;  %6181 = vrot.lane.b32.xlu0 %v12166_v49, %s14478_s4  ;;  %vm14731_vm10 = vcmask 171008  }
 0x67a   : > { %5200 = vst [vmem:[#allocation5 + $0xe0] sm:$0xff] %v12620_v38  ;;  %5925 = vrot.lane.b32.xlu1 %v12208_v29, %s14444_s2  ;;  %14717 = vst [vmem:[#allocation62_spill] sm:$0xff] %v12634_v47  ;;  %7384 = vmatprep.mubr.bf16.mxu1 %v12634_v47 }
 0x67b   : > { %v12636_v18 = vpop.permute.xlu0 %5649  ;;  %7589 = vmatprep.mubr.bf16.mxu0 %v12634_v47  ;;  %vm14733_vm3 = vmmov %vm14731_vm10 }
 0x67c   : > { %v5243_v5 = vpop.permute.xlu1 %5242  ;;  %14718 = vst [vmem:[#allocation51_spill] sm:$0xff] %v12636_v18 }
 0x67d   : > { %v12640_v23 = vsel %vm14719_vm15, %v12095_v6, %v5243_v5  ;;  %v12644_v44 = vsel %vm14720_vm7, %v5243_v5, %v12565_v11  ;;  %5813 = vrot.lane.b32.xlu0 %v12646_v40, %s14428_s1  ;;  %vm14735_vm15 = vcmask 7168   ;;  %vm14736_vm7 = vcmask 162816  }
 0x67e   : > { %5281 = vst [vmem:[#allocation5 + $0x140] sm:$0xff] %v12640_v23  ;;  %5282 = vst [vmem:[#allocation5 + $0x148] sm:$0xff] %v12644_v44  ;;  %6033 = vrot.lane.b32.xlu1 %v12208_v29, %s14461_s5 }
 0x67f   : > { %v12656_v51 = vpop.permute.xlu0 %5730 }
 0x680   : > { %v5324_v6 = vpop.permute.xlu1 %5323  ;;  %14721 = vst [vmem:[#allocation35_spill] sm:$0xff] %v12656_v51 }
 0x681   : > { %v12660_v5 = vsel %vm14722_vm12, %v12105_v2, %v5324_v6  ;;  %v12664_v11 = vsel %vm14724_vm4, %v5324_v6, %v12575_v48  ;;  %6021 = vrot.lane.b32.xlu0 %v12646_v40, %s14461_s5  ;;  %vm14738_vm12 = vmmov %vm14736_vm7  ;;  %vm14740_vm4 = vcmask 154624  }
 0x682   : > { %14723 = vst [vmem:[#allocation61_spill] sm:$0xff] %v12660_v5  ;;  %5362 = vst [vmem:[#allocation5 + $0x1a0] sm:$0xff] %v12660_v5  ;;  %6114 = vrot.lane.b32.xlu1 %v12208_v29, %s14473_s3 }
 0x683   : > { %5363 = vst [vmem:[#allocation5 + $0x1a8] sm:$0xff] %v12664_v11  ;;  %v12672_v31 = vpop.permute.xlu0 %5915 }
 0x684   : > { %v5405_v47 = vpop.permute.xlu1 %5404  ;;  %14725 = vst [vmem:[#allocation55_spill] sm:$0xff] %v12672_v31 }
 0x685   : > { %v12676_v2 = vsel %vm14726_vm13, %v12192_v41, %v5405_v47  ;;  %v12680_v6 = vsel %vm14728_vm6, %v5405_v47, %v12583_v34  ;;  %6102 = vrot.lane.b32.xlu0 %v12646_v40, %s14473_s3  ;;  %vm14742_vm13 = vmmov %vm14740_vm4  ;;  %vm14744_vm6 = vcmask 146432  }
 0x686   : > { %14727 = vst [vmem:[#allocation63_spill] sm:$0xff] %v12676_v2  ;;  %14729 = vst [vmem:[#allocation52_spill] sm:$0xff] %v12680_v6  ;;  %5811 = vrot.lane.b32.xlu1 %v12166_v49, %s14428_s1 }
 0x687   : > { %5443 = vst [vmem:[#allocation5 + $0x200] sm:$0xff] %v12676_v2  ;;  %5444 = vst [vmem:[#allocation5 + $0x208] sm:$0xff] %v12680_v6  ;;  %v12688_v50 = vpop.permute.xlu0 %5923  ;;  %v12796_v6 = vld [vmem:[#allocation3 + $0x38] sm:$0xff] }
 0x688   : > { %v5486_v48 = vpop.permute.xlu1 %5485  ;;  %14730 = vst [vmem:[#allocation42_spill] sm:$0xff] %v12688_v50  ;;  %v5939_v34 = vsel %vm14735_vm15, %v12376_v55, %v12688_v50  ;;  %v12798_v50 = vld [vmem:[#allocation3 + $0x48] sm:$0xff] }
 0x689   : > { %v12692_v41 = vsel %vm14731_vm10, %v12262_v9, %v5486_v48  ;;  %v12696_v47 = vsel %vm14733_vm3, %v5486_v48, %v12593_v42  ;;  %5963 = vst [vmem:[#allocation5 + $0x460] sm:$0xff] %v5939_v34  ;;  %6183 = vrot.lane.b32.xlu0 %v12646_v40, %s14478_s4  ;;  %vm14745_vm10 = vmmov %vm14744_vm6 }
 0x68a   : > { %14732 = vst [vmem:[#allocation48_spill] sm:$0xff] %v12692_v41  ;;  %14734 = vst [vmem:[#allocation40_spill] sm:$0xff] %v12696_v47  ;;  %5909 = vrot.lane.b32.xlu1 %v12646_v40, %s14444_s2 }
 0x68b   : > { %5524 = vst [vmem:[#allocation5 + $0x260] sm:$0xff] %v12692_v41  ;;  %5525 = vst [vmem:[#allocation5 + $0x268] sm:$0xff] %v12696_v47  ;;  %v12707_v9 = vpop.permute.xlu0 %5009 }
 0x68c   : > { %v5567_v49 = vpop.permute.xlu1 %5566  ;;  %vm14747_vm3 = vmmov %vm14735_vm15 }
 0x68d   : > { %v12711_v48 = vsel %vm14736_vm7, %v12292_v56, %v5567_v49  ;;  %v12715_v55 = vsel %vm14738_vm12, %v5567_v49, %v12616_v58  ;;  %5003 = vrot.lane.b32.xlu0 %v12212_v24, %s14388_s22  ;;  %v12733_v58 = vld [vmem:[#allocation3 + $0x50] sm:$0xff]  ;;  %vm14748_vm15 = vmmov %vm14747_vm3  ;;  %vm14750_vm7 = vcmask 15360   ;;  %vm14753_vm12 = vcmask 1039360  }
 0x68e   : > { %14737 = vst [vmem:[#allocation46_spill] sm:$0xff] %v12711_v48  ;;  %14739 = vst [vmem:[#allocation44_spill] sm:$0xff] %v12715_v55  ;;  %5917 = vrot.lane.b32.xlu1 %v12212_v24, %s14444_s2 }
 0x68f   : > { %5605 = vst [vmem:[#allocation5 + $0x2c0] sm:$0xff] %v12711_v48  ;;  %5606 = vst [vmem:[#allocation5 + $0x2c8] sm:$0xff] %v12715_v55  ;;  %v12723_v42 = vpop.permute.xlu0 %5090 }
 0x690   : > { %v5648_v34 = vpop.permute.xlu1 %5647 }
 0x691   : > { %v12727_v56 = vsel %vm14740_vm4, %v12314_v3, %v5648_v34  ;;  %v12731_v49 = vsel %vm14742_vm13, %v5648_v34, %v12636_v18  ;;  %5084 = vrot.lane.b32.xlu0 %v12212_v24, %s14298_s13  ;;  %vm14755_vm4 = vcmask 1031168   ;;  %vm14756_vm13 = vcmask 900096  }
 0x692   : > { %14741 = vst [vmem:[#allocation39_spill] sm:$0xff] %v12727_v56  ;;  %14743 = vst [vmem:[#allocation43_spill] sm:$0xff] %v12731_v49  ;;  %5823 = vrot.lane.b32.xlu1 %v12733_v58, %s14428_s1 }
 0x693   : > { %5687 = vst [vmem:[#allocation5 + $0x328] sm:$0xff] %v12731_v49  ;;  %v12740_v55 = vpop.permute.xlu0 %5171 }
 0x694   : > { %v5729_v48 = vpop.permute.xlu1 %5728 }
 0x695   : > { %v5745_v3 = vsel %vm14744_vm6, %v12340_v33, %v5729_v48  ;;  %v12746_v34 = vsel %vm14745_vm10, %v5729_v48, %v12656_v51  ;;  %5165 = vrot.lane.b32.xlu0 %v12212_v24, %s14335_s30  ;;  %v12765_v51 = vld [vmem:[#allocation3 + $0x10] sm:$0xff]  ;;  %vm14757_vm6 = vcmask 343040  }
 0x696   : > { %14746 = vst [vmem:[#allocation49_spill] sm:$0xff] %v12746_v34  ;;  %5767 = vst [vmem:[#allocation5 + $0x380] sm:$0xff] %v5745_v3  ;;  %6195 = vrot.lane.b32.xlu1 %v12208_v29, %s14478_s4 }
 0x697   : > { %5768 = vst [vmem:[#allocation5 + $0x388] sm:$0xff] %v12746_v34  ;;  %v12753_v56 = vpop.permute.xlu0 %5252  ;;  %vm14758_vm10 = vmmov %vm14757_vm6 }
 0x698   : > { %v5914_v18 = vpop.permute.xlu1 %5913 }
 0x699   : > { %v5935_v49 = vsel %vm14747_vm3, %v12374_v46, %v5914_v18  ;;  %v5936_v33 = vsel %vm14748_vm15, %v5914_v18, %v12672_v31  ;;  %5246 = vrot.lane.b32.xlu0 %v12212_v24, %s14361_s23  ;;  %v12781_v31 = vld [vmem:[#allocation3 + $0x40] sm:$0xff]  ;;  %vm14759_vm3 = vmmov %vm14757_vm6  ;;  %vm14760_vm15 = vcmask 334848  }
 0x69a   : > { %5959 = vst [vmem:[#allocation5 + $0x440] sm:$0xff] %v5935_v49  ;;  %5960 = vst [vmem:[#allocation5 + $0x448] sm:$0xff] %v5936_v33  ;;  %6193 = vrot.lane.b32.xlu1 %v12206_v13, %s14478_s4  ;;  %v12773_v49 = vld [vmem:[#allocation3 + $0x8] sm:$0xff] }
 0x69b   : > { %v12763_v3 = vpop.permute.xlu0 %5333 }
 0x69c   : > { %v6024_v48 = vpop.permute.xlu1 %6023 }
 0x69d   : > { %5327 = vrot.lane.b32.xlu0 %v12212_v24, %s14367_s24 }
 0x69e   : > { %6260 = vrot.lane.b32.xlu1 %v12765_v51, %s14484_s7 }
 0x69f   : > { %v12771_v18 = vpop.permute.xlu0 %5414 }
 0x6a0   : > { %v6105_v46 = vpop.permute.xlu1 %6104 }
 0x6a1   : > { %5408 = vrot.lane.b32.xlu0 %v12212_v24, %s14375_s16 }
 0x6a2   : > { %6258 = vrot.lane.b32.xlu1 %v12773_v49, %s14484_s7 }
 0x6a3   : > { %v12779_v34 = vpop.permute.xlu0 %5495 }
 0x6a4   : > { %v6186_v33 = vpop.permute.xlu1 %6185 }
 0x6a5   : > { %5489 = vrot.lane.b32.xlu0 %v12212_v24, %s14377_s28 }
 0x6a6   : > { %6268 = vrot.lane.b32.xlu1 %v12781_v31, %s14484_s7 }
 0x6a7   : > { %v12789_v47 = vpop.permute.xlu0 %5576 }
 0x6a8   : > { %v12787_v41 = vpop.permute.xlu1 %5819 }
 0x6a9   : > { %14749 = vst [vmem:[#allocation41_spill] sm:$0xff] %v12787_v41  ;;  %v12794_v2 = vsel %vm14750_vm7, %v12527_v54, %v12787_v41  ;;  %5570 = vrot.lane.b32.xlu0 %v12798_v50, %s14401_s27  ;;  %vm14761_vm7 = vmmov %vm14760_vm15 }
 0x6aa   : > { %14751 = vst [vmem:[#allocation47_spill] sm:$0xff] %v12794_v2  ;;  %6266 = vrot.lane.b32.xlu1 %v12796_v6, %s14484_s7 }
 0x6ab   : > { %v12806_v1 = vpop.permute.xlu0 %5657 }
 0x6ac   : > { %v12804_v24 = vpop.permute.xlu1 %6025 }
 0x6ad   : > { %14752 = vst [vmem:[#allocation45_spill] sm:$0xff] %v12804_v24  ;;  %v6042_v5 = vsel %vm14753_vm12, %v6024_v48, %v12804_v24  ;;  %5651 = vrot.lane.b32.xlu0 %v12798_v50, %s14402_s0  ;;  %vm14762_vm12 = vmmov %vm14761_vm7 }
 0x6ae   : > { %6064 = vst [vmem:[#allocation5 + $0x500] sm:$0xff] %v6042_v5  ;;  %6276 = vrot.lane.b32.xlu1 %v12208_v29, %s14484_s7 }
 0x6af   : > { %v12816_v2 = vpop.permute.xlu0 %5738 }
 0x6b0   : > { %v12814_v54 = vpop.permute.xlu1 %6106 }
 0x6b1   : > { %14754 = vst [vmem:[#allocation32_spill] sm:$0xff] %v12814_v54  ;;  %v6123_v41 = vsel %vm14755_vm4, %v6105_v46, %v12814_v54  ;;  %5732 = vrot.lane.b32.xlu0 %v12798_v50, %s14403_s19  ;;  %vm14763_vm4 = vcmask 326656  }
 0x6b2   : > { %6145 = vst [vmem:[#allocation5 + $0x560] sm:$0xff] %v6123_v41  ;;  %6274 = vrot.lane.b32.xlu1 %v12206_v13, %s14484_s7 }
 0x6b3   : > { %v12826_v29 = vpop.permute.xlu0 %5829 }
 0x6b4   : > { %v12824_v5 = vpop.permute.xlu1 %6187 }
 0x6b5   : > { %v6204_v48 = vsel %vm14756_vm13, %v6186_v33, %v12824_v5  ;;  %5821 = vrot.lane.b32.xlu0 %v12798_v50, %s14428_s1  ;;  %vm14764_vm13 = vmmov %vm14763_vm4 }
 0x6b6   : > { %6226 = vst [vmem:[#allocation5 + $0x5c0] sm:$0xff] %v6204_v48  ;;  %6341 = vrot.lane.b32.xlu1 %v12765_v51, %s14496_s8 }
 0x6b7   : > { %v4996_v46 = vpop.permute.xlu0 %4995 }
 0x6b8   : > { %v5008_v41 = vpop.permute.xlu1 %5007  ;;  %v5015_v24 = vsel %vm14759_vm3, %v12392_v20, %v4996_v46  ;;  %5037 = vst.msk [vmem:[#allocation5 + $0x18] sm:$0xff] %vm1732_vm2, %v4996_v46 }
 0x6b9   : > { %v5019_v13 = vsel %vm14757_vm6, %v12079_v52, %v5008_v41  ;;  %v5020_v54 = vsel %vm14758_vm10, %v5008_v41, %v12707_v9  ;;  %5036 = vst [vmem:[#allocation5 + $0x10] sm:$0xff] %v5015_v24  ;;  %6027 = vrot.lane.b32.xlu0 %v12798_v50, %s14461_s5  ;;  %vm14765_vm6 = vmmov %vm14763_vm4  ;;  %vm14766_vm10 = vcmask 318464  }
 0x6ba   : > { %6339 = vrot.lane.b32.xlu1 %v12773_v49, %s14496_s8  ;;  %7356 = vmatprep.subr.bf16.mxu1 %v5020_v54  ;;  %vm14767_vm3 = vmmov %vm14766_vm10 }
 0x6bb   : > { %v5077_v48 = vpop.permute.xlu0 %5076  ;;  %7357 = vmatpush1.bf16.msra.mxu1 %v5019_v13 }
 0x6bc   : > { %v5089_v33 = vpop.permute.xlu1 %5088  ;;  %v5096_v20 = vsel %vm14762_vm12, %v12405_v59, %v5077_v48  ;;  %5118 = vst.msk [vmem:[#allocation5 + $0x78] sm:$0xff] %vm1732_vm2, %v5077_v48  ;;  %7358 = vmatprep.subr.bf16.mxu1 %v12413_v12  ;;  %v12882_v48 = vld [vmem:[#allocation3 + $0x70] sm:$0xff] }
 0x6bd   : > { %v5100_v52 = vsel %vm14760_vm15, %v12085_v61, %v5089_v33  ;;  %v5101_v41 = vsel %vm14761_vm7, %v5089_v33, %v12723_v42  ;;  %5117 = vst [vmem:[#allocation5 + $0x70] sm:$0xff] %v5096_v20  ;;  %6108 = vrot.lane.b32.xlu0 %v12798_v50, %s14473_s3  ;;  %vm14768_vm15 = vmmov %vm14767_vm3  ;;  %vm14769_vm7 = vcmask 310272   ;;  %v12899_v20 = vld [vmem:[#allocation3 + $0x68] sm:$0xff] }
 0x6be   : > { %6349 = vrot.lane.b32.xlu1 %v12781_v31, %s14496_s8  ;;  %vm14770_vm12 = vmmov %vm14769_vm7 }
 0x6bf   : > { %v5158_v46 = vpop.permute.xlu0 %5157  ;;  %v6968_v61 = vld [vmem:[#allocation5 + $0x18] sm:$0xff]  ;;  %7359 = vmatpush1.bf16.msra.mxu1 %v12396_v8 }
 0x6c0   : > { %v5170_v54 = vpop.permute.xlu1 %5169  ;;  %v5177_v12 = vsel %vm14765_vm6, %v12421_v45, %v5158_v46  ;;  %5199 = vst.msk [vmem:[#allocation5 + $0xd8] sm:$0xff] %vm1732_vm2, %v5158_v46  ;;  %7557 = vmatprep.subr.bf16.mxu0 %v6968_v61  ;;  %7360 = vmatprep.subr.bf16.mxu1 %v12601_v7  ;;  %v12919_v46 = vld [vmem:[#allocation3 + $0x78] sm:$0xff] }
 0x6c1   : > { %v5181_v13 = vsel %vm14763_vm4, %v12091_v15, %v5170_v54  ;;  %v5182_v59 = vsel %vm14764_vm13, %v5170_v54, %v12740_v55  ;;  %5198 = vst [vmem:[#allocation5 + $0xd0] sm:$0xff] %v5177_v12  ;;  %6189 = vrot.lane.b32.xlu0 %v12798_v50, %s14478_s4  ;;  %7558 = vmatpush1.bf16.msra.mxu0 %v5015_v24  ;;  %vm14771_vm4 = vmmov %vm14769_vm7  ;;  %vm14772_vm13 = vcmask 179200  }
 0x6c2   : > { %6347 = vrot.lane.b32.xlu1 %v12796_v6, %s14496_s8  ;;  %vm14773_vm6 = vmmov %vm14772_vm13 }
 0x6c3   : > { %v5239_v8 = vpop.permute.xlu0 %5238  ;;  %7361 = vmatpush1.bf16.msra.mxu1 %v12597_v60 }
 0x6c4   : > { %v5251_v15 = vpop.permute.xlu1 %5250  ;;  %v5258_v7 = vsel %vm14768_vm15, %v12437_v25, %v5239_v8  ;;  %5280 = vst.msk [vmem:[#allocation5 + $0x138] sm:$0xff] %vm1732_vm2, %v5239_v8  ;;  %7362 = vmatprep.subr.bf16.mxu1 %v5101_v41  ;;  %v12973_v8 = vld [vmem:[#allocation3 + $0x80] sm:$0xff] }
 0x6c5   : > { %v12873_v45 = vsel %vm14766_vm10, %v12097_v36, %v5251_v15  ;;  %v12877_v33 = vsel %vm14767_vm3, %v5251_v15, %v12753_v56  ;;  %5279 = vst [vmem:[#allocation5 + $0x130] sm:$0xff] %v5258_v7  ;;  %5919 = vrot.lane.b32.xlu0 %v12733_v58, %s14444_s2  ;;  %vm14774_vm10 = vmmov %vm14773_vm6  ;;  %vm14775_vm3 = vcmask 171008   ;;  %v12975_v7 = vld [vmem:[#allocation3 + $0x18] sm:$0xff] }
 0x6c6   : > { %6357 = vrot.lane.b32.xlu1 %v12882_v48, %s14496_s8  ;;  %vm14776_vm15 = vmmov %vm14775_vm3 }
 0x6c7   : > { %v5320_v60 = vpop.permute.xlu0 %5319  ;;  %7363 = vmatpush1.bf16.msra.mxu1 %v5100_v52 }
 0x6c8   : > { %v5332_v36 = vpop.permute.xlu1 %5331  ;;  %v5339_v41 = vsel %vm14771_vm4, %v12453_v35, %v5320_v60  ;;  %5361 = vst.msk [vmem:[#allocation5 + $0x198] sm:$0xff] %vm1732_vm2, %v5320_v60  ;;  %7364 = vmatprep.subr.bf16.mxu1 %v12429_v10 }
 0x6c9   : > { %v12890_v24 = vsel %vm14769_vm7, %v12132_v0, %v5332_v36  ;;  %v12894_v25 = vsel %vm14770_vm12, %v5332_v36, %v12763_v3  ;;  %5360 = vst [vmem:[#allocation5 + $0x190] sm:$0xff] %v5339_v41  ;;  %6029 = vrot.lane.b32.xlu0 %v12733_v58, %s14461_s5  ;;  %vm14777_vm7 = vmmov %vm14775_vm3  ;;  %vm14778_vm12 = vcmask 162816  }
 0x6ca   : > { %5366 = vst [vmem:[#allocation5 + $0x1c0] sm:$0xff] %v12890_v24  ;;  %6355 = vrot.lane.b32.xlu1 %v12899_v20, %s14496_s8  ;;  %vm14779_vm4 = vmmov %vm14778_vm12 }
 0x6cb   : > { %v5401_v52 = vpop.permute.xlu0 %5400  ;;  %7365 = vmatpush1.bf16.msra.mxu1 %v12409_v21 }
 0x6cc   : > { %v5413_v0 = vpop.permute.xlu1 %5412  ;;  %v5420_v54 = vsel %vm14774_vm10, %v12466_v32, %v5401_v52  ;;  %5442 = vst.msk [vmem:[#allocation5 + $0x1f8] sm:$0xff] %vm1732_vm2, %v5401_v52  ;;  %7366 = vmatprep.subr.bf16.mxu1 %v12624_v16  ;;  %v14792_v52 = vld [vmem:[#allocation67_spill] sm:$0xff] }
 0x6cd   : > { %v12910_v35 = vsel %vm14772_vm13, %v12226_v28, %v5413_v0  ;;  %v12914_v10 = vsel %vm14773_vm6, %v5413_v0, %v12771_v18  ;;  %5441 = vst [vmem:[#allocation5 + $0x1f0] sm:$0xff] %v5420_v54  ;;  %6110 = vrot.lane.b32.xlu0 %v12733_v58, %s14473_s3  ;;  %vm14780_vm13 = vmmov %vm14779_vm4  ;;  %vm14781_vm6 = vcmask 154624   ;;  %v14791_v0 = vld [vmem:[#allocation61_spill] sm:$0xff] }
 0x6ce   : > { %5447 = vst [vmem:[#allocation5 + $0x220] sm:$0xff] %v12910_v35  ;;  %5831 = vrot.lane.b32.xlu1 %v12919_v46, %s14428_s1  ;;  %vm14782_vm10 = vmmov %vm14781_vm6 }
 0x6cf   : > { %v5482_v21 = vpop.permute.xlu0 %5481  ;;  %7367 = vmatpush1.bf16.msra.mxu1 %v12620_v38 }
 0x6d0   : > { %v5494_v28 = vpop.permute.xlu1 %5493  ;;  %v5501_v61 = vsel %vm14777_vm7, %v12479_v43, %v5482_v21  ;;  %5523 = vst.msk [vmem:[#allocation5 + $0x258] sm:$0xff] %vm1732_vm2, %v5482_v21  ;;  %7368 = vmatprep.subr.bf16.mxu1 %v5182_v59  ;;  %v14796_v21 = vld [vmem:[#allocation58_spill] sm:$0xff] }
 0x6d1   : > { %v12930_v32 = vsel %vm14775_vm3, %v12276_v26, %v5494_v28  ;;  %v12934_v16 = vsel %vm14776_vm15, %v5494_v28, %v12779_v34  ;;  %5522 = vst [vmem:[#allocation5 + $0x250] sm:$0xff] %v5501_v61  ;;  %5011 = vrot.lane.b32.xlu0 %v12919_v46, %s14388_s22  ;;  %vm14783_vm3 = vmmov %vm14781_vm6  ;;  %vm14784_vm15 = vcmask 146432   ;;  %v14798_v61 = vld [vmem:[#allocation38_spill] sm:$0xff] }
 0x6d2   : > { %5528 = vst [vmem:[#allocation5 + $0x280] sm:$0xff] %v12930_v32  ;;  %6422 = vrot.lane.b32.xlu1 %v12765_v51, %s14505_s17  ;;  %vm14785_vm7 = vmmov %vm14784_vm15 }
 0x6d3   : > { %v5563_v38 = vpop.permute.xlu0 %5562  ;;  %7369 = vmatpush1.bf16.msra.mxu1 %v5181_v13 }
 0x6d4   : > { %v5575_v26 = vpop.permute.xlu1 %5574  ;;  %v5582_v59 = vsel %vm14780_vm13, %v12489_v14, %v5563_v38  ;;  %5604 = vst.msk [vmem:[#allocation5 + $0x2b8] sm:$0xff] %vm1732_vm2, %v5563_v38  ;;  %7370 = vmatprep.subr.bf16.mxu1 %v12445_v30  ;;  %v14799_v38 = vld [vmem:[#allocation33_spill] sm:$0xff] }
 0x6d5   : > { %v12946_v12 = vsel %vm14778_vm12, %v12298_v27, %v5575_v26  ;;  %v12950_v43 = vsel %vm14779_vm4, %v5575_v26, %v12789_v47  ;;  %5603 = vst [vmem:[#allocation5 + $0x2b0] sm:$0xff] %v5582_v59  ;;  %6191 = vrot.lane.b32.xlu0 %v12733_v58, %s14478_s4  ;;  %vm14786_vm12 = vmmov %vm14785_vm7  ;;  %vm14787_vm4 = vcmask 15360   ;;  %v7025_v26 = vld [vmem:[#allocation5 + $0x1e0] sm:$0xff] }
 0x6d6   : > { %5609 = vst [vmem:[#allocation5 + $0x2e0] sm:$0xff] %v12946_v12  ;;  %6420 = vrot.lane.b32.xlu1 %v12773_v49, %s14505_s17  ;;  %vm14788_vm13 = vmmov %vm14787_vm4 }
 0x6d7   : > { %v5644_v13 = vpop.permute.xlu0 %5643  ;;  %7371 = vmatpush1.bf16.msra.mxu1 %v12425_v19 }
 0x6d8   : > { %v5656_v27 = vpop.permute.xlu1 %5655  ;;  %v5663_v15 = vsel %vm14783_vm3, %v12499_v39, %v5644_v13  ;;  %5685 = vst.msk [vmem:[#allocation5 + $0x318] sm:$0xff] %vm1732_vm2, %v5644_v13  ;;  %7372 = vmatprep.subr.bf16.mxu1 %v12644_v44  ;;  %vm14793_vm3 = vcmask 1031168  }
 0x6d9   : > { %v12964_v14 = vsel %vm14781_vm6, %v12324_v4, %v5656_v27  ;;  %v12968_v30 = vsel %vm14782_vm10, %v5656_v27, %v12806_v1  ;;  %5684 = vst [vmem:[#allocation5 + $0x310] sm:$0xff] %v5663_v15  ;;  %6262 = vrot.lane.b32.xlu0 %v12975_v7, %s14484_s7  ;;  %vm14789_vm6 = vcmask 7168   ;;  %vm14790_vm10 = vcmask 1039360   ;;  %v14801_v15 = vld [vmem:[#allocation62_spill] sm:$0xff] }
 0x6da   : > { %5690 = vst [vmem:[#allocation5 + $0x340] sm:$0xff] %v12964_v14  ;;  %5929 = vrot.lane.b32.xlu1 %v12973_v8, %s14444_s2 }
 0x6db   : > { %v5725_v19 = vpop.permute.xlu0 %5724  ;;  %7373 = vmatpush1.bf16.msra.mxu1 %v12640_v23 }
 0x6dc   : > { %v5737_v4 = vpop.permute.xlu1 %5736  ;;  %v5744_v36 = vsel %vm14786_vm12, %v12509_v22, %v5725_v19  ;;  %5766 = vst.msk [vmem:[#allocation5 + $0x378] sm:$0xff] %vm1732_vm2, %v5725_v19  ;;  %7374 = vmatprep.subr.bf16.mxu1 %v12877_v33  ;;  %vm14802_vm12 = vmmov %vm14790_vm10 }
 0x6dd   : > { %v12986_v39 = vsel %vm14784_vm15, %v12346_v37, %v5737_v4  ;;  %v12990_v44 = vsel %vm14785_vm7, %v5737_v4, %v12816_v2  ;;  %5765 = vst [vmem:[#allocation5 + $0x370] sm:$0xff] %v5744_v36  ;;  %5092 = vrot.lane.b32.xlu0 %v12919_v46, %s14298_s13  ;;  %vm14795_vm15 = vmmov %vm14789_vm6  ;;  %vm14797_vm7 = vcmask 900096   ;;  %v13061_v4 = vcombine.high %v14801_v15, %v14801_v15  ;;  %v14803_v36 = vld [vmem:[#allocation52_spill] sm:$0xff] }
 0x6de   : > { %5771 = vst [vmem:[#allocation5 + $0x3a0] sm:$0xff] %v12986_v39  ;;  %6430 = vrot.lane.b32.xlu1 %v12781_v31, %s14505_s17 }
 0x6df   : > { %v13001_v23 = vpop.permute.xlu0 %5907  ;;  %7375 = vmatpush1.bf16.msra.mxu1 %v12873_v45 }
 0x6e0   : > { %v5828_v37 = vpop.permute.xlu1 %5827  ;;  %v5933_v60 = vsel %vm14789_vm6, %v12542_v62, %v13001_v23  ;;  %7376 = vmatprep.subr.bf16.mxu1 %v12459_v53  ;;  %vm14808_vm6 = vcmask 15360  }
 0x6e1   : > { %v13006_v22 = vsel %vm14787_vm4, %v12364_v17, %v5828_v37  ;;  %v13010_v33 = vsel %vm14788_vm13, %v5828_v37, %v12826_v29  ;;  %5957 = vst [vmem:[#allocation5 + $0x430] sm:$0xff] %v5933_v60  ;;  %6264 = vrot.lane.b32.xlu0 %v12646_v40, %s14484_s7  ;;  %vm14805_vm4 = vmmov %vm14793_vm3 }
 0x6e2   : > { %6428 = vrot.lane.b32.xlu1 %v12796_v6, %s14505_s17  ;;  %vm14806_vm13 = vmmov %vm14790_vm10 }
 0x6e3   : > { %v6020_v17 = vpop.permute.xlu0 %6019  ;;  %7377 = vmatpush1.bf16.msra.mxu1 %v12441_v63 }
 0x6e4   : > { %v6032_v45 = vpop.permute.xlu1 %6031  ;;  %v13023_v41 = vsel %vm14790_vm10, %v12553_v57, %v6020_v17  ;;  %7378 = vmatprep.subr.bf16.mxu1 %v12664_v11  ;;  %v14794_v11 = vld [vmem:[#allocation42_spill] sm:$0xff]  ;;  %vm14809_vm10 = vmmov %vm14808_vm6 }
 0x6e5   : > { %6270 = vrot.lane.b32.xlu0 %v12798_v50, %s14484_s7 }
 0x6e6   : > { %6438 = vrot.lane.b32.xlu1 %v12882_v48, %s14505_s17 }
 0x6e7   : > { %v6101_v62 = vpop.permute.xlu0 %6100  ;;  %7379 = vmatpush1.bf16.msra.mxu1 %v14791_v0  ;;  %v14804_v0 = vld [vmem:[#allocation63_spill] sm:$0xff] }
 0x6e8   : > { %v6113_v53 = vpop.permute.xlu1 %6112  ;;  %v6121_v54 = vsel %vm14793_vm3, %v14792_v52, %v6101_v62  ;;  %7380 = vmatprep.subr.bf16.mxu1 %v12894_v25 }
 0x6e9   : > { %6142 = vst [vmem:[#allocation5 + $0x548] sm:$0xff] %v6121_v54  ;;  %5173 = vrot.lane.b32.xlu0 %v12919_v46, %s14335_s30  ;;  %s14918_s30 = sld [smem:[#allocation15_spill]] }
 0x6ea   : > { %6436 = vrot.lane.b32.xlu1 %v12899_v20, %s14505_s17 }
 0x6eb   : > { %v6182_v57 = vpop.permute.xlu0 %6181  ;;  %7381 = vmatpush1.bf16.msra.mxu1 %v12890_v24  ;;  %v14800_v24 = vld [vmem:[#allocation31_spill] sm:$0xff] }
 0x6ec   : > { %v13038_v63 = vpop.permute.xlu1 %5925  ;;  %v6202_v25 = vsel %vm14797_vm7, %v14796_v21, %v6182_v57  ;;  %7382 = vmatprep.subr.bf16.mxu1 %v14798_v61  ;;  %v13055_v59 = vrot.slane %v14800_v24, %v14799_v38  ;;  %v7038_v21 = vld [vmem:[#allocation5 + $0x248] sm:$0xff] }
 0x6ed   : > { %v13044_v28 = vsel %vm14795_vm15, %v14794_v11, %v13038_v63  ;;  %6223 = vst [vmem:[#allocation5 + $0x5a8] sm:$0xff] %v6202_v25  ;;  %6272 = vrot.lane.b32.xlu0 %v12733_v58, %s14484_s7 }
 0x6ee   : > { %6503 = vrot.lane.b32.xlu1 %v12765_v51, %s14512_s25 }
 0x6ef   : > { %v5814_v13 = vpop.permute.xlu0 %5813  ;;  %7383 = vmatpush1.bf16.msra.mxu1 %v7025_v26 }
 0x6f0   : > { %v13057_v27 = vpop.permute.xlu1 %6033  ;;  %7393 = vmatprep.subr.bf16.mxu1 %v14803_v36  ;;  %v14814_v36 = vld [vmem:[#allocation54_spill] sm:$0xff] }
 0x6f1   : > { %v6045_v19 = vsel %vm14802_vm12, %v6032_v45, %v13057_v27  ;;  %6343 = vrot.lane.b32.xlu0 %v12975_v7, %s14496_s8  ;;  %vm14813_vm12 = vmmov %vm14795_vm15 }
 0x6f2   : > { %6068 = vst [vmem:[#allocation5 + $0x520] sm:$0xff] %v6045_v19  ;;  %6501 = vrot.lane.b32.xlu1 %v12773_v49, %s14512_s25  ;;  %7385 = vmatmul.mubr.bf16.vlgmr.msra.gmra.mrb[28].mxu1 %v13055_v59  ;;  %v14811_v19 = vld [vmem:[#allocation48_spill] sm:$0xff] }
 0x6f3   : > { %v6022_v60 = vpop.permute.xlu0 %6021  ;;  %7394 = vmatpush1.bf16.msra.mxu1 %v14804_v0  ;;  %7425 = vmatprep.mubr.bf16.mxu1 %v13061_v4 }
 0x6f4   : > { %v13071_v37 = vpop.permute.xlu1 %6114  ;;  %v6041_v52 = vsel %vm14806_vm13, %v6020_v17, %v6022_v60  ;;  %6063 = vst.msk [vmem:[#allocation5 + $0x4f8] sm:$0xff] %vm1732_vm2, %v6022_v60  ;;  %7395 = vmatprep.subr.bf16.mxu1 %v12914_v10  ;;  %vm14817_vm13 = vcmask 334848  }
 0x6f5   : > { %v6126_v45 = vsel %vm14805_vm4, %v6113_v53, %v13071_v37  ;;  %6062 = vst [vmem:[#allocation5 + $0x4f0] sm:$0xff] %v6041_v52  ;;  %5254 = vrot.lane.b32.xlu0 %v12919_v46, %s14361_s23  ;;  %v14807_v53 = vld [vmem:[#allocation65_spill] sm:$0xff]  ;;  %vm14815_vm4 = vcmask 343040   ;;  %v14816_v52 = vld [vmem:[#allocation66_spill] sm:$0xff]  ;;  %s14919_s23 = sld [smem:[#allocation18_spill]] }
 0x6f6   : > { %6149 = vst [vmem:[#allocation5 + $0x580] sm:$0xff] %v6126_v45  ;;  %6511 = vrot.lane.b32.xlu1 %v12781_v31, %s14512_s25  ;;  %v7050_v45 = vld [vmem:[#allocation5 + $0x2a8] sm:$0xff] }
 0x6f7   : > { %v6103_v11 = vpop.permute.xlu0 %6102  ;;  %7396 = vmatpush1.bf16.msra.mxu1 %v12910_v35  ;;  %v7037_v35 = vld [vmem:[#allocation5 + $0x240] sm:$0xff] }
 0x6f8   : > { %v5812_v54 = vpop.permute.xlu1 %5811  ;;  %v6122_v10 = vsel %vm14793_vm3, %v6101_v62, %v6103_v11  ;;  %6144 = vst.msk [vmem:[#allocation5 + $0x558] sm:$0xff] %vm1732_vm2, %v6103_v11  ;;  %7397 = vmatprep.subr.bf16.mxu1 %v7038_v21  ;;  %vm14824_vm3 = vcmask 318464  }
 0x6f9   : > { %v5837_v17 = vsel %vm14808_vm6, %v14807_v53, %v5812_v54  ;;  %v5838_v25 = vsel %vm14809_vm10, %v5812_v54, %v5814_v13  ;;  %6143 = vst [vmem:[#allocation5 + $0x550] sm:$0xff] %v6122_v10  ;;  %6345 = vrot.lane.b32.xlu0 %v12646_v40, %s14496_s8  ;;  %v14810_v13 = vld [vmem:[#allocation40_spill] sm:$0xff]  ;;  %vm14819_vm6 = vcmask 326656   ;;  %vm14822_vm10 = vmmov %vm14797_vm7 }
 0x6fa   : > { %5861 = vst [vmem:[#allocation5 + $0x3d0] sm:$0xff] %v5837_v17  ;;  %5862 = vst.msk [vmem:[#allocation5 + $0x3d8] sm:$0xff] %vm1732_vm2, %v5838_v25  ;;  %6509 = vrot.lane.b32.xlu1 %v12796_v6, %s14512_s25  ;;  %v14820_v25 = vld [vmem:[#allocation44_spill] sm:$0xff] }
 0x6fb   : > { %v6184_v26 = vpop.permute.xlu0 %6183  ;;  %7398 = vmatpush1.bf16.msra.mxu1 %v7037_v35  ;;  %v14821_v35 = vld [vmem:[#allocation46_spill] sm:$0xff] }
 0x6fc   : > { %v5910_v61 = vpop.permute.xlu1 %5909  ;;  %v6203_v24 = vsel %vm14797_vm7, %v6182_v57, %v6184_v26  ;;  %6225 = vst.msk [vmem:[#allocation5 + $0x5b8] sm:$0xff] %vm1732_vm2, %v6184_v26  ;;  %7399 = vmatprep.subr.bf16.mxu1 %v14810_v13  ;;  %v14823_v26 = vld [vmem:[#allocation57_spill] sm:$0xff]  ;;  %vm14827_vm7 = vcmask 891904  }
 0x6fd   : > { %v5934_v62 = vsel %vm14795_vm15, %v13001_v23, %v5910_v61  ;;  %6224 = vst [vmem:[#allocation5 + $0x5b0] sm:$0xff] %v6203_v24  ;;  %6351 = vrot.lane.b32.xlu0 %v12798_v50, %s14496_s8  ;;  %v14812_v23 = vld [vmem:[#allocation55_spill] sm:$0xff]  ;;  %vm14826_vm15 = vcmask 310272  }
 0x6fe   : > { %5958 = vst.msk [vmem:[#allocation5 + $0x438] sm:$0xff] %vm1732_vm2, %v5934_v62  ;;  %6519 = vrot.lane.b32.xlu1 %v12882_v48, %s14512_s25 }
 0x6ff   : > { %v5004_v15 = vpop.permute.xlu0 %5003  ;;  %7400 = vmatpush1.bf16.msra.mxu1 %v14811_v19  ;;  %v14825_v19 = vld [vmem:[#allocation59_spill] sm:$0xff] }
 0x700   : > { %v13105_v40 = vpop.permute.xlu1 %5917  ;;  %v5018_v60 = vsel %vm14815_vm4, %v14814_v36, %v5004_v15  ;;  %5041 = vst.msk [vmem:[#allocation5 + $0x38] sm:$0xff] %vm1732_vm2, %v5004_v15  ;;  %7401 = vmatprep.subr.bf16.mxu1 %v12934_v16  ;;  %v7049_v16 = vld [vmem:[#allocation5 + $0x2a0] sm:$0xff]  ;;  %v7062_v15 = vld [vmem:[#allocation5 + $0x308] sm:$0xff]  ;;  %vm14833_vm4 = vcmask 171008  }
 0x701   : > { %v5937_v57 = vsel %vm14813_vm12, %v14812_v23, %v13105_v40  ;;  %5335 = vrot.lane.b32.xlu0 %v12919_v46, %s14367_s24  ;;  %vm14829_vm12 = vcmask 179200   ;;  %s7792_s24 = sld [smem:[#allocation7]] }
 0x702   : > { %5961 = vst [vmem:[#allocation5 + $0x450] sm:$0xff] %v5937_v57  ;;  %6517 = vrot.lane.b32.xlu1 %v12899_v20, %s14512_s25 }
 0x703   : > { %v5085_v0 = vpop.permute.xlu0 %5084  ;;  %7402 = vmatpush1.bf16.msra.mxu1 %v12930_v32  ;;  %v14818_v32 = vld [vmem:[#allocation56_spill] sm:$0xff] }
 0x704   : > { %v13119_v50 = vpop.permute.xlu1 %5823  ;;  %v13124_v54 = vsel %vm14817_vm13, %v14816_v52, %v5085_v0  ;;  %5122 = vst.msk [vmem:[#allocation5 + $0x98] sm:$0xff] %vm1732_vm2, %v5085_v0  ;;  %7403 = vmatprep.subr.bf16.mxu1 %v7050_v45  ;;  %v14830_v45 = vld [vmem:[#allocation43_spill] sm:$0xff]  ;;  %vm14834_vm13 = vmmov %vm14827_vm7 }
 0x705   : > { %6353 = vrot.lane.b32.xlu0 %v12733_v58, %s14496_s8 }
 0x706   : > { %6584 = vrot.lane.b32.xlu1 %v12765_v51, %s14525_s26 }
 0x707   : > { %v5166_v21 = vpop.permute.xlu0 %5165  ;;  %v6972_v53 = vld [vmem:[#allocation5 + $0x38] sm:$0xff]  ;;  %7404 = vmatpush1.bf16.msra.mxu1 %v7049_v16 }
 0x708   : > { %v13131_v11 = vpop.permute.xlu1 %6195  ;;  %v13135_v17 = vsel %vm14819_vm6, %v14818_v32, %v5166_v21  ;;  %5203 = vst.msk [vmem:[#allocation5 + $0xf8] sm:$0xff] %vm1732_vm2, %v5166_v21  ;;  %7559 = vmatprep.subr.bf16.mxu0 %v6972_v53  ;;  %7405 = vmatprep.subr.bf16.mxu1 %v14820_v25  ;;  %v14831_v21 = vld [vmem:[#allocation39_spill] sm:$0xff]  ;;  %v14832_v53 = vld [vmem:[#allocation60_spill] sm:$0xff]  ;;  %vm14836_vm6 = vcmask 162816  }
 0x709   : > { %5202 = vst [vmem:[#allocation5 + $0xf0] sm:$0xff] %v13135_v17  ;;  %5416 = vrot.lane.b32.xlu0 %v12919_v46, %s14375_s16  ;;  %7560 = vmatpush1.bf16.msra.mxu0 %v5018_v60  ;;  %v14828_v60 = vld [vmem:[#allocation50_spill] sm:$0xff]  ;;  %s497_s16 = sand.u32 1, %s14918_s30  }
 0x70a   : > { %6582 = vrot.lane.b32.xlu1 %v12773_v49, %s14525_s26 }
 0x70b   : > { %v5247_v10 = vpop.permute.xlu0 %5246  ;;  %7406 = vmatpush1.bf16.msra.mxu1 %v14821_v35 }
 0x70c   : > { %v6194_v58 = vpop.permute.xlu1 %6193  ;;  %v13149_v62 = vsel %vm14824_vm3, %v14823_v26, %v5247_v10  ;;  %5284 = vst.msk [vmem:[#allocation5 + $0x158] sm:$0xff] %vm1732_vm2, %v5247_v10  ;;  %7407 = vmatprep.subr.bf16.mxu1 %v12950_v43  ;;  %v7061_v43 = vld [vmem:[#allocation5 + $0x300] sm:$0xff]  ;;  %v7074_v10 = vld [vmem:[#allocation5 + $0x368] sm:$0xff]  ;;  %vm14840_vm3 = vmmov %vm14827_vm7 }
 0x70d   : > { %v6207_v61 = vsel %vm14822_vm10, %v6194_v58, %v13131_v11  ;;  %5283 = vst [vmem:[#allocation5 + $0x150] sm:$0xff] %v13149_v62  ;;  %5497 = vrot.lane.b32.xlu0 %v12919_v46, %s14377_s28  ;;  %vm14838_vm10 = vcmask 154624   ;;  %s8198_s28 = sshll.u32 %s497_s16, 1 }
 0x70e   : > { %6230 = vst [vmem:[#allocation5 + $0x5e0] sm:$0xff] %v6207_v61  ;;  %6592 = vrot.lane.b32.xlu1 %v12781_v31, %s14525_s26  ;;  %v14835_v61 = vld [vmem:[#allocation36_spill] sm:$0xff]  ;;  %s499_s22 = scalar_lea.vmem [#allocation11], %s8198_s28 }
 0x70f   : > { %v5328_v13 = vpop.permute.xlu0 %5327  ;;  %7408 = vmatpush1.bf16.msra.mxu1 %v12946_v12 }
 0x710   : > { %v13158_v24 = vpop.permute.xlu1 %6260  ;;  %v13163_v23 = vsel %vm14826_vm15, %v14825_v19, %v5328_v13  ;;  %5365 = vst.msk [vmem:[#allocation5 + $0x1b8] sm:$0xff] %vm1732_vm2, %v5328_v13  ;;  %7409 = vmatprep.subr.bf16.mxu1 %v7062_v15  ;;  %v14837_v15 = vld [vmem:[#allocation51_spill] sm:$0xff]  ;;  %vm14842_vm15 = vcmask 146432  }
 0x711   : > { %5364 = vst [vmem:[#allocation5 + $0x1b0] sm:$0xff] %v13163_v23  ;;  %5578 = vrot.lane.b32.xlu0 %v12919_v46, %s14401_s27 }
 0x712   : > { %6590 = vrot.lane.b32.xlu1 %v12796_v6, %s14525_s26 }
 0x713   : > { %v5409_v36 = vpop.permute.xlu0 %5408  ;;  %7410 = vmatpush1.bf16.msra.mxu1 %v7061_v43  ;;  %v13218_v43 = vld [vmem:[#allocation3 + $0x20] sm:$0xff] }
 0x714   : > { %v6259_v57 = vpop.permute.xlu1 %6258  ;;  %v13175_v0 = vsel %vm14829_vm12, %v14828_v60, %v5409_v36  ;;  %5446 = vst.msk [vmem:[#allocation5 + $0x218] sm:$0xff] %vm1732_vm2, %v5409_v36  ;;  %7411 = vmatprep.subr.bf16.mxu1 %v14830_v45  ;;  %v14841_v45 = vld [vmem:[#allocation35_spill] sm:$0xff] }
 0x715   : > { %v6282_v12 = vsel %vm14827_vm7, %v6259_v57, %v13158_v24  ;;  %5445 = vst [vmem:[#allocation5 + $0x210] sm:$0xff] %v13175_v0  ;;  %5659 = vrot.lane.b32.xlu0 %v12919_v46, %s14402_s0  ;;  %v14839_v57 = vld [vmem:[#allocation49_spill] sm:$0xff]  ;;  %vm14844_vm7 = vcmask 15360  }
 0x716   : > { %6303 = vst [vmem:[#allocation5 + $0x600] sm:$0xff] %v6282_v12  ;;  %6600 = vrot.lane.b32.xlu1 %v12882_v48, %s14525_s26  ;;  %vm14845_vm12 = vmmov %vm14844_vm7 }
 0x717   : > { %v5490_v16 = vpop.permute.xlu0 %5489  ;;  %7412 = vmatpush1.bf16.msra.mxu1 %v14831_v21 }
 0x718   : > { %v13184_v52 = vpop.permute.xlu1 %6268  ;;  %v13189_v32 = vsel %vm14833_vm4, %v14832_v53, %v5490_v16  ;;  %5527 = vst.msk [vmem:[#allocation5 + $0x278] sm:$0xff] %vm1732_vm2, %v5490_v16  ;;  %7413 = vmatprep.subr.bf16.mxu1 %v12968_v30  ;;  %v7086_v53 = vld [vmem:[#allocation5 + $0x3c8] sm:$0xff]  ;;  %vm14847_vm4 = vcmask 1039360  }
 0x719   : > { %5526 = vst [vmem:[#allocation5 + $0x270] sm:$0xff] %v13189_v32  ;;  %5740 = vrot.lane.b32.xlu0 %v12919_v46, %s14403_s19  ;;  %s14925_s19 = sld [smem:[#allocation78_spill]] }
 0x71a   : > { %6598 = vrot.lane.b32.xlu1 %v12899_v20, %s14525_s26 }
 0x71b   : > { %v5571_v58 = vpop.permute.xlu0 %5570  ;;  %7414 = vmatpush1.bf16.msra.mxu1 %v12964_v14  ;;  %v7073_v14 = vld [vmem:[#allocation5 + $0x360] sm:$0xff] }
 0x71c   : > { %v6267_v25 = vpop.permute.xlu1 %6266  ;;  %v13203_v26 = vsel %vm14836_vm6, %v14835_v61, %v5571_v58  ;;  %5608 = vst.msk [vmem:[#allocation5 + $0x2d8] sm:$0xff] %vm1732_vm2, %v5571_v58  ;;  %7415 = vmatprep.subr.bf16.mxu1 %v7074_v10  ;;  %v14846_v61 = vld [vmem:[#allocation45_spill] sm:$0xff]  ;;  %vm14851_vm6 = vcmask 900096  }
 0x71d   : > { %v6285_v35 = vsel %vm14834_vm13, %v6267_v25, %v13184_v52  ;;  %5607 = vst [vmem:[#allocation5 + $0x2d0] sm:$0xff] %v13203_v26  ;;  %6424 = vrot.lane.b32.xlu0 %v12975_v7, %s14505_s17  ;;  %v14843_v25 = vld [vmem:[#allocation41_spill] sm:$0xff]  ;;  %vm14850_vm13 = vcmask 1031168  }
 0x71e   : > { %6307 = vst [vmem:[#allocation5 + $0x620] sm:$0xff] %v6285_v35  ;;  %6665 = vrot.lane.b32.xlu1 %v12765_v51, %s14390_s29  ;;  %v7077_v51 = vld [vmem:[#allocation5 + $0x380] sm:$0xff] }
 0x71f   : > { %v5652_v13 = vpop.permute.xlu0 %5651  ;;  %7416 = vmatpush1.bf16.msra.mxu1 %v7073_v14  ;;  %v14848_v14 = vld [vmem:[#allocation47_spill] sm:$0xff] }
 0x720   : > { %v13211_v30 = vpop.permute.xlu1 %6276  ;;  %v13215_v19 = vsel %vm14838_vm10, %v14837_v15, %v5652_v13  ;;  %5689 = vst.msk [vmem:[#allocation5 + $0x338] sm:$0xff] %vm1732_vm2, %v5652_v13  ;;  %7417 = vmatprep.subr.bf16.mxu1 %v14839_v57  ;;  %v13261_v13 = vcombine.high %v13055_v59, %v13055_v59  ;;  %vm14852_vm10 = vcmask 7168  }
 0x721   : > { %5688 = vst [vmem:[#allocation5 + $0x330] sm:$0xff] %v13215_v19  ;;  %6426 = vrot.lane.b32.xlu0 %v13218_v43, %s14505_s17 }
 0x722   : > { %6663 = vrot.lane.b32.xlu1 %v12773_v49, %s14390_s29 }
 0x723   : > { %v5733_v12 = vpop.permute.xlu0 %5732  ;;  %7418 = vmatpush1.bf16.msra.mxu1 %v7077_v51  ;;  %v14849_v51 = vld [vmem:[#allocation32_spill] sm:$0xff] }
 0x724   : > { %v6275_v36 = vpop.permute.xlu1 %6274  ;;  %v5747_v16 = vsel %vm14842_vm15, %v14841_v45, %v5733_v12  ;;  %5770 = vst.msk [vmem:[#allocation5 + $0x398] sm:$0xff] %vm1732_vm2, %v5733_v12  ;;  %7419 = vmatprep.subr.bf16.mxu1 %v12990_v44  ;;  %v7098_v45 = vld [vmem:[#allocation5 + $0x428] sm:$0xff]  ;;  %vm14854_vm15 = vmmov %vm14844_vm7 }
 0x725   : > { %v6288_v60 = vsel %vm14840_vm3, %v6275_v36, %v13211_v30  ;;  %5769 = vst [vmem:[#allocation5 + $0x390] sm:$0xff] %v5747_v16  ;;  %5927 = vrot.lane.b32.xlu0 %v12919_v46, %s14444_s2  ;;  %vm14853_vm3 = vmmov %vm14847_vm4 }
 0x726   : > { %6311 = vst [vmem:[#allocation5 + $0x640] sm:$0xff] %v6288_v60  ;;  %6673 = vrot.lane.b32.xlu1 %v12781_v31, %s14390_s29  ;;  %v7085_v31 = vld [vmem:[#allocation5 + $0x3c0] sm:$0xff] }
 0x727   : > { %v5822_v21 = vpop.permute.xlu0 %5821  ;;  %7420 = vmatpush1.bf16.msra.mxu1 %v12986_v39 }
 0x728   : > { %v13236_v49 = vpop.permute.xlu1 %6341  ;;  %v5841_v58 = vsel %vm14844_vm7, %v14843_v25, %v5822_v21  ;;  %v5842_v44 = vsel %vm14845_vm12, %v5822_v21, %v13119_v50  ;;  %7421 = vmatprep.subr.bf16.mxu1 %v7086_v53  ;;  %v13285_v21 = vld [vmem:[#allocation5 + $0x488] sm:$0xff]  ;;  %vm14855_vm7 = vmmov %vm14850_vm13  ;;  %vm14856_vm12 = vcmask 343040  }
 0x729   : > { %5865 = vst [vmem:[#allocation5 + $0x3f0] sm:$0xff] %v5841_v58  ;;  %5866 = vst.msk [vmem:[#allocation5 + $0x3f8] sm:$0xff] %vm1732_vm2, %v5842_v44  ;;  %6035 = vrot.lane.b32.xlu0 %v12919_v46, %s14461_s5  ;;  %v7102_v58 = vld [vmem:[#allocation5 + $0x448] sm:$0xff]  ;;  %v13296_v44 = vld [vmem:[#allocation5 + $0x480] sm:$0xff] }
 0x72a   : > { %6671 = vrot.lane.b32.xlu1 %v12796_v6, %s14390_s29  ;;  %v7089_v6 = vld [vmem:[#allocation5 + $0x3e0] sm:$0xff] }
 0x72b   : > { %v6028_v39 = vpop.permute.xlu0 %6027  ;;  %7422 = vmatpush1.bf16.msra.mxu1 %v7085_v31  ;;  %v7101_v31 = vld [vmem:[#allocation5 + $0x440] sm:$0xff] }
 0x72c   : > { %v6340_v10 = vpop.permute.xlu1 %6339  ;;  %v13252_v50 = vsel %vm14847_vm4, %v14846_v61, %v6028_v39  ;;  %7423 = vmatprep.subr.bf16.mxu1 %v14848_v14  ;;  %v8820_v14 = vld [vmem:[%s14025_s11] sm:$0xff]  ;;  %vm14857_vm4 = vcmask 875520  }
 0x72d   : > { %v6363_v35 = vsel %vm1229_vm0, %v6340_v10, %v13236_v49  ;;  %6116 = vrot.lane.b32.xlu0 %v12919_v46, %s14473_s3 }
 0x72e   : > { %6384 = vst [vmem:[#allocation5 + $0x660] sm:$0xff] %v6363_v35  ;;  %6681 = vrot.lane.b32.xlu1 %v12882_v48, %s14390_s29 }
 0x72f   : > { %v6109_v57 = vpop.permute.xlu0 %6108  ;;  %7424 = vmatpush1.bf16.msra.mxu1 %v7089_v6  ;;  %v7269_v6 = vcombine.high %v8820_v14, %v8820_v14  ;;  %v13362_v14 = vld [vmem:[#allocation5 + $0x4c8] sm:$0xff] }
 0x730   : > { %v13263_v15 = vpop.permute.xlu1 %6349  ;;  %v13267_v36 = vsel %vm14850_vm13, %v14849_v51, %v6109_v57  ;;  %7434 = vmatprep.subr.bf16.mxu1 %v13010_v33  ;;  %v13310_v51 = vld [vmem:[#allocation5 + $0x4a8] sm:$0xff]  ;;  %vm14858_vm13 = vmmov %vm14851_vm6 }
 0x731   : > { %6197 = vrot.lane.b32.xlu0 %v12919_v46, %s14478_s4 }
 0x732   : > { %6679 = vrot.lane.b32.xlu1 %v12899_v20, %s14390_s29  ;;  %7426 = vmatmul.mubr.bf16.vlgmr.msra.gmra.mrb[28].mxu1 %v13261_v13 }
 0x733   : > { %v13275_v60 = vpop.permute.xlu0 %6189  ;;  %7435 = vmatpush1.bf16.msra.mxu1 %v13006_v22  ;;  %v7097_v22 = vld [vmem:[#allocation5 + $0x420] sm:$0xff] }
 0x734   : > { %v6348_v12 = vpop.permute.xlu1 %6347  ;;  %v13283_v33 = vsel %vm14851_vm6, %v12824_v5, %v13275_v60  ;;  %7436 = vmatprep.subr.bf16.mxu1 %v7098_v45  ;;  %vm14859_vm6 = vcmask 891904  }
 0x735   : > { %v6366_v16 = vsel %vm1229_vm0, %v6348_v12, %v13263_v15  ;;  %6278 = vrot.lane.b32.xlu0 %v12919_v46, %s14484_s7  ;;  %v13317_v12 = vrot.slane %v7269_v6, %v14799_v38 }
 0x736   : > { %6388 = vst [vmem:[#allocation5 + $0x680] sm:$0xff] %v6366_v16  ;;  %6746 = vrot.lane.b32.xlu1 %v13285_v21, %s14385_s21 }
 0x737   : > { %v5920_v25 = vpop.permute.xlu0 %5919  ;;  %7437 = vmatpush1.bf16.msra.mxu1 %v7097_v22 }
 0x738   : > { %v13291_v53 = vpop.permute.xlu1 %6357  ;;  %v5938_v5 = vsel %vm14852_vm10, %v13105_v40, %v5920_v25  ;;  %7438 = vmatprep.subr.bf16.mxu1 %v7102_v58  ;;  %v13328_v25 = vld [vmem:[#allocation3 + $0x48] sm:$0xff]  ;;  %v13333_v58 = vld [vmem:[#allocation5 + $0x4a0] sm:$0xff]  ;;  %vm14860_vm10 = vcmask 334848  }
 0x739   : > { %5962 = vst.msk [vmem:[#allocation5 + $0x458] sm:$0xff] %vm1732_vm2, %v5938_v5  ;;  %6359 = vrot.lane.b32.xlu0 %v12919_v46, %s14496_s8 }
 0x73a   : > { %6744 = vrot.lane.b32.xlu1 %v13296_v44, %s14385_s21 }
 0x73b   : > { %v6030_v35 = vpop.permute.xlu0 %6029  ;;  %7439 = vmatpush1.bf16.msra.mxu1 %v7101_v31 }
 0x73c   : > { %v6356_v10 = vpop.permute.xlu1 %6355  ;;  %v6044_v40 = vsel %vm14853_vm3, %v6028_v39, %v6030_v35  ;;  %6067 = vst.msk [vmem:[#allocation5 + $0x518] sm:$0xff] %vm1732_vm2, %v6030_v35  ;;  %7440 = vmatprep.subr.bf16.mxu1 %v13044_v28  ;;  %v7105_v39 = vld [vmem:[#allocation5 + $0x460] sm:$0xff]  ;;  %vm14861_vm3 = vmmov %vm14857_vm4 }
 0x73d   : > { %v6369_v61 = vsel %vm1229_vm0, %v6356_v10, %v13291_v53  ;;  %6066 = vst [vmem:[#allocation5 + $0x510] sm:$0xff] %v6044_v40  ;;  %5833 = vrot.lane.b32.xlu0 %v12973_v8, %s14428_s1  ;;  %v7285_v8 = vcombine.high %v13317_v12, %v13317_v12  ;;  %v13348_v10 = vld [vmem:[#allocation3 + $0x50] sm:$0xff]  ;;  %s14867_s1 = smov 86  }
 0x73e   : > { %6392 = vst [vmem:[#allocation5 + $0x6a0] sm:$0xff] %v6369_v61  ;;  %6754 = vrot.lane.b32.xlu1 %v13310_v51, %s14385_s21 }
 0x73f   : > { %v6111_v45 = vpop.permute.xlu0 %6110  ;;  %7441 = vmatpush1.bf16.msra.mxu1 %v7105_v39 }
 0x740   : > { %v13319_v28 = vpop.permute.xlu1 %5831  ;;  %v6125_v22 = vsel %vm14855_vm7, %v6109_v57, %v6111_v45  ;;  %6148 = vst.msk [vmem:[#allocation5 + $0x578] sm:$0xff] %vm1732_vm2, %v6111_v45  ;;  %7442 = vmatprep.subr.bf16.mxu1 %v13285_v21  ;;  %v13371_v45 = vld [vmem:[#allocation5 + $0x4c0] sm:$0xff]  ;;  %vm14863_vm7 = vmmov %vm14859_vm6 }
 0x741   : > { %v13324_v16 = vsel %vm14854_vm15, %v12826_v29, %v13319_v28  ;;  %6147 = vst [vmem:[#allocation5 + $0x570] sm:$0xff] %v6125_v22  ;;  %6432 = vrot.lane.b32.xlu0 %v13328_v25, %s14505_s17  ;;  %v13340_v29 = vrot.slane %v7285_v8, %v14799_v38  ;;  %vm14862_vm15 = vmmov %vm14859_vm6 }
 0x742   : > { %6752 = vrot.lane.b32.xlu1 %v13333_v58, %s14385_s21 }
 0x743   : > { %v5012_v5 = vpop.permute.xlu0 %5011  ;;  %7443 = vmatpush1.bf16.msra.mxu1 %v13296_v44  ;;  %7466 = vmatprep.mubr.bf16.mxu1 %v13340_v29 }
 0x744   : > { %v13342_v57 = vpop.permute.xlu1 %6422  ;;  %v5021_v31 = vsel %vm14856_vm12, %v12707_v9, %v5012_v5  ;;  %5045 = vst.msk [vmem:[#allocation5 + $0x58] sm:$0xff] %vm1732_vm2, %v5012_v5  ;;  %7444 = vmatprep.subr.bf16.mxu1 %v13310_v51  ;;  %v7125_v5 = vld [vmem:[#allocation5 + $0x500] sm:$0xff]  ;;  %vm14864_vm12 = vmmov %vm14861_vm3 }
 0x745   : > { %6434 = vrot.lane.b32.xlu0 %v13348_v10, %s14505_s17 }
 0x746   : > { %6762 = vrot.lane.b32.xlu1 %v12882_v48, %s14385_s21 }
 0x747   : > { %v6192_v61 = vpop.permute.xlu0 %6191  ;;  %7445 = vmatpush1.bf16.msra.mxu1 %v13333_v58 }
 0x748   : > { %v6421_v35 = vpop.permute.xlu1 %6420  ;;  %v6206_v40 = vsel %vm14858_vm13, %v13275_v60, %v6192_v61  ;;  %6229 = vst.msk [vmem:[#allocation5 + $0x5d8] sm:$0xff] %vm1732_vm2, %v6192_v61  ;;  %7446 = vmatprep.subr.bf16.mxu1 %v13362_v14  ;;  %vm14866_vm13 = vmmov %vm14859_vm6 }
 0x749   : > { %v6444_v9 = vsel %vm14857_vm4, %v6421_v35, %v13342_v57  ;;  %6228 = vst [vmem:[#allocation5 + $0x5d0] sm:$0xff] %v6206_v40  ;;  %6440 = vrot.lane.b32.xlu0 %v12919_v46, %s14505_s17  ;;  %v7121_v46 = vld [vmem:[#allocation5 + $0x4e0] sm:$0xff]  ;;  %vm14865_vm4 = vcmask 326656  }
 0x74a   : > { %6465 = vst [vmem:[#allocation5 + $0x6c0] sm:$0xff] %v6444_v9  ;;  %6760 = vrot.lane.b32.xlu1 %v12899_v20, %s14385_s21  ;;  %v6980_v20 = vld [vmem:[#allocation5 + $0x78] sm:$0xff] }
 0x74b   : > { %v6263_v6 = vpop.permute.xlu0 %6262  ;;  %v6976_v39 = vld [vmem:[#allocation5 + $0x58] sm:$0xff]  ;;  %7447 = vmatpush1.bf16.msra.mxu1 %v13371_v45 }
 0x74c   : > { %v13369_v48 = vpop.permute.xlu1 %5929  ;;  %v13376_v60 = vsel %vm14859_vm6, %v13158_v24, %v6263_v6  ;;  %7561 = vmatprep.subr.bf16.mxu0 %v6976_v39  ;;  %7448 = vmatprep.subr.bf16.mxu1 %v13023_v41  ;;  %v6984_v41 = vld [vmem:[#allocation5 + $0x98] sm:$0xff]  ;;  %vm14868_vm6 = vcmask 318464  }
 0x74d   : > { %6505 = vrot.lane.b32.xlu0 %v12975_v7, %s14512_s25  ;;  %7562 = vmatpush1.bf16.msra.mxu0 %v5021_v31  ;;  %v6979_v7 = vld [vmem:[#allocation5 + $0x70] sm:$0xff] }
 0x74e   : > { %6827 = vrot.lane.b32.xlu1 %v13285_v21, %s14384_s6  ;;  %7563 = vmatprep.subr.bf16.mxu0 %v6980_v20 }
 0x74f   : > { %v5093_v8 = vpop.permute.xlu0 %5092  ;;  %7449 = vmatpush1.bf16.msra.mxu1 %v7121_v46 }
 0x750   : > { %v13383_v22 = vpop.permute.xlu1 %6430  ;;  %v5102_v24 = vsel %vm14860_vm10, %v12723_v42, %v5093_v8  ;;  %5126 = vst.msk [vmem:[#allocation5 + $0xb8] sm:$0xff] %vm1732_vm2, %v5093_v8  ;;  %7450 = vmatprep.subr.bf16.mxu1 %v13252_v50  ;;  %v13421_v8 = vld [vmem:[#allocation3 + $0x78] sm:$0xff]  ;;  %vm14870_vm10 = vcmask 310272  }
 0x751   : > { %6507 = vrot.lane.b32.xlu0 %v13218_v43, %s14512_s25  ;;  %7564 = vmatpush1.bf16.msra.mxu0 %v6979_v7  ;;  %v6996_v7 = vld [vmem:[#allocation5 + $0xf8] sm:$0xff] }
 0x752   : > { %6825 = vrot.lane.b32.xlu1 %v13296_v44, %s14384_s6  ;;  %7565 = vmatprep.subr.bf16.mxu0 %v6984_v41 }
 0x753   : > { %v6265_v35 = vpop.permute.xlu0 %6264  ;;  %7451 = vmatpush1.bf16.msra.mxu1 %v7125_v5 }
 0x754   : > { %v6429_v31 = vpop.permute.xlu1 %6428  ;;  %v6284_v50 = vsel %vm14862_vm15, %v6263_v6, %v6265_v35  ;;  %6306 = vst.msk [vmem:[#allocation5 + $0x618] sm:$0xff] %vm1732_vm2, %v6265_v35  ;;  %v6992_v6 = vld [vmem:[#allocation5 + $0xd8] sm:$0xff]  ;;  %vm14872_vm15 = vcmask 179200  }
 0x755   : > { %v13395_v42 = vsel %vm14861_vm3, %v6429_v31, %v13383_v22  ;;  %6305 = vst [vmem:[#allocation5 + $0x610] sm:$0xff] %v6284_v50  ;;  %6513 = vrot.lane.b32.xlu0 %v13328_v25, %s14512_s25  ;;  %7566 = vmatpush1.bf16.msra.mxu0 %v13124_v54  ;;  %vm14871_vm3 = vcmask 736256  }
 0x756   : > { %6835 = vrot.lane.b32.xlu1 %v13310_v51, %s14384_s6 }
 0x757   : > { %v6271_v9 = vpop.permute.xlu0 %6270  ;;  %v6988_v40 = vld [vmem:[#allocation5 + $0xb8] sm:$0xff] }
 0x758   : > { %v13404_v61 = vpop.permute.xlu1 %6438  ;;  %v13408_v39 = vsel %vm14863_vm7, %v13184_v52, %v6271_v9  ;;  %7567 = vmatprep.subr.bf16.mxu0 %v6988_v40  ;;  %vm14873_vm7 = vcmask 171008  }
 0x759   : > { %6515 = vrot.lane.b32.xlu0 %v13348_v10, %s14512_s25  ;;  %7568 = vmatpush1.bf16.msra.mxu0 %v5102_v24  ;;  %v6991_v24 = vld [vmem:[#allocation5 + $0xd0] sm:$0xff] }
 0x75a   : > { %6833 = vrot.lane.b32.xlu1 %v13333_v58, %s14384_s6  ;;  %7569 = vmatprep.subr.bf16.mxu0 %v6992_v6 }
 0x75b   : > { %v5174_v54 = vpop.permute.xlu0 %5173 }
 0x75c   : > { %v6437_v20 = vpop.permute.xlu1 %6436  ;;  %v5183_v52 = vsel %vm14865_vm4, %v12740_v55, %v5174_v54  ;;  %5207 = vst.msk [vmem:[#allocation5 + $0x118] sm:$0xff] %vm1732_vm2, %v5174_v54  ;;  %v13431_v55 = vld [vmem:[#allocation3 + $0x18] sm:$0xff]  ;;  %vm14875_vm4 = vcmask 162816  }
 0x75d   : > { %v13416_v46 = vsel %vm14864_vm12, %v6437_v20, %v13404_v61  ;;  %6521 = vrot.lane.b32.xlu0 %v13421_v8, %s14512_s25  ;;  %7570 = vmatpush1.bf16.msra.mxu0 %v6991_v24  ;;  %vm14874_vm12 = vmmov %vm14871_vm3 }
 0x75e   : > { %6843 = vrot.lane.b32.xlu1 %v13362_v14, %s14384_s6  ;;  %7571 = vmatprep.subr.bf16.mxu0 %v6996_v7 }
 0x75f   : > { %v6273_v5 = vpop.permute.xlu0 %6272 }
 0x760   : > { %v13427_v41 = vpop.permute.xlu1 %6503  ;;  %v6287_v31 = vsel %vm14866_vm13, %v6271_v9, %v6273_v5  ;;  %6310 = vst.msk [vmem:[#allocation5 + $0x638] sm:$0xff] %vm1732_vm2, %v6273_v5  ;;  %vm14876_vm13 = vcmask 154624  }
 0x761   : > { %6309 = vst [vmem:[#allocation5 + $0x630] sm:$0xff] %v6287_v31  ;;  %6586 = vrot.lane.b32.xlu0 %v13431_v55, %s14525_s26  ;;  %7572 = vmatpush1.bf16.msra.mxu0 %v13135_v17  ;;  %v7004_v17 = vld [vmem:[#allocation5 + $0x138] sm:$0xff] }
 0x762   : > { %6841 = vrot.lane.b32.xlu1 %v13371_v45, %s14384_s6 }
 0x763   : > { %v6344_v50 = vpop.permute.xlu0 %6343  ;;  %v7000_v40 = vld [vmem:[#allocation5 + $0x118] sm:$0xff] }
 0x764   : > { %v6502_v35 = vpop.permute.xlu1 %6501  ;;  %v13444_v9 = vsel %vm1229_vm0, %v13236_v49, %v6344_v50  ;;  %7573 = vmatprep.subr.bf16.mxu0 %v7000_v40  ;;  %v7003_v49 = vld [vmem:[#allocation5 + $0x130] sm:$0xff] }
 0x765   : > { %v13440_v6 = vsel %vm1273_vm14, %v6502_v35, %v13427_v41  ;;  %6588 = vrot.lane.b32.xlu0 %v13218_v43, %s14525_s26  ;;  %7574 = vmatpush1.bf16.msra.mxu0 %v5183_v52 }
 0x766   : > { %6908 = vrot.lane.b32.xlu1 %v13285_v21, %s14867_s1  ;;  %7575 = vmatprep.subr.bf16.mxu0 %v7004_v17  ;;  %v7008_v21 = vld [vmem:[#allocation5 + $0x158] sm:$0xff] }
 0x767   : > { %v5255_v54 = vpop.permute.xlu0 %5254 }
 0x768   : > { %v13450_v20 = vpop.permute.xlu1 %6511  ;;  %v5264_v24 = vsel %vm14868_vm6, %v12753_v56, %v5255_v54  ;;  %5288 = vst.msk [vmem:[#allocation5 + $0x178] sm:$0xff] %vm1732_vm2, %v5255_v54  ;;  %vm14877_vm6 = vmmov %vm14871_vm3 }
 0x769   : > { %6594 = vrot.lane.b32.xlu0 %v13328_v25, %s14525_s26  ;;  %7576 = vmatpush1.bf16.msra.mxu0 %v7003_v49 }
 0x76a   : > { %6906 = vrot.lane.b32.xlu1 %v13296_v44, %s14867_s1  ;;  %7577 = vmatprep.subr.bf16.mxu0 %v7008_v21  ;;  %v14869_v44 = vld [vmem:[#allocation53_spill] sm:$0xff] }
 0x76b   : > { %v6346_v7 = vpop.permute.xlu0 %6345 }
 0x76c   : > { %v6510_v52 = vpop.permute.xlu1 %6509  ;;  %v6365_v56 = vsel %vm1229_vm0, %v6344_v50, %v6346_v7  ;;  %6387 = vst.msk [vmem:[#allocation5 + $0x678] sm:$0xff] %vm1732_vm2, %v6346_v7 }
 0x76d   : > { %v13461_v5 = vsel %vm1273_vm14, %v6510_v52, %v13450_v20  ;;  %6386 = vst [vmem:[#allocation5 + $0x670] sm:$0xff] %v6365_v56  ;;  %6037 = vrot.lane.b32.xlu0 %v14869_v44, %s14461_s5  ;;  %7578 = vmatpush1.bf16.msra.mxu0 %v13149_v62 }
 0x76e   : > { %6916 = vrot.lane.b32.xlu1 %v13310_v51, %s14867_s1  ;;  %v7016_v51 = vld [vmem:[#allocation5 + $0x198] sm:$0xff] }
 0x76f   : > { %v6352_v35 = vpop.permute.xlu0 %6351  ;;  %v7012_v40 = vld [vmem:[#allocation5 + $0x178] sm:$0xff] }
 0x770   : > { %v13470_v31 = vpop.permute.xlu1 %6519  ;;  %v13474_v17 = vsel %vm1229_vm0, %v13263_v15, %v6352_v35  ;;  %7579 = vmatprep.subr.bf16.mxu0 %v7012_v40 }
 0x771   : > { %6596 = vrot.lane.b32.xlu0 %v13348_v10, %s14525_s26  ;;  %7580 = vmatpush1.bf16.msra.mxu0 %v5264_v24  ;;  %v7020_v24 = vld [vmem:[#allocation5 + $0x1b8] sm:$0xff] }
 0x772   : > { %6914 = vrot.lane.b32.xlu1 %v13333_v58, %s14867_s1  ;;  %7581 = vmatprep.subr.bf16.mxu0 %v7016_v51  ;;  %v7015_v58 = vld [vmem:[#allocation5 + $0x190] sm:$0xff] }
 0x773   : > { %v5336_v62 = vpop.permute.xlu0 %5335 }
 0x774   : > { %v6518_v50 = vpop.permute.xlu1 %6517  ;;  %v5345_v15 = vsel %vm14870_vm10, %v12763_v3, %v5336_v62  ;;  %5369 = vst.msk [vmem:[#allocation5 + $0x1d8] sm:$0xff] %vm1732_vm2, %v5336_v62  ;;  %vm14878_vm10 = vcmask 146432  }
 0x775   : > { %v13482_v54 = vsel %vm1273_vm14, %v6518_v50, %v13470_v31  ;;  %6602 = vrot.lane.b32.xlu0 %v13421_v8, %s14525_s26  ;;  %7582 = vmatpush1.bf16.msra.mxu0 %v7015_v58  ;;  %v7032_v50 = vld [vmem:[#allocation5 + $0x218] sm:$0xff] }
 0x776   : > { %6924 = vrot.lane.b32.xlu1 %v13362_v14, %s14867_s1  ;;  %7583 = vmatprep.subr.bf16.mxu0 %v7020_v24 }
 0x777   : > { %v6354_v21 = vpop.permute.xlu0 %6353 }
 0x778   : > { %v13491_v49 = vpop.permute.xlu1 %6584  ;;  %v6368_v52 = vsel %vm1229_vm0, %v6352_v35, %v6354_v21  ;;  %6391 = vst.msk [vmem:[#allocation5 + $0x698] sm:$0xff] %vm1732_vm2, %v6354_v21 }
 0x779   : > { %6390 = vst [vmem:[#allocation5 + $0x690] sm:$0xff] %v6368_v52  ;;  %6118 = vrot.lane.b32.xlu0 %v14869_v44, %s14473_s3  ;;  %7584 = vmatpush1.bf16.msra.mxu0 %v13163_v23  ;;  %s14926_s3 = smov %s14925_s19 }
 0x77a   : > { %6922 = vrot.lane.b32.xlu1 %v13371_v45, %s14867_s1  ;;  %v7028_v45 = vld [vmem:[#allocation5 + $0x1f8] sm:$0xff] }
 0x77b   : > { %v5417_v14 = vpop.permute.xlu0 %5416  ;;  %v7024_v7 = vld [vmem:[#allocation5 + $0x1d8] sm:$0xff] }
 0x77c   : > { %v6583_v3 = vpop.permute.xlu1 %6582  ;;  %v5426_v35 = vsel %vm14872_vm15, %v12771_v18, %v5417_v14  ;;  %5450 = vst.msk [vmem:[#allocation5 + $0x238] sm:$0xff] %vm1732_vm2, %v5417_v14  ;;  %7585 = vmatprep.subr.bf16.mxu0 %v7024_v7  ;;  %v7027_v18 = vld [vmem:[#allocation5 + $0x1f0] sm:$0xff]  ;;  %v7044_v7 = vld [vmem:[#allocation5 + $0x278] sm:$0xff] }
 0x77d   : > { %v13502_v56 = vsel %vm14871_vm3, %v6583_v3, %v13491_v49  ;;  %6667 = vrot.lane.b32.xlu0 %v13431_v55, %s14390_s29  ;;  %7586 = vmatpush1.bf16.msra.mxu0 %v5345_v15  ;;  %vm14879_vm3 = vcmask 875520  }
 0x77e   : > { %7587 = vmatprep.subr.bf16.mxu0 %v7028_v45  ;;  %vm14880_vm15 = vmmov %vm14879_vm3 }
 0x77f   : > { %v5498_v40 = vpop.permute.xlu0 %5497 }
 0x780   : > { %v13509_v23 = vpop.permute.xlu1 %6592  ;;  %v5507_v51 = vsel %vm14873_vm7, %v12779_v34, %v5498_v40  ;;  %5531 = vst.msk [vmem:[#allocation5 + $0x298] sm:$0xff] %vm1732_vm2, %v5498_v40  ;;  %vm14881_vm7 = vcmask 7168  }
 0x781   : > { %6669 = vrot.lane.b32.xlu0 %v13218_v43, %s14390_s29  ;;  %7588 = vmatpush1.bf16.msra.mxu0 %v7027_v18 }
 0x782   : > { %7598 = vmatprep.subr.bf16.mxu0 %v7032_v50 }
 0x783   : > { %v5579_v58 = vpop.permute.xlu0 %5578  ;;  %v7036_v34 = vld [vmem:[#allocation5 + $0x238] sm:$0xff] }
 0x784   : > { %v6591_v62 = vpop.permute.xlu1 %6590  ;;  %v13522_v24 = vsel %vm14875_vm4, %v12789_v47, %v5579_v58  ;;  %5612 = vst.msk [vmem:[#allocation5 + $0x2f8] sm:$0xff] %vm1732_vm2, %v5579_v58  ;;  %7590 = vmatmul.mubr.bf16.vlgmr.msra.gmra.mrb[40].mxu0 %v13055_v59  ;;  %v7040_v59 = vld [vmem:[#allocation5 + $0x258] sm:$0xff]  ;;  %vm14883_vm4 = vcmask 1039360  }
 0x785   : > { %v13518_v15 = vsel %vm14874_vm12, %v6591_v62, %v13509_v23  ;;  %6199 = vrot.lane.b32.xlu0 %v14869_v44, %s14478_s4  ;;  %7599 = vmatpush1.bf16.msra.mxu0 %v13175_v0  ;;  %vm14882_vm12 = vmmov %vm14881_vm7 }
 0x786   : > { %7630 = vmatprep.mubr.bf16.mxu0 %v13061_v4  ;;  %7600 = vmatprep.subr.bf16.mxu0 %v7036_v34 }
 0x787   : > { %v5660_v52 = vpop.permute.xlu0 %5659 }
 0x788   : > { %v13530_v21 = vpop.permute.xlu1 %6600  ;;  %v13534_v47 = vsel %vm14876_vm13, %v12806_v1, %v5660_v52  ;;  %5693 = vst.msk [vmem:[#allocation5 + $0x358] sm:$0xff] %vm1732_vm2, %v5660_v52  ;;  %v7039_v1 = vld [vmem:[#allocation5 + $0x250] sm:$0xff]  ;;  %vm14884_vm13 = vcmask 1031168  }
 0x789   : > { %6675 = vrot.lane.b32.xlu0 %v13328_v25, %s14390_s29  ;;  %7601 = vmatpush1.bf16.msra.mxu0 %v5426_v35 }
 0x78a   : > { %7602 = vmatprep.subr.bf16.mxu0 %v7040_v59 }
 0x78b   : > { %v5741_v3 = vpop.permute.xlu0 %5740 }
 0x78c   : > { %v6599_v0 = vpop.permute.xlu1 %6598  ;;  %v13545_v14 = vsel %vm14878_vm10, %v12816_v2, %v5741_v3  ;;  %5774 = vst.msk [vmem:[#allocation5 + $0x3b8] sm:$0xff] %vm1732_vm2, %v5741_v3  ;;  %v7048_v2 = vld [vmem:[#allocation5 + $0x298] sm:$0xff]  ;;  %vm14886_vm10 = vcmask 891904  }
 0x78d   : > { %v13541_v4 = vsel %vm14877_vm6, %v6599_v0, %v13530_v21  ;;  %6677 = vrot.lane.b32.xlu0 %v13348_v10, %s14390_s29  ;;  %7603 = vmatpush1.bf16.msra.mxu0 %v7039_v1  ;;  %v7056_v0 = vld [vmem:[#allocation5 + $0x2d8] sm:$0xff]  ;;  %vm14885_vm6 = vcmask 900096  }
 0x78e   : > { %7604 = vmatprep.subr.bf16.mxu0 %v7044_v7  ;;  %v7129_v7 = vld [vmem:[#allocation5 + $0x520] sm:$0xff] }
 0x78f   : > { %v6425_v45 = vpop.permute.xlu0 %6424 }
 0x790   : > { %v13550_v35 = vpop.permute.xlu1 %6665  ;;  %v13554_v40 = vsel %vm14879_vm3, %v13342_v57, %v6425_v45  ;;  %v7052_v57 = vld [vmem:[#allocation5 + $0x2b8] sm:$0xff]  ;;  %vm14887_vm3 = vcmask 719872  }
 0x791   : > { %6280 = vrot.lane.b32.xlu0 %v14869_v44, %s14484_s7  ;;  %7605 = vmatpush1.bf16.msra.mxu0 %v13189_v32 }
 0x792   : > { %7606 = vmatprep.subr.bf16.mxu0 %v7048_v2  ;;  %v7134_v2 = vld [vmem:[#allocation5 + $0x548] sm:$0xff] }
 0x793   : > { %v6427_v50 = vpop.permute.xlu0 %6426 }
 0x794   : > { %v6664_v18 = vpop.permute.xlu1 %6663  ;;  %v13564_v58 = vsel %vm14880_vm15, %v6425_v45, %v6427_v50  ;;  %6468 = vst.msk [vmem:[#allocation5 + $0x6d8] sm:$0xff] %vm1732_vm2, %v6427_v50  ;;  %v7060_v45 = vld [vmem:[#allocation5 + $0x2f8] sm:$0xff]  ;;  %vm14888_vm15 = vcmask 15360  }
 0x795   : > { %v13561_v62 = vsel %vm1317_vm11, %v6664_v18, %v13550_v35  ;;  %6361 = vrot.lane.b32.xlu0 %v14869_v44, %s14496_s8  ;;  %7607 = vmatpush1.bf16.msra.mxu0 %v5507_v51  ;;  %v7051_v51 = vld [vmem:[#allocation5 + $0x2b0] sm:$0xff]  ;;  %s7265_s8 = sld [smem:[#allocation6]] }
 0x796   : > { %7608 = vmatprep.subr.bf16.mxu0 %v7052_v57  ;;  %v7133_v57 = vld [vmem:[#allocation5 + $0x540] sm:$0xff] }
 0x797   : > { %v5928_v34 = vpop.permute.xlu0 %5927 }
 0x798   : > { %v13569_v32 = vpop.permute.xlu1 %6673  ;;  %v13573_v52 = vsel %vm14881_vm7, %v13038_v63, %v5928_v34  ;;  %v5942_v59 = vsel %vm14882_vm12, %v5928_v34, %v13369_v48  ;;  %vm14889_vm7 = vmmov %vm14887_vm3  ;;  %vm14890_vm12 = vcmask 875520  }
 0x799   : > { %5965 = vst [vmem:[#allocation5 + $0x470] sm:$0xff] %v13573_v52  ;;  %5966 = vst.msk [vmem:[#allocation5 + $0x478] sm:$0xff] %vm1732_vm2, %v5942_v59  ;;  %6442 = vrot.lane.b32.xlu0 %v14869_v44, %s14505_s17  ;;  %7609 = vmatpush1.bf16.msra.mxu0 %v7051_v51  ;;  %s8086_s17 = scalar_lea.sflag [#allocation10], %s497_s16 }
 0x79a   : > { %7610 = vmatprep.subr.bf16.mxu0 %v7056_v0  ;;  %v7137_v0 = vld [vmem:[#allocation5 + $0x560] sm:$0xff] }
 0x79b   : > { %v13581_v1 = vpop.permute.xlu0 %6035 }
 0x79c   : > { %v6672_v3 = vpop.permute.xlu1 %6671  ;;  %v6046_v48 = vsel %vm14883_vm4, %v13057_v27, %v13581_v1  ;;  %vm14891_vm4 = vmmov %vm14890_vm12 }
 0x79d   : > { %v13585_v63 = vsel %vm1317_vm11, %v6672_v3, %v13569_v32  ;;  %6523 = vrot.lane.b32.xlu0 %v14869_v44, %s14512_s25  ;;  %7452 = vmatprep.subr.bf16.mxu1 %v6046_v48  ;;  %v7068_v3 = vld [vmem:[#allocation5 + $0x338] sm:$0xff] }
 0x79e   : > { %7611 = vmatpush1.bf16.msra.mxu0 %v13203_v26  ;;  %7453 = vmatpush1.bf16.msra.mxu1 %v7129_v7  ;;  %v7064_v26 = vld [vmem:[#allocation5 + $0x318] sm:$0xff] }
 0x79f   : > { %7612 = vmatprep.subr.bf16.mxu0 %v7060_v45  ;;  %v13595_v50 = vpop.permute.xlu0 %6116  ;;  %7454 = vmatprep.subr.bf16.mxu1 %v7134_v2  ;;  %v7072_v45 = vld [vmem:[#allocation5 + $0x358] sm:$0xff]  ;;  %v7146_v2 = vld [vmem:[#allocation5 + $0x5a8] sm:$0xff] }
 0x7a0   : > { %v13593_v18 = vpop.permute.xlu1 %6681  ;;  %v6127_v27 = vsel %vm14884_vm13, %v13071_v37, %v13595_v50  ;;  %vm14892_vm13 = vmmov %vm14887_vm3 }
 0x7a1   : > { %6604 = vrot.lane.b32.xlu0 %v14869_v44, %s14525_s26  ;;  %s8954_s26 = smov [#allocation11]  }
 0x7a2   : > { %7613 = vmatpush1.bf16.msra.mxu0 %v13522_v24  ;;  %7455 = vmatpush1.bf16.msra.mxu1 %v7133_v57  ;;  %v7063_v24 = vld [vmem:[#allocation5 + $0x310] sm:$0xff]  ;;  %s8858_s18 = sshll.u32 %s8954_s26, 4  ;;  %s8859_s18 = int_to_ptr.vmem [resolvable:$false] %s8858_s18 }
 0x7a3   : > { %7614 = vmatprep.subr.bf16.mxu0 %v7064_v26  ;;  %v13603_v59 = vpop.permute.xlu0 %6197  ;;  %7456 = vmatprep.subr.bf16.mxu1 %v13267_v36  ;;  %s8860_s12 = scalar_lea.vmem %s8859_s18, 64 }
 0x7a4   : > { %v6680_v34 = vpop.permute.xlu1 %6679  ;;  %v6208_v37 = vsel %vm14885_vm6, %v13131_v11, %v13603_v59  ;;  %v7141_v11 = vld [vmem:[#allocation5 + $0x580] sm:$0xff]  ;;  %vm14893_vm6 = vmmov %vm14891_vm4 }
 0x7a5   : > { %v13608_v51 = vsel %vm1317_vm11, %v6680_v34, %v13593_v18  ;;  %6683 = vrot.lane.b32.xlu0 %v13421_v8, %s14390_s29  ;;  %v7076_v34 = vld [vmem:[#allocation5 + $0x378] sm:$0xff] }
 0x7a6   : > { %7615 = vmatpush1.bf16.msra.mxu0 %v7063_v24  ;;  %7457 = vmatpush1.bf16.msra.mxu1 %v7137_v0 }
 0x7a7   : > { %7616 = vmatprep.subr.bf16.mxu0 %v7068_v3  ;;  %v13617_v36 = vpop.permute.xlu0 %6278  ;;  %7458 = vmatprep.subr.bf16.mxu1 %v6127_v27 }
 0x7a8   : > { %v13615_v48 = vpop.permute.xlu1 %6746  ;;  %v13622_v7 = vsel %vm14886_vm10, %v13211_v30, %v13617_v36  ;;  %vm14896_vm10 = vcmask 736256  }
 0x7a9   : > { %6685 = vrot.lane.b32.xlu0 %v14869_v44, %s14390_s29  ;;  %s8100_s29 = sshll.u32 %s499_s22, 4  ;;  %s13974_s29 = int_to_ptr.vmem [resolvable:$true] %s8100_s29 }
 0x7aa   : > { %7617 = vmatpush1.bf16.msra.mxu0 %v13215_v19  ;;  %7459 = vmatpush1.bf16.msra.mxu1 %v7141_v11  ;;  %v7145_v19 = vld [vmem:[#allocation5 + $0x5a0] sm:$0xff]  ;;  %s8854_s25 = scalar_lea.vmem %s13974_s29, 32  ;;  %p8861_p2 = scmp.lt.s32.totalorder %s13974_s29, %s8859_s18 }
 0x7ab   : > { %7618 = vmatprep.subr.bf16.mxu0 %v7072_v45  ;;  %v13627_v26 = vpop.permute.xlu0 %6359  ;;  %7460 = vmatprep.subr.bf16.mxu1 %v7146_v2  ;;  %v7149_v11 = vld [vmem:[#allocation5 + $0x5c0] sm:$0xff]  ;;  %p8855_p6 = scmp.ne.s32.totalorder %s13974_s29, %s8854_s25  ;;  %p8862_p3 = scmp.lt.s32.totalorder %s8860_s12, %s8854_s25 }
 0x7ac   : > { %v6745_v57 = vpop.permute.xlu1 %6744  ;;  %v13636_v30 = vsel %vm1229_vm0, %v13291_v53, %v13627_v26  ;;  %v7075_v53 = vld [vmem:[#allocation5 + $0x370] sm:$0xff] }
 0x7ad   : > { %v13631_v27 = vsel %vm14887_vm3, %v6745_v57, %v13615_v48  ;;  %6748 = vrot.lane.b32.xlu0 %v13431_v55, %s14385_s21  ;;  %v7153_v57 = vld [vmem:[#allocation5 + $0x5e0] sm:$0xff]  ;;  %vm14897_vm3 = vmmov %vm14896_vm10  ;;  %p8863_p4 = por %p8862_p3, %p8861_p2 }
 0x7ae   : > { %7619 = vmatpush1.bf16.msra.mxu0 %v13534_v47  ;;  %7461 = vmatpush1.bf16.msra.mxu1 %v7145_v19  ;;  %v7080_v47 = vld [vmem:[#allocation5 + $0x398] sm:$0xff]  ;;  %v13661_v19 = vrot.slane %v13317_v12, %v14799_v38  ;;  %v7157_v12 = vld [vmem:[#allocation5 + $0x600] sm:$0xff] }
 0x7af   : > { %7620 = vmatprep.subr.bf16.mxu0 %v7076_v34  ;;  %v5834_v0 = vpop.permute.xlu0 %5833  ;;  %7462 = vmatprep.subr.bf16.mxu1 %v13283_v33  ;;  %v7084_v34 = vld [vmem:[#allocation5 + $0x3b8] sm:$0xff] }
 0x7b0   : > { %v13641_v24 = vpop.permute.xlu1 %6754  ;;  %v5846_v3 = vsel %vm14888_vm15, %v13319_v28, %v5834_v0  ;;  %vm14898_vm15 = vmmov %vm14897_vm3 }
 0x7b1   : > { %5870 = vst.msk [vmem:[#allocation5 + $0x418] sm:$0xff] %vm1732_vm2, %v5846_v3  ;;  %6750 = vrot.lane.b32.xlu0 %v13218_v43, %s14385_s21  ;;  %v7079_v43 = vld [vmem:[#allocation5 + $0x390] sm:$0xff]  ;;  %v7088_v3 = vld [vmem:[#allocation5 + $0x3d8] sm:$0xff] }
 0x7b2   : > { %7621 = vmatpush1.bf16.msra.mxu0 %v7075_v53  ;;  %7463 = vmatpush1.bf16.msra.mxu1 %v7149_v11 }
 0x7b3   : > { %7622 = vmatprep.subr.bf16.mxu0 %v7080_v47  ;;  %v6433_v2 = vpop.permute.xlu0 %6432  ;;  %7464 = vmatprep.subr.bf16.mxu1 %v6208_v37  ;;  %v7161_v47 = vld [vmem:[#allocation5 + $0x620] sm:$0xff] }
 0x7b4   : > { %v6753_v45 = vpop.permute.xlu1 %6752  ;;  %v13655_v28 = vsel %vm14890_vm12, %v13383_v22, %v6433_v2  ;;  %vm14900_vm12 = vmmov %vm14897_vm3 }
 0x7b5   : > { %v13651_v33 = vsel %vm14889_vm7, %v6753_v45, %v13641_v24  ;;  %6756 = vrot.lane.b32.xlu0 %v13328_v25, %s14385_s21  ;;  %v13672_v25 = vcombine.high %v13340_v29, %v13340_v29  ;;  %v7092_v45 = vld [vmem:[#allocation5 + $0x3f8] sm:$0xff]  ;;  %vm14899_vm7 = vcmask 1039360  }
 0x7b6   : > { %7623 = vmatpush1.bf16.msra.mxu0 %v7079_v43  ;;  %7465 = vmatpush1.bf16.msra.mxu1 %v7153_v57  ;;  %v7091_v43 = vld [vmem:[#allocation5 + $0x3f0] sm:$0xff]  ;;  %v7165_v57 = vld [vmem:[#allocation5 + $0x640] sm:$0xff] }
 0x7b7   : > { %7624 = vmatprep.subr.bf16.mxu0 %v7084_v34  ;;  %v6435_v0 = vpop.permute.xlu0 %6434  ;;  %7475 = vmatprep.subr.bf16.mxu1 %v13376_v60 }
 0x7b8   : > { %v13663_v37 = vpop.permute.xlu1 %6762  ;;  %v13667_v22 = vsel %vm14891_vm4, %v6433_v2, %v6435_v0  ;;  %6472 = vst.msk [vmem:[#allocation5 + $0x6f8] sm:$0xff] %vm1732_vm2, %v6435_v0  ;;  %v7096_v34 = vld [vmem:[#allocation5 + $0x418] sm:$0xff]  ;;  %vm14901_vm4 = vmmov %vm14897_vm3 }
 0x7b9   : > { %6758 = vrot.lane.b32.xlu0 %v13348_v10, %s14385_s21  ;;  %7467 = vmatmul.mubr.bf16.vlgmr.msra.gmra.mrb[28].mxu1 %v13661_v19 }
 0x7ba   : > { %7625 = vmatpush1.bf16.msra.mxu0 %v13545_v14  ;;  %7476 = vmatpush1.bf16.msra.mxu1 %v7157_v12  ;;  %v7087_v14 = vld [vmem:[#allocation5 + $0x3d0] sm:$0xff] }
 0x7bb   : > { %7626 = vmatprep.subr.bf16.mxu0 %v7088_v3  ;;  %v13678_v53 = vpop.permute.xlu0 %6440  ;;  %7477 = vmatprep.subr.bf16.mxu1 %v13408_v39  ;;  %v7169_v3 = vld [vmem:[#allocation5 + $0x660] sm:$0xff] }
 0x7bc   : > { %v6761_v60 = vpop.permute.xlu1 %6760  ;;  %v13688_v10 = vsel %vm14893_vm6, %v13404_v61, %v13678_v53  ;;  %7507 = vmatprep.mubr.bf16.mxu1 %v13672_v25  ;;  %vm14903_vm6 = vcmask 900096  }
 0x7bd   : > { %v13683_v11 = vsel %vm14892_vm13, %v6761_v60, %v13663_v37  ;;  %6764 = vrot.lane.b32.xlu0 %v13421_v8, %s14385_s21  ;;  %v7100_v60 = vld [vmem:[#allocation5 + $0x438] sm:$0xff]  ;;  %vm14902_vm13 = vcmask 1031168  }
 0x7be   : > { %7627 = vmatpush1.bf16.msra.mxu0 %v7087_v14  ;;  %7478 = vmatpush1.bf16.msra.mxu1 %v7161_v47 }
 0x7bf   : > { %7628 = vmatprep.subr.bf16.mxu0 %v7092_v45  ;;  %v6506_v2 = vpop.permute.xlu0 %6505  ;;  %7479 = vmatprep.subr.bf16.mxu1 %v13622_v7  ;;  %v14894_v45 = vld [vmem:[#allocation37_spill] sm:$0xff] }
 0x7c0   : > { %v13693_v39 = vpop.permute.xlu1 %6827  ;;  %v13698_v61 = vsel %vm1273_vm14, %v13427_v41, %v6506_v2 }
 0x7c1   : > { %6766 = vrot.lane.b32.xlu0 %v14869_v44, %s14385_s21  ;;  %s8263_s21 = sshll.u32 %s14919_s23, 5 }
 0x7c2   : > { %7629 = vmatpush1.bf16.msra.mxu0 %v7091_v43  ;;  %7480 = vmatpush1.bf16.msra.mxu1 %v7165_v57  ;;  %s13972_s4 = scalar_lea.hbm %s14925_s19, %s8263_s21 }
 0x7c3   : > { %7639 = vmatprep.subr.bf16.mxu0 %v7096_v34  ;;  %v6508_v12 = vpop.permute.xlu0 %6507  ;;  %7481 = vmatprep.subr.bf16.mxu1 %v13444_v9  ;;  %v7103_v34 = vld [vmem:[#allocation5 + $0x450] sm:$0xff] }
 0x7c4   : > { %v6826_v0 = vpop.permute.xlu1 %6825  ;;  %v13708_v41 = vsel %vm1273_vm14, %v6506_v2, %v6508_v12  ;;  %6549 = vst.msk [vmem:[#allocation5 + $0x738] sm:$0xff] %vm1732_vm2, %v6508_v12  ;;  %v7173_v2 = vld [vmem:[#allocation5 + $0x680] sm:$0xff]  ;;  %v7108_v12 = vld [vmem:[#allocation5 + $0x478] sm:$0xff] }
 0x7c5   : > { %v13705_v7 = vsel %vm1361_vm8, %v6826_v0, %v13693_v39  ;;  %6829 = vrot.lane.b32.xlu0 %v13431_v55, %s14384_s6  ;;  %7631 = vmatmul.mubr.bf16.vlgmr.msra.gmra.mrb[40].mxu0 %v13261_v13  ;;  %v7099_v13 = vld [vmem:[#allocation5 + $0x430] sm:$0xff]  ;;  %v7177_v0 = vld [vmem:[#allocation5 + $0x6a0] sm:$0xff] }
 0x7c6   : > { %7640 = vmatpush1.bf16.msra.mxu0 %v13324_v16  ;;  %7482 = vmatpush1.bf16.msra.mxu1 %v7169_v3  ;;  %v7104_v16 = vld [vmem:[#allocation5 + $0x458] sm:$0xff] }
 0x7c7   : > { %7641 = vmatprep.subr.bf16.mxu0 %v7100_v60  ;;  %v6514_v14 = vpop.permute.xlu0 %6513  ;;  %7483 = vmatprep.subr.bf16.mxu1 %v13474_v17 }
 0x7c8   : > { %v13715_v9 = vpop.permute.xlu1 %6835  ;;  %v13720_v47 = vsel %vm1273_vm14, %v13450_v20, %v6514_v14  ;;  %7671 = vmatprep.mubr.bf16.mxu0 %v13340_v29  ;;  %v13734_v29 = vld [vmem:[#allocation3 + $0x48] sm:$0xff] }
 0x7c9   : > { %6831 = vrot.lane.b32.xlu0 %v14894_v45, %s14384_s6 }
 0x7ca   : > { %7642 = vmatpush1.bf16.msra.mxu0 %v7099_v13  ;;  %7484 = vmatpush1.bf16.msra.mxu1 %v7173_v2  ;;  %v7181_v13 = vld [vmem:[#allocation5 + $0x6c0] sm:$0xff]  ;;  %v7112_v2 = vld [vmem:[#allocation5 + $0x498] sm:$0xff] }
 0x7cb   : > { %7643 = vmatprep.subr.bf16.mxu0 %v7104_v16  ;;  %v6516_v57 = vpop.permute.xlu0 %6515  ;;  %7485 = vmatprep.subr.bf16.mxu1 %v13636_v30 }
 0x7cc   : > { %v6834_v43 = vpop.permute.xlu1 %6833  ;;  %v13731_v20 = vsel %vm1273_vm14, %v6514_v14, %v6516_v57  ;;  %6553 = vst.msk [vmem:[#allocation5 + $0x758] sm:$0xff] %vm1732_vm2, %v6516_v57  ;;  %v14895_v14 = vld [vmem:[#allocation64_spill] sm:$0xff] }
 0x7cd   : > { %v13728_v17 = vsel %vm1361_vm8, %v6834_v43, %v13715_v9  ;;  %6837 = vrot.lane.b32.xlu0 %v13734_v29, %s14384_s6  ;;  %v7111_v57 = vld [vmem:[#allocation5 + $0x490] sm:$0xff] }
 0x7ce   : > { %7644 = vmatpush1.bf16.msra.mxu0 %v7103_v34  ;;  %7486 = vmatpush1.bf16.msra.mxu1 %v7177_v0 }
 0x7cf   : > { %7645 = vmatprep.subr.bf16.mxu0 %v7108_v12  ;;  %v13740_v3 = vpop.permute.xlu0 %6521  ;;  %7487 = vmatprep.subr.bf16.mxu1 %v13554_v40 }
 0x7d0   : > { %v13738_v30 = vpop.permute.xlu1 %6843  ;;  %v6532_v60 = vsel %vm1273_vm14, %v13470_v31, %v13740_v3 }
 0x7d1   : > { %6839 = vrot.lane.b32.xlu0 %v14895_v14, %s14384_s6 }
 0x7d2   : > { %7646 = vmatpush1.bf16.msra.mxu0 %v13573_v52  ;;  %7488 = vmatpush1.bf16.msra.mxu1 %v7181_v13  ;;  %v7116_v52 = vld [vmem:[#allocation5 + $0x4b8] sm:$0xff] }
 0x7d3   : > { %7647 = vmatprep.subr.bf16.mxu0 %v7112_v2  ;;  %v6587_v43 = vpop.permute.xlu0 %6586  ;;  %7489 = vmatprep.subr.bf16.mxu1 %v13655_v28  ;;  %v7119_v2 = vld [vmem:[#allocation5 + $0x4d0] sm:$0xff] }
 0x7d4   : > { %v6842_v16 = vpop.permute.xlu1 %6841  ;;  %v6607_v31 = vsel %vm14896_vm10, %v13491_v49, %v6587_v43  ;;  %v7120_v49 = vld [vmem:[#allocation5 + $0x4d8] sm:$0xff]  ;;  %vm14904_vm10 = vcmask 891904  }
 0x7d5   : > { %v13752_v40 = vsel %vm1361_vm8, %v6842_v16, %v13738_v30  ;;  %6845 = vrot.lane.b32.xlu0 %v13421_v8, %s14384_s6  ;;  %v7115_v8 = vld [vmem:[#allocation5 + $0x4b0] sm:$0xff]  ;;  %v7124_v16 = vld [vmem:[#allocation5 + $0x4f8] sm:$0xff] }
 0x7d6   : > { %7648 = vmatpush1.bf16.msra.mxu0 %v7111_v57  ;;  %7490 = vmatpush1.bf16.msra.mxu1 %v13395_v42 }
 0x7d7   : > { %7649 = vmatprep.subr.bf16.mxu0 %v7116_v52  ;;  %v6589_v0 = vpop.permute.xlu0 %6588  ;;  %7491 = vmatprep.subr.bf16.mxu1 %v13688_v10 }
 0x7d8   : > { %v13759_v34 = vpop.permute.xlu1 %6908  ;;  %v13763_v28 = vsel %vm14897_vm3, %v6587_v43, %v6589_v0  ;;  %6630 = vst.msk [vmem:[#allocation5 + $0x798] sm:$0xff] %vm1732_vm2, %v6589_v0  ;;  %vm14905_vm3 = vcmask 875520  }
 0x7d9   : > { %6847 = vrot.lane.b32.xlu0 %v14869_v44, %s14384_s6  ;;  %s14923_s6 = sld [smem:[#allocation21_spill]] }
 0x7da   : > { %7650 = vmatpush1.bf16.msra.mxu0 %v7115_v8  ;;  %7492 = vmatpush1.bf16.msra.mxu1 %v13416_v46 }
 0x7db   : > { %7651 = vmatprep.subr.bf16.mxu0 %v7120_v49  ;;  %v6595_v12 = vpop.permute.xlu0 %6594  ;;  %7493 = vmatprep.subr.bf16.mxu1 %v13698_v61 }
 0x7dc   : > { %v6907_v42 = vpop.permute.xlu1 %6906  ;;  %v6610_v13 = vsel %vm14898_vm15, %v13509_v23, %v6595_v12  ;;  %v7128_v23 = vld [vmem:[#allocation5 + $0x518] sm:$0xff] }
 0x7dd   : > { %v13772_v10 = vsel %vm1383_vm5, %v6907_v42, %v13759_v34  ;;  %6910 = vrot.lane.b32.xlu0 %v13431_v55, %s14867_s1  ;;  %v7123_v55 = vld [vmem:[#allocation5 + $0x4f0] sm:$0xff] }
 0x7de   : > { %7652 = vmatpush1.bf16.msra.mxu0 %v7119_v2  ;;  %7494 = vmatpush1.bf16.msra.mxu1 %v13440_v6 }
 0x7df   : > { %7653 = vmatprep.subr.bf16.mxu0 %v7124_v16  ;;  %v6038_v43 = vpop.permute.xlu0 %6037  ;;  %7495 = vmatprep.subr.bf16.mxu1 %v13720_v47  ;;  %p14927_p9 = scmp.ne.s32.totalorder %s14923_s6, 0 }
 0x7e0   : > { %v13779_v46 = vpop.permute.xlu1 %6916  ;;  %v6047_v61 = vsel %vm14899_vm7, %v13581_v1, %v6038_v43  ;;  %6071 = vst.msk [vmem:[#allocation5 + $0x538] sm:$0xff] %vm1732_vm2, %v6038_v43 }
 0x7e1   : > { %6070 = vst [vmem:[#allocation5 + $0x530] sm:$0xff] %v6047_v61  ;;  %6912 = vrot.lane.b32.xlu0 %v14894_v45, %s14867_s1  ;;  %v7127_v45 = vld [vmem:[#allocation5 + $0x510] sm:$0xff]  ;;  %p8856_p10 = pnand %p8855_p6, %p14927_p9 }
 0x7e2   : > { %7654 = vmatpush1.bf16.msra.mxu0 %v7123_v55  ;;  %7496 = vmatpush1.bf16.msra.mxu1 %v13461_v5 }
 0x7e3   : > { %7655 = vmatprep.subr.bf16.mxu0 %v7128_v23  ;;  %v6597_v57 = vpop.permute.xlu0 %6596  ;;  %7497 = vmatprep.subr.bf16.mxu1 %v6532_v60  ;;  %v7147_v23 = vld [vmem:[#allocation5 + $0x5b0] sm:$0xff]  ;;  %p8857_p12 = pneg %p8856_p10 }
 0x7e4   : > { %v6915_v6 = vpop.permute.xlu1 %6914  ;;  %v13793_v1 = vsel %vm14900_vm12, %v6595_v12, %v6597_v57  ;;  %6634 = vst.msk [vmem:[#allocation5 + $0x7b8] sm:$0xff] %vm1732_vm2, %v6597_v57  ;;  %v13821_v12 = vld.sshfl [vmem:[%s14025_s11 + $0x8] sm:$0x11 pattern:$0x75316420] }
 0x7e5   : > { %v13790_v47 = vsel %vm1383_vm5, %v6915_v6, %v13779_v46  ;;  %6918 = vrot.lane.b32.xlu0 %v13734_v29, %s14867_s1  ;;  %v7136_v29 = vld [vmem:[#allocation5 + $0x558] sm:$0xff]  ;;  %p8864_p7 = pnand %p8863_p4, %p8857_p12 }
 0x7e6   : > { %7656 = vmatpush1.bf16.msra.mxu0 %v7127_v45  ;;  %7498 = vmatpush1.bf16.msra.mxu1 %v13482_v54  ;;  %v7152_v6 = vld [vmem:[#allocation5 + $0x5d8] sm:$0xff]  ;;  %v7151_v45 = vld [vmem:[#allocation5 + $0x5d0] sm:$0xff] }
 0x7e7   : > { %v13801_v52 = vpop.permute.xlu0 %6602  ;;  %v7132_v60 = vld [vmem:[#allocation5 + $0x538] sm:$0xff]  ;;  %7499 = vmatprep.subr.bf16.mxu1 %v6607_v31 }
 0x7e8   : > { %v13799_v5 = vpop.permute.xlu1 %6924  ;;  %v6613_v0 = vsel %vm14901_vm4, %v13530_v21, %v13801_v52  ;;  %7657 = vmatprep.subr.bf16.mxu0 %v7132_v60  ;;  %v6892_v21 = vld [vmem:[#allocation3 + $0x78] sm:$0xff] }
 0x7e9   : > { %6920 = vrot.lane.b32.xlu0 %v14895_v14, %s14867_s1  ;;  %v7135_v14 = vld [vmem:[#allocation5 + $0x550] sm:$0xff] }
 0x7ea   : > { %7658 = vmatpush1.bf16.msra.mxu0 %v6047_v61  ;;  %7500 = vmatpush1.bf16.msra.mxu1 %v13502_v56  ;;  %v7140_v56 = vld [vmem:[#allocation5 + $0x578] sm:$0xff] }
 0x7eb   : > { %7659 = vmatprep.subr.bf16.mxu0 %v7136_v29  ;;  %v6119_v8 = vpop.permute.xlu0 %6118  ;;  %7501 = vmatprep.subr.bf16.mxu1 %v6610_v13  ;;  %v7139_v13 = vld [vmem:[#allocation5 + $0x570] sm:$0xff]  ;;  %v7160_v29 = vld [vmem:[#allocation5 + $0x618] sm:$0xff] }
 0x7ec   : > { %v6923_v54 = vpop.permute.xlu1 %6922  ;;  %v6128_v31 = vsel %vm14902_vm13, %v13595_v50, %v6119_v8  ;;  %6152 = vst.msk [vmem:[#allocation5 + $0x598] sm:$0xff] %vm1732_vm2, %v6119_v8  ;;  %v7164_v8 = vld [vmem:[#allocation5 + $0x638] sm:$0xff] }
 0x7ed   : > { %v13811_v49 = vsel %vm1383_vm5, %v6923_v54, %v13799_v5  ;;  %6151 = vst [vmem:[#allocation5 + $0x590] sm:$0xff] %v6128_v31  ;;  %6926 = vrot.lane.b32.xlu0 %v6892_v21, %s14867_s1 }
 0x7ee   : > { %7660 = vmatpush1.bf16.msra.mxu0 %v7135_v14  ;;  %7502 = vmatpush1.bf16.msra.mxu1 %v13518_v15  ;;  %v7325_v15 = vcombine.high %v13821_v12, %v13821_v12  ;;  %v7163_v14 = vld [vmem:[#allocation5 + $0x630] sm:$0xff] }
 0x7ef   : > { %7661 = vmatprep.subr.bf16.mxu0 %v7140_v56  ;;  %v6668_v42 = vpop.permute.xlu0 %6667  ;;  %7503 = vmatprep.subr.bf16.mxu1 %v6613_v0 }
 0x7f0   : > { %v6688_v50 = vsel %vm1317_vm11, %v13550_v35, %v6668_v42  ;;  %v13836_v35 = vcombine.high %v13661_v19, %v13661_v19 }
 0x7f1   : > { %6928 = vrot.lane.b32.xlu0 %v14869_v44, %s14867_s1  ;;  %v7148_v44 = vld [vmem:[#allocation5 + $0x5b8] sm:$0xff] }
 0x7f2   : > { %7662 = vmatpush1.bf16.msra.mxu0 %v7139_v13  ;;  %7504 = vmatpush1.bf16.msra.mxu1 %v13541_v4  ;;  %v13840_v4 = vrot.slane %v7325_v15, %v14799_v38  ;;  %v7176_v13 = vld [vmem:[#allocation5 + $0x698] sm:$0xff] }
 0x7f3   : > { %v6670_v2 = vpop.permute.xlu0 %6669  ;;  %v7144_v16 = vld [vmem:[#allocation5 + $0x598] sm:$0xff]  ;;  %7505 = vmatprep.subr.bf16.mxu1 %v6688_v50 }
 0x7f4   : > { %v13831_v43 = vsel %vm1317_vm11, %v6668_v42, %v6670_v2  ;;  %6711 = vst.msk [vmem:[#allocation5 + $0x7f8] sm:$0xff] %vm1732_vm2, %v6670_v2  ;;  %7663 = vmatprep.subr.bf16.mxu0 %v7144_v16  ;;  %v7175_v2 = vld [vmem:[#allocation5 + $0x690] sm:$0xff] }
 0x7f6   : > { %7664 = vmatpush1.bf16.msra.mxu0 %v6128_v31  ;;  %7506 = vmatpush1.bf16.msra.mxu1 %v13561_v62 }
 0x7f7   : > { %7665 = vmatprep.subr.bf16.mxu0 %v7148_v44  ;;  %v6200_v61 = vpop.permute.xlu0 %6199 }
 0x7f8   : > { %v6209_v55 = vsel %vm14903_vm6, %v13603_v59, %v6200_v61  ;;  %6233 = vst.msk [vmem:[#allocation5 + $0x5f8] sm:$0xff] %vm1732_vm2, %v6200_v61  ;;  %v7184_v61 = vld [vmem:[#allocation5 + $0x6d8] sm:$0xff] }
 0x7f9   : > { %7508 = vmatmul.mubr.bf16.vlgmr.msra.gmra.mrb[28].mxu1 %v13836_v35 }
 0x7fa   : > { %7666 = vmatpush1.bf16.msra.mxu0 %v7147_v23  ;;  %8255 = vmatprep.mubr.msk.bf16.mxu1 %vm4253_vm9, %v13840_v4  ;;  %v7188_v23 = vld [vmem:[#allocation5 + $0x6f8] sm:$0xff] }
 0x7fb   : > { %7667 = vmatprep.subr.bf16.mxu0 %v7152_v6  ;;  %v6676_v62 = vpop.permute.xlu0 %6675 }
 0x7fc   : > { %v6691_v57 = vsel %vm1317_vm11, %v13569_v32, %v6676_v62 }
 0x7fd   : > { %7516 = vmatprep.subr.bf16.mxu1 %v6691_v57 }
 0x7fe   : > { %7668 = vmatpush1.bf16.msra.mxu0 %v7151_v45  ;;  %7517 = vmatpush1.bf16.msra.mxu1 %v13585_v63  ;;  %v7159_v63 = vld [vmem:[#allocation5 + $0x610] sm:$0xff] }
 0x7ff   : > { %v6678_v59 = vpop.permute.xlu0 %6677  ;;  %v7156_v60 = vld [vmem:[#allocation5 + $0x5f8] sm:$0xff] }
 0x800   : > { %v13852_v0 = vsel %vm1317_vm11, %v6676_v62, %v6678_v59  ;;  %6715 = vst.msk [vmem:[#allocation5 + $0x818] sm:$0xff] %vm1732_vm2, %v6678_v59  ;;  %7669 = vmatprep.subr.bf16.mxu0 %v7156_v60 }
 0x802   : > { %7670 = vmatpush1.bf16.msra.mxu0 %v6209_v55 }
 0x803   : > { %7680 = vmatprep.subr.bf16.mxu0 %v7160_v29  ;;  %v6281_v54 = vpop.permute.xlu0 %6280 }
 0x804   : > { %v6290_v32 = vsel %vm14904_vm10, %v13617_v36, %v6281_v54  ;;  %6314 = vst.msk [vmem:[#allocation5 + $0x658] sm:$0xff] %vm1732_vm2, %v6281_v54 }
 0x805   : > { %7672 = vmatmul.mubr.bf16.vlgmr.msra.gmra.mrb[40].mxu0 %v13661_v19  ;;  %v7172_v19 = vld [vmem:[#allocation5 + $0x678] sm:$0xff] }
 0x806   : > { %7681 = vmatpush1.bf16.msra.mxu0 %v7159_v63  ;;  %7712 = vmatprep.mubr.bf16.mxu0 %v13672_v25 }
 0x807   : > { %7682 = vmatprep.subr.bf16.mxu0 %v7164_v8  ;;  %v6362_v31 = vpop.permute.xlu0 %6361 }
 0x808   : > { %v6371_v21 = vsel %vm1229_vm0, %v13627_v26, %v6362_v31  ;;  %6395 = vst.msk [vmem:[#allocation5 + $0x6b8] sm:$0xff] %vm1732_vm2, %v6362_v31  ;;  %v7171_v26 = vld [vmem:[#allocation5 + $0x670] sm:$0xff]  ;;  %vm14906_vm0 = vmmov %vm14901_vm4 }
 0x80a   : > { %7683 = vmatpush1.bf16.msra.mxu0 %v7163_v14 }
 0x80b   : > { %v6443_v56 = vpop.permute.xlu0 %6442  ;;  %v7168_v36 = vld [vmem:[#allocation5 + $0x658] sm:$0xff] }
 0x80c   : > { %v6452_v42 = vsel %vm14905_vm3, %v13678_v53, %v6443_v56  ;;  %6476 = vst.msk [vmem:[#allocation5 + $0x718] sm:$0xff] %vm1732_vm2, %v6443_v56  ;;  %7684 = vmatprep.subr.bf16.mxu0 %v7168_v36 }
 0x80e   : > { %7685 = vmatpush1.bf16.msra.mxu0 %v6290_v32 }
 0x80f   : > { %7686 = vmatprep.subr.bf16.mxu0 %v7172_v19  ;;  %v6524_v25 = vpop.permute.xlu0 %6523  ;;  %v7180_v16 = vld [vmem:[#allocation5 + $0x6b8] sm:$0xff] }
 0x810   : > { %v6533_v50 = vsel %vm1273_vm14, %v13740_v3, %v6524_v25  ;;  %6557 = vst.msk [vmem:[#allocation5 + $0x778] sm:$0xff] %vm1732_vm2, %v6524_v25  ;;  %vm14907_vm14 = vcmask 719872  }
 0x812   : > { %7687 = vmatpush1.bf16.msra.mxu0 %v7171_v26 }
 0x813   : > { %7688 = vmatprep.subr.bf16.mxu0 %v7176_v13  ;;  %v6605_v15 = vpop.permute.xlu0 %6604  ;;  %v7192_v62 = vld [vmem:[#allocation5 + $0x718] sm:$0xff]  ;;  %v7794_v13 = vld [vmem:[#allocation8 + $0x8] sm:$0xff] }
 0x814   : > { %v13871_v53 = vsel %vm14906_vm0, %v13801_v52, %v6605_v15  ;;  %6638 = vst.msk [vmem:[#allocation5 + $0x7d8] sm:$0xff] %vm1732_vm2, %v6605_v15  ;;  %v7796_v15 = vld [vmem:[#allocation8 + $0x18] sm:$0xff] }
 0x816   : > { %7689 = vmatpush1.bf16.msra.mxu0 %v7175_v2 }
 0x817   : > { %7690 = vmatprep.subr.bf16.mxu0 %v7180_v16  ;;  %v6684_v44 = vpop.permute.xlu0 %6683  ;;  %v7204_v60 = vld [vmem:[#allocation5 + $0x778] sm:$0xff]  ;;  %v8347_v16 = vpack.c.bf16 %v7796_v15, %v7794_v13 }
 0x818   : > { %v6694_v3 = vsel %vm1317_vm11, %v13593_v18, %v6684_v44  ;;  %v7832_v13 = vld [vmem:[#allocation8 + $0x138] sm:$0xff] }
 0x819   : > { %7518 = vmatprep.subr.bf16.mxu1 %v6694_v3 }
 0x81a   : > { %7691 = vmatpush1.bf16.msra.mxu0 %v6371_v21  ;;  %7519 = vmatpush1.bf16.msra.mxu1 %v13608_v51 }
 0x81b   : > { %7692 = vmatprep.subr.bf16.mxu0 %v7184_v61  ;;  %v6686_v55 = vpop.permute.xlu0 %6685  ;;  %v7798_v61 = vld [vmem:[#allocation8 + $0x28] sm:$0xff] }
 0x81c   : > { %v13878_v52 = vsel %vm1317_vm11, %v6684_v44, %v6686_v55  ;;  %6719 = vst.msk [vmem:[#allocation5 + $0x838] sm:$0xff] %vm1732_vm2, %v6686_v55  ;;  %vm14908_vm11 = vmmov %vm14907_vm14  ;;  %v7793_v44 = vld [vmem:[#allocation8] sm:$0xff]  ;;  %v7332_v55 = vrot.slane %v13821_v12, %v14799_v38 }
 0x81d   : > { %vm14909_vm15 = vmmov %vm14908_vm11 }
 0x81e   : > { %7693 = vmatpush1.bf16.msra.mxu0 %v13564_v58  ;;  %v7196_v58 = vld [vmem:[#allocation5 + $0x738] sm:$0xff]  ;;  %vm14910_vm7 = vmmov %vm14908_vm11 }
 0x81f   : > { %7694 = vmatprep.subr.bf16.mxu0 %v7188_v23  ;;  %v6749_v6 = vpop.permute.xlu0 %6748  ;;  %vm14911_vm12 = vmmov %vm14910_vm7 }
 0x820   : > { %v6769_v18 = vsel %vm14907_vm14, %v13615_v48, %v6749_v6  ;;  %vm14912_vm4 = vmmov %vm14910_vm7 }
 0x821   : > { %7520 = vmatprep.subr.bf16.mxu1 %v6769_v18 }
 0x822   : > { %7695 = vmatpush1.bf16.msra.mxu0 %v13667_v22  ;;  %7521 = vmatpush1.bf16.msra.mxu1 %v13631_v27  ;;  %v7200_v22 = vld [vmem:[#allocation5 + $0x758] sm:$0xff] }
 0x823   : > { %7696 = vmatprep.subr.bf16.mxu0 %v7192_v62  ;;  %v6751_v51 = vpop.permute.xlu0 %6750  ;;  %v7228_v14 = vld [vmem:[#allocation5 + $0x838] sm:$0xff]  ;;  %v7797_v62 = vld [vmem:[#allocation8 + $0x20] sm:$0xff] }
 0x824   : > { %v13887_v57 = vsel %vm14908_vm11, %v6749_v6, %v6751_v51  ;;  %6792 = vst.msk [vmem:[#allocation5 + $0x858] sm:$0xff] %vm1732_vm2, %v6751_v51  ;;  %v7799_v51 = vld [vmem:[#allocation8 + $0x30] sm:$0xff] }
 0x826   : > { %7697 = vmatpush1.bf16.msra.mxu0 %v6452_v42 }
 0x827   : > { %7698 = vmatprep.subr.bf16.mxu0 %v7196_v58  ;;  %v6757_v45 = vpop.permute.xlu0 %6756  ;;  %v7804_v58 = vld [vmem:[#allocation8 + $0x58] sm:$0xff] }
 0x828   : > { %v6772_v48 = vsel %vm14909_vm15, %v13641_v24, %v6757_v45 }
 0x829   : > { %7522 = vmatprep.subr.bf16.mxu1 %v6772_v48  ;;  %v7801_v48 = vld [vmem:[#allocation8 + $0x40] sm:$0xff] }
 0x82a   : > { %7699 = vmatpush1.bf16.msra.mxu0 %v13708_v41  ;;  %7523 = vmatpush1.bf16.msra.mxu1 %v13651_v33  ;;  %v7208_v41 = vld [vmem:[#allocation5 + $0x798] sm:$0xff] }
 0x82b   : > { %7700 = vmatprep.subr.bf16.mxu0 %v7200_v22  ;;  %v6759_v27 = vpop.permute.xlu0 %6758  ;;  %v7803_v22 = vld [vmem:[#allocation8 + $0x50] sm:$0xff] }
 0x82c   : > { %v6773_v59 = vsel %vm14910_vm7, %v6757_v45, %v6759_v27  ;;  %6796 = vst.msk [vmem:[#allocation5 + $0x878] sm:$0xff] %vm1732_vm2, %v6759_v27  ;;  %v8353_v45 = vpack.c.bf16 %v7799_v51, %v7797_v62  ;;  %v7806_v27 = vld [vmem:[#allocation8 + $0x68] sm:$0xff]  ;;  %v7837_v62 = vld [vmem:[#allocation8 + $0x160] sm:$0xff]  ;;  %v7839_v51 = vld [vmem:[#allocation8 + $0x170] sm:$0xff] }
 0x82e   : > { %7701 = vmatpush1.bf16.msra.mxu0 %v13731_v20  ;;  %v7212_v20 = vld [vmem:[#allocation5 + $0x7b8] sm:$0xff] }
 0x82f   : > { %7702 = vmatprep.subr.bf16.mxu0 %v7204_v60  ;;  %v6765_v29 = vpop.permute.xlu0 %6764  ;;  %v8357_v60 = vpack.c.bf16 %v7803_v22, %v7801_v48  ;;  %v7846_v22 = vld [vmem:[#allocation8 + $0x1a8] sm:$0xff] }
 0x830   : > { %v6775_v24 = vsel %vm14911_vm12, %v13663_v37, %v6765_v29  ;;  %v7216_v37 = vld [vmem:[#allocation5 + $0x7d8] sm:$0xff] }
 0x831   : > { %7524 = vmatprep.subr.bf16.mxu1 %v6775_v24 }
 0x832   : > { %7703 = vmatpush1.bf16.msra.mxu0 %v6533_v50  ;;  %7525 = vmatpush1.bf16.msra.mxu1 %v13683_v11 }
 0x833   : > { %7704 = vmatprep.subr.bf16.mxu0 %v7208_v41  ;;  %v6767_v33 = vpop.permute.xlu0 %6766  ;;  %v7805_v41 = vld [vmem:[#allocation8 + $0x60] sm:$0xff] }
 0x834   : > { %v6776_v54 = vsel %vm14912_vm4, %v6765_v29, %v6767_v33  ;;  %6800 = vst.msk [vmem:[#allocation5 + $0x898] sm:$0xff] %vm1732_vm2, %v6767_v33  ;;  %v7807_v33 = vld [vmem:[#allocation8 + $0x70] sm:$0xff] }
 0x836   : > { %7705 = vmatpush1.bf16.msra.mxu0 %v13763_v28  ;;  %v7220_v28 = vld [vmem:[#allocation5 + $0x7f8] sm:$0xff] }
 0x837   : > { %7706 = vmatprep.subr.bf16.mxu0 %v7212_v20  ;;  %v6830_v32 = vpop.permute.xlu0 %6829  ;;  %v7812_v20 = vld [vmem:[#allocation8 + $0x98] sm:$0xff] }
 0x838   : > { %v6850_v63 = vsel %vm1361_vm8, %v13693_v39, %v6830_v32 }
 0x839   : > { %7526 = vmatprep.subr.bf16.mxu1 %v6850_v63 }
 0x83a   : > { %7707 = vmatpush1.bf16.msra.mxu0 %v13793_v1  ;;  %7527 = vmatpush1.bf16.msra.mxu1 %v13705_v7  ;;  %v7224_v1 = vld [vmem:[#allocation5 + $0x818] sm:$0xff] }
 0x83b   : > { %7708 = vmatprep.subr.bf16.mxu0 %v7216_v37  ;;  %v6832_v11 = vpop.permute.xlu0 %6831  ;;  %v7240_v36 = vld [vmem:[#allocation5 + $0x898] sm:$0xff]  ;;  %v7809_v37 = vld [vmem:[#allocation8 + $0x80] sm:$0xff] }
 0x83c   : > { %v6851_v8 = vsel %vm1361_vm8, %v6830_v32, %v6832_v11  ;;  %6873 = vst.msk [vmem:[#allocation5 + $0x8b8] sm:$0xff] %vm1732_vm2, %v6832_v11  ;;  %v8361_v32 = vpack.c.bf16 %v7807_v33, %v7805_v41  ;;  %v7811_v11 = vld [vmem:[#allocation8 + $0x90] sm:$0xff]  ;;  %v7852_v41 = vld [vmem:[#allocation8 + $0x1d8] sm:$0xff] }
 0x83e   : > { %7709 = vmatpush1.bf16.msra.mxu0 %v13871_v53 }
 0x83f   : > { %7710 = vmatprep.subr.bf16.mxu0 %v7220_v28  ;;  %v6838_v31 = vpop.permute.xlu0 %6837  ;;  %v7816_v28 = vld [vmem:[#allocation8 + $0xb8] sm:$0xff] }
 0x840   : > { %v6853_v39 = vsel %vm1361_vm8, %v13715_v9, %v6838_v31 }
 0x841   : > { %7528 = vmatprep.subr.bf16.mxu1 %v6853_v39 }
 0x842   : > { %7711 = vmatpush1.bf16.msra.mxu0 %v13831_v43  ;;  %7529 = vmatpush1.bf16.msra.mxu1 %v13728_v17  ;;  %v7232_v17 = vld [vmem:[#allocation5 + $0x858] sm:$0xff] }
 0x843   : > { %7721 = vmatprep.subr.bf16.mxu0 %v7224_v1  ;;  %v6840_v7 = vpop.permute.xlu0 %6839  ;;  %v7244_v19 = vld [vmem:[#allocation5 + $0x8b8] sm:$0xff]  ;;  %v7813_v1 = vld [vmem:[#allocation8 + $0xa0] sm:$0xff] }
 0x844   : > { %v6854_v21 = vsel %vm1361_vm8, %v6838_v31, %v6840_v7  ;;  %6877 = vst.msk [vmem:[#allocation5 + $0x8d8] sm:$0xff] %vm1732_vm2, %v6840_v7  ;;  %v8365_v31 = vpack.c.bf16 %v7811_v11, %v7809_v37  ;;  %v7815_v7 = vld [vmem:[#allocation8 + $0xb0] sm:$0xff]  ;;  %v7856_v37 = vld [vmem:[#allocation8 + $0x1f8] sm:$0xff] }
 0x845   : > { %7713 = vmatmul.mubr.bf16.vlgmr.msra.gmra.mrb[40].mxu0 %v13836_v35 }
 0x846   : > { %7722 = vmatpush1.bf16.msra.mxu0 %v13852_v0  ;;  %8256 = vmatprep.mubr.msk.bf16.mxu0 %vm4253_vm9, %v13840_v4  ;;  %v7236_v4 = vld [vmem:[#allocation5 + $0x878] sm:$0xff] }
 0x847   : > { %7723 = vmatprep.subr.bf16.mxu0 %v7228_v14  ;;  %v6846_v9 = vpop.permute.xlu0 %6845  ;;  %v7820_v14 = vld [vmem:[#allocation8 + $0xd8] sm:$0xff] }
 0x848   : > { %v6856_v43 = vsel %vm1361_vm8, %v13738_v30, %v6846_v9 }
 0x849   : > { %7530 = vmatprep.subr.bf16.mxu1 %v6856_v43 }
 0x84a   : > { %7724 = vmatpush1.bf16.msra.mxu0 %v13878_v52  ;;  %7531 = vmatpush1.bf16.msra.mxu1 %v13752_v40 }
 0x84b   : > { %7725 = vmatprep.subr.bf16.mxu0 %v7232_v17  ;;  %v6848_v56 = vpop.permute.xlu0 %6847  ;;  %v7817_v17 = vld [vmem:[#allocation8 + $0xc0] sm:$0xff] }
 0x84c   : > { %v6857_v35 = vsel %vm1361_vm8, %v6846_v9, %v6848_v56  ;;  %6881 = vst.msk [vmem:[#allocation5 + $0x8f8] sm:$0xff] %vm1732_vm2, %v6848_v56  ;;  %v8369_v9 = vpack.c.bf16 %v7815_v7, %v7813_v1  ;;  %v7819_v56 = vld [vmem:[#allocation8 + $0xd0] sm:$0xff]  ;;  %v7860_v1 = vld [vmem:[#allocation8 + $0x218] sm:$0xff] }
 0x84e   : > { %7726 = vmatpush1.bf16.msra.mxu0 %v13887_v57 }
 0x84f   : > { %7727 = vmatprep.subr.bf16.mxu0 %v7236_v4  ;;  %v6911_v0 = vpop.permute.xlu0 %6910  ;;  %v7824_v4 = vld [vmem:[#allocation8 + $0xf8] sm:$0xff] }
 0x850   : > { %v6931_v30 = vsel %vm1383_vm5, %v13759_v34, %v6911_v0  ;;  %v7248_v34 = vld [vmem:[#allocation5 + $0x8d8] sm:$0xff] }
 0x851   : > { %7532 = vmatprep.subr.bf16.mxu1 %v6931_v30 }
 0x852   : > { %7728 = vmatpush1.bf16.msra.mxu0 %v6773_v59  ;;  %7533 = vmatpush1.bf16.msra.mxu1 %v13772_v10  ;;  %v7808_v59 = vld [vmem:[#allocation8 + $0x78] sm:$0xff] }
 0x853   : > { %7729 = vmatprep.subr.bf16.mxu0 %v7240_v36  ;;  %v6913_v40 = vpop.permute.xlu0 %6912  ;;  %v7252_v53 = vld [vmem:[#allocation5 + $0x8f8] sm:$0xff]  ;;  %v8359_v24 = vpack.c.bf16 %v7808_v59, %v7806_v27  ;;  %v7821_v36 = vld [vmem:[#allocation8 + $0xe0] sm:$0xff] }
 0x854   : > { %v6932_v42 = vsel %vm1383_vm5, %v6911_v0, %v6913_v40  ;;  %6954 = vst.msk [vmem:[#allocation5 + $0x918] sm:$0xff] %vm1732_vm2, %v6913_v40  ;;  %v8373_v0 = vpack.c.bf16 %v7819_v56, %v7817_v17  ;;  %v7823_v40 = vld [vmem:[#allocation8 + $0xf0] sm:$0xff]  ;;  %v7848_v27 = vld [vmem:[#allocation8 + $0x1b8] sm:$0xff]  ;;  %v7845_v59 = vld [vmem:[#allocation8 + $0x1a0] sm:$0xff] }
 0x856   : > { %7730 = vmatpush1.bf16.msra.mxu0 %v6776_v54  ;;  %v7810_v54 = vld [vmem:[#allocation8 + $0x88] sm:$0xff] }
 0x857   : > { %7731 = vmatprep.subr.bf16.mxu0 %v7244_v19  ;;  %v6919_v25 = vpop.permute.xlu0 %6918  ;;  %v8363_v63 = vpack.c.bf16 %v7812_v20, %v7810_v54  ;;  %v7828_v19 = vld [vmem:[#allocation8 + $0x118] sm:$0xff]  ;;  %v7849_v20 = vld [vmem:[#allocation8 + $0x1c0] sm:$0xff] }
 0x858   : > { %v6934_v50 = vsel %vm1383_vm5, %v13779_v46, %v6919_v25  ;;  %v7795_v46 = vld [vmem:[#allocation8 + $0x10] sm:$0xff] }
 0x859   : > { %7534 = vmatprep.subr.bf16.mxu1 %v6934_v50  ;;  %v8349_v23 = vpack.c.bf16 %v7795_v46, %v7793_v44  ;;  %v7834_v44 = vld [vmem:[#allocation8 + $0x148] sm:$0xff]  ;;  %v7836_v46 = vld [vmem:[#allocation8 + $0x158] sm:$0xff] }
 0x85a   : > { %7732 = vmatpush1.bf16.msra.mxu0 %v6851_v8  ;;  %7535 = vmatpush1.bf16.msra.mxu1 %v13790_v47  ;;  %v7800_v47 = vld [vmem:[#allocation8 + $0x38] sm:$0xff]  ;;  %v7814_v8 = vld [vmem:[#allocation8 + $0xa8] sm:$0xff] }
 0x85b   : > { %7733 = vmatprep.subr.bf16.mxu0 %v7248_v34  ;;  %v6921_v10 = vpop.permute.xlu0 %6920  ;;  %v7256_v52 = vld [vmem:[#allocation5 + $0x918] sm:$0xff]  ;;  %v8351_v18 = vpack.c.bf16 %v7800_v47, %v7798_v61  ;;  %v8367_v39 = vpack.c.bf16 %v7816_v28, %v7814_v8  ;;  %v7825_v34 = vld [vmem:[#allocation8 + $0x100] sm:$0xff]  ;;  %v8387_v61 = vpack.c.bf16 %v7836_v46, %v7834_v44 }
 0x85c   : > { %v6935_v26 = vsel %vm1383_vm5, %v6919_v25, %v6921_v10  ;;  %6958 = vst.msk [vmem:[#allocation5 + $0x938] sm:$0xff] %vm1732_vm2, %v6921_v10  ;;  %v8377_v25 = vpack.c.bf16 %v7823_v40, %v7821_v36  ;;  %v7827_v10 = vld [vmem:[#allocation8 + $0x110] sm:$0xff]  ;;  %v7833_v47 = vld [vmem:[#allocation8 + $0x140] sm:$0xff] }
 0x85d   : > { %v8381_v15 = vpack.c.bf16 %v7827_v10, %v7825_v34  ;;  %v7853_v28 = vld [vmem:[#allocation8 + $0x1e0] sm:$0xff] }
 0x85e   : > { %7734 = vmatpush1.bf16.msra.mxu0 %v6854_v21  ;;  %v7818_v21 = vld [vmem:[#allocation8 + $0xc8] sm:$0xff] }
 0x85f   : > { %7735 = vmatprep.subr.bf16.mxu0 %v7252_v53  ;;  %v6927_v2 = vpop.permute.xlu0 %6926  ;;  %v8371_v43 = vpack.c.bf16 %v7820_v14, %v7818_v21  ;;  %v7266_v14 = vstv %s7265_s8 }
 0x860   : > { %v6937_v3 = vsel %vm1383_vm5, %v13799_v5, %v6927_v2  ;;  %v7802_v5 = vld [vmem:[#allocation8 + $0x48] sm:$0xff] }
 0x861   : > { %7536 = vmatprep.subr.bf16.mxu1 %v6937_v3 }
 0x862   : > { %7736 = vmatpush1.bf16.msra.mxu0 %v6857_v35  ;;  %7537 = vmatpush1.bf16.msra.mxu1 %v13811_v49  ;;  %v8355_v49 = vpack.c.bf16 %v7804_v58, %v7802_v5  ;;  %v7822_v35 = vld [vmem:[#allocation8 + $0xe8] sm:$0xff]  ;;  %v7844_v58 = vld [vmem:[#allocation8 + $0x198] sm:$0xff] }
 0x863   : > { %7737 = vmatprep.subr.bf16.mxu0 %v7256_v52  ;;  %v6929_v6 = vpop.permute.xlu0 %6928  ;;  %8348 = vmatprep.subr.bf16.mxu1 %v8347_v16  ;;  %v7260_v12 = vld [vmem:[#allocation5 + $0x938] sm:$0xff]  ;;  %v8375_v30 = vpack.c.bf16 %v7824_v4, %v7822_v35  ;;  %v7831_v16 = vld [vmem:[#allocation8 + $0x130] sm:$0xff]  ;;  %v7838_v52 = vld [vmem:[#allocation8 + $0x168] sm:$0xff] }
 0x864   : > { %v6938_v57 = vsel %vm1383_vm5, %v6927_v2, %v6929_v6  ;;  %6962 = vst.msk [vmem:[#allocation5 + $0x958] sm:$0xff] %vm1732_vm2, %v6929_v6  ;;  %v7829_v2 = vld [vmem:[#allocation8 + $0x120] sm:$0xff]  ;;  %v7842_v5 = vld [vmem:[#allocation8 + $0x188] sm:$0xff] }
 0x865   : > { %7549 = vmatmul.mubr.bf16.vlgmr.msra.gmra.mrb[28].mxu1 %v7332_v55  ;;  %v8385_v3 = vpack.c.bf16 %v7831_v16, %v7829_v2  ;;  %v7862_v2 = vld [vmem:[#allocation8 + $0x228] sm:$0xff]  ;;  %v7864_v16 = vld [vmem:[#allocation8 + $0x238] sm:$0xff] }
 0x866   : > { %7738 = vmatpush1.bf16.msra.mxu0 %v6932_v42  ;;  %8350 = vmatpush1.bf16.msra.mxu1 %v8349_v23  ;;  %v7826_v42 = vld [vmem:[#allocation8 + $0x108] sm:$0xff]  ;;  %v7840_v23 = vld [vmem:[#allocation8 + $0x178] sm:$0xff] }
 0x867   : > { %7739 = vmatprep.subr.bf16.mxu0 %v7260_v12  ;;  %8352 = vmatprep.subr.bf16.mxu1 %v8351_v18  ;;  %v8379_v50 = vpack.c.bf16 %v7828_v19, %v7826_v42  ;;  %v8391_v18 = vpack.c.bf16 %v7840_v23, %v7838_v52  ;;  %v8395_v12 = vpack.c.bf16 %v7844_v58, %v7842_v5  ;;  %v7866_v5 = vld [vmem:[#allocation8 + $0x248] sm:$0xff]  ;;  %v7868_v58 = vld [vmem:[#allocation8 + $0x258] sm:$0xff] }
 0x868   : > { %v8415_v23 = vpack.c.bf16 %v7864_v16, %v7862_v2  ;;  %v14922_v2 = vld [vmem:[#allocation30_spill] sm:$0xff] }
 0x86a   : > { %7740 = vmatpush1.bf16.msra.mxu0 %v6935_v26  ;;  %8354 = vmatpush1.bf16.msra.mxu1 %v8353_v45  ;;  %v7830_v26 = vld [vmem:[#allocation8 + $0x128] sm:$0xff]  ;;  %v7841_v45 = vld [vmem:[#allocation8 + $0x180] sm:$0xff] }
 0x86b   : > { %v7264_v29 = vld [vmem:[#allocation5 + $0x958] sm:$0xff]  ;;  %8356 = vmatprep.subr.bf16.mxu1 %v8355_v49  ;;  %v8383_v53 = vpack.c.bf16 %v7832_v13, %v7830_v26  ;;  %v7843_v49 = vld [vmem:[#allocation8 + $0x190] sm:$0xff] }
 0x86c   : > { %7741 = vmatprep.subr.bf16.mxu0 %v7264_v29  ;;  %v8397_v48 = vpack.c.bf16 %v7843_v49, %v7841_v45  ;;  %v7847_v29 = vld [vmem:[#allocation8 + $0x1b0] sm:$0xff]  ;;  %v8419_v45 = vpack.c.bf16 %v7868_v58, %v7866_v5  ;;  %v7865_v49 = vld [vmem:[#allocation8 + $0x240] sm:$0xff] }
 0x86d   : > { %v8401_v33 = vpack.c.bf16 %v7847_v29, %v7845_v59  ;;  %v7869_v29 = vld [vmem:[#allocation8 + $0x260] sm:$0xff] }
 0x86e   : > { %7742 = vmatpush1.bf16.msra.mxu0 %v6938_v57  ;;  %8358 = vmatpush1.bf16.msra.mxu1 %v8357_v60  ;;  %v8393_v57 = vpack.c.bf16 %v7839_v51, %v7837_v62  ;;  %v8399_v60 = vpack.c.bf16 %v7848_v27, %v7846_v22  ;;  %v14916_v62 = vld [vmem:[#allocation23_spill] sm:$0xff]  ;;  %v7872_v27 = vld [vmem:[#allocation8 + $0x278] sm:$0xff] }
 0x86f   : > { %8360 = vmatprep.subr.bf16.mxu1 %v8359_v24  ;;  %v7850_v24 = vld [vmem:[#allocation8 + $0x1c8] sm:$0xff]  ;;  %v14917_v51 = vsub.s32 3, %v14916_v62 }
 0x870   : > { %v8403_v54 = vpack.c.bf16 %v7852_v41, %v7850_v24  ;;  %v7870_v22 = vld [vmem:[#allocation8 + $0x268] sm:$0xff]  ;;  %v7871_v24 = vld [vmem:[#allocation8 + $0x270] sm:$0xff] }
 0x871   : > { %7754 = vmatmul.mubr.bf16.vlgmr.msra.gmra.mrb[40].mxu0 %v7332_v55  ;;  %v7835_v55 = vld [vmem:[#allocation8 + $0x150] sm:$0xff]  ;;  %v7874_v41 = vld [vmem:[#allocation8 + $0x288] sm:$0xff] }
 0x872   : > { %8362 = vmatpush1.bf16.msra.mxu1 %v8361_v32  ;;  %v8389_v6 = vpack.c.bf16 %v7835_v55, %v7833_v47  ;;  %v7851_v32 = vld [vmem:[#allocation8 + $0x1d0] sm:$0xff] }
 0x873   : > { %8364 = vmatprep.subr.bf16.mxu1 %v8363_v63  ;;  %v7854_v63 = vld [vmem:[#allocation8 + $0x1e8] sm:$0xff]  ;;  %v8405_v11 = vpack.c.bf16 %v7851_v32, %v7849_v20  ;;  %v14915_v47 = vld [vmem:[#allocation25_spill] sm:$0xff]  ;;  %v7873_v32 = vld [vmem:[#allocation8 + $0x280] sm:$0xff] }
 0x874   : > { %v8407_v8 = vpack.c.bf16 %v7856_v37, %v7854_v63  ;;  %v7875_v63 = vld [vmem:[#allocation8 + $0x290] sm:$0xff]  ;;  %v7878_v37 = vld [vmem:[#allocation8 + $0x2a8] sm:$0xff] }
 0x876   : > { %8366 = vmatpush1.bf16.msra.mxu1 %v8365_v31  ;;  %v7855_v31 = vld [vmem:[#allocation8 + $0x1f0] sm:$0xff] }
 0x877   : > { %8368 = vmatprep.subr.bf16.mxu1 %v8367_v39  ;;  %v7858_v39 = vld [vmem:[#allocation8 + $0x208] sm:$0xff]  ;;  %v8409_v7 = vpack.c.bf16 %v7855_v31, %v7853_v28  ;;  %v7877_v31 = vld [vmem:[#allocation8 + $0x2a0] sm:$0xff] }
 0x878   : > { %v8411_v21 = vpack.c.bf16 %v7860_v1, %v7858_v39  ;;  %v7879_v39 = vld [vmem:[#allocation8 + $0x2b0] sm:$0xff]  ;;  %v7882_v1 = vld [vmem:[#allocation8 + $0x2c8] sm:$0xff] }
 0x87a   : > { %8370 = vmatpush1.bf16.msra.mxu1 %v8369_v9 }
 0x87b   : > { %8372 = vmatprep.subr.bf16.mxu1 %v8371_v43 }
 0x87e   : > { %8374 = vmatpush1.bf16.msra.mxu1 %v8373_v0 }
 0x87f   : > { %8376 = vmatprep.subr.bf16.mxu1 %v8375_v30 }
 0x882   : > { %8378 = vmatpush1.bf16.msra.mxu1 %v8377_v25 }
 0x883   : > { %8380 = vmatprep.subr.bf16.mxu1 %v8379_v50 }
 0x886   : > { %8382 = vmatpush1.bf16.msra.mxu1 %v8381_v15  ;;  %v7857_v15 = vld [vmem:[#allocation8 + $0x200] sm:$0xff] }
 0x887   : > { %8384 = vmatprep.subr.bf16.mxu1 %v8383_v53  ;;  %v7859_v53 = vld [vmem:[#allocation8 + $0x210] sm:$0xff] }
 0x888   : > { %v8413_v52 = vpack.c.bf16 %v7859_v53, %v7857_v15  ;;  %v14921_v15 = vld [vmem:[#allocation29_spill] sm:$0xff] }
 0x88a   : > { %8386 = vmatpush1.bf16.msra.mxu1 %v8385_v3  ;;  %v14914_v3 = vld [vmem:[#allocation24_spill] sm:$0xff] }
 0x88b   : > { %8388 = vmatprep.subr.bf16.mxu1 %v8387_v61 }
 0x88e   : > { %8390 = vmatpush1.bf16.msra.mxu1 %v8389_v6  ;;  %v7861_v6 = vld [vmem:[#allocation8 + $0x220] sm:$0xff] }
 0x88f   : > { %8392 = vmatprep.subr.bf16.mxu1 %v8391_v18  ;;  %v7863_v18 = vld [vmem:[#allocation8 + $0x230] sm:$0xff] }
 0x892   : > { %8394 = vmatpush1.bf16.msra.mxu1 %v8393_v57 }
 0x893   : > { %8396 = vmatprep.subr.bf16.mxu1 %v8395_v12  ;;  %v8417_v12 = vpack.c.bf16 %v7863_v18, %v7861_v6 }
 0x896   : > { %8398 = vmatpush1.bf16.msra.mxu1 %v8397_v48  ;;  %v7867_v48 = vld [vmem:[#allocation8 + $0x250] sm:$0xff] }
 0x897   : > { %8400 = vmatprep.subr.bf16.mxu1 %v8399_v60  ;;  %v8421_v59 = vpack.c.bf16 %v7867_v48, %v7865_v49  ;;  %v8423_v60 = vpack.c.bf16 %v7872_v27, %v7870_v22 }
 0x89a   : > { %8402 = vmatpush1.bf16.msra.mxu1 %v8401_v33  ;;  %v7876_v33 = vld [vmem:[#allocation8 + $0x298] sm:$0xff] }
 0x89b   : > { %8404 = vmatprep.subr.bf16.mxu1 %v8403_v54  ;;  %v8425_v54 = vpack.c.bf16 %v7871_v24, %v7869_v29  ;;  %v8427_v20 = vpack.c.bf16 %v7876_v33, %v7874_v41 }
 0x89e   : > { %8406 = vmatpush1.bf16.msra.mxu1 %v8405_v11  ;;  %v7880_v11 = vld [vmem:[#allocation8 + $0x2b8] sm:$0xff] }
 0x89f   : > { %8408 = vmatprep.subr.bf16.mxu1 %v8407_v8  ;;  %v8429_v8 = vpack.c.bf16 %v7875_v63, %v7873_v32  ;;  %v8431_v28 = vpack.c.bf16 %v7880_v11, %v7878_v37 }
 0x8a2   : > { %8410 = vmatpush1.bf16.msra.mxu1 %v8409_v7  ;;  %v7884_v7 = vld [vmem:[#allocation8 + $0x2d8] sm:$0xff] }
 0x8a3   : > { %8412 = vmatprep.subr.bf16.mxu1 %v8411_v21  ;;  %v8433_v21 = vpack.c.bf16 %v7879_v39, %v7877_v31 }
 0x938   : > { %v7550_v9 = vpop.f32.mrb[28].mxu1 }
 0x939   : > { %v8483_v43 = vadd.f32 %v7550_v9, %v7266_v14  ;;  %v7552_v17 = vpop.f32.mrb[29].mxu1  ;;  %v7881_v9 = vld [vmem:[#allocation8 + $0x2c0] sm:$0xff] }
 0x93a   : > { %v8484_v56 = vadd.f32 %v7552_v17, %v7266_v14  ;;  %v7554_v35 = vpop.f32.mrb[30].mxu1  ;;  %v7886_v17 = vld [vmem:[#allocation8 + $0x2e8] sm:$0xff] }
 0x93b   : > { %v7555_v4 = vpop.f32.mrb[31].mxu1 }
 0x93c   : > { %v7766_v0 = vcombine.low %v8483_v43, %v8484_v56  ;;  %v7883_v43 = vld [vmem:[#allocation8 + $0x2d0] sm:$0xff]  ;;  %v7888_v56 = vld [vmem:[#allocation8 + $0x2f8] sm:$0xff] }
 0x93d   : > { %v8437_v35 = vpack.c.bf16 %v7883_v43, %v7881_v9  ;;  %v8439_v4 = vpack.c.bf16 %v7888_v56, %v7886_v17 }
 0x93e   : > { %v7774_v34 = vrot.slane %v7766_v0, %v14799_v38  ;;  %v7885_v0 = vld [vmem:[#allocation8 + $0x2e0] sm:$0xff] }
 0x944   : > { %v7755_v30 = vpop.f32.mrb[40].mxu0 }
 0x945   : > { %v8485_v36 = vadd.f32 %v7755_v30, %v7266_v14  ;;  %v7757_v40 = vpop.f32.mrb[41].mxu0  ;;  %v7887_v30 = vld [vmem:[#allocation8 + $0x2f0] sm:$0xff] }
 0x946   : > { %v8486_v42 = vadd.f32 %v7757_v40, %v7266_v14  ;;  %v7759_v19 = vpop.f32.mrb[42].mxu0  ;;  %v8435_v14 = vpack.c.bf16 %v7884_v7, %v7882_v1  ;;  %v7892_v40 = vld [vmem:[#allocation8 + $0x318] sm:$0xff] }
 0x947   : > { %v7760_v25 = vpop.f32.mrb[43].mxu0 }
 0x948   : > { %v7767_v50 = vcombine.low %v8485_v36, %v8486_v42  ;;  %v7890_v36 = vld [vmem:[#allocation8 + $0x308] sm:$0xff]  ;;  %v8441_v42 = vpack.c.bf16 %v7887_v30, %v7885_v0  ;;  %v7889_v25 = vld [vmem:[#allocation8 + $0x300] sm:$0xff] }
 0x949   : > { %v8443_v19 = vpack.c.bf16 %v7892_v40, %v7890_v36 }
 0x94a   : > { %v7781_v10 = vrot.slane %v7767_v50, %v14799_v38  ;;  %v7891_v50 = vld [vmem:[#allocation8 + $0x310] sm:$0xff] }
 0x94c   : > { %v7782_v26 = vcombine.low %v7774_v34, %v7781_v10  ;;  %v8445_v34 = vpack.c.bf16 %v7891_v50, %v7889_v25  ;;  %v14920_v10 = vsub.s32 2, %v14916_v62 }
 0x94e   : > { %v7789_v13 = vrot.slane %v7782_v26, %v14799_v38 }
 0x950   : > { %v13949_v46 = vsel %vm720_vm1, %v7789_v13, 0.0  ;;  %v8057_v13 = vstv %s7792_s24 }
 0x951   : > { %v7901_v61 = vrot.slane %v13949_v46, %v14914_v3  ;;  %v7897_v55 = vrot.slane %v13949_v46, %v14915_v47  ;;  %v7909_v57 = vrot.slane %v13949_v46, %v14917_v51  ;;  %v7905_v26 = vrot.slane %v13949_v46, %v14920_v10 }
 0x952   : > { %v8058_v53 = vmul.f32 %v8057_v13, %v14921_v15  ;;  %v8059_v16 = vmul.f32 %v8057_v13, %v14922_v2 }
 0x953   : > { %7979 = vmatprep.mubr.f32.mxu1 %v7901_v61 }
 0x954   : > { %7980 = vmatmul.mubr.f32.vlgmr.msra.gmra.mrb[2].mxu1 %v7897_v55 }
 0x955   : > { %8414 = vmatpush1.bf16.msra.mxu1 %v8413_v52  ;;  %8257 = vmatprep.mubr.msk.f32.mxu1 %vm1732_vm2, %v7909_v57  ;;  %v14924_v52 = vlaneseq }
 0x956   : > { %8416 = vmatprep.subr.bf16.mxu1 %v8415_v23 }
 0x957   : > { %vm8082_vm8 = vcmp.lt.s32.totalorder %v14924_v52, 256 }
 0x959   : > { %8418 = vmatpush1.bf16.msra.mxu1 %v8417_v12 }
 0x95a   : > { %8420 = vmatprep.subr.bf16.mxu1 %v8419_v45 }
 0x95d   : > { %8422 = vmatpush1.bf16.msra.mxu1 %v8421_v59 }
 0x95e   : > { %8424 = vmatprep.subr.bf16.mxu1 %v8423_v60 }
 0x961   : > { %8426 = vmatpush1.bf16.msra.mxu1 %v8425_v54 }
 0x962   : > { %8428 = vmatprep.subr.bf16.mxu1 %v8427_v20 }
 0x965   : > { %8430 = vmatpush1.bf16.msra.mxu1 %v8429_v8 }
 0x966   : > { %8432 = vmatprep.subr.bf16.mxu1 %v8431_v28 }
 0x969   : > { %8434 = vmatpush1.bf16.msra.mxu1 %v8433_v21 }
 0x96a   : > { %8436 = vmatprep.subr.bf16.mxu1 %v8435_v14 }
 0x96d   : > { %8438 = vmatpush1.bf16.msra.mxu1 %v8437_v35 }
 0x96e   : > { %8440 = vmatprep.subr.bf16.mxu1 %v8439_v4 }
 0x971   : > { %8442 = vmatpush1.bf16.msra.mxu1 %v8441_v42 }
 0x972   : > { %8444 = vmatprep.subr.bf16.mxu1 %v8443_v19 }
 0x975   : > { %8446 = vmatpush1.bf16.msra.mxu1 %v8445_v34 }
 0x978   : > { %8051 = vmatmul.mubr.f32.vlgmr.msra.gmra.mrb[2].mxu1 %v7905_v26 }
 0xa4b   : > { %v8052_v44 = vpop.f32.mrb[2].mxu1 }
 0xa4c   : > { %v8060_v3 = vadd.f32 %v8058_v53, %v8052_v44  ;;  %v8054_v61 = vpop.f32.mrb[3].mxu1 }
 0xa4d   : > { %v8061_v47 = vadd.f32 %v8059_v16, %v8054_v61 }
 0xa4f   : > { %v8064_v55 = vcombine.low %v8060_v3, %v8061_v47 }
 0xa51   : > { %v8071_v46 = vrot.slane %v8064_v55, %v14799_v38 }
 0xa53   : > { %v8078_v23 = vrot.slane %v8071_v46, %v14799_v38 }
 0xa55   : > { %8084 = vst.msk [vmem:[%s499_s22] sm:$0x3] %vm8082_vm8, %v8078_v23 }
 0xa56   : > { %8867 = shalt.err (!%p8864_p7)
}
 0xa57   : > { %s8868_s14 = scalar_lea.hbm %s13972_s4, 32  ;;  %s8872_s15 = scalar_lea.hbm %s14926_s3, 64 }
 0xa58   : > { %p8869_p8 = scmp.ne.s32.totalorder %s13972_s4, %s8868_s14  ;;  %p8873_p1 = scmp.lt.u32.totalorder %s13972_s4, %s14926_s3 }
 0xa59   : > { %p8874_p0 = scmp.lt.u32.totalorder %s8872_s15, %s8868_s14  ;;  %p8876_p6 = scmp.lt.u32.totalorder %s8868_s14, %s13972_s4 }
 0xa5a   : > { %p8870_p11 = pnand %p8869_p8, %p14927_p9 }
 0xa5b   : > { %p8875_p5 = por %p8874_p0, %p8873_p1 }
 0xa5c   : > { %p8871_p13 = pneg %p8870_p11 }
 0xa5d   : > { %p8877_p10 = por %p8876_p6, %p8875_p5 }
 0xa5f   : > { %p8878_p12 = pnand %p8877_p10, %p8871_p13 }
 0xa61   : > { %8881 = shalt.err (!%p8878_p12)
}
 0xa62   : > { %8610 = dma.vmem_to_hbm [thread:$0]  (%p14927_p9), %s13974_s29, 32, %s13972_s4, %s8086_s17  }
 0xa63 PF: > { %s14928_s1 = sld [smem:[#allocation17_spill]]  ;;  %s14929_s5 = sld [smem:[#allocation14_spill]] }
 0xa64   : > { %s14930_s7 = sld [smem:[#allocation22_spill]] }
 0xa69   : > { %p8622_p2 = scmp.ge.s32.totalorder %s14928_s1, 2  ;;  %s8112_s8 = sand.u32 1, %s14929_s5  }
 0xa6a   : > { %p14931_p3 = scmp.ne.s32.totalorder %s14930_s7, 0  ;;  %s8113_s30 = scalar_lea.sflag [#allocation10], %s8112_s8 }
 0xa6c   : > { %p8617_p4 = pnand %p8622_p2, %p14931_p3 }
 0xa6e   : > { %8903 = dma.done.wait (!%p8617_p4), %s8113_s30, 32  }
 0xa6f   : > { %8905 = vsyncadd (!%p8617_p4), %s8113_s30, 4294967264  ;;  %s14932_s20 = sld [smem:[#allocation19_spill]]  ;;  %s14933_s17 = sld [smem:[#allocation15_spill]] }
 0xa70   : > { %s14934_s18 = sld [smem:[#allocation16_spill]]  ;;  %s14935_s19 = sld [smem:[#allocation20_spill]] }
 0xa75   : > { %p27_p7 = scmp.ge.s32.totalorder %s14932_s20, 4  }
 0xa77   :  { %29 = sbr.rel (!%p27_p7) target bundleno = 18 (0x12), region = 122 }
 0xa7e   :  { %8118 = vsyncpa [#allocation9], 1 }
 0xa7f   :  { %8120 = vsyncpa [#allocation9 + $0x1], 1 }
 0xa80   :  { %8121 = vsyncpa [#allocation10], 1 }
 0xa81   :  { %8123 = vsyncpa [#allocation10 + $0x1], 1 }

</bundles_post_ra>
